<compile_context>
chip_gen: v7x
topology: tpu7x:2x2x1
jax: 0.10.0
libtpu: 0.0.40
codegen_flags: <defaults>
</compile_context>

<pallas_src>
import functools

import jax
import jax.numpy as jnp
from jax import lax
from jax.experimental import pallas as pl
from jax.experimental.pallas import tpu as pltpu


def _upsample_kernel(x_main_ref, x_halo1_ref, x_halo2_ref, wt_ref, b_ref,
                     a_ref, o_ref, win_ref, patch_ref, *, TH, W, C, COUT, s):
    """One (batch, H-tile) grid step.

    x_main_ref : (1, TH, W+2, C) bf16   padded input rows [h*TH, h*TH+TH)
    x_halo1_ref: (1, 1,  W+2, C) bf16   padded input row   h*TH+TH
    x_halo2_ref: (1, 1,  W+2, C) bf16   padded input row   h*TH+TH+1
    wt_ref     : (COUT, 9*C)     bf16   folded conv weights, K order (ky,kx,c)
    b_ref      : (COUT, 1)       f32    bias column
    a_ref      : (1,)            f32    shared PReLU alpha (SMEM)
    o_ref      : (1, C, TH*s, W*s) f32  pixel-shuffled NCHW output tile
    win_ref    : (TH+2, W+2, C)  bf16   VMEM scratch: assembled halo window
    patch_ref  : (TH*W, 9*C)     bf16   VMEM scratch: im2col patch
    """
    # Assemble the (TH+2)-row halo window in VMEM (one main copy + 2 rows).
    win_ref[0:TH] = x_main_ref[0]
    win_ref[TH] = x_halo1_ref[0, 0]
    win_ref[TH + 1] = x_halo2_ref[0, 0]

    # im2col: 9 sliced stores into the patch scratch (K order = (ky, kx, c)).
    for ky in range(3):
        for kx in range(3):
            k = ky * 3 + kx
            piece = win_ref[ky:ky + TH, kx:kx + W, :]           # (TH, W, C)
            patch_ref[:, k * C:(k + 1) * C] = piece.reshape(TH * W, C)

    # Single MXU contraction: (COUT, 9C) x (TH*W, 9C)^T -> (COUT, TH*W), f32.
    acc = lax.dot_general(
        wt_ref[...], patch_ref[...],
        dimension_numbers=(((1,), (1,)), ((), ())),
        preferred_element_type=jnp.float32)

    y = acc + b_ref[...]                          # bias, lane-dense VPU op
    alpha = a_ref[0]                              # scalar from SMEM
    y = jnp.where(y >= 0.0, y, alpha * y)         # PReLU (shared parameter)

    # Fused PixelShuffle + NCHW assembly:
    #   y[c*s*s + i*s + j, th*W + w] -> o[c, th*s + i, w*s + j]
    y = y.reshape(C, s, s, TH, W)
    y = jnp.transpose(y, (0, 3, 1, 4, 2))         # (C, TH, s, W, s)
    o_ref[0] = y.reshape(C, TH * s, W * s).astype(o_ref.dtype)


def _round_up(x, m):
    return -(-x // m) * m


def _vmem_bytes_estimate(TH, W, C, COUT, s):
    """Rough per-step VMEM footprint including (sublane, lane) padding of the
    minor two dims (bf16 tiles pad to (16,128), f32 to (8,128))."""
    c_lanes = _round_up(C, 128)
    k_lanes = _round_up(9 * C, 128)
    row = _round_up(W + 2, 16) * c_lanes * 2            # one padded bf16 input row
    main = 2 * TH * row                                 # double-buffered main block
    halo = 2 * 2 * row                                  # two 1-row halo blocks
    wgt = 2 * _round_up(COUT, 16) * k_lanes * 2
    outb = 2 * C * _round_up(TH * s, 8) * _round_up(W * s, 128) * 4
    win = (TH + 2) * row                                # halo-window scratch
    patch = _round_up(TH * W, 16) * k_lanes * 2         # im2col scratch
    acc = 3 * _round_up(COUT, 8) * _round_up(TH * W, 128) * 4  # acc + shuffle temps
    return main + halo + wgt + outb + win + patch + acc


def _pick_tile_h(H, W, C, COUT, s, n_batch, budget_bytes=24 * 1024 * 1024):
    """Largest H-tile that (a) divides H, (b) keeps the output block legal
    (TH*s % 8 == 0 or TH == H), (c) fits a conservative (v7x-safe) VMEM
    budget; prefers >= 2 grid points so both v7x TensorCores get work."""
    legal = [th for th in range(1, H + 1)
             if H % th == 0 and ((th * s) % 8 == 0 or th == H)]
    fitting = [th for th in legal
               if _vmem_bytes_estimate(th, W, C, COUT, s) <= budget_bytes]
    pool = fitting if fitting else legal
    th = max(pool)
    if n_batch * (H // th) < 2:                  # keep both v7x TCs busy
        multi = [t for t in pool if H // t >= 2]
        if multi:
            th = max(multi)
    return th


def upsample_block_forward(x_nchw, weight_hwio, bias, alpha, scale_factor):
    """x_nchw (N, C, H, W) f32 -> (N, C, H*s, W*s) f32, matching
    Conv2d(C, C*s*s, 3, padding=1) -> PixelShuffle(s) -> PReLU()."""
    N, C, H, W = x_nchw.shape
    s = int(scale_factor)
    COUT = C * s * s
    assert weight_hwio.shape == (3, 3, C, COUT)

    TH = _pick_tile_h(H, W, C, COUT, s, N)
    n_h = H // TH

    # NCHW -> NHWC (channels minor for the folded-K contraction), zero-pad H/W
    # by 1, cast matmul operands to bf16 (f32 accumulation in the kernel).
    x_nhwc = jnp.transpose(x_nchw, (0, 2, 3, 1)).astype(jnp.bfloat16)
    x_pad = jnp.pad(x_nhwc, ((0, 0), (1, 1), (1, 1), (0, 0)))   # (N, H+2, W+2, C)

    # Fold the 3x3 taps into the contraction dim: (3,3,C,COUT) -> (COUT, 9C).
    w_t = weight_hwio.reshape(9 * C, COUT).T.astype(jnp.bfloat16)
    b2 = bias.reshape(COUT, 1).astype(jnp.float32)
    a1 = jnp.asarray(alpha, jnp.float32).reshape(1)

    kernel = functools.partial(
        _upsample_kernel, TH=TH, W=W, C=C, COUT=COUT, s=s)

    # NOTE: x_pad is passed three times (same HBM buffer, no copies): one
    # TH-row main block plus two single-row halo blocks per grid step.
    # TODO(synk): if a profile still shows exposed DMA on the skinny halo rows,
    # add pipeline_mode=pl.Buffered(3) on the two halo BlockSpecs.
    return pl.pallas_call(
        kernel,
        out_shape=jax.ShapeDtypeStruct((N, C, H * s, W * s), jnp.float32),
        grid_spec=pltpu.PrefetchScalarGridSpec(
            num_scalar_prefetch=0,
            grid=(N, n_h),
            in_specs=[
                pl.BlockSpec((1, TH, W + 2, C), lambda n, h: (n, h, 0, 0)),
                pl.BlockSpec((1, 1, W + 2, C),
                             lambda n, h: (n, h * TH + TH, 0, 0)),
                pl.BlockSpec((1, 1, W + 2, C),
                             lambda n, h: (n, h * TH + TH + 1, 0, 0)),
                pl.BlockSpec((COUT, 9 * C), lambda n, h: (0, 0)),
                pl.BlockSpec((COUT, 1), lambda n, h: (0, 0)),
                pl.BlockSpec(memory_space=pltpu.MemorySpace.SMEM),
            ],
            out_specs=pl.BlockSpec((1, C, TH * s, W * s),
                                   lambda n, h: (n, 0, h, 0)),
            scratch_shapes=[
                pltpu.VMEM((TH + 2, W + 2, C), jnp.bfloat16),   # halo window
                pltpu.VMEM((TH * W, 9 * C), jnp.bfloat16),      # im2col patch
            ],
        ),
        compiler_params=pltpu.CompilerParams(
            dimension_semantics=("parallel", "parallel"),
            # 48 MiB is safe on v7x's 64 MiB physical VMEM; v5e/v6e (128 MiB)
            # can raise this together with the _pick_tile_h budget.
            vmem_limit_bytes=48 * 1024 * 1024),
    )(x_pad, x_pad, x_pad, w_t, b2, a1)


def _reference_forward(x_nchw, weight_hwio, bias, alpha, s):
    """Pure-JAX reference (lax.conv, same bf16 operands / f32 accumulation)."""
    N, C, H, W = x_nchw.shape
    COUT = C * s * s
    x_nhwc = jnp.transpose(x_nchw, (0, 2, 3, 1)).astype(jnp.bfloat16)
    w = weight_hwio.astype(jnp.bfloat16)
    conv = lax.conv_general_dilated(
        x_nhwc, w, window_strides=(1, 1), padding=((1, 1), (1, 1)),
        dimension_numbers=("NHWC", "HWIO", "NHWC"),
        preferred_element_type=jnp.float32)
    conv = conv + bias.reshape(1, 1, 1, COUT).astype(jnp.float32)
    y = conv.reshape(N, H, W, C, s, s)
    y = jnp.transpose(y, (0, 3, 1, 4, 2, 5)).reshape(N, C, H * s, W * s)
    return jnp.where(y >= 0, y, alpha * y)


if __name__ == "__main__":
    key = jax.random.PRNGKey(0)
    k_x, k_w, k_b = jax.random.split(key, 3)

    N, C, H, W = 2, 4, 16, 16
    scale = 2
    COUT = C * scale * scale

    x = jax.random.normal(k_x, (N, C, H, W), dtype=jnp.float32)
    # Deterministic synthetic parameters (PyTorch-like small uniform init).
    weight = (jax.random.uniform(k_w, (3, 3, C, COUT), jnp.float32) - 0.5) * 0.3
    bias = (jax.random.uniform(k_b, (COUT,), jnp.float32) - 0.5) * 0.1
    alpha = jnp.float32(0.25)  # nn.PReLU() default init

    out = upsample_block_forward(x, weight, bias, alpha, scale)
    out = jax.block_until_ready(out)

    ref = _reference_forward(x, weight, bias, alpha, scale)
    assert out.shape == (N, C, H * scale, W * scale)
    max_err = float(jnp.max(jnp.abs(out - ref)))
    assert jnp.allclose(out, ref, atol=2e-4, rtol=2e-4), (
        f"mismatch vs reference, max err {max_err}")

    print("KERNEL_OK")
</pallas_src>

<mosaic_0001>
module attributes {stable_mosaic.version = 11 : i64} {
  func.func @_upsample_kernel(%arg0: i32, %arg1: i32, %arg2: memref<1x16x18x4xbf16, #tpu.memory_space<vmem>>, %arg3: memref<1x1x18x4xbf16, #tpu.memory_space<vmem>>, %arg4: memref<1x1x18x4xbf16, #tpu.memory_space<vmem>>, %arg5: memref<16x36xbf16, #tpu.memory_space<vmem>>, %arg6: memref<16x1xf32, #tpu.memory_space<vmem>>, %arg7: memref<1xf32, #tpu.memory_space<smem>>, %arg8: memref<1x4x32x32xf32, #tpu.memory_space<vmem>>, %arg9: memref<18x18x4xbf16, #tpu.memory_space<vmem>>, %arg10: memref<256x36xbf16, #tpu.memory_space<vmem>>) attributes {dimension_semantics = [#tpu.dimension_semantics<parallel>, #tpu.dimension_semantics<parallel>], iteration_bounds = array<i64: 2, 1>, scalar_prefetch = 0 : i64, scratch_operands = 2 : i64, tpu.core_type = #tpu.core_type<tc>, window_params = [{transform_indices = @transform_0, window_bounds = array<i64: 1, 16, 18, 4>}, {transform_indices = @transform_1, window_bounds = array<i64: 1, 1, 18, 4>}, {transform_indices = @transform_2, window_bounds = array<i64: 1, 1, 18, 4>}, {pipeline_mode = #tpu.pipeline_mode<synchronous>, transform_indices = @transform_3, window_bounds = array<i64: 16, 36>}, {pipeline_mode = #tpu.pipeline_mode<synchronous>, transform_indices = @transform_4, window_bounds = array<i64: 16, 1>}, {transform_indices = @transform_5, window_bounds = array<i64: 1>}, {transform_indices = @transform_6, window_bounds = array<i64: 1, 4, 32, 32>}]} {
    %c0 = arith.constant 0 : index
    %c0_0 = arith.constant 0 : index
    %c0_1 = arith.constant 0 : index
    %c0_2 = arith.constant 0 : index
    %0 = vector.load %arg2[%c0, %c0_0, %c0_1, %c0_2] : memref<1x16x18x4xbf16, #tpu.memory_space<vmem>>, vector<1x16x18x4xbf16>
    %1 = vector.shape_cast %0 : vector<1x16x18x4xbf16> to vector<16x18x4xbf16>
    %c0_3 = arith.constant 0 : index
    %c0_4 = arith.constant 0 : index
    %c0_5 = arith.constant 0 : index
    %2 = vector.load %arg9[%c0_3, %c0_4, %c0_5] : memref<18x18x4xbf16, #tpu.memory_space<vmem>>, vector<16x18x4xbf16>
    tpu.vector_store %arg9[%c0_3, %c0_4, %c0_5], %1 {strides = array<i32>} : memref<18x18x4xbf16, #tpu.memory_space<vmem>>, vector<16x18x4xbf16>,
    %c0_6 = arith.constant 0 : index
    %c0_7 = arith.constant 0 : index
    %c0_8 = arith.constant 0 : index
    %c0_9 = arith.constant 0 : index
    %3 = vector.load %arg3[%c0_6, %c0_7, %c0_8, %c0_9] : memref<1x1x18x4xbf16, #tpu.memory_space<vmem>>, vector<1x1x18x4xbf16>
    %4 = vector.shape_cast %3 : vector<1x1x18x4xbf16> to vector<18x4xbf16>
    %c16 = arith.constant 16 : index
    %c0_10 = arith.constant 0 : index
    %c0_11 = arith.constant 0 : index
    %5 = vector.load %arg9[%c16, %c0_10, %c0_11] : memref<18x18x4xbf16, #tpu.memory_space<vmem>>, vector<1x18x4xbf16>
    %6 = vector.shape_cast %5 : vector<1x18x4xbf16> to vector<18x4xbf16>
    %7 = vector.shape_cast %4 : vector<18x4xbf16> to vector<1x18x4xbf16>
    tpu.vector_store %arg9[%c16, %c0_10, %c0_11], %7 {strides = array<i32>} : memref<18x18x4xbf16, #tpu.memory_space<vmem>>, vector<1x18x4xbf16>,
    %c0_12 = arith.constant 0 : index
    %c0_13 = arith.constant 0 : index
    %c0_14 = arith.constant 0 : index
    %c0_15 = arith.constant 0 : index
    %8 = vector.load %arg4[%c0_12, %c0_13, %c0_14, %c0_15] : memref<1x1x18x4xbf16, #tpu.memory_space<vmem>>, vector<1x1x18x4xbf16>
    %9 = vector.shape_cast %8 : vector<1x1x18x4xbf16> to vector<18x4xbf16>
    %c17 = arith.constant 17 : index
    %c0_16 = arith.constant 0 : index
    %c0_17 = arith.constant 0 : index
    %10 = vector.load %arg9[%c17, %c0_16, %c0_17] : memref<18x18x4xbf16, #tpu.memory_space<vmem>>, vector<1x18x4xbf16>
    %11 = vector.shape_cast %10 : vector<1x18x4xbf16> to vector<18x4xbf16>
    %12 = vector.shape_cast %9 : vector<18x4xbf16> to vector<1x18x4xbf16>
    tpu.vector_store %arg9[%c17, %c0_16, %c0_17], %12 {strides = array<i32>} : memref<18x18x4xbf16, #tpu.memory_space<vmem>>, vector<1x18x4xbf16>,
    %c0_18 = arith.constant 0 : index
    %c0_19 = arith.constant 0 : index
    %c0_20 = arith.constant 0 : index
    %13 = vector.load %arg9[%c0_18, %c0_19, %c0_20] : memref<18x18x4xbf16, #tpu.memory_space<vmem>>, vector<16x16x4xbf16>
    %14 = vector.shape_cast %13 : vector<16x16x4xbf16> to vector<256x4xbf16>
    %c0_21 = arith.constant 0 : index
    %c0_22 = arith.constant 0 : index
    %15 = vector.load %arg10[%c0_21, %c0_22] : memref<256x36xbf16, #tpu.memory_space<vmem>>, vector<256x4xbf16>
    tpu.vector_store %arg10[%c0_21, %c0_22], %14 {strides = array<i32>} : memref<256x36xbf16, #tpu.memory_space<vmem>>, vector<256x4xbf16>,
    %c0_23 = arith.constant 0 : index
    %c1 = arith.constant 1 : index
    %c0_24 = arith.constant 0 : index
    %16 = vector.load %arg9[%c0_23, %c1, %c0_24] : memref<18x18x4xbf16, #tpu.memory_space<vmem>>, vector<16x16x4xbf16>
    %17 = vector.shape_cast %16 : vector<16x16x4xbf16> to vector<256x4xbf16>
    %c0_25 = arith.constant 0 : index
    %c4 = arith.constant 4 : index
    %18 = vector.load %arg10[%c0_25, %c4] : memref<256x36xbf16, #tpu.memory_space<vmem>>, vector<256x4xbf16>
    tpu.vector_store %arg10[%c0_25, %c4], %17 {strides = array<i32>} : memref<256x36xbf16, #tpu.memory_space<vmem>>, vector<256x4xbf16>,
    %c0_26 = arith.constant 0 : index
    %c2 = arith.constant 2 : index
    %c0_27 = arith.constant 0 : index
    %19 = vector.load %arg9[%c0_26, %c2, %c0_27] : memref<18x18x4xbf16, #tpu.memory_space<vmem>>, vector<16x16x4xbf16>
    %20 = vector.shape_cast %19 : vector<16x16x4xbf16> to vector<256x4xbf16>
    %c0_28 = arith.constant 0 : index
    %c8 = arith.constant 8 : index
    %21 = vector.load %arg10[%c0_28, %c8] : memref<256x36xbf16, #tpu.memory_space<vmem>>, vector<256x4xbf16>
    tpu.vector_store %arg10[%c0_28, %c8], %20 {strides = array<i32>} : memref<256x36xbf16, #tpu.memory_space<vmem>>, vector<256x4xbf16>,
    %c1_29 = arith.constant 1 : index
    %c0_30 = arith.constant 0 : index
    %c0_31 = arith.constant 0 : index
    %22 = vector.load %arg9[%c1_29, %c0_30, %c0_31] : memref<18x18x4xbf16, #tpu.memory_space<vmem>>, vector<16x16x4xbf16>
    %23 = vector.shape_cast %22 : vector<16x16x4xbf16> to vector<256x4xbf16>
    %c0_32 = arith.constant 0 : index
    %c12 = arith.constant 12 : index
    %24 = vector.load %arg10[%c0_32, %c12] : memref<256x36xbf16, #tpu.memory_space<vmem>>, vector<256x4xbf16>
    tpu.vector_store %arg10[%c0_32, %c12], %23 {strides = array<i32>} : memref<256x36xbf16, #tpu.memory_space<vmem>>, vector<256x4xbf16>,
    %c1_33 = arith.constant 1 : index
    %c1_34 = arith.constant 1 : index
    %c0_35 = arith.constant 0 : index
    %25 = vector.load %arg9[%c1_33, %c1_34, %c0_35] : memref<18x18x4xbf16, #tpu.memory_space<vmem>>, vector<16x16x4xbf16>
    %26 = vector.shape_cast %25 : vector<16x16x4xbf16> to vector<256x4xbf16>
    %c0_36 = arith.constant 0 : index
    %c16_37 = arith.constant 16 : index
    %27 = vector.load %arg10[%c0_36, %c16_37] : memref<256x36xbf16, #tpu.memory_space<vmem>>, vector<256x4xbf16>
    tpu.vector_store %arg10[%c0_36, %c16_37], %26 {strides = array<i32>} : memref<256x36xbf16, #tpu.memory_space<vmem>>, vector<256x4xbf16>,
    %c1_38 = arith.constant 1 : index
    %c2_39 = arith.constant 2 : index
    %c0_40 = arith.constant 0 : index
    %28 = vector.load %arg9[%c1_38, %c2_39, %c0_40] : memref<18x18x4xbf16, #tpu.memory_space<vmem>>, vector<16x16x4xbf16>
    %29 = vector.shape_cast %28 : vector<16x16x4xbf16> to vector<256x4xbf16>
    %c0_41 = arith.constant 0 : index
    %c20 = arith.constant 20 : index
    %30 = vector.load %arg10[%c0_41, %c20] : memref<256x36xbf16, #tpu.memory_space<vmem>>, vector<256x4xbf16>
    tpu.vector_store %arg10[%c0_41, %c20], %29 {strides = array<i32>} : memref<256x36xbf16, #tpu.memory_space<vmem>>, vector<256x4xbf16>,
    %c2_42 = arith.constant 2 : index
    %c0_43 = arith.constant 0 : index
    %c0_44 = arith.constant 0 : index
    %31 = vector.load %arg9[%c2_42, %c0_43, %c0_44] : memref<18x18x4xbf16, #tpu.memory_space<vmem>>, vector<16x16x4xbf16>
    %32 = vector.shape_cast %31 : vector<16x16x4xbf16> to vector<256x4xbf16>
    %c0_45 = arith.constant 0 : index
    %c24 = arith.constant 24 : index
    %33 = vector.load %arg10[%c0_45, %c24] : memref<256x36xbf16, #tpu.memory_space<vmem>>, vector<256x4xbf16>
    tpu.vector_store %arg10[%c0_45, %c24], %32 {strides = array<i32>} : memref<256x36xbf16, #tpu.memory_space<vmem>>, vector<256x4xbf16>,
    %c2_46 = arith.constant 2 : index
    %c1_47 = arith.constant 1 : index
    %c0_48 = arith.constant 0 : index
    %34 = vector.load %arg9[%c2_46, %c1_47, %c0_48] : memref<18x18x4xbf16, #tpu.memory_space<vmem>>, vector<16x16x4xbf16>
    %35 = vector.shape_cast %34 : vector<16x16x4xbf16> to vector<256x4xbf16>
    %c0_49 = arith.constant 0 : index
    %c28 = arith.constant 28 : index
    %36 = vector.load %arg10[%c0_49, %c28] : memref<256x36xbf16, #tpu.memory_space<vmem>>, vector<256x4xbf16>
    tpu.vector_store %arg10[%c0_49, %c28], %35 {strides = array<i32>} : memref<256x36xbf16, #tpu.memory_space<vmem>>, vector<256x4xbf16>,
    %c2_50 = arith.constant 2 : index
    %c2_51 = arith.constant 2 : index
    %c0_52 = arith.constant 0 : index
    %37 = vector.load %arg9[%c2_50, %c2_51, %c0_52] : memref<18x18x4xbf16, #tpu.memory_space<vmem>>, vector<16x16x4xbf16>
    %38 = vector.shape_cast %37 : vector<16x16x4xbf16> to vector<256x4xbf16>
    %c0_53 = arith.constant 0 : index
    %c32 = arith.constant 32 : index
    %39 = vector.load %arg10[%c0_53, %c32] : memref<256x36xbf16, #tpu.memory_space<vmem>>, vector<256x4xbf16>
    tpu.vector_store %arg10[%c0_53, %c32], %38 {strides = array<i32>} : memref<256x36xbf16, #tpu.memory_space<vmem>>, vector<256x4xbf16>,
    %c0_54 = arith.constant 0 : index
    %c0_55 = arith.constant 0 : index
    %40 = vector.load %arg5[%c0_54, %c0_55] : memref<16x36xbf16, #tpu.memory_space<vmem>>, vector<16x36xbf16>
    %c0_56 = arith.constant 0 : index
    %c0_57 = arith.constant 0 : index
    %41 = vector.load %arg10[%c0_56, %c0_57] : memref<256x36xbf16, #tpu.memory_space<vmem>>, vector<256x36xbf16>
    %cst = arith.constant dense<0.000000e+00> : vector<16x256xf32>
    %42 = tpu.matmul %40, %41, %cst {dimension_numbers = #tpu.dot_dimension_numbers<[1], [1], [0], [0], [0, 0, 1, 0], [], []>} : vector<16x36xbf16>, vector<256x36xbf16>, vector<16x256xf32> -> vector<16x256xf32>
    %c0_58 = arith.constant 0 : index
    %c0_59 = arith.constant 0 : index
    %43 = vector.load %arg6[%c0_58, %c0_59] : memref<16x1xf32, #tpu.memory_space<vmem>>, vector<16x1xf32>
    %44 = vector.broadcast %43 : vector<16x1xf32> to vector<16x256xf32>
    %45 = arith.addf %42, %44 : vector<16x256xf32>
    %c0_60 = arith.constant 0 : index
    %46 = memref.load %arg7[%c0_60] : memref<1xf32, #tpu.memory_space<smem>>
    %cst_61 = arith.constant 0.000000e+00 : f32
    %47 = vector.broadcast %cst_61 : f32 to vector<16x256xf32>
    %48 = arith.cmpf oge, %45, %47 : vector<16x256xf32>
    %49 = vector.broadcast %46 : f32 to vector<16x256xf32>
    %50 = arith.mulf %49, %45 : vector<16x256xf32>
    %51 = arith.select %48, %45, %50 : vector<16x256xi1>, vector<16x256xf32>
    %52 = vector.shape_cast %51 : vector<16x256xf32> to vector<4x2x2x16x16xf32>
    %53 = tpu.transpose %52, [0, 3, 1, 4, 2] : vector<4x2x2x16x16xf32> -> vector<4x16x2x16x2xf32>
    %54 = vector.shape_cast %53 : vector<4x16x2x16x2xf32> to vector<4x32x32xf32>
    %c0_62 = arith.constant 0 : index
    %c0_63 = arith.constant 0 : index
    %c0_64 = arith.constant 0 : index
    %c0_65 = arith.constant 0 : index
    %55 = vector.load %arg8[%c0_62, %c0_63, %c0_64, %c0_65] : memref<1x4x32x32xf32, #tpu.memory_space<vmem>>, vector<1x4x32x32xf32>
    %56 = vector.shape_cast %55 : vector<1x4x32x32xf32> to vector<4x32x32xf32>
    %57 = vector.shape_cast %54 : vector<4x32x32xf32> to vector<1x4x32x32xf32>
    tpu.vector_store %arg8[%c0_62, %c0_63, %c0_64, %c0_65], %57 {strides = array<i32>} : memref<1x4x32x32xf32, #tpu.memory_space<vmem>>, vector<1x4x32x32xf32>,
    return
  }
  func.func @transform_0(%arg0: i32, %arg1: i32) -> (i32, i32, i32, i32) {
    %c0_i32 = arith.constant 0 : i32
    %c0_i32_0 = arith.constant 0 : i32
    %c0_i32_1 = arith.constant 0 : i32
    return %arg0, %arg1, %c0_i32, %c0_i32_0 : i32, i32, i32, i32
  }
  func.func @transform_1(%arg0: i32, %arg1: i32) -> (i32, i32, i32, i32) {
    %c16_i32 = arith.constant 16 : i32
    %0 = arith.muli %arg1, %c16_i32 : i32
    %c16_i32_0 = arith.constant 16 : i32
    %1 = arith.addi %0, %c16_i32_0 : i32
    %c0_i32 = arith.constant 0 : i32
    %c0_i32_1 = arith.constant 0 : i32
    %c0_i32_2 = arith.constant 0 : i32
    return %arg0, %1, %c0_i32, %c0_i32_1 : i32, i32, i32, i32
  }
  func.func @transform_2(%arg0: i32, %arg1: i32) -> (i32, i32, i32, i32) {
    %c16_i32 = arith.constant 16 : i32
    %0 = arith.muli %arg1, %c16_i32 : i32
    %c16_i32_0 = arith.constant 16 : i32
    %1 = arith.addi %0, %c16_i32_0 : i32
    %c1_i32 = arith.constant 1 : i32
    %2 = arith.addi %1, %c1_i32 : i32
    %c0_i32 = arith.constant 0 : i32
    %c0_i32_1 = arith.constant 0 : i32
    %c0_i32_2 = arith.constant 0 : i32
    return %arg0, %2, %c0_i32, %c0_i32_1 : i32, i32, i32, i32
  }
  func.func @transform_3(%arg0: i32, %arg1: i32) -> (i32, i32) {
    %c0_i32 = arith.constant 0 : i32
    %c0_i32_0 = arith.constant 0 : i32
    %c0_i32_1 = arith.constant 0 : i32
    return %c0_i32, %c0_i32_0 : i32, i32
  }
  func.func @transform_4(%arg0: i32, %arg1: i32) -> (i32, i32) {
    %c0_i32 = arith.constant 0 : i32
    %c0_i32_0 = arith.constant 0 : i32
    %c0_i32_1 = arith.constant 0 : i32
    return %c0_i32, %c0_i32_0 : i32, i32
  }
  func.func @transform_5(%arg0: i32, %arg1: i32) -> i32 {
    %c0_i32 = arith.constant 0 : i32
    %c0_i32_0 = arith.constant 0 : i32
    return %c0_i32 : i32
  }
  func.func @transform_6(%arg0: i32, %arg1: i32) -> (i32, i32, i32, i32) {
    %c0_i32 = arith.constant 0 : i32
    %c0_i32_0 = arith.constant 0 : i32
    %c0_i32_1 = arith.constant 0 : i32
    return %arg0, %c0_i32, %arg1, %c0_i32_0 : i32, i32, i32, i32
  }
}

</mosaic_0001>

<bundles_post_ra>
// kernel: tpu_custom_call.1
= control target key start
LH: loop header
LB: loop body
LE: loop exit
PB: predicated region body
PF: predicated region fallthrough
CT: control target
= control target key end

     0   :  { %s28311_s0 = inlined_call_operand.vmem [shape: bf16[2,18,18,4], index: 0, kind: input, shape index: {}]   ;;  %s28312_s1 = inlined_call_operand.vmem [shape: bf16[2,18,18,4], index: 1, kind: input, shape index: {}]   ;;  %s28313_s2 = inlined_call_operand.vmem [shape: bf16[2,18,18,4], index: 2, kind: input, shape index: {}]   ;;  %s28314_s3 = inlined_call_operand.vmem [shape: bf16[16,36], index: 3, kind: input, shape index: {}]   ;;  %s28315_s4 = inlined_call_operand.vmem [shape: f32[16,1], index: 4, kind: input, shape index: {}]   ;;  %s28316_s5 = inlined_call_operand.<no memory space> [shape: f32[1], index: 5, kind: input, shape index: {}]   ;;  %s28317_s6 = inlined_call_operand.hbm [shape: f32[2,4,32,32], index: 6, kind: output, shape index: {}]  }
   0x1   :  { %11 = sst [smem:[#allocation4]] %s28316_s5 }
   0x2   :  { %12 = vsyncpa [#allocation6], 0 }
   0x3   :  { %14 = vsyncpa [#allocation6 + $0x1], 0  ;;  %s20658_s23 = smov 0   ;;  %s20660_s24 = smov 0  }
   0x4   :  { %s20662_s25 = smov 0   ;;  %s20664_s26 = smov 0  }
   0x5   :  { %s20666_s27 = smov 0   ;;  %s20668_s28 = smov 0  }
   0x6 LB: > { %s20139_s5 = sadd.s32 4294967295, %s20591_s28   ;;  %s20140_s29 = sadd.s32 4294967294, %s20591_s28   ;;  %s20591_s28 = sphi %s20668_s28, %s20_s28   ;;  %s20587_s27 = sphi %s20666_s27, %s30050_s27   ;;  %s20583_s26 = sphi %s20664_s26, %s30049_s26   ;;  %s20579_s25 = sphi %s20662_s25, %s30048_s25   ;;  %s20575_s24 = sphi %s20660_s24, %s30047_s24   ;;  %s20571_s23 = sphi %s20658_s23, %s30046_s23  }
   0x7   : > { %s32_s30 = sadd.s32 1, %s20587_s27  ;;  %s196_s7 = sadd.s32 1, %s20579_s25 }
   0x8   : > { %p34_p0 = scmp.ge.s32.totalorder %s32_s30, 2  ;;  %p206_p1 = scmp.ne.s32.totalorder %s20579_s25, %s20575_s24 }
   0x9   : > { %p207_p2 = scmp.eq.s32.totalorder %s20139_s5, 1  ;;  %p212_p3 = scmp.ne.s32.totalorder %s20575_s24, %s20571_s23 }
   0xa   : > { %s30052_s30 = smov (%p34_p0, %s32_s30), 0  ;;  %p213_p5 = scmp.eq.s32.totalorder %s20140_s29, 1 }
   0xb   : > { %p20698_p4 = por %p207_p2, %p206_p1  ;;  %s191_s9 = ssub.s32 %s20587_s27, %s30052_s30 }
   0xc   : > { %p20143_p6 = scmp.ge.s32.totalorder %s20591_s28, 1  ;;  %p194_p7 = scmp.eq.s32.totalorder %s191_s9, 0 }
   0xd   : > { %p20705_p8 = por %p213_p5, %p212_p3  ;;  %p296_p9 = scmp.lt.s32.totalorder %s20591_s28, 3 }
   0xe   : > { %s20711_s11 = scalar_select %p194_p7, %s20579_s25, %s196_s7  }
   0xf   : > { %p297_p10 = pnand %p20143_p6, %p296_p9 }
  0x11   : > { %300 = sbr.rel (%p297_p10) target bundleno = 2277 (0x8e5), region = 44 }
  0x18   : > { %p364_p11 = scmp.lt.s32.totalorder %s20583_s26, 1  ;;  %vm455_vm0 = vcmask 27648   ;;  %vm458_vm1 = vcmask 24576   ;;  %vm712_vm2 = vsmask.f32 3328  ;;  %s20593_s17 = smov 4  }
  0x19   : > { %vm713_vm3 = vsmask.f32 7440  ;;  %vm1308_vm5 = vcmask 1042432   ;;  %vm1309_vm6 = vcmask 1046532   ;;  %s20594_s18 = smov 8   ;;  %vm647_vm8 = vcmask 31744  }
  0x1a   : > { %s365_s12 = scalar_select %p364_p11, %s20583_s26, 1  ;;  %vm20773_vm4 = vmor %vm712_vm2, %vm713_vm3  ;;  %vm1195_vm9 = vcmask 64544   ;;  %vm1519_vm10 = vcmask 97344   ;;  %vm1697_vm11 = vcmask 130144   ;;  %vm2242_vm12 = vcmask 162944  }
  0x1b   : > { %vm20895_vm7 = vmor %vm1308_vm5, %vm1309_vm6  ;;  %s20595_s5 = smov 12   ;;  %s20596_s29 = smov 16   ;;  %vm2563_vm13 = vcmask 195744   ;;  %vm2741_vm14 = vcmask 228544   ;;  %vm3286_vm15 = vcmask 261344   ;;  %vm19728_vm6 = vcmask 15360  }
  0x1c   : > { %s20715_s13 = smul.u32 216, %s365_s12  ;;  %s20597_s7 = smov 20  }
  0x1d   : > { %s20598_s12 = smov 24   ;;  %s20602_s20 = smov 112  }
  0x1e   : > { %s20721_s16 = scalar_lea.vmem %s28311_s0, %s20715_s13  ;;  %s20348_s19 = sadd.s32 192, %s20715_s13 }
  0x1f   : > { %v407_v0 = vld [vmem:[%s20721_s16] sm:$0xf]  ;;  %v408_v1 = vld [vmem:[%s20721_s16 + $0x4] sm:$0xf]  ;;  %v409_v2 = vld [vmem:[%s20721_s16 + $0x8] sm:$0x1]  ;;  %s389_s22 = scalar_lea.vmem %s28312_s1, %s20348_s19 }
  0x20   : > { %456 = vst.msk [vmem:[#allocation2] sm:$0xf] %vm455_vm0, %v407_v0  ;;  %457 = vst.msk [vmem:[#allocation2 + $0x4] sm:$0xf] %vm455_vm0, %v408_v1  ;;  %v410_v3 = vld [vmem:[%s20721_s16 + $0xc] sm:$0xf] }
  0x21   : > { %459 = vst.msk [vmem:[#allocation2 + $0x8] sm:$0x1] %vm458_vm1, %v409_v2  ;;  %v411_v4 = vld [vmem:[%s20721_s16 + $0x10] sm:$0xf]  ;;  %v412_v5 = vld [vmem:[%s20721_s16 + $0x14] sm:$0x1] }
  0x22   : > { %460 = vst.msk [vmem:[#allocation2 + $0xc] sm:$0xf] %vm455_vm0, %v410_v3  ;;  %461 = vst.msk [vmem:[#allocation2 + $0x10] sm:$0xf] %vm455_vm0, %v411_v4  ;;  %v413_v6 = vld [vmem:[%s20721_s16 + $0x18] sm:$0xf] }
  0x23   : > { %462 = vst.msk [vmem:[#allocation2 + $0x14] sm:$0x1] %vm458_vm1, %v412_v5  ;;  %v414_v7 = vld [vmem:[%s20721_s16 + $0x1c] sm:$0xf]  ;;  %v415_v8 = vld [vmem:[%s20721_s16 + $0x20] sm:$0x1] }
  0x24   : > { %463 = vst.msk [vmem:[#allocation2 + $0x18] sm:$0xf] %vm455_vm0, %v413_v6  ;;  %464 = vst.msk [vmem:[#allocation2 + $0x1c] sm:$0xf] %vm455_vm0, %v414_v7  ;;  %v419_v9 = vld [vmem:[%s20721_s16 + $0x30] sm:$0xf] }
  0x25   : > { %465 = vst.msk [vmem:[#allocation2 + $0x20] sm:$0x1] %vm458_vm1, %v415_v8  ;;  %v420_v10 = vld [vmem:[%s20721_s16 + $0x34] sm:$0xf]  ;;  %v421_v11 = vld [vmem:[%s20721_s16 + $0x38] sm:$0x1] }
  0x26   : > { %469 = vst.msk [vmem:[#allocation2 + $0x30] sm:$0xf] %vm455_vm0, %v419_v9  ;;  %470 = vst.msk [vmem:[#allocation2 + $0x34] sm:$0xf] %vm455_vm0, %v420_v10  ;;  %v416_v12 = vld [vmem:[%s20721_s16 + $0x24] sm:$0xf] }
  0x27   : > { %471 = vst.msk [vmem:[#allocation2 + $0x38] sm:$0x1] %vm458_vm1, %v421_v11  ;;  %v417_v13 = vld [vmem:[%s20721_s16 + $0x28] sm:$0xf]  ;;  %v418_v14 = vld [vmem:[%s20721_s16 + $0x2c] sm:$0x1] }
  0x28   : > { %466 = vst.msk [vmem:[#allocation2 + $0x24] sm:$0xf] %vm455_vm0, %v416_v12  ;;  %467 = vst.msk [vmem:[#allocation2 + $0x28] sm:$0xf] %vm455_vm0, %v417_v13  ;;  %v425_v15 = vld [vmem:[%s20721_s16 + $0x48] sm:$0xf] }
  0x29   : > { %468 = vst.msk [vmem:[#allocation2 + $0x2c] sm:$0x1] %vm458_vm1, %v418_v14  ;;  %v426_v16 = vld [vmem:[%s20721_s16 + $0x4c] sm:$0xf]  ;;  %v427_v17 = vld [vmem:[%s20721_s16 + $0x50] sm:$0x1] }
  0x2a   : > { %475 = vst.msk [vmem:[#allocation2 + $0x48] sm:$0xf] %vm455_vm0, %v425_v15  ;;  %476 = vst.msk [vmem:[#allocation2 + $0x4c] sm:$0xf] %vm455_vm0, %v426_v16  ;;  %v422_v18 = vld [vmem:[%s20721_s16 + $0x3c] sm:$0xf] }
  0x2b   : > { %477 = vst.msk [vmem:[#allocation2 + $0x50] sm:$0x1] %vm458_vm1, %v427_v17  ;;  %v423_v19 = vld [vmem:[%s20721_s16 + $0x40] sm:$0xf]  ;;  %v424_v20 = vld [vmem:[%s20721_s16 + $0x44] sm:$0x1] }
  0x2c   : > { %472 = vst.msk [vmem:[#allocation2 + $0x3c] sm:$0xf] %vm455_vm0, %v422_v18  ;;  %473 = vst.msk [vmem:[#allocation2 + $0x40] sm:$0xf] %vm455_vm0, %v423_v19  ;;  %v431_v21 = vld [vmem:[%s20721_s16 + $0x60] sm:$0xf] }
  0x2d   : > { %474 = vst.msk [vmem:[#allocation2 + $0x44] sm:$0x1] %vm458_vm1, %v424_v20  ;;  %v432_v22 = vld [vmem:[%s20721_s16 + $0x64] sm:$0xf]  ;;  %v433_v23 = vld [vmem:[%s20721_s16 + $0x68] sm:$0x1] }
  0x2e   : > { %v664_v24 = vld [vmem:[#allocation2] sm:$0xf]  ;;  %v665_v25 = vld [vmem:[#allocation2 + $0x4] sm:$0xf]  ;;  %v666_v26 = vld [vmem:[#allocation2 + $0x8] sm:$0x1] }
  0x2f   : > { %481 = vst.msk [vmem:[#allocation2 + $0x60] sm:$0xf] %vm455_vm0, %v431_v21  ;;  %482 = vst.msk [vmem:[#allocation2 + $0x64] sm:$0xf] %vm455_vm0, %v432_v22  ;;  %v716_v27 = vshrl.u32 %v664_v24, 16  ;;  %v719_v28 = vshll.u32 %v664_v24, 16 }
  0x30   : > { %483 = vst.msk [vmem:[#allocation2 + $0x68] sm:$0x1] %vm458_vm1, %v433_v23  ;;  %v725_v29 = vshll.u32 %v665_v25, 16  ;;  %v729_v30 = vshrl.u32 %v665_v25, 16  ;;  %v667_v31 = vld [vmem:[#allocation2 + $0xc] sm:$0xf] }
  0x31   : > { %v735_v32 = vshll.u32 %v666_v26, 16  ;;  %v668_v33 = vld [vmem:[#allocation2 + $0x10] sm:$0xf]  ;;  %v669_v34 = vld [vmem:[#allocation2 + $0x14] sm:$0x1]  ;;  %v740_v35 = vshrl.u32 %v667_v31, 16 }
  0x32   : > { %v718_v36 = vrot.slane %v716_v27, 4  ;;  %v721_v37 = vrot.slane %v719_v28, 5  ;;  %v727_v38 = vrot.slane %v725_v29, 5  ;;  %v731_v39 = vrot.slane %v729_v30, 4  ;;  %v670_v40 = vld [vmem:[#allocation2 + $0x18] sm:$0xf] }
  0x33   : > { %v737_v41 = vrot.slane %v735_v32, 5  ;;  %v742_v42 = vrot.slane %v740_v35, 4  ;;  %v743_v43 = vshll.u32 %v667_v31, 16  ;;  %v749_v44 = vshll.u32 %v668_v33, 16  ;;  %v671_v49 = vld [vmem:[#allocation2 + $0x1c] sm:$0xf] }
  0x34   : > { %v722_v45 = vor.u32 %v721_v37, %v718_v36  ;;  %v732_v46 = vor.u32 %v731_v39, %v727_v38  ;;  %v753_v47 = vshrl.u32 %v668_v33, 16  ;;  %v759_v48 = vshll.u32 %v669_v34, 16  ;;  %v672_v59 = vld [vmem:[#allocation2 + $0x20] sm:$0x1]  ;;  %v676_v0 = vld [vmem:[#allocation2 + $0x30] sm:$0xf] }
  0x35   : > { %v745_v51 = vrot.slane %v743_v43, 5  ;;  %v751_v52 = vrot.slane %v749_v44, 5  ;;  %v764_v53 = vshrl.u32 %v670_v40, 16  ;;  %v767_v54 = vshll.u32 %v670_v40, 16  ;;  %v677_v5 = vld [vmem:[#allocation2 + $0x34] sm:$0xf] }
  0x36   : > { %v723_v55 = vrot.slane %v722_v45, 4  ;;  %v733_v56 = vrot.slane %v732_v46, 4  ;;  %v755_v57 = vrot.slane %v753_v47, 4  ;;  %v761_v58 = vrot.slane %v759_v48, 5  ;;  %v678_v13 = vld [vmem:[#allocation2 + $0x38] sm:$0x1] }
  0x37   : > { %v746_v60 = vor.u32 %v745_v51, %v742_v42  ;;  %v766_v61 = vrot.slane %v764_v53, 4  ;;  %v769_v62 = vrot.slane %v767_v54, 5  ;;  %v773_v63 = vshll.u32 %v671_v49, 16  ;;  %v673_v19 = vld [vmem:[#allocation2 + $0x24] sm:$0xf]  ;;  %s20350_s9 = sadd.s32 204, %s20715_s13 }
  0x38   : > { %v728_v1 = vsel %vm20773_vm4, %v723_v55, %v727_v38  ;;  %v738_v2 = vsel %vm20773_vm4, %v733_v56, %v737_v41  ;;  %v756_v3 = vor.u32 %v755_v57, %v751_v52  ;;  %v777_v4 = vshrl.u32 %v671_v49, 16  ;;  %v674_v24 = vld [vmem:[#allocation2 + $0x28] sm:$0xf]  ;;  %v675_v29 = vld [vmem:[#allocation2 + $0x2c] sm:$0x1]  ;;  %s20599_s13 = smov 28  }
  0x39   : > { %v20164_v6 = vcombine.low %v728_v1, %v738_v2  ;;  %v747_v7 = vrot.slane %v746_v60, 4  ;;  %v770_v8 = vor.u32 %v769_v62, %v766_v61  ;;  %v775_v9 = vrot.slane %v773_v63, 5  ;;  %v682_v30 = vld [vmem:[#allocation2 + $0x48] sm:$0xf]  ;;  %v683_v35 = vld [vmem:[#allocation2 + $0x4c] sm:$0xf] }
  0x3a   : > { %v757_v10 = vrot.slane %v756_v3, 4  ;;  %v779_v11 = vrot.slane %v777_v4, 4  ;;  %v783_v12 = vshll.u32 %v672_v59, 16  ;;  %v812_v14 = vshrl.u32 %v676_v0, 16  ;;  %v428_v40 = vld [vmem:[%s20721_s16 + $0x54] sm:$0xf] }
  0x3b   : > { %1147 = vrot.lane.b32.xlu0 %v20164_v6, %s20593_s17  ;;  %v752_v15 = vsel %vm20773_vm4, %v747_v7, %v751_v52  ;;  %v771_v16 = vrot.slane %v770_v8, 4  ;;  %v815_v17 = vshll.u32 %v676_v0, 16  ;;  %v821_v18 = vshll.u32 %v677_v5, 16  ;;  %v429_v45 = vld [vmem:[%s20721_s16 + $0x58] sm:$0xf]  ;;  %s20600_s19 = smov 32  }
  0x3c   : > { %v762_v20 = vsel %vm20773_vm4, %v757_v10, %v761_v58  ;;  %v780_v21 = vor.u32 %v779_v11, %v775_v9  ;;  %v785_v22 = vrot.slane %v783_v12, 5  ;;  %v814_v23 = vrot.slane %v812_v14, 4  ;;  %478 = vst.msk [vmem:[#allocation2 + $0x54] sm:$0xf] %vm455_vm0, %v428_v40  ;;  %v684_v51 = vld [vmem:[#allocation2 + $0x50] sm:$0x1] }
  0x3d   : > { %v20165_v25 = vcombine.low %v752_v15, %v762_v20  ;;  %v776_v26 = vsel %vm20773_vm4, %v771_v16, %v775_v9  ;;  %v817_v27 = vrot.slane %v815_v17, 5  ;;  %v20788_v28 = vrot.slane %v821_v18, 5  ;;  %v679_v52 = vld [vmem:[#allocation2 + $0x3c] sm:$0xf]  ;;  %479 = vst.msk [vmem:[#allocation2 + $0x58] sm:$0xf] %vm455_vm0, %v429_v45 }
  0x3e   : > { %v781_v31 = vrot.slane %v780_v21, 4  ;;  %v825_v32 = vshrl.u32 %v677_v5, 16  ;;  %v831_v33 = vshll.u32 %v678_v13, 16  ;;  %v788_v34 = vshrl.u32 %v673_v19, 16  ;;  %v430_v53 = vld [vmem:[%s20721_s16 + $0x5c] sm:$0x1] }
  0x3f   : > { %1149 = vrot.lane.b32.xlu0 %v20165_v25, %s20593_s17  ;;  %v818_v36 = vor.u32 %v817_v27, %v814_v23  ;;  %v791_v37 = vshll.u32 %v673_v19, 16  ;;  %v797_v38 = vshll.u32 %v674_v24, 16  ;;  %v801_v39 = vshrl.u32 %v674_v24, 16  ;;  %480 = vst.msk [vmem:[#allocation2 + $0x5c] sm:$0x1] %vm458_vm1, %v430_v53  ;;  %s20603_s21 = smov 96  }
  0x40   : > { %v786_v41 = vsel %vm20773_vm4, %v781_v31, %v785_v22  ;;  %v827_v42 = vrot.slane %v825_v32, 4  ;;  %v833_v43 = vrot.slane %v831_v33, 5  ;;  %v790_v44 = vrot.slane %v788_v34, 4  ;;  %v437_v58 = vld [vmem:[%s20721_s16 + $0x78] sm:$0xf]  ;;  %s20606_s14 = smov 48  }
  0x41   : > { %v20166_v46 = vcombine.low %v776_v26, %v786_v41  ;;  %v819_v47 = vrot.slane %v818_v36, 4  ;;  %v793_v48 = vrot.slane %v791_v37, 5  ;;  %v799_v49 = vrot.slane %v797_v38, 5  ;;  %v438_v63 = vld [vmem:[%s20721_s16 + $0x7c] sm:$0xf]  ;;  %s20612_s15 = smov 10  }
  0x42   : > { %v828_v54 = vor.u32 %v827_v42, %v20788_v28  ;;  %v803_v55 = vrot.slane %v801_v39, 4  ;;  %v807_v56 = vshll.u32 %v675_v29, 16  ;;  %v860_v57 = vshrl.u32 %v682_v30, 16  ;;  %v439_v0 = vld [vmem:[%s20721_s16 + $0x80] sm:$0x1] }
  0x43   : > { %1151 = vrot.lane.b32.xlu1 %v20166_v46, %s20593_s17  ;;  %v824_v59 = vsel %vm20773_vm4, %v819_v47, %v20788_v28  ;;  %v794_v60 = vor.u32 %v793_v48, %v790_v44  ;;  %v863_v61 = vshll.u32 %v682_v30, 16  ;;  %v869_v62 = vshll.u32 %v683_v35, 16  ;;  %487 = vst.msk [vmem:[#allocation2 + $0x78] sm:$0xf] %vm455_vm0, %v437_v58  ;;  %v680_v5 = vld [vmem:[#allocation2 + $0x40] sm:$0xf] }
  0x44   : > { %v829_v1 = vrot.slane %v828_v54, 4  ;;  %v804_v2 = vor.u32 %v803_v55, %v799_v49  ;;  %v809_v3 = vrot.slane %v807_v56, 5  ;;  %v862_v4 = vrot.slane %v860_v57, 4  ;;  %488 = vst.msk [vmem:[#allocation2 + $0x7c] sm:$0xf] %vm455_vm0, %v438_v63 }
  0x45   : > { %489 = vst.msk [vmem:[#allocation2 + $0x80] sm:$0x1] %vm458_vm1, %v439_v0  ;;  %v434_v6 = vld [vmem:[%s20721_s16 + $0x6c] sm:$0xf]  ;;  %v795_v7 = vrot.slane %v794_v60, 4  ;;  %v865_v8 = vrot.slane %v863_v61, 5 }
  0x46   : > { %v871_v9 = vrot.slane %v869_v62, 5  ;;  %v873_v10 = vshrl.u32 %v683_v35, 16  ;;  %v681_v11 = vld [vmem:[#allocation2 + $0x44] sm:$0x1]  ;;  %v435_v12 = vld [vmem:[%s20721_s16 + $0x70] sm:$0xf]  ;;  %v834_v13 = vsel %vm20773_vm4, %v829_v1, %v833_v43 }
  0x47   : > { %484 = vst.msk [vmem:[#allocation2 + $0x6c] sm:$0xf] %vm455_vm0, %v434_v6  ;;  %v805_v14 = vrot.slane %v804_v2, 4  ;;  %v879_v15 = vshll.u32 %v684_v51, 16  ;;  %v836_v16 = vshrl.u32 %v679_v52, 16  ;;  %v20168_v18 = vcombine.low %v824_v59, %v834_v13 }
  0x48   : > { %v436_v17 = vld [vmem:[%s20721_s16 + $0x74] sm:$0x1]  ;;  %485 = vst.msk [vmem:[#allocation2 + $0x70] sm:$0xf] %vm455_vm0, %v435_v12  ;;  %v800_v19 = vsel %vm20773_vm4, %v795_v7, %v799_v49  ;;  %v866_v20 = vor.u32 %v865_v8, %v862_v4  ;;  %v875_v21 = vrot.slane %v873_v10, 4  ;;  %v839_v27 = vshll.u32 %v679_v52, 16 }
  0x49   : > { %v688_v22 = vld [vmem:[#allocation2 + $0x60] sm:$0xf]  ;;  %486 = vst.msk [vmem:[#allocation2 + $0x74] sm:$0x1] %vm458_vm1, %v436_v17  ;;  %v443_v23 = vld [vmem:[%s20721_s16 + $0x90] sm:$0xf]  ;;  %v810_v24 = vsel %vm20773_vm4, %v805_v14, %v809_v3  ;;  %1155 = vrot.lane.b32.xlu0 %v20168_v18, %s20593_s17 }
  0x4a   : > { %v881_v25 = vrot.slane %v879_v15, 5  ;;  %v838_v26 = vrot.slane %v836_v16, 4  ;;  %493 = vst.msk [vmem:[#allocation2 + $0x90] sm:$0xf] %vm455_vm0, %v443_v23  ;;  %v20167_v28 = vcombine.low %v800_v19, %v810_v24  ;;  %v867_v29 = vrot.slane %v866_v20, 4 }
  0x4b   : > { %v876_v30 = vor.u32 %v875_v21, %v871_v9  ;;  %v845_v31 = vshll.u32 %v680_v5, 16  ;;  %v444_v32 = vld [vmem:[%s20721_s16 + $0x94] sm:$0xf]  ;;  %v841_v33 = vrot.slane %v839_v27, 5  ;;  %v849_v34 = vshrl.u32 %v680_v5, 16 }
  0x4c   : > { %v855_v35 = vshll.u32 %v681_v11, 16  ;;  %v689_v36 = vld [vmem:[#allocation2 + $0x64] sm:$0xf]  ;;  %v908_v37 = vshrl.u32 %v688_v22, 16  ;;  %494 = vst.msk [vmem:[#allocation2 + $0x94] sm:$0xf] %vm455_vm0, %v444_v32  ;;  %1153 = vrot.lane.b32.xlu1 %v20167_v28, %s20593_s17  ;;  %v872_v38 = vsel %vm20773_vm4, %v867_v29, %v871_v9 }
  0x4d   : > { %v877_v39 = vrot.slane %v876_v30, 4  ;;  %v847_v40 = vrot.slane %v845_v31, 5  ;;  %v690_v41 = vld [vmem:[#allocation2 + $0x68] sm:$0x1]  ;;  %v911_v42 = vshll.u32 %v688_v22, 16  ;;  %v842_v43 = vor.u32 %v841_v33, %v838_v26 }
  0x4e   : > { %v851_v44 = vrot.slane %v849_v34, 4  ;;  %v857_v45 = vrot.slane %v855_v35, 5  ;;  %v910_v46 = vrot.slane %v908_v37, 4  ;;  %v685_v47 = vld [vmem:[#allocation2 + $0x54] sm:$0xf]  ;;  %v917_v51 = vshll.u32 %v689_v36, 16 }
  0x4f   : > { %v882_v48 = vsel %vm20773_vm4, %v877_v39, %v881_v25  ;;  %v913_v49 = vrot.slane %v911_v42, 5  ;;  %v921_v52 = vshrl.u32 %v689_v36, 16  ;;  %v843_v54 = vrot.slane %v842_v43, 4  ;;  %v686_v57 = vld [vmem:[#allocation2 + $0x58] sm:$0xf] }
  0x50   : > { %v20170_v53 = vcombine.low %v872_v38, %v882_v48  ;;  %v852_v55 = vor.u32 %v851_v44, %v847_v40  ;;  %v927_v56 = vshll.u32 %v690_v41, 16  ;;  %v687_v58 = vld [vmem:[#allocation2 + $0x5c] sm:$0x1]  ;;  %v919_v60 = vrot.slane %v917_v51, 5  ;;  %v445_v63 = vld [vmem:[%s20721_s16 + $0x98] sm:$0x1] }
  0x51   : > { %v914_v59 = vor.u32 %v913_v49, %v910_v46  ;;  %v923_v61 = vrot.slane %v921_v52, 4  ;;  %v884_v62 = vshrl.u32 %v685_v47, 16  ;;  %v848_v0 = vsel %vm20773_vm4, %v843_v54, %v847_v40  ;;  %v694_v4 = vld [vmem:[#allocation2 + $0x78] sm:$0xf]  ;;  %495 = vst.msk [vmem:[#allocation2 + $0x98] sm:$0x1] %vm458_vm1, %v445_v63 }
  0x52   : > { %1159 = vrot.lane.b32.xlu0 %v20170_v53, %s20593_s17  ;;  %v853_v1 = vrot.slane %v852_v55, 4  ;;  %v929_v2 = vrot.slane %v927_v56, 5  ;;  %v887_v3 = vshll.u32 %v685_v47, 16  ;;  %v893_v8 = vshll.u32 %v686_v57, 16  ;;  %v695_v9 = vld [vmem:[#allocation2 + $0x7c] sm:$0xf] }
  0x53   : > { %v915_v5 = vrot.slane %v914_v59, 4  ;;  %v924_v6 = vor.u32 %v923_v61, %v919_v60  ;;  %v886_v7 = vrot.slane %v884_v62, 4  ;;  %v897_v12 = vshrl.u32 %v686_v57, 16  ;;  %v696_v14 = vld [vmem:[#allocation2 + $0x80] sm:$0x1] }
  0x54   : > { %v858_v10 = vsel %vm20773_vm4, %v853_v1, %v857_v45  ;;  %v889_v11 = vrot.slane %v887_v3, 5  ;;  %v903_v13 = vshll.u32 %v687_v58, 16  ;;  %v440_v15 = vld [vmem:[%s20721_s16 + $0x84] sm:$0xf]  ;;  %v895_v19 = vrot.slane %v893_v8, 5 }
  0x55   : > { %v20169_v16 = vcombine.low %v848_v0, %v858_v10  ;;  %v920_v17 = vsel %vm20773_vm4, %v915_v5, %v919_v60  ;;  %v925_v18 = vrot.slane %v924_v6, 4  ;;  %v691_v20 = vld [vmem:[#allocation2 + $0x6c] sm:$0xf]  ;;  %v441_v21 = vld [vmem:[%s20721_s16 + $0x88] sm:$0xf]  ;;  %v899_v24 = vrot.slane %v897_v12, 4 }
  0x56   : > { %v442_v22 = vld [vmem:[%s20721_s16 + $0x8c] sm:$0x1]  ;;  %490 = vst.msk [vmem:[#allocation2 + $0x84] sm:$0xf] %vm455_vm0, %v440_v15  ;;  %v890_v23 = vor.u32 %v889_v11, %v886_v7  ;;  %v905_v25 = vrot.slane %v903_v13, 5  ;;  %v956_v26 = vshrl.u32 %v694_v4, 16 }
  0x57   : > { %v692_v27 = vld [vmem:[#allocation2 + $0x70] sm:$0xf]  ;;  %491 = vst.msk [vmem:[#allocation2 + $0x88] sm:$0xf] %vm455_vm0, %v441_v21  ;;  %v449_v28 = vld [vmem:[%s20721_s16 + $0xa8] sm:$0xf]  ;;  %1157 = vrot.lane.b32.xlu1 %v20169_v16, %s20593_s17  ;;  %v930_v29 = vsel %vm20773_vm4, %v925_v18, %v929_v2  ;;  %v900_v36 = vor.u32 %v899_v24, %v895_v19 }
  0x58   : > { %492 = vst.msk [vmem:[#allocation2 + $0x8c] sm:$0x1] %vm458_vm1, %v442_v22  ;;  %v959_v30 = vshll.u32 %v694_v4, 16  ;;  %v965_v31 = vshll.u32 %v695_v9, 16  ;;  %v969_v32 = vshrl.u32 %v695_v9, 16  ;;  %v20172_v34 = vcombine.low %v920_v17, %v930_v29 }
  0x59   : > { %v450_v33 = vld [vmem:[%s20721_s16 + $0xac] sm:$0xf]  ;;  %499 = vst.msk [vmem:[#allocation2 + $0xa8] sm:$0xf] %vm455_vm0, %v449_v28  ;;  %v891_v35 = vrot.slane %v890_v23, 4  ;;  %v958_v37 = vrot.slane %v956_v26, 4 }
  0x5a   : > { %v451_v38 = vld [vmem:[%s20721_s16 + $0xb0] sm:$0x1]  ;;  %500 = vst.msk [vmem:[#allocation2 + $0xac] sm:$0xf] %vm455_vm0, %v450_v33  ;;  %v446_v39 = vld [vmem:[%s20721_s16 + $0x9c] sm:$0xf]  ;;  %1163 = vrot.lane.b32.xlu0 %v20172_v34, %s20593_s17 }
  0x5b   : > { %v961_v40 = vrot.slane %v959_v30, 5  ;;  %v967_v41 = vrot.slane %v965_v31, 5  ;;  %v971_v42 = vrot.slane %v969_v32, 4  ;;  %v975_v43 = vshll.u32 %v696_v14, 16  ;;  %v693_v44 = vld [vmem:[#allocation2 + $0x74] sm:$0x1] }
  0x5c   : > { %501 = vst.msk [vmem:[#allocation2 + $0xb0] sm:$0x1] %vm458_vm1, %v451_v38  ;;  %v896_v45 = vsel %vm20773_vm4, %v891_v35, %v895_v19  ;;  %v901_v46 = vrot.slane %v900_v36, 4  ;;  %v932_v47 = vshrl.u32 %v691_v20, 16  ;;  %v935_v48 = vshll.u32 %v691_v20, 16 }
  0x5d   : > { %496 = vst.msk [vmem:[#allocation2 + $0x9c] sm:$0xf] %vm455_vm0, %v446_v39  ;;  %v447_v49 = vld [vmem:[%s20721_s16 + $0xa0] sm:$0xf]  ;;  %v962_v51 = vor.u32 %v961_v40, %v958_v37  ;;  %v972_v52 = vor.u32 %v971_v42, %v967_v41  ;;  %v977_v53 = vrot.slane %v975_v43, 5  ;;  %v941_v54 = vshll.u32 %v692_v27, 16 }
  0x5e   : > { %v700_v55 = vld [vmem:[#allocation2 + $0x90] sm:$0xf]  ;;  %v448_v56 = vld [vmem:[%s20721_s16 + $0xa4] sm:$0x1]  ;;  %497 = vst.msk [vmem:[#allocation2 + $0xa0] sm:$0xf] %vm455_vm0, %v447_v49  ;;  %v906_v57 = vsel %vm20773_vm4, %v901_v46, %v905_v25 }
  0x5f   : > { %v934_v58 = vrot.slane %v932_v47, 4  ;;  %v937_v59 = vrot.slane %v935_v48, 5  ;;  %v945_v60 = vshrl.u32 %v692_v27, 16  ;;  %v701_v61 = vld [vmem:[#allocation2 + $0x94] sm:$0xf]  ;;  %v20171_v62 = vcombine.low %v896_v45, %v906_v57 }
  0x60   : > { %498 = vst.msk [vmem:[#allocation2 + $0xa4] sm:$0x1] %vm458_vm1, %v448_v56  ;;  %v963_v63 = vrot.slane %v962_v51, 4  ;;  %v973_v0 = vrot.slane %v972_v52, 4  ;;  %v943_v1 = vrot.slane %v941_v54, 5  ;;  %v951_v4 = vshll.u32 %v693_v44, 16 }
  0x61   : > { %v938_v2 = vor.u32 %v937_v59, %v934_v58  ;;  %v947_v3 = vrot.slane %v945_v60, 4  ;;  %v1004_v5 = vshrl.u32 %v700_v55, 16  ;;  %1161 = vrot.lane.b32.xlu1 %v20171_v62, %s20593_s17  ;;  %v702_v8 = vld [vmem:[#allocation2 + $0x98] sm:$0x1]  ;;  %v1007_v9 = vshll.u32 %v700_v55, 16 }
  0x62   : > { %v968_v6 = vsel %vm20773_vm4, %v963_v63, %v967_v41  ;;  %v978_v7 = vsel %vm20773_vm4, %v973_v0, %v977_v53  ;;  %v1013_v10 = vshll.u32 %v701_v61, 16  ;;  %v697_v11 = vld [vmem:[#allocation2 + $0x84] sm:$0xf]  ;;  %v953_v15 = vrot.slane %v951_v4, 5  ;;  %v698_v16 = vld [vmem:[#allocation2 + $0x88] sm:$0xf] }
  0x63   : > { %v20174_v12 = vcombine.low %v968_v6, %v978_v7  ;;  %v939_v13 = vrot.slane %v938_v2, 4  ;;  %v948_v14 = vor.u32 %v947_v3, %v943_v1  ;;  %v1006_v17 = vrot.slane %v1004_v5, 4  ;;  %v699_v24 = vld [vmem:[#allocation2 + $0x8c] sm:$0x1]  ;;  %v706_v30 = vld [vmem:[#allocation2 + $0xa8] sm:$0xf] }
  0x64   : > { %v1009_v18 = vrot.slane %v1007_v9, 5  ;;  %v1015_v19 = vrot.slane %v1013_v10, 5  ;;  %v1017_v20 = vshrl.u32 %v701_v61, 16  ;;  %v1023_v23 = vshll.u32 %v702_v8, 16  ;;  %v707_v35 = vld [vmem:[#allocation2 + $0xac] sm:$0xf] }
  0x65   : > { %1167 = vrot.lane.b32.xlu0 %v20174_v12, %s20593_s17  ;;  %v944_v21 = vsel %vm20773_vm4, %v939_v13, %v943_v1  ;;  %v949_v22 = vrot.slane %v948_v14, 4  ;;  %v980_v25 = vshrl.u32 %v697_v11, 16  ;;  %v983_v28 = vshll.u32 %v697_v11, 16  ;;  %v452_v40 = vld [vmem:[%s20721_s16 + $0xb4] sm:$0xf] }
  0x66   : > { %v1010_v26 = vor.u32 %v1009_v18, %v1006_v17  ;;  %v1019_v27 = vrot.slane %v1017_v20, 4  ;;  %v989_v29 = vshll.u32 %v698_v16, 16  ;;  %v1025_v32 = vrot.slane %v1023_v23, 5  ;;  %v453_v41 = vld [vmem:[%s20721_s16 + $0xb8] sm:$0xf] }
  0x67   : > { %v954_v31 = vsel %vm20773_vm4, %v949_v22, %v953_v15  ;;  %v982_v33 = vrot.slane %v980_v25, 4  ;;  %v993_v34 = vshrl.u32 %v698_v16, 16  ;;  %v985_v39 = vrot.slane %v983_v28, 5  ;;  %v454_v46 = vld [vmem:[%s20721_s16 + $0xbc] sm:$0x1]  ;;  %s402_s16 = scalar_lea.vmem %s28313_s2, %s20350_s9  ;;  %s20605_s9 = smov 64  }
  0x68   : > { %v20173_v36 = vcombine.low %v944_v21, %v954_v31  ;;  %v1011_v37 = vrot.slane %v1010_v26, 4  ;;  %v1020_v38 = vor.u32 %v1019_v27, %v1015_v19  ;;  %v991_v42 = vrot.slane %v989_v29, 5  ;;  %502 = vst.msk [vmem:[#allocation2 + $0xb4] sm:$0xf] %vm455_vm0, %v452_v40  ;;  %503 = vst.msk [vmem:[#allocation2 + $0xb8] sm:$0xf] %vm455_vm0, %v453_v41 }
  0x69   : > { %v995_v43 = vrot.slane %v993_v34, 4  ;;  %v999_v44 = vshll.u32 %v699_v24, 16  ;;  %v1052_v45 = vshrl.u32 %v706_v30, 16  ;;  %v986_v49 = vor.u32 %v985_v39, %v982_v33  ;;  %v708_v51 = vld [vmem:[#allocation2 + $0xb0] sm:$0x1] }
  0x6a   : > { %1165 = vrot.lane.b32.xlu1 %v20173_v36, %s20593_s17  ;;  %v1016_v47 = vsel %vm20773_vm4, %v1011_v37, %v1015_v19  ;;  %v1021_v48 = vrot.slane %v1020_v38, 4  ;;  %v1055_v52 = vshll.u32 %v706_v30, 16  ;;  %504 = vst.msk [vmem:[#allocation2 + $0xbc] sm:$0x1] %vm458_vm1, %v454_v46  ;;  %v1061_v56 = vshll.u32 %v707_v35, 16 }
  0x6b   : > { %v996_v53 = vor.u32 %v995_v43, %v991_v42  ;;  %v1001_v54 = vrot.slane %v999_v44, 5  ;;  %v1054_v55 = vrot.slane %v1052_v45, 4  ;;  %v703_v57 = vld [vmem:[#allocation2 + $0x9c] sm:$0xf]  ;;  %v987_v59 = vrot.slane %v986_v49, 4 }
  0x6c   : > { %v1026_v58 = vsel %vm20773_vm4, %v1021_v48, %v1025_v32  ;;  %v1057_v60 = vrot.slane %v1055_v52, 5  ;;  %v1065_v61 = vshrl.u32 %v707_v35, 16  ;;  %v704_v62 = vld [vmem:[#allocation2 + $0xa0] sm:$0xf]  ;;  %v1063_v1 = vrot.slane %v1061_v56, 5 }
  0x6d   : > { %v20176_v63 = vcombine.low %v1016_v47, %v1026_v58  ;;  %v997_v0 = vrot.slane %v996_v53, 4  ;;  %v1071_v2 = vshll.u32 %v708_v51, 16  ;;  %v992_v3 = vsel %vm20773_vm4, %v987_v59, %v991_v42  ;;  %v705_v6 = vld [vmem:[#allocation2 + $0xa4] sm:$0x1]  ;;  %v1212_v8 = vld [vmem:[#allocation2] sm:$0xe] }
  0x6e   : > { %v1058_v4 = vor.u32 %v1057_v60, %v1054_v55  ;;  %v1067_v5 = vrot.slane %v1065_v61, 4  ;;  %v1028_v7 = vshrl.u32 %v703_v57, 16  ;;  %v1031_v11 = vshll.u32 %v703_v57, 16  ;;  %v1213_v13 = vld [vmem:[#allocation2 + $0x4] sm:$0xf] }
  0x6f   : > { %1171 = vrot.lane.b32.xlu0 %v20176_v63, %s20593_s17  ;;  %v1002_v9 = vsel %vm20773_vm4, %v997_v0, %v1001_v54  ;;  %v1073_v10 = vrot.slane %v1071_v2, 5  ;;  %v1037_v12 = vshll.u32 %v704_v62, 16  ;;  %v1214_v18 = vld [vmem:[#allocation2 + $0x8] sm:$0x1]  ;;  %v1041_v21 = vshrl.u32 %v704_v62, 16 }
  0x70   : > { %v20175_v14 = vcombine.low %v992_v3, %v1002_v9  ;;  %v1059_v15 = vrot.slane %v1058_v4, 4  ;;  %v1068_v16 = vor.u32 %v1067_v5, %v1063_v1  ;;  %v1030_v17 = vrot.slane %v1028_v7, 4  ;;  %v709_v24 = vld [vmem:[#allocation2 + $0xb4] sm:$0xf]  ;;  %v710_v33 = vld [vmem:[#allocation2 + $0xb8] sm:$0xf] }
  0x71   : > { %v1033_v19 = vrot.slane %v1031_v11, 5  ;;  %v1039_v20 = vrot.slane %v1037_v12, 5  ;;  %v1047_v22 = vshll.u32 %v705_v6, 16  ;;  %v20180_v27 = vrot.slane %v1212_v8, 9  ;;  %v1218_v38 = vld [vmem:[#allocation2 + $0x18] sm:$0xe] }
  0x72   : > { %1169 = vrot.lane.b32.xlu1 %v20175_v14, %s20593_s17  ;;  %v1064_v25 = vsel %vm20773_vm4, %v1059_v15, %v1063_v1  ;;  %v1069_v26 = vrot.slane %v1068_v16, 4  ;;  %v1313_v28 = vrot.slane %v1213_v13, 5  ;;  %v1043_v30 = vrot.slane %v1041_v21, 4  ;;  %v711_v42 = vld [vmem:[#allocation2 + $0xbc] sm:$0x1] }
  0x73   : > { %v1034_v29 = vor.u32 %v1033_v19, %v1030_v17  ;;  %v1049_v31 = vrot.slane %v1047_v22, 5  ;;  %v1316_v32 = vrot.slane %v1214_v18, 5  ;;  %v1076_v37 = vshrl.u32 %v709_v24, 16  ;;  %v1219_v44 = vld [vmem:[#allocation2 + $0x1c] sm:$0xf] }
  0x74   : > { %v1074_v34 = vsel %vm20773_vm4, %v1069_v26, %v1073_v10  ;;  %v1314_v35 = vsel %vm20895_vm7, %v20180_v27, %v1313_v28  ;;  %v1315_v36 = vrot.slane %v1313_v28, 4  ;;  %v1044_v41 = vor.u32 %v1043_v30, %v1039_v20  ;;  %v1220_v49 = vld [vmem:[#allocation2 + $0x20] sm:$0x1]  ;;  %v1215_v55 = vld [vmem:[#allocation2 + $0xc] sm:$0xe] }
  0x75   : > { %v20178_v39 = vcombine.low %v1064_v25, %v1074_v34  ;;  %v1035_v40 = vrot.slane %v1034_v29, 4  ;;  %v1079_v43 = vshll.u32 %v709_v24, 16  ;;  %v1078_v46 = vrot.slane %v1076_v37, 4  ;;  %v1216_v56 = vld [vmem:[#allocation2 + $0x10] sm:$0xf] }
  0x76   : > { %v1317_v45 = vsel %vm20895_vm7, %v1315_v36, %v1316_v32  ;;  %v1085_v47 = vshll.u32 %v710_v33, 16  ;;  %v1089_v48 = vshrl.u32 %v710_v33, 16  ;;  %v1045_v52 = vrot.slane %v1044_v41, 4  ;;  %v1217_v61 = vld [vmem:[#allocation2 + $0x14] sm:$0x1] }
  0x77   : > { %1175 = vrot.lane.b32.xlu0 %v20178_v39, %s20593_s17  ;;  %v1040_v51 = vsel %vm20773_vm4, %v1035_v40, %v1039_v20  ;;  %v20196_v53 = vcombine.low %v1314_v35, %v1317_v45  ;;  %v1081_v54 = vrot.slane %v1079_v43, 5  ;;  %v1095_v59 = vshll.u32 %v711_v42, 16  ;;  %v1224_v2 = vld [vmem:[#allocation2 + $0x30] sm:$0xe]  ;;  %v1225_v3 = vld [vmem:[#allocation2 + $0x34] sm:$0xf] }
  0x78   : > { %v1087_v57 = vrot.slane %v1085_v47, 5  ;;  %v1091_v58 = vrot.slane %v1089_v48, 4  ;;  %v20182_v60 = vrot.slane %v1218_v38, 9  ;;  %v1050_v62 = vsel %vm20773_vm4, %v1045_v52, %v1049_v31  ;;  %v1226_v8 = vld [vmem:[#allocation2 + $0x38] sm:$0x1] }
  0x79   : > { %v1082_v63 = vor.u32 %v1081_v54, %v1078_v46  ;;  %v1327_v0 = vrot.slane %v1219_v44, 5  ;;  %v1330_v1 = vrot.slane %v1220_v49, 5  ;;  %v20177_v4 = vcombine.low %v1040_v51, %v1050_v62  ;;  %v1221_v9 = vld [vmem:[#allocation2 + $0x24] sm:$0xe]  ;;  %v1222_v14 = vld [vmem:[#allocation2 + $0x28] sm:$0xf] }
  0x7a   : > { %v1092_v5 = vor.u32 %v1091_v58, %v1087_v57  ;;  %v1097_v6 = vrot.slane %v1095_v59, 5  ;;  %v20181_v7 = vrot.slane %v1215_v55, 9  ;;  %v1320_v13 = vrot.slane %v1216_v56, 5  ;;  %v1223_v15 = vld [vmem:[#allocation2 + $0x2c] sm:$0x1] }
  0x7b   : > { %1471 = vrot.lane.b32.xlu0 %v20196_v53, %s20594_s18  ;;  %v1083_v10 = vrot.slane %v1082_v63, 4  ;;  %v1328_v11 = vsel %vm20895_vm7, %v20182_v60, %v1327_v0  ;;  %v1329_v12 = vrot.slane %v1327_v0, 4  ;;  %v1230_v16 = vld [vmem:[#allocation2 + $0x48] sm:$0xe]  ;;  %1173 = vrot.lane.b32.xlu1 %v20177_v4, %s20593_s17  ;;  %v1323_v18 = vrot.slane %v1217_v61, 5 }
  0x7c   : > { %v1093_v17 = vrot.slane %v1092_v5, 4  ;;  %v20184_v19 = vrot.slane %v1224_v2, 9  ;;  %v1341_v20 = vrot.slane %v1225_v3, 5  ;;  %v1231_v21 = vld [vmem:[#allocation2 + $0x4c] sm:$0xf]  ;;  %v1321_v25 = vsel %vm20895_vm7, %v20181_v7, %v1320_v13 }
  0x7d   : > { %v1088_v22 = vsel %vm20773_vm4, %v1083_v10, %v1087_v57  ;;  %v1331_v24 = vsel %vm20895_vm7, %v1329_v12, %v1330_v1  ;;  %v1322_v26 = vrot.slane %v1320_v13, 4  ;;  %v1232_v27 = vld [vmem:[#allocation2 + $0x50] sm:$0x1]  ;;  %v1227_v28 = vld [vmem:[#allocation2 + $0x3c] sm:$0xe]  ;;  %v1344_v37 = vrot.slane %v1226_v8, 5 }
  0x7e   : > { %v1098_v29 = vsel %vm20773_vm4, %v1093_v17, %v1097_v6  ;;  %v20198_v30 = vcombine.low %v1328_v11, %v1331_v24  ;;  %v1342_v31 = vsel %vm20895_vm7, %v20184_v19, %v1341_v20  ;;  %v1343_v32 = vrot.slane %v1341_v20, 4  ;;  %v1228_v33 = vld [vmem:[#allocation2 + $0x40] sm:$0xf]  ;;  %v1229_v34 = vld [vmem:[#allocation2 + $0x44] sm:$0x1] }
  0x7f   : > { %v20179_v35 = vcombine.low %v1088_v22, %v1098_v29  ;;  %v1324_v36 = vsel %vm20895_vm7, %v1322_v26, %v1323_v18  ;;  %v20183_v38 = vrot.slane %v1221_v9, 9  ;;  %v1236_v39 = vld [vmem:[#allocation2 + $0x60] sm:$0xe]  ;;  %v1237_v40 = vld [vmem:[#allocation2 + $0x64] sm:$0xf]  ;;  %v1334_v42 = vrot.slane %v1222_v14, 5 }
  0x80   : > { %1475 = vrot.lane.b32.xlu0 %v20198_v30, %s20594_s18  ;;  %v20197_v41 = vcombine.low %v1321_v25, %v1324_v36  ;;  %v1337_v43 = vrot.slane %v1223_v15, 5  ;;  %v20186_v44 = vrot.slane %v1230_v16, 9  ;;  %v1238_v45 = vld [vmem:[#allocation2 + $0x68] sm:$0x1]  ;;  %v1345_v46 = vsel %vm20895_vm7, %v1343_v32, %v1344_v37  ;;  %v1233_v51 = vld [vmem:[#allocation2 + $0x54] sm:$0xe] }
  0x81   : > { %1177 = vrot.lane.b32.xlu1 %v20179_v35, %s20593_s17  ;;  %v1355_v47 = vrot.slane %v1231_v21, 5  ;;  %v1358_v48 = vrot.slane %v1232_v27, 5  ;;  %v20185_v49 = vrot.slane %v1227_v28, 9  ;;  %v20200_v52 = vcombine.low %v1342_v31, %v1345_v46  ;;  %v1234_v56 = vld [vmem:[#allocation2 + $0x58] sm:$0xf] }
  0x82   : > { %v1335_v53 = vsel %vm20895_vm7, %v20183_v38, %v1334_v42  ;;  %v1336_v54 = vrot.slane %v1334_v42, 4  ;;  %v1348_v55 = vrot.slane %v1228_v33, 5  ;;  %v1235_v57 = vld [vmem:[#allocation2 + $0x5c] sm:$0x1]  ;;  %v1242_v58 = vld [vmem:[#allocation2 + $0x78] sm:$0xe] }
  0x83   : > { %v1356_v59 = vsel %vm20895_vm7, %v20186_v44, %v1355_v47  ;;  %v1357_v60 = vrot.slane %v1355_v47, 4  ;;  %v1351_v61 = vrot.slane %v1229_v34, 5  ;;  %v20188_v62 = vrot.slane %v1236_v39, 9  ;;  %v1243_v63 = vld [vmem:[#allocation2 + $0x7c] sm:$0xf] }
  0x84   : > { %1479 = vrot.lane.b32.xlu0 %v20200_v52, %s20594_s18  ;;  %v1338_v0 = vsel %vm20895_vm7, %v1336_v54, %v1337_v43  ;;  %v1349_v1 = vsel %vm20895_vm7, %v20185_v49, %v1348_v55  ;;  %v1350_v2 = vrot.slane %v1348_v55, 4  ;;  %v1369_v3 = vrot.slane %v1237_v40, 5  ;;  %v1244_v4 = vld [vmem:[#allocation2 + $0x80] sm:$0x1]  ;;  %v1239_v5 = vld [vmem:[#allocation2 + $0x6c] sm:$0xe] }
  0x85   : > { %1473 = vrot.lane.b32.xlu1 %v20197_v41, %s20594_s18  ;;  %v20199_v6 = vcombine.low %v1335_v53, %v1338_v0  ;;  %v1359_v7 = vsel %vm20895_vm7, %v1357_v60, %v1358_v48  ;;  %v1372_v8 = vrot.slane %v1238_v45, 5  ;;  %v20187_v9 = vrot.slane %v1233_v51, 9  ;;  %v1240_v10 = vld [vmem:[#allocation2 + $0x70] sm:$0xf]  ;;  %v1241_v11 = vld [vmem:[#allocation2 + $0x74] sm:$0x1] }
  0x86   : > { %v20202_v12 = vcombine.low %v1356_v59, %v1359_v7  ;;  %v1352_v13 = vsel %vm20895_vm7, %v1350_v2, %v1351_v61  ;;  %v1370_v14 = vsel %vm20895_vm7, %v20188_v62, %v1369_v3  ;;  %v1371_v15 = vrot.slane %v1369_v3, 4  ;;  %v1248_v16 = vld [vmem:[#allocation2 + $0x90] sm:$0xe]  ;;  %v1249_v17 = vld [vmem:[#allocation2 + $0x94] sm:$0xf]  ;;  %v20484_v3 = vld [vmem:[#allocation2 + $0x24] sm:$0xff]  }
  0x87   : > { %v20201_v18 = vcombine.low %v1349_v1, %v1352_v13  ;;  %v1362_v19 = vrot.slane %v1234_v56, 5  ;;  %v1365_v20 = vrot.slane %v1235_v57, 5  ;;  %v20190_v21 = vrot.slane %v1242_v58, 9  ;;  %v1250_v22 = vld [vmem:[#allocation2 + $0x98] sm:$0x1]  ;;  %v20481_v0 = vld [vmem:[#allocation2 + $0xc] sm:$0xff]  }
  0x88   : > { %1483 = vrot.lane.b32.xlu0 %v20202_v12, %s20594_s18  ;;  %v1373_v24 = vsel %vm20895_vm7, %v1371_v15, %v1372_v8  ;;  %v1383_v25 = vrot.slane %v1243_v63, 5  ;;  %v1386_v26 = vrot.slane %v1244_v4, 5  ;;  %v20189_v27 = vrot.slane %v1239_v5, 9  ;;  %v20955_v32 = vld [vmem:[#allocation2 + $0x84] sm:$0xe]  ;;  %v20482_v1 = vld [vmem:[#allocation2 + $0x18] sm:$0xff]  }
  0x89   : > { %1477 = vrot.lane.b32.xlu1 %v20199_v6, %s20594_s18  ;;  %v20204_v28 = vcombine.low %v1370_v14, %v1373_v24  ;;  %v1363_v29 = vsel %vm20895_vm7, %v20187_v9, %v1362_v19  ;;  %v1364_v30 = vrot.slane %v1362_v19, 4  ;;  %v1376_v31 = vrot.slane %v1240_v10, 5  ;;  %v20957_v33 = vld [vmem:[#allocation2 + $0x88] sm:$0xf]  ;;  %v20959_v34 = vld [vmem:[#allocation2 + $0x8c] sm:$0x1] }
  0x8a   : > { %v1254_v35 = vld [vmem:[#allocation2 + $0xa8] sm:$0xe]  ;;  %v1384_v36 = vsel %vm20895_vm7, %v20190_v21, %v1383_v25  ;;  %v1385_v37 = vrot.slane %v1383_v25, 4  ;;  %v1379_v38 = vrot.slane %v1241_v11, 5  ;;  %v20192_v39 = vrot.slane %v1248_v16, 9  ;;  %v20480_v63 = vld [vmem:[#allocation2] sm:$0xff]  }
  0x8b   : > { %v1255_v40 = vld [vmem:[#allocation2 + $0xac] sm:$0xf]  ;;  %v1256_v41 = vld [vmem:[#allocation2 + $0xb0] sm:$0x1]  ;;  %v1366_v42 = vsel %vm20895_vm7, %v1364_v30, %v1365_v20  ;;  %v1378_v43 = vrot.slane %v1376_v31, 4  ;;  %v1397_v44 = vrot.slane %v1249_v17, 5  ;;  %v20972_v48 = vsel %vm20895_vm7, %v20189_v27, %v1376_v31 }
  0x8c   : > { %v20965_v45 = vld [vmem:[#allocation2 + $0xa0] sm:$0xf]  ;;  %1487 = vrot.lane.b32.xlu0 %v20204_v28, %s20594_s18  ;;  %v20203_v46 = vcombine.low %v1363_v29, %v1366_v42  ;;  %v1387_v47 = vsel %vm20895_vm7, %v1385_v37, %v1386_v26  ;;  %v1400_v49 = vrot.slane %v1250_v22, 5  ;;  %v20974_v51 = vld [vmem:[#allocation2 + $0x9c] sm:$0xe]  ;;  %v20191_v58 = vrot.slane %v20955_v32, 9 }
  0x8d   : > { %v20976_v52 = vld [vmem:[#allocation2 + $0xa4] sm:$0x1]  ;;  %1481 = vrot.lane.b32.xlu1 %v20201_v18, %s20594_s18  ;;  %v20206_v53 = vcombine.low %v1384_v36, %v1387_v47  ;;  %v20981_v54 = vsel %vm20895_vm7, %v1378_v43, %v1379_v38  ;;  %v1398_v55 = vsel %vm20895_vm7, %v20192_v39, %v1397_v44  ;;  %v1399_v56 = vrot.slane %v1397_v44, 4  ;;  %v20985_v57 = vld [vmem:[#allocation2 + $0xb8] sm:$0xf]  ;;  %v20483_v2 = vld [vmem:[#allocation2 + $0x30] sm:$0xff]  }
  0x8e   : > { %v1390_v59 = vrot.slane %v20957_v33, 5  ;;  %v1393_v60 = vrot.slane %v20959_v34, 5  ;;  %v20194_v61 = vrot.slane %v1254_v35, 9  ;;  %v20990_v62 = vld [vmem:[#allocation2 + $0xb4] sm:$0xe]  ;;  %v20485_v4 = vld [vmem:[#allocation2 + $0x48] sm:$0xff]   ;;  %v20205_v19 = vcombine.low %v20972_v48, %v20981_v54 }
  0x8f   : > { %v20486_v5 = vld [vmem:[#allocation2 + $0x3c] sm:$0xff]   ;;  %v20488_v7 = vld [vmem:[#allocation2 + $0x54] sm:$0xff]   ;;  %v20490_v9 = vld [vmem:[#allocation2 + $0x6c] sm:$0xff]   ;;  %v1401_v15 = vsel %vm20895_vm7, %v1399_v56, %v1400_v49  ;;  %v1411_v16 = vrot.slane %v1255_v40, 5  ;;  %v1414_v17 = vrot.slane %v1256_v41, 5  ;;  %v1404_v22 = vrot.slane %v20965_v45, 5 }
  0x90   : > { %v20487_v6 = vld [vmem:[#allocation2 + $0x60] sm:$0xff]   ;;  %v20489_v8 = vld [vmem:[#allocation2 + $0x78] sm:$0xff]   ;;  %v20491_v10 = vld [vmem:[#allocation2 + $0x90] sm:$0xff]   ;;  %1491 = vrot.lane.b32.xlu0 %v20206_v53, %s20594_s18  ;;  %v20208_v20 = vcombine.low %v1398_v55, %v1401_v15  ;;  %v1392_v21 = vrot.slane %v1390_v59, 4  ;;  %v20193_v26 = vrot.slane %v20974_v51, 9  ;;  %v1407_v27 = vrot.slane %v20976_v52, 5 }
  0x91   : > { %v20492_v11 = vld [vmem:[#allocation2 + $0x84] sm:$0xff]   ;;  %v20494_v13 = vld [vmem:[#allocation2 + $0x9c] sm:$0xff]   ;;  %v20495_v14 = vld [vmem:[#allocation2 + $0xb4] sm:$0xff]   ;;  %1485 = vrot.lane.b32.xlu1 %v20203_v46, %s20594_s18  ;;  %v1412_v24 = vsel %vm20895_vm7, %v20194_v61, %v1411_v16  ;;  %v1413_v25 = vrot.slane %v1411_v16, 4  ;;  %v1391_v28 = vsel %vm20895_vm7, %v20191_v58, %v1390_v59  ;;  %v1406_v30 = vrot.slane %v1404_v22, 4  ;;  %648 = vst.msk [vmem:[#allocation3] sm:$0xff] %vm647_vm8, %v20480_v63 }
  0x92   : > { %v20493_v12 = vld [vmem:[#allocation2 + $0xa8] sm:$0xff]   ;;  %v1259_v18 = vld [vmem:[#allocation2 + $0xbc] sm:$0x1]  ;;  %v1394_v29 = vsel %vm20895_vm7, %v1392_v21, %v1393_v60  ;;  %v1418_v31 = vrot.slane %v20985_v57, 5  ;;  %v20195_v33 = vrot.slane %v20990_v62, 9  ;;  %649 = vst.msk [vmem:[#allocation3 + $0x8] sm:$0xff] %vm647_vm8, %v20481_v0  ;;  %v1405_v38 = vsel %vm20895_vm7, %v20193_v26, %v1404_v22 }
  0x93   : > { %v1415_v32 = vsel %vm20895_vm7, %v1413_v25, %v1414_v17  ;;  %v1421_v36 = vrot.slane %v1259_v18, 5  ;;  %650 = vst.msk [vmem:[#allocation3 + $0x10] sm:$0xff] %vm647_vm8, %v20482_v1  ;;  %652 = vst.msk [vmem:[#allocation3 + $0x20] sm:$0xff] %vm647_vm8, %v20483_v2  ;;  %v20207_v37 = vcombine.low %v1391_v28, %v1394_v29  ;;  %v1408_v39 = vsel %vm20895_vm7, %v1406_v30, %v1407_v27  ;;  %v20464_v40 = vld [vmem:[#allocation2 + $0xc] sm:$0xff]   ;;  %v1716_v46 = vld [vmem:[#allocation2 + $0x14] sm:$0x1] }
  0x94   : > { %1495 = vrot.lane.b32.xlu0 %v20208_v20, %s20594_s18  ;;  %v20210_v34 = vcombine.low %v1412_v24, %v1415_v32  ;;  %v1420_v35 = vrot.slane %v1418_v31, 4  ;;  %651 = vst.msk [vmem:[#allocation3 + $0x18] sm:$0xff] %vm647_vm8, %v20484_v3  ;;  %654 = vst.msk [vmem:[#allocation3 + $0x30] sm:$0xff] %vm647_vm8, %v20485_v4  ;;  %v20209_v41 = vcombine.low %v1405_v38, %v1408_v39  ;;  %v1714_v44 = vld [vmem:[#allocation2 + $0xc] sm:$0xf]  ;;  %v20465_v53 = vld [vmem:[#allocation2 + $0x24] sm:$0xff]  }
  0x95   : > { %653 = vst.msk [vmem:[#allocation3 + $0x28] sm:$0xff] %vm647_vm8, %v20486_v5  ;;  %656 = vst.msk [vmem:[#allocation3 + $0x40] sm:$0xff] %vm647_vm8, %v20487_v6  ;;  %1489 = vrot.lane.b32.xlu1 %v20205_v19, %s20594_s18  ;;  %v1419_v42 = vsel %vm20895_vm7, %v20195_v33, %v1418_v31  ;;  %v1715_v45 = vld [vmem:[#allocation2 + $0x10] sm:$0xf]  ;;  %v1763_v47 = vshrl.u32 %v1714_v44, 16  ;;  %v1766_v48 = vshll.u32 %v1714_v44, 16 }
  0x96   : > { %655 = vst.msk [vmem:[#allocation3 + $0x38] sm:$0xff] %vm647_vm8, %v20488_v7  ;;  %658 = vst.msk [vmem:[#allocation3 + $0x50] sm:$0xff] %vm647_vm8, %v20489_v8  ;;  %v1422_v43 = vsel %vm20895_vm7, %v1420_v35, %v1421_v36  ;;  %v1772_v49 = vshll.u32 %v1715_v45, 16  ;;  %v1776_v51 = vshrl.u32 %v1715_v45, 16  ;;  %v505_v52 = vld [vmem:[%s389_s22] sm:$0xf] }
  0x97   : > { %657 = vst.msk [vmem:[#allocation3 + $0x48] sm:$0xff] %vm647_vm8, %v20490_v9  ;;  %660 = vst.msk [vmem:[#allocation3 + $0x60] sm:$0xff] %vm647_vm8, %v20491_v10  ;;  %v1782_v54 = vshll.u32 %v1716_v46, 16  ;;  %v506_v55 = vld [vmem:[%s389_s22 + $0x4] sm:$0xf]  ;;  %v1765_v57 = vrot.slane %v1763_v47, 4  ;;  %v20211_v62 = vcombine.low %v1419_v42, %v1422_v43 }
  0x98   : > { %659 = vst.msk [vmem:[#allocation3 + $0x58] sm:$0xff] %vm647_vm8, %v20492_v11  ;;  %662 = vst.msk [vmem:[#allocation3 + $0x70] sm:$0xff] %vm647_vm8, %v20493_v12  ;;  %1499 = vrot.lane.b32.xlu0 %v20210_v34, %s20594_s18  ;;  %v507_v56 = vld [vmem:[%s389_s22 + $0x8] sm:$0x1]  ;;  %v1768_v58 = vrot.slane %v1766_v48, 5  ;;  %v1774_v59 = vrot.slane %v1772_v49, 5 }
  0x99   : > { %661 = vst.msk [vmem:[#allocation3 + $0x68] sm:$0xff] %vm647_vm8, %v20494_v13  ;;  %663 = vst.msk [vmem:[#allocation3 + $0x78] sm:$0xff] %vm647_vm8, %v20495_v14  ;;  %1493 = vrot.lane.b32.xlu1 %v20207_v37, %s20594_s18  ;;  %v1778_v60 = vrot.slane %v1776_v51, 4  ;;  %v1720_v61 = vld [vmem:[#allocation2 + $0x24] sm:$0xf]  ;;  %v1784_v63 = vrot.slane %v1782_v54, 5 }
  0x9a   : > { %509 = vst.msk [vmem:[#allocation2 + $0xc0] sm:$0xf] %vm455_vm0, %v505_v52  ;;  %510 = vst.msk [vmem:[#allocation2 + $0xc4] sm:$0xf] %vm455_vm0, %v506_v55  ;;  %v1721_v0 = vld [vmem:[#allocation2 + $0x28] sm:$0xf]  ;;  %v1769_v4 = vor.u32 %v1768_v58, %v1765_v57 }
  0x9b   : > { %511 = vst.msk [vmem:[#allocation2 + $0xc8] sm:$0x1] %vm458_vm1, %v507_v56  ;;  %v1722_v1 = vld [vmem:[#allocation2 + $0x2c] sm:$0x1]  ;;  %v1811_v2 = vshrl.u32 %v1720_v61, 16  ;;  %v20467_v3 = vld [vmem:[#allocation2 + $0x3c] sm:$0xff]   ;;  %v1779_v5 = vor.u32 %v1778_v60, %v1774_v59 }
  0x9c   : > { %1649 = vrot.lane.b32.xlu0 %v20464_v40, %s20595_s5  ;;  %v1814_v6 = vshll.u32 %v1720_v61, 16  ;;  %v1820_v7 = vshll.u32 %v1721_v0, 16  ;;  %v1717_v8 = vld [vmem:[#allocation2 + $0x18] sm:$0xf]  ;;  %v1824_v11 = vshrl.u32 %v1721_v0, 16  ;;  %v1830_v12 = vshll.u32 %v1722_v1, 16 }
  0x9d   : > { %1497 = vrot.lane.b32.xlu1 %v20209_v41, %s20594_s18  ;;  %v20466_v9 = vld [vmem:[#allocation2 + $0x18] sm:$0xff]   ;;  %v1813_v10 = vrot.slane %v1811_v2, 4  ;;  %v1787_v14 = vshrl.u32 %v1717_v8, 16  ;;  %v1770_v15 = vrot.slane %v1769_v4, 4  ;;  %v1780_v16 = vrot.slane %v1779_v5, 4  ;;  %v20468_v40 = vld [vmem:[#allocation2 + $0x30] sm:$0xff]  }
  0x9e   : > { %v1718_v13 = vld [vmem:[#allocation2 + $0x1c] sm:$0xf]  ;;  %v1816_v17 = vrot.slane %v1814_v6, 5  ;;  %v1822_v18 = vrot.slane %v1820_v7, 5  ;;  %v1719_v19 = vld [vmem:[#allocation2 + $0x20] sm:$0x1] }
  0x9f   : > { %v1826_v20 = vrot.slane %v1824_v11, 4  ;;  %v1832_v21 = vrot.slane %v1830_v12, 5  ;;  %v1789_v22 = vrot.slane %v1787_v14, 4  ;;  %v1790_v24 = vshll.u32 %v1717_v8, 16  ;;  %v1726_v25 = vld [vmem:[#allocation2 + $0x3c] sm:$0xf] }
  0xa0   : > { %1653 = vrot.lane.b32.xlu0 %v20465_v53, %s20595_s5  ;;  %v1775_v26 = vsel %vm20773_vm4, %v1770_v15, %v1774_v59  ;;  %v1785_v27 = vsel %vm20773_vm4, %v1780_v16, %v1784_v63  ;;  %v1817_v28 = vor.u32 %v1816_v17, %v1813_v10  ;;  %v1796_v29 = vshll.u32 %v1718_v13, 16  ;;  %v1727_v34 = vld [vmem:[#allocation2 + $0x40] sm:$0xf]  ;;  %v20469_v35 = vld [vmem:[#allocation2 + $0x54] sm:$0xff]   ;;  %v1728_v44 = vld [vmem:[#allocation2 + $0x44] sm:$0x1] }
  0xa1   : > { %1501 = vrot.lane.b32.xlu1 %v20211_v62, %s20594_s18  ;;  %v21056_v30 = vcombine.low %v1775_v26, %v1785_v27  ;;  %v1827_v31 = vor.u32 %v1826_v20, %v1822_v18  ;;  %v1792_v32 = vrot.slane %v1790_v24, 5  ;;  %v1800_v33 = vshrl.u32 %v1718_v13, 16  ;;  %v1723_v51 = vld [vmem:[#allocation2 + $0x30] sm:$0xf]  ;;  %v1724_v56 = vld [vmem:[#allocation2 + $0x34] sm:$0xf] }
  0xa2   : > { %v1818_v36 = vrot.slane %v1817_v28, 4  ;;  %v1798_v37 = vrot.slane %v1796_v29, 5  ;;  %v1806_v38 = vshll.u32 %v1719_v19, 16  ;;  %v1859_v39 = vshrl.u32 %v1726_v25, 16  ;;  %v20471_v57 = vld [vmem:[#allocation2 + $0x6c] sm:$0xff]   ;;  %v20473_v14 = vld [vmem:[#allocation2 + $0x84] sm:$0xff]  }
  0xa3   : > { %v1828_v41 = vrot.slane %v1827_v31, 4  ;;  %v1793_v42 = vor.u32 %v1792_v32, %v1789_v22  ;;  %v1802_v43 = vrot.slane %v1800_v33, 4  ;;  %v1862_v45 = vshll.u32 %v1726_v25, 16  ;;  %v20470_v62 = vld [vmem:[#allocation2 + $0x48] sm:$0xff]   ;;  %v1725_v2 = vld [vmem:[#allocation2 + $0x38] sm:$0x1] }
  0xa4   : > { %1657 = vrot.lane.b32.xlu0 %v20467_v3, %s20595_s5  ;;  %v1823_v46 = vsel %vm20773_vm4, %v1818_v36, %v1822_v18  ;;  %v1808_v47 = vrot.slane %v1806_v38, 5  ;;  %v1861_v48 = vrot.slane %v1859_v39, 4  ;;  %v1868_v49 = vshll.u32 %v1727_v34, 16  ;;  %v1732_v8 = vld [vmem:[#allocation2 + $0x54] sm:$0xf]  ;;  %v20472_v20 = vld [vmem:[#allocation2 + $0x60] sm:$0xff]  }
  0xa5   : > { %1651 = vrot.lane.b32.xlu1 %v20466_v9, %s20595_s5  ;;  %v1833_v52 = vsel %vm20773_vm4, %v1828_v41, %v1832_v21  ;;  %v1794_v53 = vrot.slane %v1793_v42, 4  ;;  %v1803_v54 = vor.u32 %v1802_v43, %v1798_v37  ;;  %v1864_v55 = vrot.slane %v1862_v45, 5  ;;  %v1733_v13 = vld [vmem:[#allocation2 + $0x58] sm:$0xf]  ;;  %v1734_v19 = vld [vmem:[#allocation2 + $0x5c] sm:$0x1] }
  0xa6   : > { %v21065_v58 = vcombine.low %v1823_v46, %v1833_v52  ;;  %v1870_v59 = vrot.slane %v1868_v49, 5  ;;  %v1872_v60 = vshrl.u32 %v1727_v34, 16  ;;  %v1878_v61 = vshll.u32 %v1728_v44, 16  ;;  %v20475_v36 = vld [vmem:[#allocation2 + $0x9c] sm:$0xff]   ;;  %v1730_v41 = vld [vmem:[#allocation2 + $0x4c] sm:$0xf] }
  0xa7   : > { %v1799_v63 = vsel %vm20773_vm4, %v1794_v53, %v1798_v37  ;;  %v1804_v0 = vrot.slane %v1803_v54, 4  ;;  %v1865_v1 = vor.u32 %v1864_v55, %v1861_v48  ;;  %v1835_v3 = vshrl.u32 %v1723_v51, 16  ;;  %v20474_v42 = vld [vmem:[#allocation2 + $0x78] sm:$0xff]   ;;  %v1731_v49 = vld [vmem:[#allocation2 + $0x50] sm:$0x1]  ;;  %s20604_s22 = smov 80  }
  0xa8   : > { %1661 = vrot.lane.b32.xlu0 %v20469_v35, %s20595_s5  ;;  %v1874_v4 = vrot.slane %v1872_v60, 4  ;;  %v1880_v5 = vrot.slane %v1878_v61, 5  ;;  %v1838_v6 = vshll.u32 %v1723_v51, 16  ;;  %v1844_v7 = vshll.u32 %v1724_v56, 16  ;;  %v1729_v35 = vld [vmem:[#allocation2 + $0x48] sm:$0xf] }
  0xa9   : > { %1655 = vrot.lane.b32.xlu1 %v20468_v40, %s20595_s5  ;;  %v1809_v9 = vsel %vm20773_vm4, %v1804_v0, %v1808_v47  ;;  %v1866_v10 = vrot.slane %v1865_v1, 4  ;;  %v1837_v11 = vrot.slane %v1835_v3, 4  ;;  %v1848_v12 = vshrl.u32 %v1724_v56, 16  ;;  %v1738_v53 = vld [vmem:[#allocation2 + $0x6c] sm:$0xf]  ;;  %v20477_v61 = vld [vmem:[#allocation2 + $0xb4] sm:$0xff]  }
  0xaa   : > { %v21073_v15 = vcombine.low %v1799_v63, %v1809_v9  ;;  %v1875_v16 = vor.u32 %v1874_v4, %v1870_v59  ;;  %v1840_v17 = vrot.slane %v1838_v6, 5  ;;  %v1846_v18 = vrot.slane %v1844_v7, 5  ;;  %v1739_v60 = vld [vmem:[#allocation2 + $0x70] sm:$0xf]  ;;  %v1740_v9 = vld [vmem:[#allocation2 + $0x74] sm:$0x1] }
  0xab   : > { %v1871_v21 = vsel %vm20773_vm4, %v1866_v10, %v1870_v59  ;;  %v1850_v22 = vrot.slane %v1848_v12, 4  ;;  %v1854_v24 = vshll.u32 %v1725_v2, 16  ;;  %v1907_v25 = vshrl.u32 %v1732_v8, 16  ;;  %v20476_v2 = vld [vmem:[#allocation2 + $0x90] sm:$0xff]  }
  0xac   : > { %1665 = vrot.lane.b32.xlu0 %v20471_v57, %s20595_s5  ;;  %v1876_v26 = vrot.slane %v1875_v16, 4  ;;  %v1841_v27 = vor.u32 %v1840_v17, %v1837_v11  ;;  %v1910_v28 = vshll.u32 %v1732_v8, 16  ;;  %v1916_v29 = vshll.u32 %v1733_v13, 16 }
  0xad   : > { %1659 = vrot.lane.b32.xlu1 %v20470_v62, %s20595_s5  ;;  %v1851_v31 = vor.u32 %v1850_v22, %v1846_v18  ;;  %v1856_v32 = vrot.slane %v1854_v24, 5  ;;  %v1909_v33 = vrot.slane %v1907_v25, 4  ;;  %v1920_v34 = vshrl.u32 %v1733_v13, 16  ;;  %v1148_v54 = vpop.permute.xlu0 %1147  ;;  %v1736_v24 = vld [vmem:[#allocation2 + $0x64] sm:$0xf]  ;;  %v20478_v25 = vld [vmem:[#allocation2 + $0xa8] sm:$0xff]  }
  0xae   : > { %v1881_v37 = vsel %vm20773_vm4, %v1876_v26, %v1880_v5  ;;  %v1842_v38 = vrot.slane %v1841_v27, 4  ;;  %v1912_v39 = vrot.slane %v1910_v28, 5  ;;  %v1918_v40 = vrot.slane %v1916_v29, 5  ;;  %1196 = vst.msk [vmem:[#allocation3] sm:$0xff] %vm1195_vm9, %v1148_v54 }
  0xaf   : > { %v21082_v43 = vcombine.low %v1871_v21, %v1881_v37  ;;  %v1852_v44 = vrot.slane %v1851_v31, 4  ;;  %v1922_v45 = vrot.slane %v1920_v34, 4  ;;  %v1926_v46 = vshll.u32 %v1734_v19, 16  ;;  %v1737_v31 = vld [vmem:[#allocation2 + $0x68] sm:$0x1] }
  0xb0   : > { %1669 = vrot.lane.b32.xlu0 %v20473_v14, %s20595_s5  ;;  %v1847_v47 = vsel %vm20773_vm4, %v1842_v38, %v1846_v18  ;;  %v1913_v48 = vor.u32 %v1912_v39, %v1909_v33  ;;  %v1883_v51 = vshrl.u32 %v1729_v35, 16  ;;  %v1886_v52 = vshll.u32 %v1729_v35, 16  ;;  %v1735_v18 = vld [vmem:[#allocation2 + $0x60] sm:$0xf] }
  0xb1   : > { %1663 = vrot.lane.b32.xlu1 %v20472_v20, %s20595_s5  ;;  %v1857_v55 = vsel %vm20773_vm4, %v1852_v44, %v1856_v32  ;;  %v1923_v56 = vor.u32 %v1922_v45, %v1918_v40  ;;  %v1928_v57 = vrot.slane %v1926_v46, 5  ;;  %v1892_v59 = vshll.u32 %v1730_v41, 16  ;;  %v1150_v12 = vpop.permute.xlu0 %1149 }
  0xb2   : > { %v21090_v62 = vcombine.low %v1847_v47, %v1857_v55  ;;  %v1914_v63 = vrot.slane %v1913_v48, 4  ;;  %v1885_v0 = vrot.slane %v1883_v51, 4  ;;  %v1888_v1 = vrot.slane %v1886_v52, 5  ;;  %1197 = vst.msk [vmem:[#allocation3 + $0x8] sm:$0xff] %vm1195_vm9, %v1150_v12  ;;  %v20479_v47 = vld [vmem:[#allocation2 + $0xc0] sm:$0xff]  }
  0xb3   : > { %v1924_v3 = vrot.slane %v1923_v56, 4  ;;  %v1894_v4 = vrot.slane %v1892_v59, 5  ;;  %v1896_v5 = vshrl.u32 %v1730_v41, 16  ;;  %v1902_v6 = vshll.u32 %v1731_v49, 16 }
  0xb4   : > { %1673 = vrot.lane.b32.xlu0 %v20475_v36, %s20595_s5  ;;  %v1919_v7 = vsel %vm20773_vm4, %v1914_v63, %v1918_v40  ;;  %v1889_v8 = vor.u32 %v1888_v1, %v1885_v0  ;;  %v1955_v10 = vshrl.u32 %v1738_v53, 16  ;;  %v1958_v11 = vshll.u32 %v1738_v53, 16  ;;  %v1744_v36 = vld [vmem:[#allocation2 + $0x84] sm:$0xf]  ;;  %v1745_v53 = vld [vmem:[#allocation2 + $0x88] sm:$0xf] }
  0xb5   : > { %1667 = vrot.lane.b32.xlu1 %v20474_v42, %s20595_s5  ;;  %v1929_v13 = vsel %vm20773_vm4, %v1924_v3, %v1928_v57  ;;  %v1898_v14 = vrot.slane %v1896_v5, 4  ;;  %v1904_v16 = vrot.slane %v1902_v6, 5  ;;  %v1964_v17 = vshll.u32 %v1739_v60, 16  ;;  %v1152_v37 = vpop.permute.xlu1 %1151  ;;  %v1746_v57 = vld [vmem:[#allocation2 + $0x8c] sm:$0x1] }
  0xb6   : > { %v21099_v19 = vcombine.low %v1919_v7, %v1929_v13  ;;  %v1890_v20 = vrot.slane %v1889_v8, 4  ;;  %v1957_v21 = vrot.slane %v1955_v10, 4  ;;  %v1960_v22 = vrot.slane %v1958_v11, 5  ;;  %1198 = vst.msk [vmem:[#allocation3 + $0x10] sm:$0xff] %vm1195_vm9, %v1152_v37  ;;  %v1741_v0 = vld [vmem:[#allocation2 + $0x78] sm:$0xf] }
  0xb7   : > { %v1899_v26 = vor.u32 %v1898_v14, %v1894_v4  ;;  %v1966_v27 = vrot.slane %v1964_v17, 5  ;;  %v1968_v28 = vshrl.u32 %v1739_v60, 16  ;;  %v1974_v29 = vshll.u32 %v1740_v9, 16  ;;  %v1742_v5 = vld [vmem:[#allocation2 + $0x7c] sm:$0xf] }
  0xb8   : > { %1677 = vrot.lane.b32.xlu0 %v20477_v61, %s20595_s5  ;;  %v1895_v32 = vsel %vm20773_vm4, %v1890_v20, %v1894_v4  ;;  %v1961_v33 = vor.u32 %v1960_v22, %v1957_v21  ;;  %v1931_v34 = vshrl.u32 %v1735_v18, 16  ;;  %v1934_v35 = vshll.u32 %v1735_v18, 16  ;;  %v1743_v11 = vld [vmem:[#allocation2 + $0x80] sm:$0x1]  ;;  %v1752_v37 = vld [vmem:[#allocation2 + $0xa4] sm:$0x1] }
  0xb9   : > { %1671 = vrot.lane.b32.xlu1 %v20476_v2, %s20595_s5  ;;  %v1900_v38 = vrot.slane %v1899_v26, 4  ;;  %v1970_v39 = vrot.slane %v1968_v28, 4  ;;  %v1976_v40 = vrot.slane %v1974_v29, 5  ;;  %v1940_v41 = vshll.u32 %v1736_v24, 16 }
  0xba   : > { %v1962_v42 = vrot.slane %v1961_v33, 4  ;;  %v1933_v44 = vrot.slane %v1931_v34, 4  ;;  %v1936_v45 = vrot.slane %v1934_v35, 5  ;;  %v1944_v46 = vshrl.u32 %v1736_v24, 16  ;;  %v1751_v33 = vld [vmem:[#allocation2 + $0xa0] sm:$0xf] }
  0xbb   : > { %v1905_v48 = vsel %vm20773_vm4, %v1900_v38, %v1904_v16  ;;  %v1971_v49 = vor.u32 %v1970_v39, %v1966_v27  ;;  %v1942_v51 = vrot.slane %v1940_v41, 5  ;;  %v1950_v52 = vshll.u32 %v1737_v31, 16  ;;  %v1156_v6 = vpop.permute.xlu0 %1155 }
  0xbc   : > { %2194 = vrot.lane.b32.xlu0 %v21056_v30, %s20596_s29  ;;  %v21110_v54 = vcombine.low %v1895_v32, %v1905_v48  ;;  %v1967_v55 = vsel %vm20773_vm4, %v1962_v42, %v1966_v27  ;;  %v1937_v30 = vor.u32 %v1936_v45, %v1933_v44  ;;  %v1946_v56 = vrot.slane %v1944_v46, 4  ;;  %1200 = vst.msk [vmem:[#allocation3 + $0x20] sm:$0xff] %vm1195_vm9, %v1156_v6  ;;  %v1750_v27 = vld [vmem:[#allocation2 + $0x9c] sm:$0xf]  ;;  %v1747_v42 = vld [vmem:[#allocation2 + $0x90] sm:$0xf] }
  0xbd   : > { %1675 = vrot.lane.b32.xlu1 %v20478_v25, %s20595_s5  ;;  %v1972_v59 = vrot.slane %v1971_v49, 4  ;;  %v1952_v60 = vrot.slane %v1950_v52, 5  ;;  %v2003_v61 = vshrl.u32 %v1744_v36, 16  ;;  %v2006_v63 = vshll.u32 %v1744_v36, 16  ;;  %v1748_v48 = vld [vmem:[#allocation2 + $0x94] sm:$0xf] }
  0xbe   : > { %v1938_v1 = vrot.slane %v1937_v30, 4  ;;  %v1947_v2 = vor.u32 %v1946_v56, %v1942_v51  ;;  %v2012_v3 = vshll.u32 %v1745_v53, 16  ;;  %v2016_v4 = vshrl.u32 %v1745_v53, 16  ;;  %v1154_v16 = vpop.permute.xlu1 %1153 }
  0xbf   : > { %v1977_v7 = vsel %vm20773_vm4, %v1972_v59, %v1976_v40  ;;  %v2005_v8 = vrot.slane %v2003_v61, 4  ;;  %v2008_v9 = vrot.slane %v2006_v63, 5  ;;  %v2022_v10 = vshll.u32 %v1746_v57, 16  ;;  %1199 = vst.msk [vmem:[#allocation3 + $0x18] sm:$0xff] %vm1195_vm9, %v1154_v16 }
  0xc0   : > { %2198 = vrot.lane.b32.xlu0 %v21065_v58, %s20596_s29  ;;  %v20236_v12 = vcombine.low %v1967_v55, %v1977_v7  ;;  %v1943_v58 = vsel %vm20773_vm4, %v1938_v1, %v1942_v51  ;;  %v1948_v13 = vrot.slane %v1947_v2, 4  ;;  %v2014_v14 = vrot.slane %v2012_v3, 5  ;;  %v1756_v3 = vld [vmem:[#allocation2 + $0xb4] sm:$0xf] }
  0xc1   : > { %1679 = vrot.lane.b32.xlu1 %v20479_v47, %s20595_s5  ;;  %v2009_v17 = vor.u32 %v2008_v9, %v2005_v8  ;;  %v2018_v18 = vrot.slane %v2016_v4, 4  ;;  %v2024_v20 = vrot.slane %v2022_v10, 5  ;;  %v1979_v21 = vshrl.u32 %v1741_v0, 16  ;;  %v1757_v9 = vld [vmem:[#allocation2 + $0xb8] sm:$0xf] }
  0xc2   : > { %v1953_v22 = vsel %vm20773_vm4, %v1948_v13, %v1952_v60  ;;  %v1982_v24 = vshll.u32 %v1741_v0, 16  ;;  %v1988_v25 = vshll.u32 %v1742_v5, 16  ;;  %v1992_v26 = vshrl.u32 %v1742_v5, 16  ;;  %v1749_v0 = vld [vmem:[#allocation2 + $0x98] sm:$0x1] }
  0xc3   : > { %v21129_v28 = vcombine.low %v1943_v58, %v1953_v22  ;;  %v2010_v29 = vrot.slane %v2009_v17, 4  ;;  %v2019_v31 = vor.u32 %v2018_v18, %v2014_v14  ;;  %v1981_v32 = vrot.slane %v1979_v21, 4  ;;  %v1758_v13 = vld [vmem:[#allocation2 + $0xbc] sm:$0x1] }
  0xc4   : > { %2202 = vrot.lane.b32.xlu0 %v21082_v43, %s20596_s29  ;;  %v1984_v34 = vrot.slane %v1982_v24, 5  ;;  %v1990_v35 = vrot.slane %v1988_v25, 5  ;;  %v1994_v36 = vrot.slane %v1992_v26, 4  ;;  %v1998_v43 = vshll.u32 %v1743_v11, 16  ;;  %v1160_v44 = vpop.permute.xlu0 %1159  ;;  %v1754_v26 = vld [vmem:[#allocation2 + $0xac] sm:$0xf] }
  0xc5   : > { %2196 = vrot.lane.b32.xlu1 %v21073_v15, %s20596_s29  ;;  %v2015_v38 = vsel %vm20773_vm4, %v2010_v29, %v2014_v14  ;;  %v2020_v39 = vrot.slane %v2019_v31, 4  ;;  %v2051_v40 = vshrl.u32 %v1750_v27, 16  ;;  %v2054_v41 = vshll.u32 %v1750_v27, 16  ;;  %1202 = vst.msk [vmem:[#allocation3 + $0x30] sm:$0xff] %vm1195_vm9, %v1160_v44 }
  0xc6   : > { %v1985_v15 = vor.u32 %v1984_v34, %v1981_v32  ;;  %v1995_v45 = vor.u32 %v1994_v36, %v1990_v35  ;;  %v2000_v46 = vrot.slane %v1998_v43, 5  ;;  %v2060_v47 = vshll.u32 %v1751_v33, 16 }
  0xc7   : > { %v2025_v49 = vsel %vm20773_vm4, %v2020_v39, %v2024_v20  ;;  %v2053_v51 = vrot.slane %v2051_v40, 4  ;;  %v2056_v52 = vrot.slane %v2054_v41, 5  ;;  %v2064_v53 = vshrl.u32 %v1751_v33, 16  ;;  %v1753_v20 = vld [vmem:[#allocation2 + $0xa8] sm:$0xf] }
  0xc8   : > { %2206 = vrot.lane.b32.xlu0 %v21099_v19, %s20596_s29  ;;  %v20238_v55 = vcombine.low %v2015_v38, %v2025_v49  ;;  %v1986_v30 = vrot.slane %v1985_v15, 4  ;;  %v1996_v56 = vrot.slane %v1995_v45, 4  ;;  %v2062_v19 = vrot.slane %v2060_v47, 5  ;;  %v1755_v39 = vld [vmem:[#allocation2 + $0xb0] sm:$0x1] }
  0xc9   : > { %2200 = vrot.lane.b32.xlu1 %v21090_v62, %s20596_s29  ;;  %v2057_v57 = vor.u32 %v2056_v52, %v2053_v51  ;;  %v2066_v59 = vrot.slane %v2064_v53, 4  ;;  %v2070_v60 = vshll.u32 %v1752_v37, 16  ;;  %v2027_v61 = vshrl.u32 %v1747_v42, 16  ;;  %v1158_v4 = vpop.permute.xlu1 %1157  ;;  %v2259_v15 = vld [vmem:[#allocation2 + $0xc] sm:$0xe] }
  0xca   : > { %v1991_v63 = vsel %vm20773_vm4, %v1986_v30, %v1990_v35  ;;  %v2001_v62 = vsel %vm20773_vm4, %v1996_v56, %v2000_v46  ;;  %v2030_v1 = vshll.u32 %v1747_v42, 16  ;;  %v2036_v2 = vshll.u32 %v1748_v48, 16  ;;  %1201 = vst.msk [vmem:[#allocation3 + $0x28] sm:$0xff] %vm1195_vm9, %v1158_v4  ;;  %v2260_v45 = vld [vmem:[#allocation2 + $0x10] sm:$0xf] }
  0xcb   : > { %v20237_v5 = vcombine.low %v1991_v63, %v2001_v62  ;;  %v2058_v6 = vrot.slane %v2057_v57, 4  ;;  %v2067_v7 = vor.u32 %v2066_v59, %v2062_v19  ;;  %v2072_v8 = vrot.slane %v2070_v60, 5  ;;  %v2261_v52 = vld [vmem:[#allocation2 + $0x14] sm:$0x1]  ;;  %v1760_v63 = vld [vmem:[#allocation2 + $0xc4] sm:$0xf] }
  0xcc   : > { %2210 = vrot.lane.b32.xlu0 %v20236_v12, %s20596_s29  ;;  %v2029_v10 = vrot.slane %v2027_v61, 4  ;;  %v2032_v11 = vrot.slane %v2030_v1, 5  ;;  %v2038_v12 = vrot.slane %v2036_v2, 5  ;;  %v2040_v58 = vshrl.u32 %v1748_v48, 16  ;;  %v1761_v4 = vld [vmem:[#allocation2 + $0xc8] sm:$0x1] }
  0xcd   : > { %2204 = vrot.lane.b32.xlu1 %v21110_v54, %s20596_s29  ;;  %v2063_v14 = vsel %vm20773_vm4, %v2058_v6, %v2062_v19  ;;  %v2068_v16 = vrot.slane %v2067_v7, 4  ;;  %v2046_v17 = vshll.u32 %v1749_v0, 16  ;;  %v2099_v18 = vshrl.u32 %v1756_v3, 16  ;;  %v1164_v54 = vpop.permute.xlu0 %1163  ;;  %v1759_v19 = vld [vmem:[#allocation2 + $0xc0] sm:$0xf] }
  0xce   : > { %v2033_v21 = vor.u32 %v2032_v11, %v2029_v10  ;;  %v2042_v22 = vrot.slane %v2040_v58, 4  ;;  %v2102_v24 = vshll.u32 %v1756_v3, 16  ;;  %v2108_v25 = vshll.u32 %v1757_v9, 16  ;;  %1204 = vst.msk [vmem:[#allocation3 + $0x40] sm:$0xff] %vm1195_vm9, %v1164_v54  ;;  %v2262_v54 = vld [vmem:[#allocation2 + $0x18] sm:$0xe] }
  0xcf   : > { %v2073_v27 = vsel %vm20773_vm4, %v2068_v16, %v2072_v8  ;;  %v2048_v29 = vrot.slane %v2046_v17, 5  ;;  %v2101_v31 = vrot.slane %v2099_v18, 4  ;;  %v2112_v32 = vshrl.u32 %v1757_v9, 16  ;;  %v2265_v9 = vld [vmem:[#allocation2 + $0x24] sm:$0xe] }
  0xd0   : > { %2214 = vrot.lane.b32.xlu0 %v20238_v55, %s20596_s29  ;;  %v20240_v33 = vcombine.low %v2063_v14, %v2073_v27  ;;  %v2034_v34 = vrot.slane %v2033_v21, 4  ;;  %v2043_v35 = vor.u32 %v2042_v22, %v2038_v12  ;;  %v2104_v36 = vrot.slane %v2102_v24, 5  ;;  %v2263_v21 = vld [vmem:[#allocation2 + $0x1c] sm:$0xf]  ;;  %v2264_v27 = vld [vmem:[#allocation2 + $0x20] sm:$0x1] }
  0xd1   : > { %2208 = vrot.lane.b32.xlu1 %v21129_v28, %s20596_s29  ;;  %v2110_v43 = vrot.slane %v2108_v25, 5  ;;  %v2114_v37 = vrot.slane %v2112_v32, 4  ;;  %v2118_v38 = vshll.u32 %v1758_v13, 16  ;;  %v2075_v40 = vshrl.u32 %v1753_v20, 16  ;;  %v2266_v13 = vld [vmem:[#allocation2 + $0x28] sm:$0xf] }
  0xd2   : > { %v2039_v28 = vsel %vm20773_vm4, %v2034_v34, %v2038_v12  ;;  %v2044_v41 = vrot.slane %v2043_v35, 4  ;;  %v2105_v42 = vor.u32 %v2104_v36, %v2101_v31  ;;  %v2078_v44 = vshll.u32 %v1753_v20, 16  ;;  %v2267_v20 = vld [vmem:[#allocation2 + $0x2c] sm:$0x1]  ;;  %v2271_v35 = vld [vmem:[#allocation2 + $0x3c] sm:$0xe] }
  0xd3   : > { %v1162_v46 = vpop.permute.xlu1 %1161  ;;  %v2115_v47 = vor.u32 %v2114_v37, %v2110_v43  ;;  %v2120_v48 = vrot.slane %v2118_v38, 5  ;;  %v2077_v49 = vrot.slane %v2075_v40, 4  ;;  %v2084_v51 = vshll.u32 %v1754_v26, 16  ;;  %v2273_v40 = vld [vmem:[#allocation2 + $0x44] sm:$0x1] }
  0xd4   : > { %2218 = vrot.lane.b32.xlu0 %v20240_v33, %s20596_s29  ;;  %1203 = vst.msk [vmem:[#allocation3 + $0x38] sm:$0xff] %vm1195_vm9, %v1162_v46  ;;  %v2049_v53 = vsel %vm20773_vm4, %v2044_v41, %v2048_v29  ;;  %v2106_v55 = vrot.slane %v2105_v42, 4  ;;  %v2080_v30 = vrot.slane %v2078_v44, 5  ;;  %v2088_v56 = vshrl.u32 %v1754_v26, 16 }
  0xd5   : > { %2212 = vrot.lane.b32.xlu1 %v20237_v5, %s20596_s29  ;;  %v20239_v57 = vcombine.low %v2039_v28, %v2049_v53  ;;  %v2116_v59 = vrot.slane %v2115_v47, 4  ;;  %v2086_v60 = vrot.slane %v2084_v51, 5  ;;  %v2094_v61 = vshll.u32 %v1755_v39, 16  ;;  %v2272_v39 = vld [vmem:[#allocation2 + $0x40] sm:$0xf] }
  0xd6   : > { %v2111_v0 = vsel %vm20773_vm4, %v2106_v55, %v2110_v43  ;;  %v2081_v1 = vor.u32 %v2080_v30, %v2077_v49  ;;  %v2090_v2 = vrot.slane %v2088_v56, 4  ;;  %v20244_v3 = vrot.slane %v2259_v15, 9  ;;  %v2268_v15 = vld [vmem:[#allocation2 + $0x30] sm:$0xe]  ;;  %v2269_v30 = vld [vmem:[#allocation2 + $0x34] sm:$0xf] }
  0xd7   : > { %v1168_v62 = vpop.permute.xlu0 %1167  ;;  %v2121_v5 = vsel %vm20773_vm4, %v2116_v59, %v2120_v48  ;;  %v2096_v6 = vrot.slane %v2094_v61, 5  ;;  %v2357_v7 = vrot.slane %v2260_v45, 5  ;;  %v2360_v8 = vrot.slane %v2261_v52, 5  ;;  %v2270_v56 = vld [vmem:[#allocation2 + $0x38] sm:$0x1] }
  0xd8   : > { %1206 = vst.msk [vmem:[#allocation3 + $0x50] sm:$0xff] %vm1195_vm9, %v1168_v62  ;;  %v20242_v10 = vcombine.low %v2111_v0, %v2121_v5  ;;  %v2082_v11 = vrot.slane %v2081_v1, 4  ;;  %v2091_v12 = vor.u32 %v2090_v2, %v2086_v60  ;;  %v2123_v58 = vshrl.u32 %v1759_v19, 16 }
  0xd9   : > { %2216 = vrot.lane.b32.xlu1 %v20239_v57, %s20596_s29  ;;  %v2358_v14 = vsel %vm20895_vm7, %v20244_v3, %v2357_v7  ;;  %v2359_v16 = vrot.slane %v2357_v7, 4  ;;  %v2126_v17 = vshll.u32 %v1759_v19, 16  ;;  %v2132_v18 = vshll.u32 %v1760_v63, 16  ;;  %v2277_v19 = vld [vmem:[#allocation2 + $0x54] sm:$0xe] }
  0xda   : > { %2222 = vrot.lane.b32.xlu0 %v20242_v10, %s20596_s29  ;;  %v2087_v22 = vsel %vm20773_vm4, %v2082_v11, %v2086_v60  ;;  %v2092_v24 = vrot.slane %v2091_v12, 4  ;;  %v2125_v25 = vrot.slane %v2123_v58, 4  ;;  %v2136_v26 = vshrl.u32 %v1760_v63, 16  ;;  %v2278_v63 = vld [vmem:[#allocation2 + $0x58] sm:$0xf] }
  0xdb   : > { %v2361_v31 = vsel %vm20895_vm7, %v2359_v16, %v2360_v8  ;;  %v2128_v32 = vrot.slane %v2126_v17, 5  ;;  %v2134_v33 = vrot.slane %v2132_v18, 5  ;;  %v2142_v34 = vshll.u32 %v1761_v4, 16  ;;  %v2279_v3 = vld [vmem:[#allocation2 + $0x5c] sm:$0x1] }
  0xdc   : > { %v1166_v29 = vpop.permute.xlu1 %1165  ;;  %v2097_v36 = vsel %vm20773_vm4, %v2092_v24, %v2096_v6  ;;  %v20260_v43 = vcombine.low %v2358_v14, %v2361_v31  ;;  %v2138_v37 = vrot.slane %v2136_v26, 4  ;;  %v20246_v38 = vrot.slane %v2265_v9, 9  ;;  %v2274_v4 = vld [vmem:[#allocation2 + $0x48] sm:$0xe]  ;;  %v2275_v10 = vld [vmem:[#allocation2 + $0x4c] sm:$0xf] }
  0xdd   : > { %1205 = vst.msk [vmem:[#allocation3 + $0x48] sm:$0xff] %vm1195_vm9, %v1166_v29  ;;  %v20241_v28 = vcombine.low %v2087_v22, %v2097_v36  ;;  %v2129_v41 = vor.u32 %v2128_v32, %v2125_v25  ;;  %v2144_v42 = vrot.slane %v2142_v34, 5  ;;  %v2371_v44 = vrot.slane %v2266_v13, 5  ;;  %v2276_v11 = vld [vmem:[#allocation2 + $0x50] sm:$0x1] }
  0xde   : > { %2515 = vrot.lane.b32.xlu0 %v20260_v43, %s20597_s7  ;;  %v2139_v45 = vor.u32 %v2138_v37, %v2134_v33  ;;  %v2374_v46 = vrot.slane %v2267_v20, 5  ;;  %v20245_v47 = vrot.slane %v2262_v54, 9  ;;  %v2364_v48 = vrot.slane %v2263_v21, 5  ;;  %v2283_v16 = vld [vmem:[#allocation2 + $0x6c] sm:$0xe] }
  0xdf   : > { %2220 = vrot.lane.b32.xlu1 %v20241_v28, %s20596_s29  ;;  %v2130_v49 = vrot.slane %v2129_v41, 4  ;;  %v2372_v51 = vsel %vm20895_vm7, %v20246_v38, %v2371_v44  ;;  %v2373_v52 = vrot.slane %v2371_v44, 4  ;;  %v2367_v53 = vrot.slane %v2264_v27, 5  ;;  %v2284_v17 = vld [vmem:[#allocation2 + $0x70] sm:$0xf] }
  0xe0   : > { %v2140_v57 = vrot.slane %v2139_v45, 4  ;;  %v2365_v59 = vsel %vm20895_vm7, %v20245_v47, %v2364_v48  ;;  %v2366_v60 = vrot.slane %v2364_v48, 4  ;;  %v20248_v61 = vrot.slane %v2271_v35, 9  ;;  %v2285_v27 = vld [vmem:[#allocation2 + $0x74] sm:$0x1] }
  0xe1   : > { %v1172_v55 = vpop.permute.xlu0 %1171  ;;  %v2135_v62 = vsel %vm20773_vm4, %v2130_v49, %v2134_v33  ;;  %v2375_v0 = vsel %vm20895_vm7, %v2373_v52, %v2374_v46  ;;  %v2385_v1 = vrot.slane %v2272_v39, 5  ;;  %v2388_v2 = vrot.slane %v2273_v40, 5  ;;  %v2280_v34 = vld [vmem:[#allocation2 + $0x60] sm:$0xe]  ;;  %v2281_v35 = vld [vmem:[#allocation2 + $0x64] sm:$0xf] }
  0xe2   : > { %1208 = vst.msk [vmem:[#allocation3 + $0x60] sm:$0xff] %vm1195_vm9, %v1172_v55  ;;  %v2145_v5 = vsel %vm20773_vm4, %v2140_v57, %v2144_v42  ;;  %v20262_v6 = vcombine.low %v2372_v51, %v2375_v0  ;;  %v2368_v7 = vsel %vm20895_vm7, %v2366_v60, %v2367_v53  ;;  %v20247_v8 = vrot.slane %v2268_v15, 9  ;;  %v2282_v36 = vld [vmem:[#allocation2 + $0x68] sm:$0x1]  ;;  %v2289_v28 = vld [vmem:[#allocation2 + $0x84] sm:$0xe] }
  0xe3   : > { %v20243_v12 = vcombine.low %v2135_v62, %v2145_v5  ;;  %v20261_v58 = vcombine.low %v2365_v59, %v2368_v7  ;;  %v2386_v13 = vsel %vm20895_vm7, %v20248_v61, %v2385_v1  ;;  %v2387_v14 = vrot.slane %v2385_v1, 4  ;;  %v2290_v45 = vld [vmem:[#allocation2 + $0x88] sm:$0xf]  ;;  %v2291_v49 = vld [vmem:[#allocation2 + $0x8c] sm:$0x1] }
  0xe4   : > { %v1170_v9 = vpop.permute.xlu1 %1169  ;;  %2519 = vrot.lane.b32.xlu0 %v20262_v6, %s20597_s7  ;;  %v2378_v18 = vrot.slane %v2269_v30, 5  ;;  %v2381_v20 = vrot.slane %v2270_v56, 5  ;;  %v20250_v54 = vrot.slane %v2277_v19, 9  ;;  %v2399_v21 = vrot.slane %v2278_v63, 5  ;;  %v2286_v30 = vld [vmem:[#allocation2 + $0x78] sm:$0xe] }
  0xe5   : > { %1207 = vst.msk [vmem:[#allocation3 + $0x58] sm:$0xff] %vm1195_vm9, %v1170_v9  ;;  %2224 = vrot.lane.b32.xlu1 %v20243_v12, %s20596_s29  ;;  %v2389_v22 = vsel %vm20895_vm7, %v2387_v14, %v2388_v2  ;;  %v2402_v24 = vrot.slane %v2279_v3, 5  ;;  %v20249_v25 = vrot.slane %v2274_v4, 9  ;;  %v2392_v26 = vrot.slane %v2275_v10, 5  ;;  %v2287_v61 = vld [vmem:[#allocation2 + $0x7c] sm:$0xf] }
  0xe6   : > { %v20264_v29 = vcombine.low %v2386_v13, %v2389_v22  ;;  %v2379_v31 = vsel %vm20895_vm7, %v20247_v8, %v2378_v18  ;;  %v2380_v32 = vrot.slane %v2378_v18, 4  ;;  %v2400_v33 = vsel %vm20895_vm7, %v20250_v54, %v2399_v21  ;;  %v2288_v2 = vld [vmem:[#allocation2 + $0x80] sm:$0x1]  ;;  %v2295_v8 = vld [vmem:[#allocation2 + $0x9c] sm:$0xe] }
  0xe7   : > { %v2401_v43 = vrot.slane %v2399_v21, 4  ;;  %v2393_v38 = vsel %vm20895_vm7, %v20249_v25, %v2392_v26  ;;  %v2394_v39 = vrot.slane %v2392_v26, 4  ;;  %v2395_v40 = vrot.slane %v2276_v11, 5  ;;  %v2296_v9 = vld [vmem:[#allocation2 + $0xa0] sm:$0xf] }
  0xe8   : > { %2523 = vrot.lane.b32.xlu0 %v20264_v29, %s20597_s7  ;;  %v2382_v41 = vsel %vm20895_vm7, %v2380_v32, %v2381_v20  ;;  %v20252_v42 = vrot.slane %v2283_v16, 9  ;;  %v2413_v44 = vrot.slane %v2284_v17, 5  ;;  %v2416_v15 = vrot.slane %v2285_v27, 5  ;;  %v2292_v18 = vld [vmem:[#allocation2 + $0x90] sm:$0xe] }
  0xe9   : > { %v1176_v37 = vpop.permute.xlu0 %1175  ;;  %2517 = vrot.lane.b32.xlu1 %v20261_v58, %s20597_s7  ;;  %v20263_v46 = vcombine.low %v2379_v31, %v2382_v41  ;;  %v2403_v47 = vsel %vm20895_vm7, %v2401_v43, %v2402_v24  ;;  %v2396_v48 = vsel %vm20895_vm7, %v2394_v39, %v2395_v40  ;;  %v20251_v19 = vrot.slane %v2280_v34, 9  ;;  %v2297_v58 = vld [vmem:[#allocation2 + $0xa4] sm:$0x1]  ;;  %v2293_v20 = vld [vmem:[#allocation2 + $0x94] sm:$0xf] }
  0xea   : > { %1210 = vst.msk [vmem:[#allocation3 + $0x70] sm:$0xff] %vm1195_vm9, %v1176_v37  ;;  %v20266_v51 = vcombine.low %v2400_v33, %v2403_v47  ;;  %v20265_v52 = vcombine.low %v2393_v38, %v2396_v48  ;;  %v2414_v53 = vsel %vm20895_vm7, %v20252_v42, %v2413_v44  ;;  %v2415_v55 = vrot.slane %v2413_v44, 4  ;;  %v2294_v26 = vld [vmem:[#allocation2 + $0x98] sm:$0x1]  ;;  %v2301_v27 = vld [vmem:[#allocation2 + $0xb4] sm:$0xe] }
  0xeb   : > { %v2406_v57 = vrot.slane %v2281_v35, 5  ;;  %v2409_v59 = vrot.slane %v2282_v36, 5  ;;  %v20254_v60 = vrot.slane %v2289_v28, 9  ;;  %v2427_v0 = vrot.slane %v2290_v45, 5  ;;  %v2302_v35 = vld [vmem:[#allocation2 + $0xb8] sm:$0xf] }
  0xec   : > { %2527 = vrot.lane.b32.xlu0 %v20266_v51, %s20597_s7  ;;  %v2417_v63 = vsel %vm20895_vm7, %v2415_v55, %v2416_v15  ;;  %v2430_v1 = vrot.slane %v2291_v49, 5  ;;  %v20253_v3 = vrot.slane %v2286_v30, 9  ;;  %v2420_v7 = vrot.slane %v2287_v61, 5  ;;  %v2303_v36 = vld [vmem:[#allocation2 + $0xbc] sm:$0x1] }
  0xed   : > { %v1472_v56 = vpop.permute.xlu0 %1471  ;;  %v1174_v62 = vpop.permute.xlu1 %1173  ;;  %2521 = vrot.lane.b32.xlu1 %v20263_v46, %s20597_s7  ;;  %v20268_v4 = vcombine.low %v2414_v53, %v2417_v63  ;;  %v2407_v5 = vsel %vm20895_vm7, %v20251_v19, %v2406_v57  ;;  %v2408_v6 = vrot.slane %v2406_v57, 4  ;;  %v2428_v10 = vsel %vm20895_vm7, %v20254_v60, %v2427_v0  ;;  %v2298_v40 = vld [vmem:[#allocation2 + $0xa8] sm:$0xe]  ;;  %v2299_v44 = vld [vmem:[#allocation2 + $0xac] sm:$0xf] }
  0xee   : > { %1520 = vst.msk [vmem:[#allocation3] sm:$0xff] %vm1519_vm10, %v1472_v56  ;;  %v2429_v11 = vrot.slane %v2427_v0, 4  ;;  %v2423_v12 = vrot.slane %v2288_v2, 5  ;;  %v20256_v13 = vrot.slane %v2295_v8, 9  ;;  %v2422_v16 = vrot.slane %v2420_v7, 4 }
  0xef   : > { %1209 = vst.msk [vmem:[#allocation3 + $0x68] sm:$0xff] %vm1195_vm9, %v1174_v62  ;;  %v2410_v14 = vsel %vm20895_vm7, %v2408_v6, %v2409_v59  ;;  %v2441_v17 = vrot.slane %v2296_v9, 5  ;;  %v2421_v24 = vsel %vm20895_vm7, %v20253_v3, %v2420_v7  ;;  %v2444_v25 = vrot.slane %v2297_v58, 5  ;;  %v2300_v15 = vld [vmem:[#allocation2 + $0xb0] sm:$0x1]  ;;  %v20496_v7 = vld [vmem:[#allocation2 + $0x18] sm:$0xff]  }
  0xf0   : > { %2531 = vrot.lane.b32.xlu0 %v20268_v4, %s20597_s7  ;;  %v20267_v54 = vcombine.low %v2407_v5, %v2410_v14  ;;  %v2431_v21 = vsel %vm20895_vm7, %v2429_v11, %v2430_v1  ;;  %v20255_v34 = vrot.slane %v2292_v18, 9  ;;  %v2424_v43 = vsel %vm20895_vm7, %v2422_v16, %v2423_v12  ;;  %v2304_v55 = vld [vmem:[#allocation2 + $0xc0] sm:$0xe]  ;;  %v2305_v59 = vld [vmem:[#allocation2 + $0xc4] sm:$0xf]  ;;  %v20497_v14 = vld [vmem:[#allocation2 + $0x30] sm:$0xff]  }
  0xf1   : > { %2525 = vrot.lane.b32.xlu1 %v20265_v52, %s20597_s7  ;;  %v20270_v29 = vcombine.low %v2428_v10, %v2431_v21  ;;  %v2442_v32 = vsel %vm20895_vm7, %v20256_v13, %v2441_v17  ;;  %v2443_v33 = vrot.slane %v2441_v17, 4  ;;  %v2434_v37 = vrot.slane %v2293_v20, 5  ;;  %v2306_v60 = vld [vmem:[#allocation2 + $0xc8] sm:$0x1]  ;;  %v2758_v20 = vld [vmem:[#allocation2 + $0x18] sm:$0xf] }
  0xf2   : > { %v1476_v22 = vpop.permute.xlu0 %1475  ;;  %v2437_v38 = vrot.slane %v2294_v26, 5  ;;  %v20258_v39 = vrot.slane %v2301_v27, 9  ;;  %v2455_v41 = vrot.slane %v2302_v35, 5  ;;  %v2458_v42 = vrot.slane %v2303_v36, 5  ;;  %v2760_v21 = vld [vmem:[#allocation2 + $0x20] sm:$0x1] }
  0xf3   : > { %v1178_v31 = vpop.permute.xlu1 %1177  ;;  %1522 = vst.msk [vmem:[#allocation3 + $0x10] sm:$0xff] %vm1519_vm10, %v1476_v22  ;;  %v2445_v28 = vsel %vm20895_vm7, %v2443_v33, %v2444_v25  ;;  %v2436_v47 = vrot.slane %v2434_v37, 4  ;;  %v20269_v48 = vcombine.low %v2421_v24, %v2424_v43  ;;  %v2448_v53 = vrot.slane %v2299_v44, 5  ;;  %v20499_v27 = vld [vmem:[#allocation2 + $0x48] sm:$0xff]  }
  0xf4   : > { %1211 = vst.msk [vmem:[#allocation3 + $0x78] sm:$0xff] %vm1195_vm9, %v1178_v31  ;;  %2535 = vrot.lane.b32.xlu0 %v20270_v29, %s20597_s7  ;;  %v20272_v45 = vcombine.low %v2442_v32, %v2445_v28  ;;  %v2456_v51 = vsel %vm20895_vm7, %v20258_v39, %v2455_v41  ;;  %v2457_v52 = vrot.slane %v2455_v41, 4  ;;  %v2435_v30 = vsel %vm20895_vm7, %v20255_v34, %v2434_v37  ;;  %v512_v31 = vld [vmem:[%s402_s16] sm:$0xf]  ;;  %v513_v32 = vld [vmem:[%s402_s16 + $0x4] sm:$0xf] }
  0xf5   : > { %2529 = vrot.lane.b32.xlu1 %v20267_v54, %s20597_s7  ;;  %v2438_v56 = vsel %vm20895_vm7, %v2436_v47, %v2437_v38  ;;  %v20257_v19 = vrot.slane %v2298_v40, 9  ;;  %v2451_v57 = vrot.slane %v2300_v15, 5  ;;  %v2450_v63 = vrot.slane %v2448_v53, 4  ;;  %v2759_v54 = vld [vmem:[#allocation2 + $0x1c] sm:$0xf]  ;;  %v20498_v38 = vld [vmem:[#allocation2 + $0x24] sm:$0xff]  }
  0xf6   : > { %v1480_v46 = vpop.permute.xlu0 %1479  ;;  %v2459_v61 = vsel %vm20895_vm7, %v2457_v52, %v2458_v42  ;;  %v20259_v1 = vrot.slane %v2304_v55, 9  ;;  %v2462_v2 = vrot.slane %v2305_v59, 5  ;;  %v20271_v3 = vcombine.low %v2435_v30, %v2438_v56  ;;  %v514_v37 = vld [vmem:[%s402_s16 + $0x8] sm:$0x1]  ;;  %516 = vst.msk [vmem:[#allocation2 + $0xcc] sm:$0xf] %vm455_vm0, %v512_v31 }
  0xf7   : > { %v1474_v49 = vpop.permute.xlu1 %1473  ;;  %1524 = vst.msk [vmem:[#allocation3 + $0x20] sm:$0xff] %vm1519_vm10, %v1480_v46  ;;  %v20274_v62 = vcombine.low %v2456_v51, %v2459_v61  ;;  %v2449_v5 = vsel %vm20895_vm7, %v20257_v19, %v2448_v53  ;;  %v2452_v6 = vsel %vm20895_vm7, %v2450_v63, %v2451_v57  ;;  %v2465_v9 = vrot.slane %v2306_v60, 5  ;;  %v2764_v28 = vld [vmem:[#allocation2 + $0x30] sm:$0xf]  ;;  %v2765_v41 = vld [vmem:[#allocation2 + $0x34] sm:$0xf] }
  0xf8   : > { %1521 = vst.msk [vmem:[#allocation3 + $0x8] sm:$0xff] %vm1519_vm10, %v1474_v49  ;;  %2539 = vrot.lane.b32.xlu0 %v20272_v45, %s20597_s7  ;;  %v2464_v8 = vrot.slane %v2462_v2, 4  ;;  %v20273_v11 = vcombine.low %v2449_v5, %v2452_v6  ;;  %v2463_v58 = vsel %vm20895_vm7, %v20259_v1, %v2462_v2  ;;  %v2807_v22 = vshrl.u32 %v2758_v20, 16  ;;  %v2766_v15 = vld [vmem:[#allocation2 + $0x38] sm:$0x1]  ;;  %v20501_v49 = vld [vmem:[#allocation2 + $0x60] sm:$0xff]  }
  0xf9   : > { %2533 = vrot.lane.b32.xlu1 %v20269_v48, %s20597_s7  ;;  %v2810_v24 = vshll.u32 %v2758_v20, 16  ;;  %v2816_v25 = vshll.u32 %v2759_v54, 16  ;;  %v2820_v26 = vshrl.u32 %v2759_v54, 16  ;;  %v2826_v29 = vshll.u32 %v2760_v21, 16  ;;  %517 = vst.msk [vmem:[#allocation2 + $0xd0] sm:$0xf] %vm455_vm0, %v513_v32 }
  0xfa   : > { %v1484_v0 = vpop.permute.xlu0 %1483  ;;  %v2466_v13 = vsel %vm20895_vm7, %v2464_v8, %v2465_v9  ;;  %v2809_v34 = vrot.slane %v2807_v22, 4  ;;  %518 = vst.msk [vmem:[#allocation2 + $0xd4] sm:$0x1] %vm458_vm1, %v514_v37  ;;  %v2855_v45 = vshrl.u32 %v2764_v28, 16  ;;  %v2858_v46 = vshll.u32 %v2764_v28, 16  ;;  %v20500_v48 = vld [vmem:[#allocation2 + $0x3c] sm:$0xff]  }
  0xfb   : > { %v1478_v4 = vpop.permute.xlu1 %1477  ;;  %1526 = vst.msk [vmem:[#allocation3 + $0x30] sm:$0xff] %vm1519_vm10, %v1484_v0  ;;  %v20275_v17 = vcombine.low %v2463_v58, %v2466_v13  ;;  %v2812_v35 = vrot.slane %v2810_v24, 5  ;;  %v2818_v36 = vrot.slane %v2816_v25, 5  ;;  %v2822_v43 = vrot.slane %v2820_v26, 4  ;;  %v2761_v47 = vld [vmem:[#allocation2 + $0x24] sm:$0xf] }
  0xfc   : > { %1523 = vst.msk [vmem:[#allocation3 + $0x18] sm:$0xff] %vm1519_vm10, %v1478_v4  ;;  %2543 = vrot.lane.b32.xlu0 %v20274_v62, %s20597_s7  ;;  %v2828_v40 = vrot.slane %v2826_v29, 5  ;;  %v2864_v51 = vshll.u32 %v2765_v41, 16  ;;  %v2868_v52 = vshrl.u32 %v2765_v41, 16  ;;  %v2874_v53 = vshll.u32 %v2766_v15, 16  ;;  %v20503_v2 = vld [vmem:[#allocation2 + $0x78] sm:$0xff]  }
  0xfd   : > { %2537 = vrot.lane.b32.xlu1 %v20271_v3, %s20597_s7  ;;  %v2813_v42 = vor.u32 %v2812_v35, %v2809_v34  ;;  %v2823_v44 = vor.u32 %v2822_v43, %v2818_v36  ;;  %v2831_v55 = vshrl.u32 %v2761_v47, 16  ;;  %v2857_v57 = vrot.slane %v2855_v45, 4  ;;  %v2762_v60 = vld [vmem:[#allocation2 + $0x28] sm:$0xf]  ;;  %v2763_v0 = vld [vmem:[#allocation2 + $0x2c] sm:$0x1] }
  0xfe   : > { %v1488_v10 = vpop.permute.xlu0 %1487  ;;  %v2860_v59 = vrot.slane %v2858_v46, 5  ;;  %v2866_v63 = vrot.slane %v2864_v51, 5  ;;  %v2870_v62 = vrot.slane %v2868_v52, 4  ;;  %v2834_v6 = vshll.u32 %v2761_v47, 16  ;;  %v2772_v31 = vld [vmem:[#allocation2 + $0x50] sm:$0x1] }
  0xff   : > { %v1482_v12 = vpop.permute.xlu1 %1481  ;;  %1528 = vst.msk [vmem:[#allocation3 + $0x40] sm:$0xff] %vm1519_vm10, %v1488_v10  ;;  %v2814_v56 = vrot.slane %v2813_v42, 4  ;;  %v2824_v19 = vrot.slane %v2823_v44, 4  ;;  %v2833_v1 = vrot.slane %v2831_v55, 4  ;;  %v2876_v10 = vrot.slane %v2874_v53, 5  ;;  %v20505_v43 = vld [vmem:[#allocation2 + $0x90] sm:$0xff]  }
 0x100   : > { %1525 = vst.msk [vmem:[#allocation3 + $0x28] sm:$0xff] %vm1519_vm10, %v1482_v12  ;;  %2693 = vrot.lane.b32.xlu0 %v20496_v7, %s20598_s12  ;;  %v2861_v5 = vor.u32 %v2860_v59, %v2857_v57  ;;  %v2770_v7 = vld [vmem:[#allocation2 + $0x48] sm:$0xf]  ;;  %v2871_v9 = vor.u32 %v2870_v62, %v2866_v63  ;;  %v2836_v13 = vrot.slane %v2834_v6, 5  ;;  %v2767_v32 = vld [vmem:[#allocation2 + $0x3c] sm:$0xf] }
 0x101   : > { %2541 = vrot.lane.b32.xlu1 %v20273_v11, %s20597_s7  ;;  %v2819_v3 = vsel %vm20773_vm4, %v2814_v56, %v2818_v36  ;;  %v2829_v4 = vsel %vm20773_vm4, %v2824_v19, %v2828_v40  ;;  %v2840_v11 = vshll.u32 %v2762_v60, 16  ;;  %v2903_v22 = vshrl.u32 %v2770_v7, 16  ;;  %v2768_v41 = vld [vmem:[#allocation2 + $0x40] sm:$0xf]  ;;  %v20504_v42 = vld [vmem:[#allocation2 + $0x6c] sm:$0xff]   ;;  %s3754_s16 = sld [smem:[#allocation4]] }
 0x102   : > { %v1492_v16 = vpop.permute.xlu0 %1491  ;;  %v21297_v8 = vcombine.low %v2819_v3, %v2829_v4  ;;  %v2862_v58 = vrot.slane %v2861_v5, 4  ;;  %v2872_v54 = vrot.slane %v2871_v9, 4  ;;  %v2906_v24 = vshll.u32 %v2770_v7, 16  ;;  %v2769_v52 = vld [vmem:[#allocation2 + $0x44] sm:$0x1]  ;;  %v20507_v59 = vld [vmem:[#allocation2 + $0xa8] sm:$0xff]  }
 0x103   : > { %v1486_v18 = vpop.permute.xlu1 %1485  ;;  %1530 = vst.msk [vmem:[#allocation3 + $0x50] sm:$0xff] %vm1519_vm10, %v1492_v16  ;;  %v2850_v16 = vshll.u32 %v2763_v0, 16  ;;  %v2842_v21 = vrot.slane %v2840_v11, 5  ;;  %v2837_v26 = vor.u32 %v2836_v13, %v2833_v1  ;;  %v2905_v34 = vrot.slane %v2903_v22, 4  ;;  %v2776_v57 = vld [vmem:[#allocation2 + $0x60] sm:$0xf] }
 0x104   : > { %1527 = vst.msk [vmem:[#allocation3 + $0x38] sm:$0xff] %vm1519_vm10, %v1486_v18  ;;  %2697 = vrot.lane.b32.xlu0 %v20497_v14, %s20598_s12  ;;  %v2844_v14 = vshrl.u32 %v2762_v60, 16  ;;  %v20502_v18 = vld [vmem:[#allocation2 + $0x54] sm:$0xff]   ;;  %v2867_v25 = vsel %vm20773_vm4, %v2862_v58, %v2866_v63  ;;  %v2908_v35 = vrot.slane %v2906_v24, 5  ;;  %v2922_v46 = vshll.u32 %v2772_v31, 16 }
 0x105   : > { %2545 = vrot.lane.b32.xlu1 %v20275_v17, %s20597_s7  ;;  %v2771_v17 = vld [vmem:[#allocation2 + $0x4c] sm:$0xf]  ;;  %v2852_v29 = vrot.slane %v2850_v16, 5  ;;  %v2879_v47 = vshrl.u32 %v2767_v32, 16  ;;  %v2882_v53 = vshll.u32 %v2767_v32, 16  ;;  %v2888_v19 = vshll.u32 %v2768_v41, 16 }
 0x106   : > { %v1496_v33 = vpop.permute.xlu0 %1495  ;;  %v2912_v36 = vshll.u32 %v2771_v17, 16  ;;  %v2916_v28 = vshrl.u32 %v2771_v17, 16  ;;  %v2909_v15 = vor.u32 %v2908_v35, %v2905_v34  ;;  %v2892_v0 = vshrl.u32 %v2768_v41, 16  ;;  %v2777_v1 = vld [vmem:[#allocation2 + $0x64] sm:$0xf] }
 0x107   : > { %v1490_v39 = vpop.permute.xlu1 %1489  ;;  %1532 = vst.msk [vmem:[#allocation3 + $0x60] sm:$0xff] %vm1519_vm10, %v1496_v33  ;;  %v2877_v33 = vsel %vm20773_vm4, %v2872_v54, %v2876_v10  ;;  %v2881_v56 = vrot.slane %v2879_v47, 4  ;;  %v2884_v62 = vrot.slane %v2882_v53, 5  ;;  %v2890_v6 = vrot.slane %v2888_v19, 5 }
 0x108   : > { %1529 = vst.msk [vmem:[#allocation3 + $0x48] sm:$0xff] %vm1519_vm10, %v1490_v39  ;;  %2701 = vrot.lane.b32.xlu0 %v20499_v27, %s20598_s12  ;;  %v2846_v27 = vrot.slane %v2844_v14, 4  ;;  %v2838_v39 = vrot.slane %v2837_v26, 4  ;;  %v2914_v45 = vrot.slane %v2912_v36, 5  ;;  %v2918_v51 = vrot.slane %v2916_v28, 4 }
 0x109   : > { %2695 = vrot.lane.b32.xlu1 %v20498_v38, %s20598_s12  ;;  %v21308_v38 = vcombine.low %v2867_v25, %v2877_v33  ;;  %v2910_v55 = vrot.slane %v2909_v15, 4  ;;  %v2898_v7 = vshll.u32 %v2769_v52, 16  ;;  %v2885_v10 = vor.u32 %v2884_v62, %v2881_v56  ;;  %v2774_v26 = vld [vmem:[#allocation2 + $0x58] sm:$0xf]  ;;  %v2775_v28 = vld [vmem:[#allocation2 + $0x5c] sm:$0x1] }
 0x10a   : > { %v1500_v30 = vpop.permute.xlu0 %1499  ;;  %v2847_v40 = vor.u32 %v2846_v27, %v2842_v21  ;;  %v2919_v63 = vor.u32 %v2918_v51, %v2914_v45  ;;  %v2894_v11 = vrot.slane %v2892_v0, 4  ;;  %v2951_v58 = vshrl.u32 %v2776_v57, 16  ;;  %v20508_v27 = vld [vmem:[#allocation2 + $0x9c] sm:$0xff]  }
 0x10b   : > { %v1494_v61 = vpop.permute.xlu1 %1493  ;;  %1534 = vst.msk [vmem:[#allocation3 + $0x70] sm:$0xff] %vm1519_vm10, %v1500_v30  ;;  %v2924_v30 = vrot.slane %v2922_v46, 5  ;;  %v2915_v5 = vsel %vm20773_vm4, %v2910_v55, %v2914_v45  ;;  %v2900_v13 = vrot.slane %v2898_v7, 5  ;;  %v2954_v14 = vshll.u32 %v2776_v57, 16  ;;  %v2784_v0 = vld [vmem:[#allocation2 + $0x80] sm:$0x1] }
 0x10c   : > { %1531 = vst.msk [vmem:[#allocation3 + $0x58] sm:$0xff] %vm1519_vm10, %v1494_v61  ;;  %2705 = vrot.lane.b32.xlu0 %v20501_v49, %s20598_s12  ;;  %v2848_v49 = vrot.slane %v2847_v40, 4  ;;  %v2920_v9 = vrot.slane %v2919_v63, 4  ;;  %v2960_v16 = vshll.u32 %v2777_v1, 16  ;;  %v2964_v17 = vshrl.u32 %v2777_v1, 16 }
 0x10d   : > { %2699 = vrot.lane.b32.xlu1 %v20500_v48, %s20598_s12  ;;  %v2843_v48 = vsel %vm20773_vm4, %v2838_v39, %v2842_v21  ;;  %v2886_v22 = vrot.slane %v2885_v10, 4  ;;  %v2895_v24 = vor.u32 %v2894_v11, %v2890_v6  ;;  %v2953_v25 = vrot.slane %v2951_v58, 4  ;;  %v20511_v10 = vld [vmem:[#allocation2 + $0xcc] sm:$0xff]  }
 0x10e   : > { %v1650_v12 = vpop.permute.xlu0 %1649  ;;  %v2853_v61 = vsel %vm20773_vm4, %v2848_v49, %v2852_v29  ;;  %v2925_v21 = vsel %vm20773_vm4, %v2920_v9, %v2924_v30  ;;  %v2956_v32 = vrot.slane %v2954_v14, 5  ;;  %v2962_v33 = vrot.slane %v2960_v16, 5  ;;  %v20510_v49 = vld [vmem:[#allocation2 + $0xb4] sm:$0xff]  }
 0x10f   : > { %v1498_v20 = vpop.permute.xlu1 %1497  ;;  %1698 = vst.msk [vmem:[#allocation3] sm:$0xff] %vm1697_vm11, %v1650_v12  ;;  %v21320_v4 = vcombine.low %v2843_v48, %v2853_v61  ;;  %v2778_v12 = vld [vmem:[#allocation2 + $0x68] sm:$0x1]  ;;  %v21330_v31 = vcombine.low %v2915_v5, %v2925_v21  ;;  %v2966_v34 = vrot.slane %v2964_v17, 4  ;;  %v2891_v35 = vsel %vm20773_vm4, %v2886_v22, %v2890_v6  ;;  %v2780_v17 = vld [vmem:[#allocation2 + $0x70] sm:$0xf] }
 0x110   : > { %1533 = vst.msk [vmem:[#allocation3 + $0x68] sm:$0xff] %vm1519_vm10, %v1498_v20  ;;  %2709 = vrot.lane.b32.xlu0 %v20503_v2, %s20598_s12  ;;  %v20506_v2 = vld [vmem:[#allocation2 + $0x84] sm:$0xff]   ;;  %v2896_v36 = vrot.slane %v2895_v24, 4  ;;  %v2957_v39 = vor.u32 %v2956_v32, %v2953_v25  ;;  %v2940_v48 = vshrl.u32 %v2774_v26, 16  ;;  %v2946_v57 = vshll.u32 %v2775_v28, 16 }
 0x111   : > { %2703 = vrot.lane.b32.xlu1 %v20502_v18, %s20598_s12  ;;  %v2773_v18 = vld [vmem:[#allocation2 + $0x54] sm:$0xf]  ;;  %v20509_v20 = vld [vmem:[#allocation2 + $0xc0] sm:$0xff]   ;;  %v2967_v40 = vor.u32 %v2966_v34, %v2962_v33  ;;  %vm3659_vm0 = vcmask 293888   ;;  %vm3607_vm1 = vcmask 294144   ;;  %vm19778_vm9 = vcmask 64512  }
 0x112   : > { %v1654_v37 = vpop.permute.xlu0 %1653  ;;  %v2930_v41 = vshll.u32 %v2773_v18, 16  ;;  %v2901_v45 = vsel %vm20773_vm4, %v2896_v36, %v2900_v13  ;;  %v2958_v53 = vrot.slane %v2957_v39, 4  ;;  %v2942_v19 = vrot.slane %v2940_v48, 4  ;;  %v2781_v25 = vld [vmem:[#allocation2 + $0x74] sm:$0x1] }
 0x113   : > { %v1502_v44 = vpop.permute.xlu1 %1501  ;;  %1700 = vst.msk [vmem:[#allocation3 + $0x10] sm:$0xff] %vm1697_vm11, %v1654_v37  ;;  %v2927_v37 = vshrl.u32 %v2773_v18, 16  ;;  %v21340_v52 = vcombine.low %v2891_v35, %v2901_v45  ;;  %v2968_v55 = vrot.slane %v2967_v40, 4  ;;  %v2948_v7 = vrot.slane %v2946_v57, 5 }
 0x114   : > { %1535 = vst.msk [vmem:[#allocation3 + $0x78] sm:$0xff] %vm1519_vm10, %v1502_v44  ;;  %2713 = vrot.lane.b32.xlu0 %v20505_v43, %s20598_s12  ;;  %v2970_v43 = vshll.u32 %v2778_v12, 16  ;;  %v2782_v44 = vld [vmem:[#allocation2 + $0x78] sm:$0xf]  ;;  %v2932_v30 = vrot.slane %v2930_v41, 5  ;;  %v2963_v61 = vsel %vm20773_vm4, %v2958_v53, %v2962_v33  ;;  %v2984_v39 = vshll.u32 %v2780_v17, 16 }
 0x115   : > { %2707 = vrot.lane.b32.xlu1 %v20504_v42, %s20598_s12  ;;  %v2936_v42 = vshll.u32 %v2774_v26, 16  ;;  %v2929_v47 = vrot.slane %v2927_v37, 4  ;;  %v3002_v1 = vshll.u32 %v2782_v44, 16  ;;  %v2788_v26 = vld [vmem:[#allocation2 + $0x90] sm:$0xf]  ;;  %v2988_v40 = vshrl.u32 %v2780_v17, 16 }
 0x116   : > { %v1658_v60 = vpop.permute.xlu0 %1657  ;;  %v2972_v46 = vrot.slane %v2970_v43, 5  ;;  %v2994_v28 = vshll.u32 %v2781_v25, 16  ;;  %v2789_v41 = vld [vmem:[#allocation2 + $0x94] sm:$0xf]  ;;  %v2986_v45 = vrot.slane %v2984_v39, 5  ;;  %vm19795_vm10 = vcmask 80896  }
 0x117   : > { %v1652_v3 = vpop.permute.xlu1 %1651  ;;  %1702 = vst.msk [vmem:[#allocation3 + $0x20] sm:$0xff] %vm1697_vm11, %v1658_v60  ;;  %v2938_v56 = vrot.slane %v2936_v42, 5  ;;  %v2999_v60 = vshrl.u32 %v2782_v44, 16  ;;  %v2933_v62 = vor.u32 %v2932_v30, %v2929_v47  ;;  %v3004_v58 = vrot.slane %v3002_v1, 5  ;;  %v2785_v30 = vld [vmem:[#allocation2 + $0x84] sm:$0xf] }
 0x118   : > { %1699 = vst.msk [vmem:[#allocation3 + $0x8] sm:$0xff] %vm1697_vm11, %v1652_v3  ;;  %2717 = vrot.lane.b32.xlu0 %v20507_v59, %s20598_s12  ;;  %v2783_v59 = vld [vmem:[#allocation2 + $0x7c] sm:$0xf]  ;;  %v2973_v63 = vsel %vm20773_vm4, %v2968_v55, %v2972_v46  ;;  %v3047_v42 = vshrl.u32 %v2788_v26, 16  ;;  %v2790_v46 = vld [vmem:[#allocation2 + $0x98] sm:$0x1] }
 0x119   : > { %2711 = vrot.lane.b32.xlu1 %v20506_v2, %s20598_s12  ;;  %v2779_v2 = vld [vmem:[#allocation2 + $0x6c] sm:$0xf]  ;;  %v21349_v5 = vcombine.low %v2963_v61, %v2973_v63  ;;  %v2943_v6 = vor.u32 %v2942_v19, %v2938_v56  ;;  %v3001_v9 = vrot.slane %v2999_v60, 4  ;;  %v2934_v12 = vrot.slane %v2933_v62, 4  ;;  %v2786_v61 = vld [vmem:[#allocation2 + $0x88] sm:$0xf] }
 0x11a   : > { %v1662_v54 = vpop.permute.xlu0 %1661  ;;  %v3008_v13 = vshll.u32 %v2783_v59, 16  ;;  %v3012_v14 = vshrl.u32 %v2783_v59, 16  ;;  %v2975_v18 = vshrl.u32 %v2779_v2, 16  ;;  %v3050_v47 = vshll.u32 %v2788_v26, 16  ;;  %v2794_v17 = vld [vmem:[#allocation2 + $0xa8] sm:$0xf] }
 0x11b   : > { %v1656_v29 = vpop.permute.xlu1 %1655  ;;  %1704 = vst.msk [vmem:[#allocation3 + $0x30] sm:$0xff] %vm1697_vm11, %v1662_v54  ;;  %v2944_v16 = vrot.slane %v2943_v6, 4  ;;  %v2939_v54 = vsel %vm20773_vm4, %v2934_v12, %v2938_v56  ;;  %v3005_v21 = vor.u32 %v3004_v58, %v3001_v9  ;;  %v2996_v53 = vrot.slane %v2994_v28, 5 }
 0x11c   : > { %1701 = vst.msk [vmem:[#allocation3 + $0x18] sm:$0xff] %vm1697_vm11, %v1656_v29  ;;  %2721 = vrot.lane.b32.xlu0 %v20509_v20, %s20598_s12  ;;  %v2978_v20 = vshll.u32 %v2779_v2, 16  ;;  %v3010_v22 = vrot.slane %v3008_v13, 5  ;;  %v3014_v24 = vrot.slane %v3012_v14, 4  ;;  %v2977_v33 = vrot.slane %v2975_v18, 4 }
 0x11d   : > { %2715 = vrot.lane.b32.xlu1 %v20508_v27, %s20598_s12  ;;  %v2949_v29 = vsel %vm20773_vm4, %v2944_v16, %v2948_v7  ;;  %v3006_v43 = vrot.slane %v3005_v21, 4  ;;  %v3049_v55 = vrot.slane %v3047_v42, 4  ;;  %v3052_v57 = vrot.slane %v3050_v47, 5  ;;  %v2795_v21 = vld [vmem:[#allocation2 + $0xac] sm:$0xf] }
 0x11e   : > { %v1666_v15 = vpop.permute.xlu0 %1665  ;;  %v2980_v34 = vrot.slane %v2978_v20, 5  ;;  %v21362_v36 = vcombine.low %v2939_v54, %v2949_v29  ;;  %v3015_v37 = vor.u32 %v3014_v24, %v3010_v22  ;;  %v3056_v59 = vshll.u32 %v2789_v41, 16 }
 0x11f   : > { %v1660_v51 = vpop.permute.xlu1 %1659  ;;  %1706 = vst.msk [vmem:[#allocation3 + $0x40] sm:$0xff] %vm1697_vm11, %v1666_v15  ;;  %v3011_v44 = vsel %vm20773_vm4, %v3006_v43, %v3010_v22  ;;  %v3060_v60 = vshrl.u32 %v2789_v41, 16  ;;  %v3053_v1 = vor.u32 %v3052_v57, %v3049_v55  ;;  %v3023_v6 = vshrl.u32 %v2785_v30, 16 }
 0x120   : > { %1703 = vst.msk [vmem:[#allocation3 + $0x28] sm:$0xff] %vm1697_vm11, %v1660_v51  ;;  %3238 = vrot.lane.b32.xlu0 %v21297_v8, %s20599_s13  ;;  %v3018_v8 = vshll.u32 %v2784_v0, 16  ;;  %v3016_v15 = vrot.slane %v3015_v37, 4  ;;  %v2990_v51 = vrot.slane %v2988_v40, 4  ;;  %v3066_v0 = vshll.u32 %v2790_v46, 16 }
 0x121   : > { %2719 = vrot.lane.b32.xlu1 %v20510_v49, %s20598_s12  ;;  %v3062_v2 = vrot.slane %v3060_v60, 4  ;;  %v3032_v12 = vshll.u32 %v2786_v61, 16  ;;  %v3054_v13 = vrot.slane %v3053_v1, 4  ;;  %v3025_v16 = vrot.slane %v3023_v6, 4  ;;  %v2791_v40 = vld [vmem:[#allocation2 + $0x9c] sm:$0xf] }
 0x122   : > { %v1670_v3 = vpop.permute.xlu0 %1669  ;;  %v3020_v32 = vrot.slane %v3018_v8, 5  ;;  %v2991_v62 = vor.u32 %v2990_v51, %v2986_v45  ;;  %v3036_v8 = vshrl.u32 %v2786_v61, 16  ;;  %v3104_v39 = vshll.u32 %v2795_v21, 16  ;;  %v2800_v61 = vld [vmem:[#allocation2 + $0xc0] sm:$0xf] }
 0x123   : > { %v1664_v11 = vpop.permute.xlu1 %1663  ;;  %1708 = vst.msk [vmem:[#allocation3 + $0x50] sm:$0xff] %vm1697_vm11, %v1670_v3  ;;  %v2787_v3 = vld [vmem:[#allocation2 + $0x8c] sm:$0x1]  ;;  %v3034_v20 = vrot.slane %v3032_v12, 5  ;;  %v3071_v55 = vshrl.u32 %v2791_v40, 16  ;;  %v3146_v12 = vshll.u32 %v2800_v61, 16 }
 0x124   : > { %1705 = vst.msk [vmem:[#allocation3 + $0x38] sm:$0xff] %vm1697_vm11, %v1664_v11  ;;  %3242 = vrot.lane.b32.xlu0 %v21308_v38, %s20599_s13  ;;  %v2981_v38 = vor.u32 %v2980_v34, %v2977_v33  ;;  %v3021_v19 = vsel %vm20773_vm4, %v3016_v15, %v3020_v32  ;;  %v2992_v9 = vrot.slane %v2991_v62, 4  ;;  %v3026_v11 = vshll.u32 %v2785_v30, 16  ;;  %v2796_v32 = vld [vmem:[#allocation2 + $0xb0] sm:$0x1] }
 0x125   : > { %2723 = vrot.lane.b32.xlu1 %v20511_v10, %s20598_s12  ;;  %v3068_v10 = vrot.slane %v3066_v0, 5  ;;  %v3042_v54 = vshll.u32 %v2787_v3, 16  ;;  %v3038_v25 = vrot.slane %v3036_v8, 4  ;;  %v3095_v33 = vshrl.u32 %v2794_v17, 16  ;;  %v2792_v15 = vld [vmem:[#allocation2 + $0xa0] sm:$0xf] }
 0x126   : > { %v1674_v27 = vpop.permute.xlu0 %1673  ;;  %v2982_v49 = vrot.slane %v2981_v38, 4  ;;  %v3028_v18 = vrot.slane %v3026_v11, 5  ;;  %v3098_v34 = vshll.u32 %v2794_v17, 16  ;;  %v3108_v38 = vshrl.u32 %v2795_v21, 16  ;;  %v2801_v1 = vld [vmem:[#allocation2 + $0xc4] sm:$0xf] }
 0x127   : > { %v1668_v35 = vpop.permute.xlu1 %1667  ;;  %1710 = vst.msk [vmem:[#allocation3 + $0x60] sm:$0xff] %vm1697_vm11, %v1674_v27  ;;  %v3044_v29 = vrot.slane %v3042_v54, 5  ;;  %v3039_v37 = vor.u32 %v3038_v25, %v3034_v20  ;;  %v3097_v42 = vrot.slane %v3095_v33, 4  ;;  %v3106_v46 = vrot.slane %v3104_v39, 5 }
 0x128   : > { %1707 = vst.msk [vmem:[#allocation3 + $0x48] sm:$0xff] %vm1697_vm11, %v1668_v35  ;;  %3246 = vrot.lane.b32.xlu0 %v21330_v31, %s20599_s13  ;;  %v20300_v31 = vcombine.low %v3011_v44, %v3021_v19  ;;  %v2987_v63 = vsel %vm20773_vm4, %v2982_v49, %v2986_v45  ;;  %v3029_v27 = vor.u32 %v3028_v18, %v3025_v16  ;;  %v3100_v44 = vrot.slane %v3098_v34, 5 }
 0x129   : > { %3240 = vrot.lane.b32.xlu1 %v21320_v4, %s20599_s13  ;;  %v3058_v4 = vrot.slane %v3056_v59, 5  ;;  %v3040_v45 = vrot.slane %v3039_v37, 4  ;;  %v3114_v47 = vshll.u32 %v2796_v32, 16  ;;  %v3074_v30 = vshll.u32 %v2791_v40, 16  ;;  %v2799_v32 = vld [vmem:[#allocation2 + $0xbc] sm:$0x1] }
 0x12a   : > { %v1678_v48 = vpop.permute.xlu0 %1677  ;;  %v3030_v41 = vrot.slane %v3029_v27, 4  ;;  %v3101_v49 = vor.u32 %v3100_v44, %v3097_v42  ;;  %v3080_v60 = vshll.u32 %v2792_v15, 16  ;;  %v3073_v62 = vrot.slane %v3071_v55, 4  ;;  %v3303_v40 = vld [vmem:[#allocation2 + $0x18] sm:$0xe] }
 0x12b   : > { %v1672_v56 = vpop.permute.xlu1 %1671  ;;  %1712 = vst.msk [vmem:[#allocation3 + $0x70] sm:$0xff] %vm1697_vm11, %v1678_v48  ;;  %v3063_v14 = vor.u32 %v3062_v2, %v3058_v4  ;;  %v3116_v57 = vrot.slane %v3114_v47, 5  ;;  %v3076_v0 = vrot.slane %v3074_v30, 5  ;;  %v3084_v3 = vshrl.u32 %v2792_v15, 16 }
 0x12c   : > { %1709 = vst.msk [vmem:[#allocation3 + $0x58] sm:$0xff] %vm1697_vm11, %v1672_v56  ;;  %3250 = vrot.lane.b32.xlu0 %v21349_v5, %s20599_s13  ;;  %v2997_v5 = vsel %vm20773_vm4, %v2992_v9, %v2996_v53  ;;  %v3035_v48 = vsel %vm20773_vm4, %v3030_v41, %v3034_v20  ;;  %v2793_v53 = vld [vmem:[#allocation2 + $0xa4] sm:$0x1]  ;;  %v3045_v56 = vsel %vm20773_vm4, %v3040_v45, %v3044_v29  ;;  %v3082_v2 = vrot.slane %v3080_v60, 5  ;;  %v3304_v45 = vld [vmem:[#allocation2 + $0x1c] sm:$0xf] }
 0x12d   : > { %3244 = vrot.lane.b32.xlu1 %v21340_v52, %s20599_s13  ;;  %v20299_v22 = vcombine.low %v2987_v63, %v2997_v5  ;;  %v3059_v52 = vsel %vm20773_vm4, %v3054_v13, %v3058_v4  ;;  %v3064_v24 = vrot.slane %v3063_v14, 4  ;;  %v3102_v63 = vrot.slane %v3101_v49, 4  ;;  %v2797_v5 = vld [vmem:[#allocation2 + $0xb4] sm:$0xf]  ;;  %v3305_v49 = vld [vmem:[#allocation2 + $0x20] sm:$0x1] }
 0x12e   : > { %v2195_v7 = vpop.permute.xlu0 %2194  ;;  %v3090_v6 = vshll.u32 %v2793_v53, 16  ;;  %v3077_v9 = vor.u32 %v3076_v0, %v3073_v62  ;;  %v3143_v11 = vshrl.u32 %v2800_v61, 16  ;;  %v3086_v14 = vrot.slane %v3084_v3, 4 }
 0x12f   : > { %v1676_v58 = vpop.permute.xlu1 %1675  ;;  %2243 = vst.msk [vmem:[#allocation3] sm:$0xff] %vm2242_vm12, %v2195_v7  ;;  %v3069_v35 = vsel %vm20773_vm4, %v3064_v24, %v3068_v10  ;;  %v3107_v7 = vsel %vm20773_vm4, %v3102_v63, %v3106_v46  ;;  %v2802_v10 = vld [vmem:[#allocation2 + $0xc8] sm:$0x1]  ;;  %v3152_v8 = vshll.u32 %v2801_v1, 16  ;;  %v3148_v21 = vrot.slane %v3146_v12, 5 }
 0x130   : > { %1711 = vst.msk [vmem:[#allocation3 + $0x68] sm:$0xff] %vm1697_vm11, %v1676_v58  ;;  %3254 = vrot.lane.b32.xlu0 %v20300_v31, %s20599_s13  ;;  %v20302_v28 = vcombine.low %v3059_v52, %v3069_v35  ;;  %v20301_v31 = vcombine.low %v3035_v48, %v3045_v56  ;;  %v3092_v16 = vrot.slane %v3090_v6, 5  ;;  %v3078_v20 = vrot.slane %v3077_v9, 4 }
 0x131   : > { %3248 = vrot.lane.b32.xlu1 %v21362_v36, %s20599_s13  ;;  %v3110_v36 = vrot.slane %v3108_v38, 4  ;;  %v3145_v54 = vrot.slane %v3143_v11, 4  ;;  %v3087_v52 = vor.u32 %v3086_v14, %v3082_v2  ;;  %v3154_v24 = vrot.slane %v3152_v8, 5  ;;  %v3310_v11 = vld [vmem:[#allocation2 + $0x34] sm:$0xf] }
 0x132   : > { %v2199_v26 = vpop.permute.xlu0 %2198  ;;  %v3156_v25 = vshrl.u32 %v2801_v1, 16  ;;  %v3083_v27 = vsel %vm20773_vm4, %v3078_v20, %v3082_v2  ;;  %v3119_v33 = vshrl.u32 %v2797_v5, 16  ;;  %v3122_v34 = vshll.u32 %v2797_v5, 16  ;;  %v3306_v8 = vld [vmem:[#allocation2 + $0x24] sm:$0xe] }
 0x133   : > { %v1680_v43 = vpop.permute.xlu1 %1679  ;;  %2245 = vst.msk [vmem:[#allocation3 + $0x10] sm:$0xff] %vm2242_vm12, %v2199_v26  ;;  %v3111_v19 = vor.u32 %v3110_v36, %v3106_v46  ;;  %v3162_v26 = vshll.u32 %v2802_v10, 16  ;;  %v3149_v29 = vor.u32 %v3148_v21, %v3145_v54  ;;  %v3138_v48 = vshll.u32 %v2799_v32, 16  ;;  %v3309_v10 = vld [vmem:[#allocation2 + $0x30] sm:$0xe] }
 0x134   : > { %1713 = vst.msk [vmem:[#allocation3 + $0x78] sm:$0xff] %vm1697_vm11, %v1680_v43  ;;  %3258 = vrot.lane.b32.xlu0 %v20302_v28, %s20599_s13  ;;  %v3088_v43 = vrot.slane %v3087_v52, 4  ;;  %v3158_v37 = vrot.slane %v3156_v25, 4  ;;  %v3121_v42 = vrot.slane %v3119_v33, 4  ;;  %v3124_v44 = vrot.slane %v3122_v34, 5 }
 0x135   : > { %3252 = vrot.lane.b32.xlu1 %v20299_v22, %s20599_s13  ;;  %v3112_v4 = vrot.slane %v3111_v19, 4  ;;  %v2798_v22 = vld [vmem:[#allocation2 + $0xb8] sm:$0xf]  ;;  %v3164_v39 = vrot.slane %v3162_v26, 5  ;;  %v3150_v41 = vrot.slane %v3149_v29, 4  ;;  %v20308_v60 = vrot.slane %v3303_v40, 9 }
 0x136   : > { %v2203_v51 = vpop.permute.xlu0 %2202  ;;  %v3128_v38 = vshll.u32 %v2798_v22, 16  ;;  %v3132_v15 = vshrl.u32 %v2798_v22, 16  ;;  %v3093_v46 = vsel %vm20773_vm4, %v3088_v43, %v3092_v16  ;;  %v3159_v36 = vor.u32 %v3158_v37, %v3154_v24  ;;  %v3311_v16 = vld [vmem:[#allocation2 + $0x38] sm:$0x1]  ;;  %v3307_v21 = vld [vmem:[#allocation2 + $0x28] sm:$0xf] }
 0x137   : > { %v2197_v59 = vpop.permute.xlu1 %2196  ;;  %2247 = vst.msk [vmem:[#allocation3 + $0x20] sm:$0xff] %vm2242_vm12, %v2203_v51  ;;  %v3117_v13 = vsel %vm20773_vm4, %v3112_v4, %v3116_v57  ;;  %v2803_v51 = vld [vmem:[#allocation2 + $0xcc] sm:$0xf]  ;;  %v20303_v53 = vcombine.low %v3083_v27, %v3093_v46  ;;  %v3155_v55 = vsel %vm20773_vm4, %v3150_v41, %v3154_v24  ;;  %v3125_v30 = vor.u32 %v3124_v44, %v3121_v42  ;;  %v2805_v4 = vld [vmem:[#allocation2 + $0xd4] sm:$0x1] }
 0x138   : > { %2244 = vst.msk [vmem:[#allocation3 + $0x8] sm:$0xff] %vm2242_vm12, %v2197_v59  ;;  %v20304_v18 = vcombine.low %v3107_v7, %v3117_v13  ;;  %v3130_v47 = vrot.slane %v3128_v38, 5  ;;  %v3134_v56 = vrot.slane %v3132_v15, 4  ;;  %v3160_v57 = vrot.slane %v3159_v36, 4  ;;  %v3308_v27 = vld [vmem:[#allocation2 + $0x2c] sm:$0x1] }
 0x139   : > { %3256 = vrot.lane.b32.xlu1 %v20301_v31, %s20599_s13  ;;  %v3140_v59 = vrot.slane %v3138_v48, 5  ;;  %v3401_v61 = vrot.slane %v3304_v45, 5  ;;  %v2804_v31 = vld [vmem:[#allocation2 + $0xd0] sm:$0xf]  ;;  %v3126_v62 = vrot.slane %v3125_v30, 4  ;;  %v3404_v1 = vrot.slane %v3305_v49, 5 }
 0x13a   : > { %v2207_v58 = vpop.permute.xlu0 %2206  ;;  %3262 = vrot.lane.b32.xlu0 %v20304_v18, %s20599_s13  ;;  %v3135_v0 = vor.u32 %v3134_v56, %v3130_v47  ;;  %v3167_v2 = vshrl.u32 %v2803_v51, 16  ;;  %v3165_v3 = vsel %vm20773_vm4, %v3160_v57, %v3164_v39  ;;  %v3170_v9 = vshll.u32 %v2803_v51, 16  ;;  %v3315_v29 = vld [vmem:[#allocation2 + $0x48] sm:$0xe]  ;;  %v3316_v43 = vld [vmem:[#allocation2 + $0x4c] sm:$0xf] }
 0x13b   : > { %v2201_v17 = vpop.permute.xlu1 %2200  ;;  %2249 = vst.msk [vmem:[#allocation3 + $0x30] sm:$0xff] %vm2242_vm12, %v2207_v58  ;;  %v3402_v6 = vsel %vm20895_vm7, %v20308_v60, %v3401_v61  ;;  %v3403_v7 = vrot.slane %v3401_v61, 4  ;;  %v20306_v12 = vcombine.low %v3155_v55, %v3165_v3  ;;  %v3131_v58 = vsel %vm20773_vm4, %v3126_v62, %v3130_v47  ;;  %v3317_v37 = vld [vmem:[#allocation2 + $0x50] sm:$0x1]  ;;  %v3312_v41 = vld [vmem:[#allocation2 + $0x3c] sm:$0xe] }
 0x13c   : > { %2246 = vst.msk [vmem:[#allocation3 + $0x18] sm:$0xff] %vm2242_vm12, %v2201_v17  ;;  %v3136_v13 = vrot.slane %v3135_v0, 4  ;;  %v3169_v14 = vrot.slane %v3167_v2, 4  ;;  %v3172_v18 = vrot.slane %v3170_v9, 5  ;;  %v3176_v20 = vshll.u32 %v2804_v31, 16 }
 0x13d   : > { %3260 = vrot.lane.b32.xlu1 %v20303_v53, %s20599_s13  ;;  %v3405_v5 = vsel %vm20895_vm7, %v3403_v7, %v3404_v1  ;;  %v3180_v54 = vshrl.u32 %v2804_v31, 16  ;;  %v3186_v25 = vshll.u32 %v2805_v4, 16  ;;  %v20310_v26 = vrot.slane %v3309_v10, 9  ;;  %v3313_v46 = vld [vmem:[#allocation2 + $0x40] sm:$0xf] }
 0x13e   : > { %v2211_v35 = vpop.permute.xlu0 %2210  ;;  %3266 = vrot.lane.b32.xlu0 %v20306_v12, %s20599_s13  ;;  %v3141_v52 = vsel %vm20773_vm4, %v3136_v13, %v3140_v59  ;;  %v20324_v24 = vcombine.low %v3402_v6, %v3405_v5  ;;  %v3173_v33 = vor.u32 %v3172_v18, %v3169_v14  ;;  %v3178_v34 = vrot.slane %v3176_v20, 5  ;;  %v3314_v53 = vld [vmem:[#allocation2 + $0x44] sm:$0x1]  ;;  %v3321_v57 = vld [vmem:[#allocation2 + $0x60] sm:$0xe] }
 0x13f   : > { %v2205_v28 = vpop.permute.xlu1 %2204  ;;  %2251 = vst.msk [vmem:[#allocation3 + $0x40] sm:$0xff] %vm2242_vm12, %v2211_v35  ;;  %v20305_v32 = vcombine.low %v3131_v58, %v3141_v52  ;;  %v3182_v35 = vrot.slane %v3180_v54, 4  ;;  %v3188_v39 = vrot.slane %v3186_v25, 5  ;;  %v3415_v38 = vrot.slane %v3310_v11, 5  ;;  %v3322_v59 = vld [vmem:[#allocation2 + $0x64] sm:$0xf] }
 0x140   : > { %2248 = vst.msk [vmem:[#allocation3 + $0x28] sm:$0xff] %vm2242_vm12, %v2205_v28  ;;  %v3418_v40 = vrot.slane %v3311_v16, 5  ;;  %v20309_v28 = vrot.slane %v3306_v8, 9  ;;  %v3174_v42 = vrot.slane %v3173_v33, 4  ;;  %v3408_v15 = vrot.slane %v3307_v21, 5 }
 0x141   : > { %3264 = vrot.lane.b32.xlu1 %v20305_v32, %s20599_s13  ;;  %v3183_v44 = vor.u32 %v3182_v35, %v3178_v34  ;;  %v3411_v45 = vrot.slane %v3308_v27, 5  ;;  %v3416_v47 = vsel %vm20895_vm7, %v20310_v26, %v3415_v38  ;;  %v3417_v48 = vrot.slane %v3415_v38, 4  ;;  %v3323_v62 = vld [vmem:[#allocation2 + $0x68] sm:$0x1]  ;;  %v3318_v1 = vld [vmem:[#allocation2 + $0x54] sm:$0xe] }
 0x142   : > { %v2215_v19 = vpop.permute.xlu0 %2214  ;;  %3559 = vrot.lane.b32.xlu0 %v20324_v24, %s20600_s19  ;;  %v20312_v49 = vrot.slane %v3315_v29, 9  ;;  %v3429_v51 = vrot.slane %v3316_v43, 5  ;;  %v3179_v55 = vsel %vm20773_vm4, %v3174_v42, %v3178_v34  ;;  %v3409_v56 = vsel %vm20895_vm7, %v20309_v28, %v3408_v15  ;;  %v3319_v7 = vld [vmem:[#allocation2 + $0x58] sm:$0xf]  ;;  %v3320_v9 = vld [vmem:[#allocation2 + $0x5c] sm:$0x1] }
 0x143   : > { %v2209_v63 = vpop.permute.xlu1 %2208  ;;  %2253 = vst.msk [vmem:[#allocation3 + $0x50] sm:$0xff] %vm2242_vm12, %v2215_v19  ;;  %v3184_v30 = vrot.slane %v3183_v44, 4  ;;  %v3410_v19 = vrot.slane %v3408_v15, 4  ;;  %v3419_v60 = vsel %vm20895_vm7, %v3417_v48, %v3418_v40  ;;  %v20311_v6 = vrot.slane %v3312_v41, 9  ;;  %v3327_v13 = vld [vmem:[#allocation2 + $0x78] sm:$0xe] }
 0x144   : > { %2250 = vst.msk [vmem:[#allocation3 + $0x38] sm:$0xff] %vm2242_vm12, %v2209_v63  ;;  %v3430_v61 = vsel %vm20895_vm7, %v20312_v49, %v3429_v51  ;;  %v3431_v31 = vrot.slane %v3429_v51, 4  ;;  %v3432_v63 = vrot.slane %v3317_v37, 5  ;;  %v20326_v2 = vcombine.low %v3416_v47, %v3419_v60  ;;  %v3328_v14 = vld [vmem:[#allocation2 + $0x7c] sm:$0xf] }
 0x145   : > { %v3189_v4 = vsel %vm20773_vm4, %v3184_v30, %v3188_v39  ;;  %v3412_v3 = vsel %vm20895_vm7, %v3410_v19, %v3411_v45  ;;  %v3422_v58 = vrot.slane %v3313_v46, 5  ;;  %v3425_v16 = vrot.slane %v3314_v53, 5  ;;  %v3329_v5 = vld [vmem:[#allocation2 + $0x80] sm:$0x1]  ;;  %v3324_v52 = vld [vmem:[#allocation2 + $0x6c] sm:$0xe] }
 0x146   : > { %v2219_v17 = vpop.permute.xlu0 %2218  ;;  %v20307_v10 = vcombine.low %v3179_v55, %v3189_v4  ;;  %v20325_v11 = vcombine.low %v3409_v56, %v3412_v3  ;;  %v3433_v12 = vsel %vm20895_vm7, %v3431_v31, %v3432_v63  ;;  %3563 = vrot.lane.b32.xlu0 %v20326_v2, %s20600_s19  ;;  %v20314_v8 = vrot.slane %v3321_v57, 9  ;;  %v3325_v32 = vld [vmem:[#allocation2 + $0x70] sm:$0xf]  ;;  %v3326_v37 = vld [vmem:[#allocation2 + $0x74] sm:$0x1] }
 0x147   : > { %v2213_v22 = vpop.permute.xlu1 %2212  ;;  %2255 = vst.msk [vmem:[#allocation3 + $0x60] sm:$0xff] %vm2242_vm12, %v2219_v17  ;;  %v20328_v50 = vcombine.low %v3430_v61, %v3433_v12  ;;  %v3443_v17 = vrot.slane %v3322_v59, 5  ;;  %v3423_v18 = vsel %vm20895_vm7, %v20311_v6, %v3422_v58  ;;  %v3424_v20 = vrot.slane %v3422_v58, 4  ;;  %v3330_v41 = vld [vmem:[#allocation2 + $0x84] sm:$0xe] }
 0x148   : > { %2252 = vst.msk [vmem:[#allocation3 + $0x48] sm:$0xff] %vm2242_vm12, %v2213_v22  ;;  %3268 = vrot.lane.b32.xlu1 %v20307_v10, %s20599_s13  ;;  %v3446_v54 = vrot.slane %v3323_v62, 5  ;;  %v20313_v21 = vrot.slane %v3318_v1, 9  ;;  %v3436_v26 = vrot.slane %v3319_v7, 5  ;;  %v3439_v27 = vrot.slane %v3320_v9, 5 }
 0x149   : > { %v3444_v24 = vsel %vm20895_vm7, %v20314_v8, %v3443_v17  ;;  %v3445_v25 = vrot.slane %v3443_v17, 4  ;;  %v3426_v33 = vsel %vm20895_vm7, %v3424_v20, %v3425_v16  ;;  %v20316_v34 = vrot.slane %v3327_v13, 9  ;;  %v3331_v42 = vld [vmem:[#allocation2 + $0x88] sm:$0xf]  ;;  %v3333_v47 = vld [vmem:[#allocation2 + $0x90] sm:$0xe] }
 0x14a   : > { %v3457_v35 = vrot.slane %v3328_v14, 5  ;;  %v3460_v43 = vrot.slane %v3329_v5, 5  ;;  %3567 = vrot.lane.b32.xlu0 %v20328_v50, %s20600_s19  ;;  %v20327_v39 = vcombine.low %v3423_v18, %v3426_v33  ;;  %v3437_v40 = vsel %vm20895_vm7, %v20313_v21, %v3436_v26  ;;  %v3334_v53 = vld [vmem:[#allocation2 + $0x94] sm:$0xf]  ;;  %v3335_v55 = vld [vmem:[#allocation2 + $0x98] sm:$0x1] }
 0x14b   : > { %v2217_v36 = vpop.permute.xlu1 %2216  ;;  %v3447_v38 = vsel %vm20895_vm7, %v3445_v25, %v3446_v54  ;;  %v3438_v28 = vrot.slane %v3436_v26, 4  ;;  %v20315_v46 = vrot.slane %v3324_v52, 9  ;;  %v3450_v49 = vrot.slane %v3325_v32, 5  ;;  %v3336_v60 = vld [vmem:[#allocation2 + $0x9c] sm:$0xe] }
 0x14c   : > { %2254 = vst.msk [vmem:[#allocation3 + $0x58] sm:$0xff] %vm2242_vm12, %v2217_v36  ;;  %v2223_v0 = vpop.permute.xlu0 %2222  ;;  %3561 = vrot.lane.b32.xlu1 %v20325_v11, %s20600_s19  ;;  %v20330_v44 = vcombine.low %v3444_v24, %v3447_v38  ;;  %v3458_v15 = vsel %vm20895_vm7, %v20316_v34, %v3457_v35  ;;  %v3459_v45 = vrot.slane %v3457_v35, 4  ;;  %v3332_v36 = vld [vmem:[#allocation2 + $0x8c] sm:$0x1]  ;;  %v3453_v51 = vrot.slane %v3326_v37, 5 }
 0x14d   : > { %2257 = vst.msk [vmem:[#allocation3 + $0x70] sm:$0xff] %vm2242_vm12, %v2223_v0  ;;  %v3440_v48 = vsel %vm20895_vm7, %v3438_v28, %v3439_v27  ;;  %v20317_v57 = vrot.slane %v3330_v41, 9  ;;  %v3464_v59 = vrot.slane %v3331_v42, 5  ;;  %v3337_v61 = vld [vmem:[#allocation2 + $0xa0] sm:$0xf]  ;;  %v3452_v63 = vrot.slane %v3450_v49, 4 }
 0x14e   : > { %v20329_v30 = vcombine.low %v3437_v40, %v3440_v48  ;;  %v3461_v56 = vsel %vm20895_vm7, %v3459_v45, %v3460_v43  ;;  %3571 = vrot.lane.b32.xlu0 %v20330_v44, %s20600_s19  ;;  %v3467_v0 = vrot.slane %v3332_v36, 5  ;;  %v20318_v1 = vrot.slane %v3333_v47, 9  ;;  %v3338_v4 = vld [vmem:[#allocation2 + $0xa4] sm:$0x1]  ;;  %v3339_v9 = vld [vmem:[#allocation2 + $0xa8] sm:$0xe] }
 0x14f   : > { %v20332_v31 = vcombine.low %v3458_v15, %v3461_v56  ;;  %v3451_v2 = vsel %vm20895_vm7, %v20315_v46, %v3450_v49  ;;  %v3466_v3 = vrot.slane %v3464_v59, 4  ;;  %v3471_v6 = vrot.slane %v3334_v53, 5  ;;  %v3340_v12 = vld [vmem:[#allocation2 + $0xac] sm:$0xf]  ;;  %v3341_v58 = vld [vmem:[#allocation2 + $0xb0] sm:$0x1] }
 0x150   : > { %v2516_v22 = vpop.permute.xlu0 %2515  ;;  %3565 = vrot.lane.b32.xlu1 %v20327_v39, %s20600_s19  ;;  %v3474_v7 = vrot.slane %v3335_v55, 5  ;;  %v3454_v10 = vsel %vm20895_vm7, %v3452_v63, %v3453_v51  ;;  %v3478_v11 = vrot.slane %v3337_v61, 5  ;;  %v3465_v13 = vsel %vm20895_vm7, %v20317_v57, %v3464_v59  ;;  %v3342_v17 = vld [vmem:[#allocation2 + $0xb4] sm:$0xe]  ;;  %v3343_v5 = vld [vmem:[#allocation2 + $0xb8] sm:$0xf] }
 0x151   : > { %v2221_v29 = vpop.permute.xlu1 %2220  ;;  %2564 = vst.msk [vmem:[#allocation3] sm:$0xff] %vm2563_vm13, %v2516_v22  ;;  %v3472_v50 = vsel %vm20895_vm7, %v20318_v1, %v3471_v6  ;;  %v3473_v16 = vrot.slane %v3471_v6, 4  ;;  %v20319_v8 = vrot.slane %v3336_v60, 9  ;;  %v20331_v18 = vcombine.low %v3451_v2, %v3454_v10  ;;  %v3345_v52 = vld [vmem:[#allocation2 + $0xc0] sm:$0xe] }
 0x152   : > { %2256 = vst.msk [vmem:[#allocation3 + $0x68] sm:$0xff] %vm2242_vm12, %v2221_v29  ;;  %3575 = vrot.lane.b32.xlu0 %v20332_v31, %s20600_s19  ;;  %v3468_v20 = vsel %vm20895_vm7, %v3466_v3, %v3467_v0  ;;  %v3481_v21 = vrot.slane %v3338_v4, 5  ;;  %v20320_v22 = vrot.slane %v3339_v9, 9  ;;  %v3346_v24 = vld [vmem:[#allocation2 + $0xc4] sm:$0xf]  ;;  %v3480_v26 = vrot.slane %v3478_v11, 4 }
 0x153   : > { %v3475_v25 = vsel %vm20895_vm7, %v3473_v16, %v3474_v7  ;;  %v3485_v27 = vrot.slane %v3340_v12, 5  ;;  %v3488_v29 = vrot.slane %v3341_v58, 5  ;;  %v3347_v32 = vld [vmem:[#allocation2 + $0xc8] sm:$0x1]  ;;  %v3344_v34 = vld [vmem:[#allocation2 + $0xbc] sm:$0x1]  ;;  %v20333_v43 = vcombine.low %v3465_v13, %v3468_v20 }
 0x154   : > { %3569 = vrot.lane.b32.xlu1 %v20329_v30, %s20600_s19  ;;  %v20334_v33 = vcombine.low %v3472_v50, %v3475_v25  ;;  %v3492_v35 = vrot.slane %v3343_v5, 5  ;;  %v20322_v40 = vrot.slane %v3345_v52, 9  ;;  %v3349_v28 = vld [vmem:[#allocation2 + $0xd0] sm:$0xf]  ;;  %v3479_v42 = vsel %vm20895_vm7, %v20319_v8, %v3478_v11  ;;  %v3348_v56 = vld [vmem:[#allocation2 + $0xcc] sm:$0xe] }
 0x155   : > { %v3486_v39 = vsel %vm20895_vm7, %v20320_v22, %v3485_v27  ;;  %v3487_v38 = vrot.slane %v3485_v27, 4  ;;  %v20321_v44 = vrot.slane %v3342_v17, 9  ;;  %v3499_v15 = vrot.slane %v3346_v24, 5 }
 0x156   : > { %v2520_v19 = vpop.permute.xlu0 %2519  ;;  %3579 = vrot.lane.b32.xlu0 %v20334_v33, %s20600_s19  ;;  %v3502_v45 = vrot.slane %v3347_v32, 5  ;;  %v3482_v46 = vsel %vm20895_vm7, %v3480_v26, %v3481_v21  ;;  %v3494_v47 = vrot.slane %v3492_v35, 4  ;;  %v3495_v48 = vrot.slane %v3344_v34, 5  ;;  %v21553_v26 = vld [vmem:[%s28314_s3] sm:$0xff]  }
 0x157   : > { %v2225_v62 = vpop.permute.xlu1 %2224  ;;  %2566 = vst.msk [vmem:[#allocation3 + $0x10] sm:$0xff] %vm2563_vm13, %v2520_v19  ;;  %v3489_v36 = vsel %vm20895_vm7, %v3487_v38, %v3488_v29  ;;  %v3500_v51 = vsel %vm20895_vm7, %v20322_v40, %v3499_v15  ;;  %v3501_v53 = vrot.slane %v3499_v15, 4  ;;  %v3506_v55 = vrot.slane %v3349_v28, 5  ;;  %v3350_v19 = vld [vmem:[#allocation2 + $0xd4] sm:$0x1]  ;;  %20368 = vmatprep.mubr.msk.bf16.mxu0 %vm3659_vm0, %v21553_v26  ;;  %v3642_v34 = vld [vmem:[%s28315_s4] sm:$0xff] }
 0x158   : > { %2258 = vst.msk [vmem:[#allocation3 + $0x78] sm:$0xff] %vm2242_vm12, %v2225_v62  ;;  %3573 = vrot.lane.b32.xlu1 %v20331_v18, %s20600_s19  ;;  %v20336_v49 = vcombine.low %v3486_v39, %v3489_v36  ;;  %v20335_v60 = vcombine.low %v3479_v42, %v3482_v46  ;;  %v3493_v61 = vsel %vm20895_vm7, %v20321_v44, %v3492_v35  ;;  %v20323_v62 = vrot.slane %v3348_v56, 9  ;;  %v3643_v35 = vld [vmem:[%s28315_s4 + $0x8] sm:$0xff] }
 0x159   : > { %v3503_v59 = vsel %vm20895_vm7, %v3501_v53, %v3502_v45  ;;  %v3496_v63 = vsel %vm20895_vm7, %v3494_v47, %v3495_v48  ;;  %v3508_v0 = vrot.slane %v3506_v55, 4  ;;  %v3509_v1 = vrot.slane %v3350_v19, 5 }
 0x15a   : > { %v2524_v14 = vpop.permute.xlu0 %2523  ;;  %3583 = vrot.lane.b32.xlu0 %v20336_v49, %s20600_s19  ;;  %v20338_v31 = vcombine.low %v3500_v51, %v3503_v59  ;;  %v20337_v3 = vcombine.low %v3493_v61, %v3496_v63  ;;  %v3507_v6 = vsel %vm20895_vm7, %v20323_v62, %v3506_v55  ;;  %vm19812_vm11 = vcmask 97280  }
 0x15b   : > { %v2518_v54 = vpop.permute.xlu1 %2517  ;;  %2568 = vst.msk [vmem:[#allocation3 + $0x20] sm:$0xff] %vm2563_vm13, %v2524_v14  ;;  %v3510_v7 = vsel %vm20895_vm7, %v3508_v0, %v3509_v1  ;;  %vm19761_vm7 = vcmask 48128   ;;  %vm19829_vm12 = vcmask 113664  }
 0x15c   : > { %2565 = vst.msk [vmem:[#allocation3 + $0x8] sm:$0xff] %vm2563_vm13, %v2518_v54  ;;  %3577 = vrot.lane.b32.xlu1 %v20333_v43, %s20600_s19  ;;  %v20339_v11 = vcombine.low %v3507_v6, %v3510_v7  ;;  %v20601_v43 = vmov 0  }
 0x15d   : > { %20462 = vset.pattern.permute.xlu0 %v20601_v43  ;;  %20463 = vset.pattern.permute.xlu1 %v20601_v43 }
 0x15e   : > { %v2528_v37 = vpop.permute.xlu0 %2527  ;;  %3587 = vrot.lane.b32.xlu0 %v20338_v31, %s20600_s19 }
 0x15f   : > { %v2522_v41 = vpop.permute.xlu1 %2521  ;;  %2570 = vst.msk [vmem:[#allocation3 + $0x30] sm:$0xff] %vm2563_vm13, %v2528_v37 }
 0x160   : > { %2567 = vst.msk [vmem:[#allocation3 + $0x18] sm:$0xff] %vm2563_vm13, %v2522_v41  ;;  %3581 = vrot.lane.b32.xlu1 %v20335_v60, %s20600_s19 }
 0x162   : > { %v2532_v30 = vpop.permute.xlu0 %2531  ;;  %3646 = vperm.xlu0 %20462, %v3642_v34  }
 0x163   : > { %v2526_v57 = vpop.permute.xlu1 %2525  ;;  %2572 = vst.msk [vmem:[#allocation3 + $0x40] sm:$0xff] %vm2563_vm13, %v2532_v30 }
 0x164   : > { %2569 = vst.msk [vmem:[#allocation3 + $0x28] sm:$0xff] %vm2563_vm13, %v2526_v57  ;;  %3585 = vrot.lane.b32.xlu1 %v20337_v3, %s20600_s19 }
 0x166   : > { %v2536_v4 = vpop.permute.xlu0 %2535 }
 0x167   : > { %v2530_v2 = vpop.permute.xlu1 %2529  ;;  %2574 = vst.msk [vmem:[#allocation3 + $0x50] sm:$0xff] %vm2563_vm13, %v2536_v4 }
 0x168   : > { %2571 = vst.msk [vmem:[#allocation3 + $0x38] sm:$0xff] %vm2563_vm13, %v2530_v2  ;;  %3589 = vrot.lane.b32.xlu1 %v20339_v11, %s20600_s19 }
 0x16a   : > { %v2540_v9 = vpop.permute.xlu0 %2539 }
 0x16b   : > { %v2534_v10 = vpop.permute.xlu1 %2533  ;;  %2576 = vst.msk [vmem:[#allocation3 + $0x60] sm:$0xff] %vm2563_vm13, %v2540_v9 }
 0x16c   : > { %2573 = vst.msk [vmem:[#allocation3 + $0x48] sm:$0xff] %vm2563_vm13, %v2534_v10  ;;  %3651 = vperm.xlu1 %20463, %v3643_v35  }
 0x16e   : > { %v2544_v12 = vpop.permute.xlu0 %2543 }
 0x16f   : > { %v2538_v58 = vpop.permute.xlu1 %2537  ;;  %2578 = vst.msk [vmem:[#allocation3 + $0x70] sm:$0xff] %vm2563_vm13, %v2544_v12 }
 0x170   : > { %2575 = vst.msk [vmem:[#allocation3 + $0x58] sm:$0xff] %vm2563_vm13, %v2538_v58 }
 0x172   : > { %v2694_v23 = vpop.permute.xlu0 %2693 }
 0x173   : > { %v2542_v13 = vpop.permute.xlu1 %2541  ;;  %2742 = vst.msk [vmem:[#allocation3] sm:$0xff] %vm2741_vm14, %v2694_v23 }
 0x174   : > { %2577 = vst.msk [vmem:[#allocation3 + $0x68] sm:$0xff] %vm2563_vm13, %v2542_v13 }
 0x176   : > { %v2698_v14 = vpop.permute.xlu0 %2697 }
 0x177   : > { %v2546_v50 = vpop.permute.xlu1 %2545  ;;  %2744 = vst.msk [vmem:[#allocation3 + $0x10] sm:$0xff] %vm2741_vm14, %v2698_v14 }
 0x178   : > { %2579 = vst.msk [vmem:[#allocation3 + $0x78] sm:$0xff] %vm2563_vm13, %v2546_v50  ;;  %vm19863_vm13 = vcmask 146432  }
 0x17a   : > { %v2702_v16 = vpop.permute.xlu0 %2701 }
 0x17b   : > { %v2696_v8 = vpop.permute.xlu1 %2695  ;;  %2746 = vst.msk [vmem:[#allocation3 + $0x20] sm:$0xff] %vm2741_vm14, %v2702_v16 }
 0x17c   : > { %2743 = vst.msk [vmem:[#allocation3 + $0x8] sm:$0xff] %vm2741_vm14, %v2696_v8 }
 0x17e   : > { %v2706_v17 = vpop.permute.xlu0 %2705 }
 0x17f   : > { %v2700_v5 = vpop.permute.xlu1 %2699  ;;  %2748 = vst.msk [vmem:[#allocation3 + $0x30] sm:$0xff] %vm2741_vm14, %v2706_v17 }
 0x180   : > { %2745 = vst.msk [vmem:[#allocation3 + $0x18] sm:$0xff] %vm2741_vm14, %v2700_v5 }
 0x182   : > { %v2710_v18 = vpop.permute.xlu0 %2709 }
 0x183   : > { %v2704_v20 = vpop.permute.xlu1 %2703  ;;  %2750 = vst.msk [vmem:[#allocation3 + $0x40] sm:$0xff] %vm2741_vm14, %v2710_v18 }
 0x184   : > { %2747 = vst.msk [vmem:[#allocation3 + $0x28] sm:$0xff] %vm2741_vm14, %v2704_v20 }
 0x186   : > { %v2714_v54 = vpop.permute.xlu0 %2713 }
 0x187   : > { %v2708_v21 = vpop.permute.xlu1 %2707  ;;  %2752 = vst.msk [vmem:[#allocation3 + $0x50] sm:$0xff] %vm2741_vm14, %v2714_v54 }
 0x188   : > { %2749 = vst.msk [vmem:[#allocation3 + $0x38] sm:$0xff] %vm2741_vm14, %v2708_v21 }
 0x18a   : > { %v2718_v22 = vpop.permute.xlu0 %2717 }
 0x18b   : > { %v2712_v52 = vpop.permute.xlu1 %2711  ;;  %2754 = vst.msk [vmem:[#allocation3 + $0x60] sm:$0xff] %vm2741_vm14, %v2718_v22 }
 0x18c   : > { %2751 = vst.msk [vmem:[#allocation3 + $0x48] sm:$0xff] %vm2741_vm14, %v2712_v52 }
 0x18e   : > { %v2722_v24 = vpop.permute.xlu0 %2721 }
 0x18f   : > { %v2716_v25 = vpop.permute.xlu1 %2715  ;;  %2756 = vst.msk [vmem:[#allocation3 + $0x70] sm:$0xff] %vm2741_vm14, %v2722_v24 }
 0x190   : > { %2753 = vst.msk [vmem:[#allocation3 + $0x58] sm:$0xff] %vm2741_vm14, %v2716_v25 }
 0x192   : > { %v3239_v27 = vpop.permute.xlu0 %3238 }
 0x193   : > { %v2720_v29 = vpop.permute.xlu1 %2719  ;;  %3287 = vst.msk [vmem:[#allocation3] sm:$0xff] %vm3286_vm15, %v3239_v27  ;;  %v3759_v27 = vstv %s3754_s16  ;;  %s20613_s16 = smov 14  }
 0x194   : > { %2755 = vst.msk [vmem:[#allocation3 + $0x68] sm:$0xff] %vm2741_vm14, %v2720_v29 }
 0x196   : > { %v3243_v32 = vpop.permute.xlu0 %3242 }
 0x197   : > { %v2724_v33 = vpop.permute.xlu1 %2723  ;;  %3289 = vst.msk [vmem:[#allocation3 + $0x10] sm:$0xff] %vm3286_vm15, %v3243_v32 }
 0x198   : > { %2757 = vst.msk [vmem:[#allocation3 + $0x78] sm:$0xff] %vm2741_vm14, %v2724_v33  ;;  %vm19880_vm14 = vcmask 162816  }
 0x19a   : > { %v3247_v37 = vpop.permute.xlu0 %3246 }
 0x19b   : > { %v3241_v39 = vpop.permute.xlu1 %3240  ;;  %3291 = vst.msk [vmem:[#allocation3 + $0x20] sm:$0xff] %vm3286_vm15, %v3247_v37 }
 0x19c   : > { %3288 = vst.msk [vmem:[#allocation3 + $0x8] sm:$0xff] %vm3286_vm15, %v3241_v39 }
 0x19e   : > { %v3251_v38 = vpop.permute.xlu0 %3250 }
 0x19f   : > { %v3245_v40 = vpop.permute.xlu1 %3244  ;;  %3293 = vst.msk [vmem:[#allocation3 + $0x30] sm:$0xff] %vm3286_vm15, %v3251_v38 }
 0x1a0   : > { %3290 = vst.msk [vmem:[#allocation3 + $0x18] sm:$0xff] %vm3286_vm15, %v3245_v40 }
 0x1a2   : > { %v3255_v28 = vpop.permute.xlu0 %3254 }
 0x1a3   : > { %v3249_v41 = vpop.permute.xlu1 %3248  ;;  %3295 = vst.msk [vmem:[#allocation3 + $0x40] sm:$0xff] %vm3286_vm15, %v3255_v28 }
 0x1a4   : > { %3292 = vst.msk [vmem:[#allocation3 + $0x28] sm:$0xff] %vm3286_vm15, %v3249_v41 }
 0x1a6   : > { %v3259_v42 = vpop.permute.xlu0 %3258 }
 0x1a7   : > { %v3253_v44 = vpop.permute.xlu1 %3252  ;;  %3297 = vst.msk [vmem:[#allocation3 + $0x50] sm:$0xff] %vm3286_vm15, %v3259_v42 }
 0x1a8   : > { %3294 = vst.msk [vmem:[#allocation3 + $0x38] sm:$0xff] %vm3286_vm15, %v3253_v44 }
 0x1ab   : > { %v3257_v15 = vpop.permute.xlu1 %3256 }
 0x1ac   : > { %3296 = vst.msk [vmem:[#allocation3 + $0x48] sm:$0xff] %vm3286_vm15, %v3257_v15  ;;  %v3263_v45 = vpop.permute.xlu0 %3262 }
 0x1ad   : > { %3299 = vst.msk [vmem:[#allocation3 + $0x60] sm:$0xff] %vm3286_vm15, %v3263_v45 }
 0x1af   : > { %v3261_v46 = vpop.permute.xlu1 %3260 }
 0x1b0   : > { %3298 = vst.msk [vmem:[#allocation3 + $0x58] sm:$0xff] %vm3286_vm15, %v3261_v46  ;;  %v3267_v36 = vpop.permute.xlu0 %3266 }
 0x1b1   : > { %3301 = vst.msk [vmem:[#allocation3 + $0x70] sm:$0xff] %vm3286_vm15, %v3267_v36 }
 0x1b3   : > { %v3265_v47 = vpop.permute.xlu1 %3264 }
 0x1b4   : > { %3300 = vst.msk [vmem:[#allocation3 + $0x68] sm:$0xff] %vm3286_vm15, %v3265_v47  ;;  %v3560_v48 = vpop.permute.xlu0 %3559 }
 0x1b5   : > { %3608 = vst.msk [vmem:[#allocation3] sm:$0xff] %vm3607_vm1, %v3560_v48 }
 0x1b8   : > { %v3564_v49 = vpop.permute.xlu0 %3563 }
 0x1b9   : > { %3610 = vst.msk [vmem:[#allocation3 + $0x10] sm:$0xff] %vm3607_vm1, %v3564_v49 }
 0x1ba   : > { %v3269_v51 = vpop.permute.xlu1 %3268 }
 0x1bb   : > { %3302 = vst.msk [vmem:[#allocation3 + $0x78] sm:$0xff] %vm3286_vm15, %v3269_v51  ;;  %vm19897_vm15 = vcmask 179200  }
 0x1bc   : > { %v3568_v53 = vpop.permute.xlu0 %3567  ;;  %v3626_v61 = vld [vmem:[#allocation3] sm:$0xff] }
 0x1bd   : > { %3612 = vst.msk [vmem:[#allocation3 + $0x20] sm:$0xff] %vm3607_vm1, %v3568_v53  ;;  %v3664_v0 = vsel %vm3659_vm0, %v3626_v61, 0  ;;  %v20607_v53 = vmov 1983009808   ;;  %v20608_v61 = vmov 1934713408  }
 0x1be   : > { %v3562_v55 = vpop.permute.xlu1 %3561 }
 0x1bf   : > { %3609 = vst.msk [vmem:[#allocation3 + $0x8] sm:$0xff] %vm3607_vm1, %v3562_v55  ;;  %v3859_v55 = vunpack.c.l.s4 %v20607_v53 }
 0x1c0   : > { %v3572_v30 = vpop.permute.xlu0 %3571  ;;  %v3628_v11 = vld [vmem:[#allocation3 + $0x10] sm:$0xff] }
 0x1c1   : > { %3614 = vst.msk [vmem:[#allocation3 + $0x30] sm:$0xff] %vm3607_vm1, %v3572_v30  ;;  %v3670_v58 = vsel %vm3659_vm0, %v3628_v11, 0  ;;  %v3861_v30 = vlaneseq }
 0x1c2   : > { %v3566_v56 = vpop.permute.xlu1 %3565 }
 0x1c3   : > { %3611 = vst.msk [vmem:[#allocation3 + $0x18] sm:$0xff] %vm3607_vm1, %v3566_v56 }
 0x1c4   : > { %v3576_v19 = vpop.permute.xlu0 %3575  ;;  %v3630_v50 = vld [vmem:[#allocation3 + $0x20] sm:$0xff] }
 0x1c5   : > { %3616 = vst.msk [vmem:[#allocation3 + $0x40] sm:$0xff] %vm3607_vm1, %v3576_v19  ;;  %v3676_v8 = vsel %vm3659_vm0, %v3630_v50, 0 }
 0x1c6   : > { %v3570_v57 = vpop.permute.xlu1 %3569  ;;  %v3627_v2 = vld [vmem:[#allocation3 + $0x8] sm:$0xff] }
 0x1c7   : > { %3613 = vst.msk [vmem:[#allocation3 + $0x28] sm:$0xff] %vm3607_vm1, %v3570_v57  ;;  %v3667_v9 = vsel %vm3659_vm0, %v3627_v2, 0  ;;  %v3860_v57 = vunpack.c.0.s8 %v3859_v55 }
 0x1c8   : > { %v3580_v59 = vpop.permute.xlu0 %3579  ;;  %v3632_v20 = vld [vmem:[#allocation3 + $0x30] sm:$0xff] }
 0x1c9   : > { %3618 = vst.msk [vmem:[#allocation3 + $0x50] sm:$0xff] %vm3607_vm1, %v3580_v59  ;;  %v3682_v21 = vsel %vm3659_vm0, %v3632_v20, 0  ;;  %v3862_v59 = vshrl.u32 %v3861_v30, 7 }
 0x1ca   : > { %v3574_v60 = vpop.permute.xlu1 %3573  ;;  %v3629_v23 = vld [vmem:[#allocation3 + $0x18] sm:$0xff] }
 0x1cb   : > { %3615 = vst.msk [vmem:[#allocation3 + $0x38] sm:$0xff] %vm3607_vm1, %v3574_v60  ;;  %v3673_v14 = vsel %vm3659_vm0, %v3629_v23, 0 }
 0x1cc   : > { %v3634_v31 = vld [vmem:[#allocation3 + $0x40] sm:$0xff]  ;;  %v3584_v63 = vpop.permute.xlu0 %3583 }
 0x1cd   : > { %20370 = vmatprep.subr.msk.bf16.mxu0 %vm3659_vm0, %v3634_v31  ;;  %3620 = vst.msk [vmem:[#allocation3 + $0x60] sm:$0xff] %vm3607_vm1, %v3584_v63  ;;  %v3923_v31 = vunpack.c.l.s4 %v20608_v61 }
 0x1ce   : > { %v3578_v62 = vpop.permute.xlu1 %3577  ;;  %20353 = vmatpush3.bf16.xpose.msra.mxu0 %v3664_v0  ;;  %v3631_v17 = vld [vmem:[#allocation3 + $0x28] sm:$0xff]  ;;  %v21679_v0 = vsub.s32 %v3860_v57, %v3862_v59 }
 0x1cf   : > { %3617 = vst.msk [vmem:[#allocation3 + $0x48] sm:$0xff] %vm3607_vm1, %v3578_v62  ;;  %v3679_v18 = vsel %vm3659_vm0, %v3631_v17, 0 }
 0x1d0   : > { %v3588_v1 = vpop.permute.xlu0 %3587  ;;  %v3636_v6 = vld [vmem:[#allocation3 + $0x50] sm:$0xff] }
 0x1d1   : > { %3622 = vst.msk [vmem:[#allocation3 + $0x70] sm:$0xff] %vm3607_vm1, %v3588_v1 }
 0x1d2   : > { %v3582_v4 = vpop.permute.xlu1 %3581  ;;  %v3633_v22 = vld [vmem:[#allocation3 + $0x38] sm:$0xff] }
 0x1d3   : > { %3619 = vst.msk [vmem:[#allocation3 + $0x58] sm:$0xff] %vm3607_vm1, %v3582_v4  ;;  %v3685_v52 = vsel %vm3659_vm0, %v3633_v22, 0 }
 0x1d4   : > { %v3638_v13 = vld [vmem:[#allocation3 + $0x60] sm:$0xff] }
 0x1d6   : > { %v3635_v3 = vld [vmem:[#allocation3 + $0x48] sm:$0xff]  ;;  %v3586_v7 = vpop.permute.xlu1 %3585 }
 0x1d7   : > { %20371 = vmatprep.subr.msk.bf16.mxu0 %vm3659_vm0, %v3635_v3  ;;  %3621 = vst.msk [vmem:[#allocation3 + $0x68] sm:$0xff] %vm3607_vm1, %v3586_v7  ;;  %v3924_v3 = vunpack.c.0.s8 %v3923_v31 }
 0x1d8   : > { %20355 = vmatpush3.bf16.xpose.msra.mxu0 %v3667_v9  ;;  %v3640_v5 = vld [vmem:[#allocation3 + $0x70] sm:$0xff] }
 0x1d9   : > { %20372 = vmatprep.subr.msk.bf16.mxu0 %vm3659_vm0, %v3636_v6  ;;  %v21690_v23 = vsub.s32 %v3924_v3, %v3862_v59 }
 0x1da   : > { %v3590_v10 = vpop.permute.xlu1 %3589  ;;  %v3637_v12 = vld [vmem:[#allocation3 + $0x58] sm:$0xff] }
 0x1db   : > { %3623 = vst.msk [vmem:[#allocation3 + $0x78] sm:$0xff] %vm3607_vm1, %v3590_v10  ;;  %vm19931_vm1 = vcmask 211968  }
 0x1de   : > { %v3639_v16 = vld [vmem:[#allocation3 + $0x68] sm:$0xff] }
 0x1e0   : > { %20357 = vmatpush3.bf16.xpose.msra.mxu0 %v3670_v58 }
 0x1e1   : > { %20373 = vmatprep.subr.msk.bf16.mxu0 %vm3659_vm0, %v3637_v12  ;;  %v3647_v24 = vpop.permute.xlu0 %3646 }
 0x1e2   : > { %v3641_v54 = vld [vmem:[#allocation3 + $0x78] sm:$0xff] }
 0x1e8   : > { %20359 = vmatpush3.bf16.xpose.msra.mxu0 %v3673_v14 }
 0x1e9   : > { %20374 = vmatprep.subr.msk.bf16.mxu0 %vm3659_vm0, %v3638_v13 }
 0x1eb   : > { %v3652_v29 = vpop.permute.xlu1 %3651 }
 0x1f0   : > { %20361 = vmatpush3.bf16.xpose.msra.mxu0 %v3676_v8 }
 0x1f1   : > { %20375 = vmatprep.subr.msk.bf16.mxu0 %vm3659_vm0, %v3639_v16 }
 0x1f8   : > { %20363 = vmatpush3.bf16.xpose.msra.mxu0 %v3679_v18 }
 0x1f9   : > { %20376 = vmatprep.subr.msk.bf16.mxu0 %vm3659_vm0, %v3640_v5 }
 0x200   : > { %20365 = vmatpush3.bf16.xpose.msra.mxu0 %v3682_v21 }
 0x201   : > { %20377 = vmatprep.subr.msk.bf16.mxu0 %vm3659_vm0, %v3641_v54 }
 0x208   : > { %20367 = vmatpush3.bf16.xpose.msra.mxu0 %v3685_v52 }
 0x20f   : > { %20369 = vmatmul.mubr.msk.bf16.vlgmr.msra.gmra.mrb[0].mxu0 %vm3659_vm0, %v21553_v26  ;;  %vm19914_vm0 = vcmask 195584  }
 0x2e2   : > { %v3745_v25 = vpop.f32.mrb[0].mxu0 }
 0x2e3   : > { %v3746_v32 = vadd.f32 %v3745_v25, %v3647_v24  ;;  %v3747_v33 = vpop.f32.mrb[1].mxu0 }
 0x2e4   : > { %v3749_v34 = vpop.f32.mrb[2].mxu0  ;;  %v3748_v40 = vadd.f32 %v3747_v33, %v3647_v24 }
 0x2e5   : > { %vm3755_vm2 = vcmp.ge.f32.partialorder %v3746_v32, 0.0  ;;  %v3760_v35 = vmul.f32 %v3759_v27, %v3746_v32  ;;  %v3750_v43 = vadd.f32 %v3749_v34, %v3652_v29  ;;  %v3751_v37 = vpop.f32.mrb[3].mxu0 }
 0x2e6   : > { %v3752_v28 = vadd.f32 %v3751_v37, %v3652_v29  ;;  %v3761_v41 = vmul.f32 %v3759_v27, %v3748_v40  ;;  %vm3756_vm4 = vcmp.ge.f32.partialorder %v3748_v40, 0.0 }
 0x2e7   : > { %v21615_v39 = vsel %vm3755_vm2, %v3746_v32, %v3760_v35  ;;  %vm3757_vm3 = vcmp.ge.f32.partialorder %v3750_v43, 0.0  ;;  %v3762_v38 = vmul.f32 %v3759_v27, %v3750_v43  ;;  %vm19948_vm2 = vcmask 228352  }
 0x2e8   : > { %3770 = vrot.lane.b32.xlu1 %v21615_v39, %s20602_s20  ;;  %v3763_v42 = vmul.f32 %v3759_v27, %v3752_v28  ;;  %vm3758_vm5 = vcmp.ge.f32.partialorder %v3752_v28, 0.0  ;;  %v21637_v44 = vsel %vm3756_vm4, %v3748_v40, %v3761_v41  ;;  %vm19982_vm4 = vcmask 261120  }
 0x2e9   : > { %v21618_v26 = vsel %vm3757_vm3, %v3750_v43, %v3762_v38  ;;  %vm19965_vm3 = vcmask 244736  }
 0x2ea   : > { %3772 = vrot.lane.b32.xlu0 %v21618_v26, %s20602_s20  ;;  %v21640_v15 = vsel %vm3758_vm5, %v3752_v28, %v3763_v42 }
 0x2ec   : > { %3776 = vrot.lane.b32.xlu1 %v21615_v39, %s20603_s21 }
 0x2ee   : > { %3778 = vrot.lane.b32.xlu0 %v21618_v26, %s20603_s21 }
 0x2f0   : > { %3782 = vrot.lane.b32.xlu1 %v21615_v39, %s20604_s22 }
 0x2f2   : > { %3784 = vrot.lane.b32.xlu0 %v21618_v26, %s20604_s22 }
 0x2f4   : > { %3788 = vrot.lane.b32.xlu1 %v21615_v39, %s20605_s9 }
 0x2f6   : > { %3790 = vrot.lane.b32.xlu0 %v21618_v26, %s20605_s9 }
 0x2f8   : > { %3794 = vrot.lane.b32.xlu1 %v21615_v39, %s20606_s14 }
 0x2fa   : > { %3796 = vrot.lane.b32.xlu0 %v21618_v26, %s20606_s14 }
 0x2fc   : > { %3800 = vrot.lane.b32.xlu1 %v21615_v39, %s20600_s19 }
 0x2fe   : > { %3802 = vrot.lane.b32.xlu0 %v21618_v26, %s20600_s19 }
 0x300   : > { %3806 = vrot.lane.b32.xlu1 %v21615_v39, %s20596_s29 }
 0x302   : > { %3808 = vrot.lane.b32.xlu0 %v21618_v26, %s20596_s29 }
 0x304   : > { %3814 = vrot.lane.b32.xlu1 %v21637_v44, %s20602_s20 }
 0x306   : > { %3816 = vrot.lane.b32.xlu0 %v21640_v15, %s20602_s20 }
 0x308   : > { %3820 = vrot.lane.b32.xlu1 %v21637_v44, %s20603_s21 }
 0x30a   : > { %3822 = vrot.lane.b32.xlu0 %v21640_v15, %s20603_s21 }
 0x30c   : > { %3826 = vrot.lane.b32.xlu1 %v21637_v44, %s20604_s22 }
 0x30e   : > { %3828 = vrot.lane.b32.xlu0 %v21640_v15, %s20604_s22  ;;  %s20351_s22 = sshll.u32 %s20583_s26, 11 }
 0x310   : > { %3832 = vrot.lane.b32.xlu1 %v21637_v44, %s20605_s9 }
 0x312   : > { %3834 = vrot.lane.b32.xlu0 %v21640_v15, %s20605_s9 }
 0x314   : > { %3838 = vrot.lane.b32.xlu1 %v21637_v44, %s20606_s14 }
 0x316   : > { %3840 = vrot.lane.b32.xlu0 %v21640_v15, %s20606_s14 }
 0x318   : > { %3844 = vrot.lane.b32.xlu1 %v21637_v44, %s20600_s19 }
 0x31a   : > { %3846 = vrot.lane.b32.xlu0 %v21640_v15, %s20600_s19  ;;  %s20610_s19 = smov 2  }
 0x31c   : > { %3850 = vrot.lane.b32.xlu1 %v21637_v44, %s20596_s29 }
 0x31e   : > { %3852 = vrot.lane.b32.xlu0 %v21640_v15, %s20596_s29 }
 0x35a   : > { %v21659_v45 = vpop.permute.xlu1 %3770 }
 0x35c   : > { %v21661_v46 = vpop.permute.xlu0 %3772 }
 0x35e   : > { %v21663_v36 = vpop.permute.xlu1 %3776 }
 0x35f   : > { %v3856_v1 = vcombine.low %v21615_v39, %v21663_v36  ;;  %v3857_v61 = vcombine.high %v21615_v39, %v21663_v36 }
 0x360   : > { %v21665_v47 = vpop.permute.xlu0 %3778 }
 0x361   : > { %v3864_v7 = vrot.slane %v3856_v1, %v21679_v0  ;;  %v3871_v39 = vrot.slane %v3857_v61, %v21679_v0 }
 0x362   : > { %v21667_v48 = vpop.permute.xlu1 %3782 }
 0x363   : > { %v3872_v60 = vcombine.low %v21659_v45, %v21667_v48  ;;  %v3873_v55 = vcombine.high %v21659_v45, %v21667_v48 }
 0x364   : > { %v21669_v49 = vpop.permute.xlu0 %3784 }
 0x365   : > { %v3880_v4 = vrot.slane %v3872_v60, %v21679_v0  ;;  %v3887_v45 = vrot.slane %v3873_v55, %v21679_v0 }
 0x366   : > { %v21671_v51 = vpop.permute.xlu1 %3788 }
 0x367   : > { %v3920_v11 = vcombine.low %v3864_v7, %v3880_v4  ;;  %v3921_v30 = vcombine.high %v3864_v7, %v3880_v4 }
 0x368   : > { %v21673_v56 = vpop.permute.xlu0 %3790 }
 0x369   : > { %v3928_v50 = vrot.slane %v3920_v11, %v21690_v23 }
 0x36a   : > { %v3795_v19 = vpop.permute.xlu1 %3794 }
 0x36c   : > { %v21677_v63 = vpop.permute.xlu0 %3796 }
 0x36e   : > { %v3801_v62 = vpop.permute.xlu1 %3800 }
 0x36f   : > { %v3888_v2 = vcombine.low %v21671_v51, %v3801_v62  ;;  %v3889_v57 = vcombine.high %v21671_v51, %v3801_v62  ;;  %v3935_v62 = vrot.slane %v3921_v30, %v21690_v23 }
 0x370   : > { %v21686_v10 = vpop.permute.xlu0 %3802 }
 0x371   : > { %v3896_v12 = vrot.slane %v3888_v2, %v21679_v0  ;;  %v3903_v48 = vrot.slane %v3889_v57, %v21679_v0 }
 0x372   : > { %v3807_v6 = vpop.permute.xlu1 %3806 }
 0x373   : > { %v3904_v9 = vcombine.low %v3795_v19, %v3807_v6  ;;  %v3905_v28 = vcombine.high %v3795_v19, %v3807_v6 }
 0x374   : > { %v21694_v8 = vpop.permute.xlu0 %3808 }
 0x375   : > { %v3912_v58 = vrot.slane %v3904_v9, %v21679_v0  ;;  %v3919_v31 = vrot.slane %v3905_v28, %v21679_v0 }
 0x376   : > { %v3815_v13 = vpop.permute.xlu1 %3814 }
 0x377   : > { %v3952_v14 = vcombine.low %v3896_v12, %v3912_v58  ;;  %v3953_v41 = vcombine.high %v3896_v12, %v3912_v58  ;;  %v3968_v36 = vcombine.low %v3903_v48, %v3919_v31 }
 0x378   : > { %v21698_v54 = vpop.permute.xlu0 %3816 }
 0x379   : > { %v3960_v16 = vrot.slane %v3952_v14, %v21690_v23  ;;  %v3967_v19 = vrot.slane %v3953_v41, %v21690_v23 }
 0x37a   : > { %v21696_v17 = vpop.permute.xlu1 %3820 }
 0x37b   : > { %v3985_v5 = vcombine.high %v3928_v50, %v3960_v16  ;;  %v3984_v18 = vcombine.low %v3928_v50, %v3960_v16  ;;  %v3992_v27 = vcombine.low %v21637_v44, %v21696_v17  ;;  %v3993_v11 = vcombine.high %v21637_v44, %v21696_v17 }
 0x37c   : > { %v21700_v22 = vpop.permute.xlu0 %3822  ;;  %v3986_v14 = vcombine.low %v3935_v62, %v3967_v19  ;;  %v3987_v50 = vcombine.high %v3935_v62, %v3967_v19  ;;  %v3936_v16 = vcombine.low %v3871_v39, %v3887_v45 }
 0x37d   : > { %4432 = vxpose.xlu0.b32.start [1/2] (short) (narrow) %v3985_v5, 16  ;;  %4400 = vxpose.xlu1.b32.start [1/2] (short) (narrow) %v3984_v18, 16  ;;  %v4000_v35 = vrot.slane %v3992_v27, %v21679_v0  ;;  %v4007_v44 = vrot.slane %v3993_v11, %v21679_v0  ;;  %v4264_v62 = vcombine.low %v21640_v15, %v21700_v22 }
 0x37e   : > { %v3827_v20 = vpop.permute.xlu1 %3826  ;;  %v3944_v27 = vrot.slane %v3936_v16, %v21690_v23 }
 0x37f   : > { %v4008_v24 = vcombine.low %v3815_v13, %v3827_v20  ;;  %v4009_v4 = vcombine.high %v3815_v13, %v3827_v20 }
 0x380   : > { %v21704_v29 = vpop.permute.xlu0 %3828 }
 0x381   : > { %v4016_v32 = vrot.slane %v4008_v24, %v21679_v0  ;;  %v4023_v5 = vrot.slane %v4009_v4, %v21679_v0 }
 0x382   : > { %v3833_v21 = vpop.permute.xlu1 %3832 }
 0x383   : > { %v4056_v37 = vcombine.low %v4000_v35, %v4016_v32  ;;  %v4057_v7 = vcombine.high %v4000_v35, %v4016_v32  ;;  %v3969_v32 = vcombine.high %v3903_v48, %v3919_v31 }
 0x384   : > { %v21710_v42 = vpop.permute.xlu0 %3834 }
 0x385   : > { %v4064_v59 = vrot.slane %v4056_v37, %v21690_v23  ;;  %v4071_v13 = vrot.slane %v4057_v7, %v21690_v23  ;;  %v3937_v37 = vcombine.high %v3871_v39, %v3887_v45  ;;  %v3983_v30 = vrot.slane %v3969_v32, %v21690_v23 }
 0x386   : > { %v3839_v52 = vpop.permute.xlu1 %3838 }
 0x388   : > { %v21723_v51 = vpop.permute.xlu0 %3840 }
 0x38a   : > { %v3845_v25 = vpop.permute.xlu1 %3844 }
 0x38b   : > { %v4024_v33 = vcombine.low %v3833_v21, %v3845_v25  ;;  %v4025_v9 = vcombine.high %v3833_v21, %v3845_v25  ;;  %v3976_v21 = vrot.slane %v3968_v36, %v21690_v23  ;;  %v4072_v25 = vcombine.low %v4007_v44, %v4023_v5 }
 0x38c   : > { %v21734_v20 = vpop.permute.xlu0 %3846 }
 0x38d   : > { %v4032_v38 = vrot.slane %v4024_v33, %v21679_v0  ;;  %v4039_v18 = vrot.slane %v4025_v9, %v21679_v0  ;;  %v4176_v33 = vcombine.low %v21677_v63, %v21694_v8  ;;  %v3988_v35 = vcombine.low %v3944_v27, %v3976_v21 }
 0x38e   : > { %v3851_v34 = vpop.permute.xlu1 %3850  ;;  %v4080_v41 = vrot.slane %v4072_v25, %v21690_v23 }
 0x38f   : > { %v4040_v43 = vcombine.low %v3839_v52, %v3851_v34  ;;  %v4041_v1 = vcombine.high %v3839_v52, %v3851_v34  ;;  %v4184_v55 = vrot.slane %v4176_v33, %v21679_v0  ;;  %v4161_v33 = vcombine.high %v21673_v56, %v21686_v10 }
 0x390   : > { %v21746_v28 = vpop.permute.xlu0 %3852 }
 0x391   : > { %v4048_v40 = vrot.slane %v4040_v43, %v21679_v0  ;;  %v4055_v12 = vrot.slane %v4041_v1, %v21679_v0  ;;  %v3989_v43 = vcombine.high %v3944_v27, %v3976_v21  ;;  %v3951_v1 = vrot.slane %v3937_v37, %v21690_v23 }
 0x392   : > { %v4145_v27 = vcombine.high %v21661_v46, %v21669_v49 }
 0x393   : > { %v4088_v53 = vcombine.low %v4032_v38, %v4048_v40  ;;  %v4089_v2 = vcombine.high %v4032_v38, %v4048_v40  ;;  %v4104_v17 = vcombine.low %v4039_v18, %v4055_v12  ;;  %v4144_v38 = vcombine.low %v21661_v46, %v21669_v49 }
 0x394   : > { %v4160_v40 = vcombine.low %v21673_v56, %v21686_v10  ;;  %v4105_v57 = vcombine.high %v4039_v18, %v4055_v12  ;;  %v3990_v9 = vcombine.low %v3951_v1, %v3983_v30  ;;  %v3991_v39 = vcombine.high %v3951_v1, %v3983_v30 }
 0x395   : > { %v4096_v60 = vrot.slane %v4088_v53, %v21690_v23  ;;  %v4103_v58 = vrot.slane %v4089_v2, %v21690_v23  ;;  %v4112_v34 = vrot.slane %v4104_v17, %v21690_v23  ;;  %v4128_v53 = vcombine.low %v21618_v26, %v21665_v47 }
 0x396   : > { %v4152_v31 = vrot.slane %v4144_v38, %v21679_v0  ;;  %v4168_v19 = vrot.slane %v4160_v40, %v21679_v0  ;;  %v4073_v2 = vcombine.high %v4007_v44, %v4023_v5  ;;  %v4119_v4 = vrot.slane %v4105_v57, %v21690_v23 }
 0x397   : > { %v4121_v3 = vcombine.high %v4064_v59, %v4096_v60  ;;  %v4120_v6 = vcombine.low %v4064_v59, %v4096_v60  ;;  %v4122_v52 = vcombine.low %v4071_v13, %v4103_v58  ;;  %v4123_v24 = vcombine.high %v4071_v13, %v4103_v58 }
 0x398   : > { %v4312_v59 = vcombine.low %v21723_v51, %v21746_v28  ;;  %v4124_v60 = vcombine.low %v4080_v41, %v4112_v34  ;;  %v4125_v61 = vcombine.high %v4080_v41, %v4112_v34  ;;  %v4136_v45 = vrot.slane %v4128_v53, %v21679_v0 }
 0x399   : > { %4433 = vxpose.xlu0.b32.end [2/2] (short) (narrow) %v4121_v3, 16  ;;  %4401 = vxpose.xlu1.b32.end [2/2] (short) (narrow) %v4120_v6, 16  ;;  %v4280_v3 = vcombine.low %v21698_v54, %v21704_v29  ;;  %v4296_v6 = vcombine.low %v21710_v42, %v21734_v20  ;;  %v4224_v48 = vcombine.low %v4168_v19, %v4184_v55 }
 0x39a   : > { %v4320_v7 = vrot.slane %v4312_v59, %v21679_v0  ;;  %v4192_v36 = vcombine.low %v4136_v45, %v4152_v31  ;;  %v4087_v11 = vrot.slane %v4073_v2, %v21690_v23  ;;  %v4177_v44 = vcombine.high %v21677_v63, %v21694_v8 }
 0x39b   : > { %v4288_v12 = vrot.slane %v4280_v3, %v21679_v0  ;;  %v4304_v58 = vrot.slane %v4296_v6, %v21679_v0  ;;  %v4225_v17 = vcombine.high %v4168_v19, %v4184_v55  ;;  %v4193_v32 = vcombine.high %v4136_v45, %v4152_v31 }
 0x39c   : > { %v4126_v5 = vcombine.low %v4087_v11, %v4119_v4  ;;  %v4127_v13 = vcombine.high %v4087_v11, %v4119_v4  ;;  %v4200_v21 = vrot.slane %v4192_v36, %v21690_v23  ;;  %v4191_v63 = vrot.slane %v4177_v44, %v21679_v0 }
 0x39d   : > { %4464 = vxpose.xlu0.b32.start [1/2] (short) (narrow) %v3986_v14, 16  ;;  %4496 = vxpose.xlu1.b32.start [1/2] (short) (narrow) %v3987_v50, 16  ;;  %v4232_v14 = vrot.slane %v4224_v48, %v21690_v23  ;;  %v4272_v50 = vrot.slane %v4264_v62, %v21679_v0  ;;  %v4360_v16 = vcombine.low %v4304_v58, %v4320_v7 }
 0x39e   : > { %v4239_v8 = vrot.slane %v4225_v17, %v21690_v23  ;;  %v4361_v37 = vcombine.high %v4304_v58, %v4320_v7  ;;  %v4159_v38 = vrot.slane %v4145_v27, %v21679_v0  ;;  %v4175_v56 = vrot.slane %v4161_v33, %v21679_v0 }
 0x39f   : > { %v4328_v18 = vcombine.low %v4272_v50, %v4288_v12  ;;  %v4257_v25 = vcombine.high %v4200_v21, %v4232_v14  ;;  %v4207_v10 = vrot.slane %v4193_v32, %v21690_v23  ;;  %v4281_v40 = vcombine.high %v21698_v54, %v21704_v29 }
 0x3a0   : > { %v4265_v41 = vcombine.high %v21640_v15, %v21700_v22  ;;  %v4375_v55 = vrot.slane %v4361_v37, %v21690_v23  ;;  %v4241_v1 = vcombine.high %v4175_v56, %v4191_v63 }
 0x3a1   : > { %4465 = vxpose.xlu0.b32.end [2/2] (short) (narrow) %v4122_v52, 16  ;;  %4497 = vxpose.xlu1.b32.end [2/2] (short) (narrow) %v4123_v24, 16  ;;  %v4368_v52 = vrot.slane %v4360_v16, %v21690_v23  ;;  %v4256_v24 = vcombine.low %v4200_v21, %v4232_v14  ;;  %v4336_v34 = vrot.slane %v4328_v18, %v21690_v23 }
 0x3a2   : > { %v4258_v30 = vcombine.low %v4207_v10, %v4239_v8  ;;  %v4259_v57 = vcombine.high %v4207_v10, %v4239_v8  ;;  %v4295_v54 = vrot.slane %v4281_v40, %v21679_v0 }
 0x3a3   : > { %v4392_v46 = vcombine.low %v4336_v34, %v4368_v52  ;;  %v4393_v49 = vcombine.high %v4336_v34, %v4368_v52 }
 0x3a5   : > { %4528 = vxpose.xlu0.b32.start [1/2] (short) (narrow) %v3988_v35, 16  ;;  %4560 = vxpose.xlu1.b32.start [1/2] (short) (narrow) %v3989_v43, 16  ;;  %v4129_v35 = vcombine.high %v21618_v26, %v21665_v47  ;;  %v4313_v43 = vcombine.high %v21723_v51, %v21746_v28  ;;  %v4329_v26 = vcombine.high %v4272_v50, %v4288_v12 }
 0x3a6   : > { %v4297_v47 = vcombine.high %v21710_v42, %v21734_v20  ;;  %v4240_v28 = vcombine.low %v4175_v56, %v4191_v63  ;;  %v4279_v20 = vrot.slane %v4265_v41, %v21679_v0 }
 0x3a7   : > { %v4143_v51 = vrot.slane %v4129_v35, %v21679_v0  ;;  %v4327_v53 = vrot.slane %v4313_v43, %v21679_v0  ;;  %v4343_v29 = vrot.slane %v4329_v26, %v21690_v23 }
 0x3a8   : > { %v4311_v42 = vrot.slane %v4297_v47, %v21679_v0  ;;  %v4248_v22 = vrot.slane %v4240_v28, %v21690_v23  ;;  %v4344_v31 = vcombine.low %v4279_v20, %v4295_v54 }
 0x3a9   : > { %4529 = vxpose.xlu0.b32.end [2/2] (short) (narrow) %v4124_v60, 16  ;;  %4561 = vxpose.xlu1.b32.end [2/2] (short) (narrow) %v4125_v61, 16  ;;  %v4208_v59 = vcombine.low %v4143_v51, %v4159_v38  ;;  %v4394_v61 = vcombine.low %v4343_v29, %v4375_v55  ;;  %v4395_v15 = vcombine.high %v4343_v29, %v4375_v55 }
 0x3aa   : > { %v4376_v60 = vcombine.low %v4311_v42, %v4327_v53  ;;  %v4209_v45 = vcombine.high %v4143_v51, %v4159_v38  ;;  %v4352_v48 = vrot.slane %v4344_v31, %v21690_v23  ;;  %v4377_v62 = vcombine.high %v4311_v42, %v4327_v53 }
 0x3ab   : > { %v4216_v19 = vrot.slane %v4208_v59, %v21690_v23 }
 0x3ac   : > { %v4384_v2 = vrot.slane %v4376_v60, %v21690_v23  ;;  %v4223_v36 = vrot.slane %v4209_v45, %v21690_v23  ;;  %v4391_v11 = vrot.slane %v4377_v62, %v21690_v23 }
 0x3ad   : > { %4592 = vxpose.xlu0.b32.start [1/2] (short) (narrow) %v3990_v9, 16  ;;  %4624 = vxpose.xlu1.b32.start [1/2] (short) (narrow) %v3991_v39, 16  ;;  %v4260_v3 = vcombine.low %v4216_v19, %v4248_v22  ;;  %v4261_v6 = vcombine.high %v4216_v19, %v4248_v22  ;;  %v4255_v9 = vrot.slane %v4241_v1, %v21690_v23 }
 0x3ae   : > { %v4396_v4 = vcombine.low %v4352_v48, %v4384_v2  ;;  %v4397_v7 = vcombine.high %v4352_v48, %v4384_v2  ;;  %v4345_v39 = vcombine.high %v4279_v20, %v4295_v54 }
 0x3af   : > { %v4262_v12 = vcombine.low %v4223_v36, %v4255_v9  ;;  %v4263_v58 = vcombine.high %v4223_v36, %v4255_v9 }
 0x3b0   : > { %v4359_v14 = vrot.slane %v4345_v39, %v21690_v23 }
 0x3b1   : > { %4593 = vxpose.xlu0.b32.end [2/2] (short) (narrow) %v4126_v5, 16  ;;  %4625 = vxpose.xlu1.b32.end [2/2] (short) (narrow) %v4127_v13, 16 }
 0x3b2   : > { %v4398_v50 = vcombine.low %v4359_v14, %v4391_v11  ;;  %v4399_v16 = vcombine.high %v4359_v14, %v4391_v11 }
 0x3b5   : > { %4656 = vxpose.xlu0.b32.start [1/2] (short) (narrow) %v4256_v24, 16  ;;  %4688 = vxpose.xlu1.b32.start [1/2] (short) (narrow) %v4257_v25, 16  ;;  %v28321_v25 = vmov 0.0  }
 0x3b9   : > { %4657 = vxpose.xlu0.b32.end [2/2] (short) (narrow) %v4392_v46, 16  ;;  %4689 = vxpose.xlu1.b32.end [2/2] (short) (narrow) %v4393_v49, 16 }
 0x3bd   : > { %4720 = vxpose.xlu0.b32.start [1/2] (short) (narrow) %v4258_v30, 16  ;;  %4752 = vxpose.xlu1.b32.start [1/2] (short) (narrow) %v4259_v57, 16 }
 0x3c1   : > { %4721 = vxpose.xlu0.b32.end [2/2] (short) (narrow) %v4394_v61, 16  ;;  %4753 = vxpose.xlu1.b32.end [2/2] (short) (narrow) %v4395_v15, 16 }
 0x3c5   : > { %4784 = vxpose.xlu0.b32.start [1/2] (short) (narrow) %v4260_v3, 16  ;;  %4816 = vxpose.xlu1.b32.start [1/2] (short) (narrow) %v4261_v6, 16 }
 0x3c9   : > { %4785 = vxpose.xlu0.b32.end [2/2] (short) (narrow) %v4396_v4, 16  ;;  %4817 = vxpose.xlu1.b32.end [2/2] (short) (narrow) %v4397_v7, 16 }
 0x3cd   : > { %4848 = vxpose.xlu0.b32.start [1/2] (short) (narrow) %v4262_v12, 16  ;;  %4880 = vxpose.xlu1.b32.start [1/2] (short) (narrow) %v4263_v58, 16 }
 0x3d1   : > { %4849 = vxpose.xlu0.b32.end [2/2] (short) (narrow) %v4398_v50, 16  ;;  %4881 = vxpose.xlu1.b32.end [2/2] (short) (narrow) %v4399_v16, 16 }
 0x415   : > { %v21811_v5 = vpop.trf.xlu0  ;;  %v21813_v13 = vpop.trf.xlu1 }
 0x416   : > { %v4934_v18 = vrot.slane %v21811_v5, %v21679_v0  ;;  %v4919_v21 = vrot.slane %v21813_v13, %v21679_v0 }
 0x418   : > { %v4942_v44 = vcombine.low %v4919_v21, %v4934_v18  ;;  %v4943_v17 = vcombine.high %v4919_v21, %v4934_v18 }
 0x419   : > { %v4449_v52 = vpop.trf.xlu0  ;;  %v4417_v24 = vpop.trf.xlu1 }
 0x41a   : > { %v4993_v27 = vcombine.high %v4449_v52, %v28321_v25  ;;  %v21821_v32 = vrot.slane %v4449_v52, %v21679_v0  ;;  %v4978_v33 = vcombine.high %v4417_v24, %v28321_v25  ;;  %v21825_v34 = vrot.slane %v4417_v24, %v21679_v0 }
 0x41b   : > { %v4957_v35 = vrot.slane %v4943_v17, %v21690_v23  ;;  %v4950_v63 = vrot.slane %v4942_v44, %v21690_v23 }
 0x41c   : > { %v21830_v8 = vrot.slane %v4993_v27, %v21679_v0  ;;  %v21833_v43 = vrot.slane %v4978_v33, %v21679_v0  ;;  %v5008_v37 = vcombine.low %v21825_v34, %v21821_v32  ;;  %v5009_v46 = vcombine.high %v21825_v34, %v21821_v32 }
 0x41d   : > { %6032 = vxpose.xlu1.b32.start.end [1/1] (short) (narrow) %v4957_v35, 16  ;;  %5968 = vxpose.xlu0.b32.start.end [1/1] (short) (narrow) %v4950_v63, 16  ;;  %v21839_v49 = vpop.trf.xlu0  ;;  %v21841_v38 = vpop.trf.xlu1  ;;  %v4974_v51 = vcombine.high %v4950_v63, %v28321_v25  ;;  %v4975_v22 = vcombine.high %v4957_v35, %v28321_v25 }
 0x41e   : > { %v5051_v56 = vrot.slane %v21839_v49, %v21679_v0  ;;  %v5066_v10 = vrot.slane %v21841_v38, %v21679_v0  ;;  %v5024_v40 = vcombine.low %v21833_v43, %v21830_v8 }
 0x420   : > { %v5074_v47 = vcombine.low %v5051_v56, %v5066_v10  ;;  %v5075_v53 = vcombine.high %v5051_v56, %v5066_v10 }
 0x421   : > { %v4481_v28 = vpop.trf.xlu0  ;;  %v4513_v41 = vpop.trf.xlu1 }
 0x422   : > { %v5110_v55 = vcombine.high %v4481_v28, %v28321_v25  ;;  %v21854_v30 = vrot.slane %v4481_v28, %v21679_v0  ;;  %6000 = vxpose.xlu0.b32.start.end [1/1] (short) (narrow) %v4974_v51, 16  ;;  %v5125_v57 = vcombine.high %v4513_v41, %v28321_v25  ;;  %v21858_v59 = vrot.slane %v4513_v41, %v21679_v0 }
 0x423   : > { %v5082_v54 = vrot.slane %v5074_v47, %v21690_v23  ;;  %v5089_v1 = vrot.slane %v5075_v53, %v21690_v23  ;;  %v4927_v51 = vcombine.high %v21811_v5, %v28321_v25  ;;  %v4912_v28 = vcombine.high %v21813_v13, %v28321_v25 }
 0x424   : > { %v21862_v29 = vrot.slane %v5110_v55, %v21679_v0  ;;  %v21865_v42 = vrot.slane %v5125_v57, %v21679_v0  ;;  %v5140_v20 = vcombine.low %v21854_v30, %v21858_v59  ;;  %v5141_v60 = vcombine.high %v21854_v30, %v21858_v59 }
 0x425   : > { %6480 = vxpose.xlu1.b32.start.end [1/1] (short) (narrow) %v5082_v54, 16  ;;  %v21871_v61 = vpop.trf.xlu0  ;;  %v21873_v15 = vpop.trf.xlu1  ;;  %v5106_v45 = vcombine.high %v5082_v54, %v28321_v25  ;;  %v5107_v21 = vcombine.high %v5089_v1, %v28321_v25 }
 0x426   : > { %v5183_v31 = vrot.slane %v21871_v61, %v21679_v0  ;;  %v5198_v19 = vrot.slane %v21873_v15, %v21679_v0  ;;  %v5176_v13 = vcombine.high %v21871_v61, %v28321_v25  ;;  %v5191_v5 = vcombine.high %v21873_v15, %v28321_v25 }
 0x427   : > { %6064 = vxpose.xlu0.b32.start.end [1/1] (short) (narrow) %v4975_v22, 16 }
 0x428   : > { %v5206_v6 = vcombine.low %v5183_v31, %v5198_v19  ;;  %v5207_v11 = vcombine.high %v5183_v31, %v5198_v19  ;;  %v4941_v31 = vrot.slane %v4927_v51, %v21679_v0  ;;  %v4926_v19 = vrot.slane %v4912_v28, %v21679_v0 }
 0x429   : > { %v4545_v48 = vpop.trf.xlu0  ;;  %v4577_v62 = vpop.trf.xlu1  ;;  %v5059_v51 = vcombine.high %v21841_v38, %v28321_v25  ;;  %v5190_v15 = vrot.slane %v5176_v13, %v21679_v0  ;;  %v5205_v26 = vrot.slane %v5191_v5, %v21679_v0 }
 0x42a   : > { %6544 = vxpose.xlu1.b32.start.end [1/1] (short) (narrow) %v5089_v1, 16  ;;  %v5242_v4 = vcombine.high %v4545_v48, %v28321_v25  ;;  %v21888_v7 = vrot.slane %v4545_v48, %v21679_v0  ;;  %v5257_v9 = vcombine.high %v4577_v62, %v28321_v25  ;;  %v21892_v39 = vrot.slane %v4577_v62, %v21679_v0 }
 0x42b   : > { %v5214_v36 = vrot.slane %v5206_v6, %v21690_v23  ;;  %v5221_v27 = vrot.slane %v5207_v11, %v21690_v23  ;;  %v4958_v11 = vcombine.low %v4926_v19, %v4941_v31  ;;  %v5223_v13 = vcombine.high %v5190_v15, %v5205_v26 }
 0x42c   : > { %v21896_v12 = vrot.slane %v5242_v4, %v21679_v0  ;;  %6512 = vxpose.xlu0.b32.start.end [1/1] (short) (narrow) %v5106_v45, 16  ;;  %v21899_v58 = vrot.slane %v5257_v9, %v21679_v0  ;;  %v5272_v14 = vcombine.low %v21888_v7, %v21892_v39  ;;  %v5273_v50 = vcombine.high %v21888_v7, %v21892_v39 }
 0x42d   : > { %v21905_v16 = vpop.trf.xlu0  ;;  %v21907_v18 = vpop.trf.xlu1  ;;  %v5238_v56 = vcombine.high %v5214_v36, %v28321_v25  ;;  %v5239_v1 = vcombine.high %v5221_v27, %v28321_v25 }
 0x42e   : > { %v5315_v44 = vrot.slane %v21905_v16, %v21679_v0  ;;  %v5330_v17 = vrot.slane %v21907_v18, %v21679_v0  ;;  %v5280_v30 = vrot.slane %v5272_v14, %v21690_v23  ;;  %v5287_v14 = vrot.slane %v5273_v50, %v21690_v23 }
 0x42f   : > { %6992 = vxpose.xlu1.b32.start.end [1/1] (short) (narrow) %v5214_v36, 16 }
 0x430   : > { %v5338_v33 = vcombine.low %v5315_v44, %v5330_v17  ;;  %v5339_v22 = vcombine.high %v5315_v44, %v5330_v17  ;;  %v5304_v7 = vcombine.high %v5280_v30, %v28321_v25  ;;  %v22133_v39 = vcombine.high %v5287_v14, %v28321_v25 }
 0x431   : > { %v21919_v35 = vpop.trf.xlu0  ;;  %v21921_v63 = vpop.trf.xlu1  ;;  %6576 = vxpose.xlu0.b32.start.end [1/1] (short) (narrow) %v5107_v21, 16 }
 0x432   : > { %v5374_v10 = vcombine.high %v21919_v35, %v28321_v25  ;;  %v5389_v47 = vcombine.high %v21921_v63, %v28321_v25  ;;  %v5346_v41 = vrot.slane %v5338_v33, %v21690_v23  ;;  %v5353_v48 = vrot.slane %v5339_v22, %v21690_v23 }
 0x433   : > { %v4966_v22 = vrot.slane %v4958_v11, %v21690_v23  ;;  %v5381_v34 = vrot.slane %v21919_v35, %v21679_v0 }
 0x434   : > { %7056 = vxpose.xlu1.b32.start.end [1/1] (short) (narrow) %v5221_v27, 16  ;;  %v21934_v53 = vrot.slane %v5374_v10, %v21679_v0  ;;  %v21937_v55 = vrot.slane %v5389_v47, %v21679_v0  ;;  %v5370_v44 = vcombine.high %v5346_v41, %v28321_v25  ;;  %v5044_v47 = vcombine.high %v21839_v49, %v28321_v25 }
 0x435   : > { %v21939_v57 = vpop.trf.xlu0  ;;  %v21941_v54 = vpop.trf.xlu1  ;;  %v5073_v49 = vrot.slane %v5059_v51, %v21679_v0  ;;  %v4976_v24 = vcombine.high %v4966_v22, %v28321_v25 }
 0x436   : > { %7024 = vxpose.xlu0.b32.start.end [1/1] (short) (narrow) %v5238_v56, 16 }
 0x439   : > { %7504 = vxpose.xlu1.b32.start.end [1/1] (short) (narrow) %v5346_v41, 16  ;;  %v4673_v6 = vpop.trf.xlu0  ;;  %v4705_v45 = vpop.trf.xlu1 }
 0x43a   : > { %v5506_v62 = vcombine.high %v4673_v6, %v28321_v25  ;;  %v21953_v4 = vrot.slane %v4673_v6, %v21679_v0  ;;  %v5521_v9 = vcombine.high %v4705_v45, %v28321_v25  ;;  %v21957_v36 = vrot.slane %v4705_v45, %v21679_v0 }
 0x43b   : > { %7088 = vxpose.xlu0.b32.start.end [1/1] (short) (narrow) %v5239_v1, 16  ;;  %v4959_v45 = vcombine.high %v4926_v19, %v4941_v31 }
 0x43c   : > { %v21960_v21 = vrot.slane %v5506_v62, %v21679_v0  ;;  %v21964_v17 = vrot.slane %v5521_v9, %v21679_v0  ;;  %v5536_v27 = vcombine.low %v21953_v4, %v21957_v36  ;;  %v5537_v33 = vcombine.high %v21953_v4, %v21957_v36 }
 0x43d   : > { %v21970_v56 = vpop.trf.xlu0  ;;  %v21972_v10 = vpop.trf.xlu1  ;;  %v5058_v62 = vrot.slane %v5044_v47, %v21679_v0  ;;  %v5371_v9 = vcombine.high %v5353_v48, %v28321_v25 }
 0x43e   : > { %7568 = vxpose.xlu1.b32.start.end [1/1] (short) (narrow) %v5353_v48, 16  ;;  %v5572_v59 = vcombine.high %v21970_v56, %v28321_v25 }
 0x43f   : > { %v5091_v2 = vcombine.high %v5058_v62, %v5073_v49 }
 0x440   : > { %7536 = vxpose.xlu0.b32.start.end [1/1] (short) (narrow) %v5370_v44, 16 }
 0x441   : > { %v4737_v1 = vpop.trf.xlu0  ;;  %v4769_v6 = vpop.trf.xlu1  ;;  %v5105_v5 = vrot.slane %v5091_v2, %v21690_v23 }
 0x442   : > { %v5638_v38 = vcombine.high %v4737_v1, %v28321_v25  ;;  %v21988_v28 = vrot.slane %v4737_v1, %v21679_v0  ;;  %v5653_v41 = vcombine.high %v4769_v6, %v28321_v25  ;;  %v21992_v44 = vrot.slane %v4769_v6, %v21679_v0 }
 0x443   : > { %6096 = vxpose.xlu1.b32.start.end [1/1] (short) (narrow) %v4966_v22, 16  ;;  %v4973_v1 = vrot.slane %v4959_v45, %v21690_v23  ;;  %v5090_v6 = vcombine.low %v5058_v62, %v5073_v49  ;;  %v5222_v49 = vcombine.low %v5190_v15, %v5205_v26  ;;  %v5109_v2 = vcombine.high %v5105_v5, %v28321_v25 }
 0x444   : > { %v21995_v11 = vrot.slane %v5638_v38, %v21679_v0  ;;  %v21998_v31 = vrot.slane %v5653_v41, %v21679_v0  ;;  %v5668_v19 = vcombine.low %v21988_v28, %v21992_v44  ;;  %v5669_v48 = vcombine.high %v21988_v28, %v21992_v44 }
 0x445   : > { %v22004_v47 = vpop.trf.xlu0  ;;  %v22006_v51 = vpop.trf.xlu1  ;;  %7600 = vxpose.xlu0.b32.start.end [1/1] (short) (narrow) %v5371_v9, 16  ;;  %v5098_v38 = vrot.slane %v5090_v6, %v21690_v23  ;;  %v5237_v62 = vrot.slane %v5223_v13, %v21690_v23  ;;  %v5447_v26 = vrot.slane %v21939_v57, %v21679_v0  ;;  %v5462_v15 = vrot.slane %v21941_v54, %v21679_v0 }
 0x447   : > { %v5108_v6 = vcombine.high %v5098_v38, %v28321_v25 }
 0x448   : > { %6160 = vxpose.xlu1.b32.start.end [1/1] (short) (narrow) %v4973_v1, 16 }
 0x449   : > { %v4801_v52 = vpop.trf.xlu0  ;;  %v4833_v3 = vpop.trf.xlu1 }
 0x44a   : > { %v5770_v9 = vcombine.high %v4801_v52, %v28321_v25  ;;  %v22020_v45 = vrot.slane %v4801_v52, %v21679_v0  ;;  %6128 = vxpose.xlu0.b32.start.end [1/1] (short) (narrow) %v4976_v24, 16  ;;  %v5785_v41 = vcombine.high %v4833_v3, %v28321_v25  ;;  %v22025_v61 = vrot.slane %v4833_v3, %v21679_v0 }
 0x44b   : > { %v4977_v3 = vcombine.high %v4973_v1, %v28321_v25  ;;  %v5230_v1 = vrot.slane %v5222_v49, %v21690_v23  ;;  %v5470_v49 = vcombine.low %v5447_v26, %v5462_v15 }
 0x44c   : > { %v22029_v22 = vrot.slane %v5770_v9, %v21679_v0  ;;  %v22033_v52 = vrot.slane %v5785_v41, %v21679_v0  ;;  %v5308_v41 = vcombine.high %v21905_v16, %v28321_v25  ;;  %v5323_v9 = vcombine.high %v21907_v18, %v28321_v25 }
 0x44d   : > { %6608 = vxpose.xlu1.b32.start.end [1/1] (short) (narrow) %v5098_v38, 16  ;;  %v5240_v18 = vcombine.high %v5230_v1, %v28321_v25  ;;  %v4896_v35 = vpop.trf.xlu1 }
 0x44e   : > { %v5322_v24 = vrot.slane %v5308_v41, %v21679_v0 }
 0x44f   : > { %6192 = vxpose.xlu0.b32.start.end [1/1] (short) (narrow) %v4977_v3, 16  ;;  %v5337_v3 = vrot.slane %v5323_v9, %v21679_v0  ;;  %v5478_v9 = vrot.slane %v5470_v49, %v21690_v23  ;;  %v5016_v49 = vrot.slane %v5008_v37, %v21690_v23 }
 0x451   : > { %v5354_v16 = vcombine.low %v5322_v24, %v5337_v3 }
 0x452   : > { %6672 = vxpose.xlu1.b32.start.end [1/1] (short) (narrow) %v5105_v5, 16  ;;  %v5241_v5 = vcombine.high %v5237_v62, %v28321_v25 }
 0x453   : > { %v5362_v38 = vrot.slane %v5354_v16, %v21690_v23 }
 0x454   : > { %6640 = vxpose.xlu0.b32.start.end [1/1] (short) (narrow) %v5108_v6, 16  ;;  %v5355_v6 = vcombine.high %v5322_v24, %v5337_v3  ;;  %v5594_v24 = vrot.slane %v21972_v10, %v21679_v0 }
 0x455   : > { %v5372_v41 = vcombine.high %v5362_v38, %v28321_v25 }
 0x456   : > { %v5369_v13 = vrot.slane %v5355_v6, %v21690_v23 }
 0x457   : > { %7120 = vxpose.xlu1.b32.start.end [1/1] (short) (narrow) %v5230_v1, 16  ;;  %v5471_v1 = vcombine.high %v5447_v26, %v5462_v15 }
 0x459   : > { %6704 = vxpose.xlu0.b32.start.end [1/1] (short) (narrow) %v5109_v2, 16  ;;  %v5579_v2 = vrot.slane %v21970_v56, %v21679_v0  ;;  %v5485_v3 = vrot.slane %v5471_v1, %v21690_v23  ;;  %v5148_v1 = vrot.slane %v5140_v20, %v21690_v23  ;;  %v5440_v20 = vcombine.high %v21939_v57, %v28321_v25 }
 0x45b   : > { %v5602_v16 = vcombine.low %v5579_v2, %v5594_v24  ;;  %v5603_v26 = vcombine.high %v5579_v2, %v5594_v24  ;;  %v5503_v15 = vcombine.high %v5485_v3, %v28321_v25  ;;  %v5155_v2 = vrot.slane %v5141_v60, %v21690_v23 }
 0x45c   : > { %7184 = vxpose.xlu1.b32.start.end [1/1] (short) (narrow) %v5237_v62, 16  ;;  %v5373_v62 = vcombine.high %v5369_v13, %v28321_v25  ;;  %v5172_v32 = vcombine.high %v5148_v1, %v28321_v25  ;;  %v5455_v24 = vcombine.high %v21941_v54, %v28321_v25  ;;  %v5587_v60 = vcombine.high %v21972_v10, %v28321_v25 }
 0x45d   : > { %v5617_v6 = vrot.slane %v5603_v26, %v21690_v23  ;;  %v5454_v57 = vrot.slane %v5440_v20, %v21679_v0 }
 0x45e   : > { %7152 = vxpose.xlu0.b32.start.end [1/1] (short) (narrow) %v5240_v18, 16  ;;  %v5502_v18 = vcombine.high %v5478_v9, %v28321_v25  ;;  %v5469_v54 = vrot.slane %v5455_v24, %v21679_v0 }
 0x460   : > { %v5486_v10 = vcombine.low %v5454_v57, %v5469_v54 }
 0x461   : > { %7632 = vxpose.xlu1.b32.start.end [1/1] (short) (narrow) %v5362_v38, 16  ;;  %v5610_v38 = vrot.slane %v5602_v16, %v21690_v23  ;;  %v5586_v16 = vrot.slane %v5572_v59, %v21679_v0  ;;  %v22185_v59 = vrot.slane %v5537_v33, %v21690_v23  ;;  %v22212_v33 = vrot.slane %v5669_v48, %v21690_v23 }
 0x463   : > { %7216 = vxpose.xlu0.b32.start.end [1/1] (short) (narrow) %v5241_v5, 16  ;;  %v5634_v5 = vcombine.high %v5610_v38, %v28321_v25  ;;  %28827 = vst [vmem:[#allocation9_spill] sm:$0xff] %v22185_v59  ;;  %28829 = vst [vmem:[#allocation11_spill] sm:$0xff] %v22212_v33 }
 0x466   : > { %7696 = vxpose.xlu1.b32.start.end [1/1] (short) (narrow) %v5369_v13, 16  ;;  %v5635_v13 = vcombine.high %v5617_v6, %v28321_v25 }
 0x468   : > { %7664 = vxpose.xlu0.b32.start.end [1/1] (short) (narrow) %v5372_v41, 16  ;;  %v5023_v41 = vrot.slane %v5009_v46, %v21690_v23  ;;  %v5396_v46 = vrot.slane %v21921_v63, %v21679_v0 }
 0x46a   : > { %v5041_v37 = vcombine.high %v5023_v41, %v28321_v25  ;;  %v5404_v63 = vcombine.low %v5381_v34, %v5396_v46 }
 0x46b   : > { %8016 = vxpose.xlu1.b32.start.end [1/1] (short) (narrow) %v5478_v9, 16  ;;  %v5040_v9 = vcombine.high %v5016_v49, %v28321_v25 }
 0x46c   : > { %v5412_v56 = vrot.slane %v5404_v63, %v21690_v23  ;;  %v28835_v63 = vcombine.low %v21896_v12, %v21899_v58 }
 0x46d   : > { %7728 = vxpose.xlu0.b32.start.end [1/1] (short) (narrow) %v5373_v62, 16  ;;  %v22104_v62 = vpop.trf.xlu0 }
 0x470   : > { %8080 = vxpose.xlu1.b32.start.end [1/1] (short) (narrow) %v5485_v3, 16  ;;  %v5405_v3 = vcombine.high %v5381_v34, %v5396_v46  ;;  %v22160_v46 = vrot.slane %v5024_v40, %v21690_v23  ;;  %v22179_v40 = vrot.slane %v5536_v27, %v21690_v23 }
 0x471   : > { %v4865_v26 = vpop.trf.xlu0 }
 0x472   : > { %8048 = vxpose.xlu0.b32.start.end [1/1] (short) (narrow) %v5502_v18, 16  ;;  %v5601_v18 = vrot.slane %v5587_v60, %v21679_v0  ;;  %28826 = vst [vmem:[#allocation8_spill] sm:$0xff] %v22179_v40  ;;  %v22284_v60 = vrot.slane %v28835_v63, %v21690_v23 }
 0x474   : > { %v5619_v50 = vcombine.high %v5586_v16, %v5601_v18 }
 0x475   : > { %8528 = vxpose.xlu1.b32.start.end [1/1] (short) (narrow) %v5610_v38, 16  ;;  %v5487_v38 = vcombine.high %v5454_v57, %v5469_v54  ;;  %v22195_v57 = vrot.slane %v5668_v19, %v21690_v23 }
 0x476   : > { %v22206_v36 = vrot.slane %v5619_v50, %v21690_v23  ;;  %v28831_v50 = vcombine.low %v21862_v29, %v21865_v42 }
 0x477   : > { %8112 = vxpose.xlu0.b32.start.end [1/1] (short) (narrow) %v5503_v15, 16  ;;  %v4897_v15 = vpop.trf.xlu1  ;;  %28828 = vst [vmem:[#allocation10_spill] sm:$0xff] %v22195_v57 }
 0x478   : > { %v5917_v54 = vcombine.high %v4897_v15, %v28321_v25 }
 0x47a   : > { %8592 = vxpose.xlu1.b32.start.end [1/1] (short) (narrow) %v5617_v6, 16  ;;  %v22124_v6 = vrot.slane %v5405_v3, %v21690_v23  ;;  %v28830_v3 = vcombine.high %v21833_v43, %v21830_v8  ;;  %v5836_v8 = vcombine.high %v22104_v62, %v28321_v25  ;;  %v5851_v43 = vcombine.high %v4896_v35, %v28321_v25 }
 0x47c   : > { %8560 = vxpose.xlu0.b32.start.end [1/1] (short) (narrow) %v5634_v5, 16  ;;  %v5618_v5 = vcombine.low %v5586_v16, %v5601_v18  ;;  %v22154_v34 = vcombine.high %v22124_v6, %v28321_v25  ;;  %v22222_v16 = vrot.slane %v28830_v3, %v21690_v23  ;;  %v22262_v3 = vrot.slane %v28831_v50, %v21690_v23 }
 0x47d   : > { %v5902_v18 = vcombine.high %v4865_v26, %v28321_v25 }
 0x47f   : > { %6224 = vxpose.xlu1.b32.start.end [1/1] (short) (narrow) %v5016_v49, 16  ;;  %v5704_v49 = vcombine.high %v22004_v47, %v28321_v25 }
 0x481   : > { %8624 = vxpose.xlu0.b32.start.end [1/1] (short) (narrow) %v5635_v13, 16  ;;  %v5719_v13 = vcombine.high %v22006_v51, %v28321_v25  ;;  %v22163_v20 = vrot.slane %v5704_v49, %v21679_v0  ;;  %v22249_v49 = vrot.slane %v22104_v62, %v21679_v0  ;;  %v22268_v62 = vcombine.high %v22222_v16, %v28321_v25 }
 0x483   : > { %28832 = vst [vmem:[#allocation12_spill] sm:$0xff] %v22268_v62  ;;  %v22287_v62 = vrot.slane %v5836_v8, %v21679_v0  ;;  %v28840_v8 = vcombine.high %v22020_v45, %v22025_v61 }
 0x484   : > { %6288 = vxpose.xlu1.b32.start.end [1/1] (short) (narrow) %v5023_v41, 16  ;;  %v5173_v41 = vcombine.high %v5155_v2, %v28321_v25 }
 0x486   : > { %6256 = vxpose.xlu0.b32.start.end [1/1] (short) (narrow) %v5040_v9, 16  ;;  %v22136_v9 = vcombine.high %v5412_v56, %v28321_v25 }
 0x489   : > { %6736 = vxpose.xlu1.b32.start.end [1/1] (short) (narrow) %v5148_v1, 16  ;;  %v22139_v1 = vrot.slane %v5486_v10, %v21690_v23  ;;  %v22238_v10 = vcombine.high %v22160_v46, %v28321_v25 }
 0x48b   : > { %6320 = vxpose.xlu0.b32.start.end [1/1] (short) (narrow) %v5041_v37, 16  ;;  %v22142_v37 = vrot.slane %v5487_v38, %v21690_v23  ;;  %v22199_v27 = vcombine.high %v22139_v1, %v28321_v25  ;;  %v5909_v38 = vrot.slane %v4865_v26, %v21679_v0 }
 0x48d   : > { %v22203_v4 = vcombine.high %v22142_v37, %v28321_v25 }
 0x48e   : > { %6800 = vxpose.xlu1.b32.start.end [1/1] (short) (narrow) %v5155_v2, 16  ;;  %v22150_v2 = vrot.slane %v22006_v51, %v21679_v0 }
 0x490   : > { %6768 = vxpose.xlu0.b32.start.end [1/1] (short) (narrow) %v5172_v32, 16  ;;  %v22146_v32 = vrot.slane %v22004_v47, %v21679_v0  ;;  %v22166_v47 = vrot.slane %v5719_v13, %v21679_v0  ;;  %v22252_v13 = vrot.slane %v4896_v35, %v21679_v0  ;;  %v28833_v35 = vcombine.high %v21862_v29, %v21865_v42 }
 0x491   : > { %v22290_v29 = vrot.slane %v5851_v43, %v21679_v0  ;;  %v28836_v42 = vcombine.high %v21896_v12, %v21899_v58  ;;  %v22314_v43 = vrot.slane %v28840_v8, %v21690_v23  ;;  %v22320_v58 = vcombine.high %v22262_v3, %v28321_v25 }
 0x492   : > { %v22274_v28 = vrot.slane %v28833_v35, %v21690_v23  ;;  %v22338_v8 = vrot.slane %v5917_v54, %v21679_v0 }
 0x493   : > { %7248 = vxpose.xlu1.b32.start.end [1/1] (short) (narrow) %v5280_v30, 16  ;;  %v22173_v30 = vrot.slane %v5618_v5, %v21690_v23  ;;  %v5924_v5 = vrot.slane %v4897_v15, %v21679_v0  ;;  %v22296_v26 = vrot.slane %v28836_v42, %v21690_v23  ;;  %28841 = vst [vmem:[#allocation15_spill] sm:$0xff] %v22314_v43  ;;  %28842 = vst [vmem:[#allocation16_spill] sm:$0xff] %v22320_v58 }
 0x494   : > { %28834 = vst [vmem:[#allocation13_spill] sm:$0xff] %v22274_v28  ;;  %28847 = vst [vmem:[#allocation20_spill] sm:$0xff] %v22338_v8 }
 0x495   : > { %v5932_v42 = vcombine.low %v5909_v38, %v5924_v5  ;;  %v5933_v12 = vcombine.high %v5909_v38, %v5924_v5  ;;  %v22364_v38 = vcombine.high %v22185_v59, %v28321_v25  ;;  %v28852_v5 = vcombine.low %v21960_v21, %v21964_v17 }
 0x497   : > { %28851 = vst [vmem:[#allocation24_spill] sm:$0xff] %v22364_v38  ;;  %v22387_v38 = vcombine.high %v22195_v57, %v28321_v25  ;;  %v22394_v59 = vrot.slane %v5933_v12, %v21690_v23 }
 0x499   : > { %28858 = vst [vmem:[#allocation29_spill] sm:$0xff] %v22387_v38  ;;  %28860 = vst [vmem:[#allocation31_spill] sm:$0xff] %v22394_v59 }
 0x49d   : > { %v22168_v24 = vpop.trf.xlu0  ;;  %6832 = vxpose.xlu0.b32.start.end [1/1] (short) (narrow) %v5173_v41, 16  ;;  %v22170_v51 = vpop.trf.xlu1  ;;  %7312 = vxpose.xlu1.b32.start.end [1/1] (short) (narrow) %v5287_v14, 16  ;;  %v22234_v14 = vcombine.high %v22173_v30, %v28321_v25  ;;  %v22256_v41 = vcombine.high %v22206_v36, %v28321_v25 }
 0x49e   : > { %v28866_v12 = vcombine.low %v22168_v24, %v22170_v51 }
 0x4a1   : > { %v22228_v44 = vpop.trf.xlu0  ;;  %v22230_v48 = vpop.trf.xlu1 }
 0x4a5   : > { %v6016_v50 = vpop.trf.xlu0  ;;  %7280 = vxpose.xlu0.b32.start.end [1/1] (short) (narrow) %v5304_v7, 16  ;;  %v22278_v19 = vpop.trf.xlu1  ;;  %7760 = vxpose.xlu1.b32.start.end [1/1] (short) (narrow) %v5412_v56, 16  ;;  %v28837_v56 = vcombine.low %v21934_v53, %v21937_v55  ;;  %v28838_v7 = vcombine.low %v22020_v45, %v22025_v61  ;;  %v28844_v45 = vcombine.high %v21934_v53, %v21937_v55 }
 0x4a6   : > { %v22352_v55 = vcombine.high %v22296_v26, %v28321_v25  ;;  %v28854_v53 = vcombine.high %v21960_v21, %v21964_v17 }
 0x4a7   : > { %v22302_v15 = vrot.slane %v28837_v56, %v21690_v23  ;;  %v22308_v63 = vrot.slane %v28838_v7, %v21690_v23  ;;  %v22326_v56 = vcombine.high %v22274_v28, %v28321_v25  ;;  %v22332_v61 = vrot.slane %v28844_v45, %v21690_v23 }
 0x4a8   : > { %v22335_v7 = vrot.slane %v5902_v18, %v21679_v0  ;;  %v22344_v28 = vcombine.high %v22284_v60, %v28321_v25  ;;  %28848 = vst [vmem:[#allocation21_spill] sm:$0xff] %v22352_v55  ;;  %v22360_v18 = vcombine.high %v22179_v40, %v28321_v25  ;;  %v22370_v45 = vrot.slane %v28852_v5, %v21690_v23 }
 0x4a9   : > { %28839 = vst [vmem:[#allocation14_spill] sm:$0xff] %v22308_v63  ;;  %28843 = vst [vmem:[#allocation17_spill] sm:$0xff] %v22326_v56  ;;  %v6017_v58 = vpop.trf.xlu0  ;;  %v22340_v35 = vpop.trf.xlu1  ;;  %v5882_v56 = vcombine.low %v22287_v62, %v22290_v29  ;;  %v22356_v54 = vcombine.high %v22302_v15, %v28321_v25  ;;  %v22376_v55 = vrot.slane %v28854_v53, %v21690_v23 }
 0x4aa   : > { %28845 = vst [vmem:[#allocation18_spill] sm:$0xff] %v22332_v61  ;;  %28846 = vst [vmem:[#allocation19_spill] sm:$0xff] %v22335_v7  ;;  %v22391_v5 = vcombine.high %v22212_v33, %v28321_v25 }
 0x4ab   : > { %28849 = vst [vmem:[#allocation22_spill] sm:$0xff] %v22356_v54  ;;  %28850 = vst [vmem:[#allocation23_spill] sm:$0xff] %v22360_v18  ;;  %v22379_v54 = vrot.slane %v5932_v42, %v21690_v23  ;;  %v22383_v18 = vcombine.high %v22332_v61, %v28321_v25  ;;  %v10072_v25 = vrot.slane %v28866_v12, %v21679_v0 }
 0x4ac   : > { %28853 = vst [vmem:[#allocation25_spill] sm:$0xff] %v22370_v45  ;;  %28855 = vst [vmem:[#allocation26_spill] sm:$0xff] %v22376_v55  ;;  %v28869_v12 = vcombine.high %v22146_v32, %v22150_v2 }
 0x4ad   : > { %28856 = vst [vmem:[#allocation27_spill] sm:$0xff] %v22379_v54  ;;  %28857 = vst [vmem:[#allocation28_spill] sm:$0xff] %v22383_v18  ;;  %v6080_v42 = vpop.trf.xlu0  ;;  %7344 = vxpose.xlu0.b32.start.end [1/1] (short) (narrow) %v22133_v39, 16  ;;  %v22401_v53 = vpop.trf.xlu1  ;;  %7824 = vxpose.xlu1.b32.start.end [1/1] (short) (narrow) %v22124_v6, 16  ;;  %v28863_v39 = vcombine.low %v21995_v11, %v21998_v31 }
 0x4ae   : > { %28859 = vst [vmem:[#allocation30_spill] sm:$0xff] %v22391_v5  ;;  %v10080_v38 = vcombine.low %v6016_v50, %v6080_v42  ;;  %v10081_v57 = vcombine.high %v6016_v50, %v6080_v42  ;;  %v28861_v5 = vmov 0.0   ;;  %v28865_v50 = vcombine.high %v21995_v11, %v21998_v31 }
 0x4af   : > { %v22410_v21 = vcombine.high %v22370_v45, %v28861_v5  ;;  %v22416_v17 = vrot.slane %v28863_v39, %v21690_v23  ;;  %v22420_v6 = vcombine.high %v22376_v55, %v28861_v5  ;;  %v28867_v39 = vcombine.high %v22168_v24, %v22170_v51 }
 0x4b0   : > { %v22426_v42 = vrot.slane %v28865_v50, %v21690_v23  ;;  %v10088_v45 = vrot.slane %v10080_v38, %v21679_v0  ;;  %v28868_v11 = vcombine.low %v22146_v32, %v22150_v2  ;;  %v22450_v50 = vrot.slane %v28869_v12, %v21690_v23 }
 0x4b1   : > { %28862 = vst [vmem:[#allocation32_spill] sm:$0xff] %v22410_v21  ;;  %28864 = vst [vmem:[#allocation33_spill] sm:$0xff] %v22420_v6  ;;  %v10079_v21 = vrot.slane %v28867_v39, %v21679_v0  ;;  %v10095_v6 = vrot.slane %v10081_v57, %v21679_v0  ;;  %v6081_v55 = vpop.trf.xlu0  ;;  %v22438_v33 = vpop.trf.xlu1  ;;  %v28871_v24 = vcombine.low %v22163_v20, %v22166_v47 }
 0x4b2   : > { %v22444_v31 = vrot.slane %v28868_v11, %v21690_v23  ;;  %28870 = vst [vmem:[#allocation34_spill] sm:$0xff] %v22450_v50  ;;  %v28873_v57 = vcombine.high %v22163_v20, %v22166_v47  ;;  %v10128_v39 = vcombine.low %v10072_v25, %v10088_v45  ;;  %v10129_v11 = vcombine.high %v10072_v25, %v10088_v45 }
 0x4b3   : > { %v22456_v51 = vrot.slane %v28871_v24, %v21690_v23  ;;  %v10144_v18 = vcombine.low %v10079_v21, %v10095_v6  ;;  %v10145_v40 = vcombine.high %v10079_v21, %v10095_v6  ;;  %v10352_v61 = vcombine.low %v6017_v58, %v6081_v55 }
 0x4b4   : > { %v22462_v38 = vrot.slane %v28873_v57, %v21690_v23  ;;  %v10353_v32 = vcombine.high %v6017_v58, %v6081_v55  ;;  %v10880_v2 = vcombine.low %v22340_v35, %v22438_v33  ;;  %v10881_v12 = vcombine.high %v22340_v35, %v22438_v33 }
 0x4b5   : > { %28872 = vst [vmem:[#allocation35_spill] sm:$0xff] %v22456_v51  ;;  %v22470_v24 = vcombine.high %v22416_v17, %v28861_v5  ;;  %v22474_v20 = vcombine.high %v22426_v42, %v28861_v5  ;;  %v22478_v25 = vcombine.high %v22308_v63, %v28861_v5  ;;  %v28876_v47 = vcombine.low %v22029_v22, %v22033_v52  ;;  %v6528_v57 = vpop.trf.xlu0 }
 0x4b6   : > { %28874 = vst [vmem:[#allocation36_spill] sm:$0xff] %v22462_v38  ;;  %v28878_v33 = vcombine.low %v22228_v44, %v22230_v48  ;;  %v28879_v55 = vcombine.high %v22228_v44, %v22230_v48  ;;  %v10360_v21 = vrot.slane %v10352_v61, %v21679_v0  ;;  %v10367_v6 = vrot.slane %v10353_v32, %v21679_v0 }
 0x4b7   : > { %28875 = vst [vmem:[#allocation37_spill] sm:$0xff] %v22478_v25  ;;  %v22484_v58 = vrot.slane %v28876_v47, %v21690_v23  ;;  %7792 = vxpose.xlu0.b32.start.end [1/1] (short) (narrow) %v22136_v9, 16  ;;  %v22497_v25 = vpop.trf.xlu1  ;;  %8144 = vxpose.xlu1.b32.start.end [1/1] (short) (narrow) %v22139_v1, 16  ;;  %v28880_v47 = vcombine.high %v22029_v22, %v22033_v52 }
 0x4b8   : > { %v10344_v35 = vrot.slane %v28878_v33, %v21679_v0  ;;  %v10351_v45 = vrot.slane %v28879_v55, %v21679_v0  ;;  %v28882_v44 = vcombine.low %v22249_v49, %v22252_v13  ;;  %v28884_v9 = vcombine.high %v22249_v49, %v22252_v13 }
 0x4b9   : > { %28877 = vst [vmem:[#allocation38_spill] sm:$0xff] %v22484_v58  ;;  %v22504_v33 = vrot.slane %v28880_v47, %v21690_v23  ;;  %v22519_v1 = vrot.slane %v5882_v56, %v21690_v23  ;;  %v22523_v47 = vcombine.high %v22444_v31, %v28861_v5  ;;  %v22531_v49 = vcombine.high %v22456_v51, %v28861_v5 }
 0x4ba   : > { %v22510_v48 = vrot.slane %v28882_v44, %v21690_v23  ;;  %v22516_v61 = vrot.slane %v28884_v9, %v21690_v23  ;;  %v10400_v32 = vcombine.low %v10344_v35, %v10360_v21  ;;  %v10401_v55 = vcombine.high %v10344_v35, %v10360_v21  ;;  %v6529_v35 = vpop.trf.xlu0 }
 0x4bb   : > { %28881 = vst [vmem:[#allocation39_spill] sm:$0xff] %v22504_v33  ;;  %28886 = vst [vmem:[#allocation42_spill] sm:$0xff] %v22519_v1  ;;  %v10416_v22 = vcombine.low %v10351_v45, %v10367_v6  ;;  %v10417_v52 = vcombine.high %v10351_v45, %v10367_v6  ;;  %v22527_v44 = vcombine.high %v22450_v50, %v28861_v5  ;;  %v22539_v45 = vpop.trf.xlu1 }
 0x4bc   : > { %28883 = vst [vmem:[#allocation40_spill] sm:$0xff] %v22510_v48  ;;  %28885 = vst [vmem:[#allocation41_spill] sm:$0xff] %v22516_v61  ;;  %v28890_v13 = vcombine.high %v22287_v62, %v22290_v29  ;;  %v22543_v21 = vcombine.high %v22462_v38, %v28861_v5  ;;  %v22547_v6 = vcombine.high %v22314_v43, %v28861_v5 }
 0x4bd   : > { %28887 = vst [vmem:[#allocation43_spill] sm:$0xff] %v22523_v47  ;;  %28888 = vst [vmem:[#allocation44_spill] sm:$0xff] %v22527_v44  ;;  %v22551_v9 = vcombine.high %v22484_v58, %v28861_v5  ;;  %v22555_v62 = vcombine.high %v22379_v54, %v28861_v5  ;;  %v22559_v29 = vcombine.high %v22504_v33, %v28861_v5 }
 0x4be   : > { %28889 = vst [vmem:[#allocation45_spill] sm:$0xff] %v22531_v49  ;;  %v22537_v56 = vrot.slane %v28890_v13, %v21690_v23  ;;  %28892 = vst [vmem:[#allocation47_spill] sm:$0xff] %v22543_v21  ;;  %v22563_v13 = vcombine.high %v22510_v48, %v28861_v5  ;;  %v10143_v54 = vrot.slane %v10129_v11, %v21690_v23 }
 0x4bf   : > { %28893 = vst [vmem:[#allocation48_spill] sm:$0xff] %v22547_v6  ;;  %28894 = vst [vmem:[#allocation49_spill] sm:$0xff] %v22551_v9  ;;  %v28898_v6 = vcombine.low %v22335_v7, %v22338_v8  ;;  %v22573_v9 = vcombine.high %v22394_v59, %v28861_v5  ;;  %v10152_v48 = vrot.slane %v10144_v18, %v21690_v23 }
 0x4c0   : > { %28891 = vst [vmem:[#allocation46_spill] sm:$0xff] %v22537_v56  ;;  %28895 = vst [vmem:[#allocation50_spill] sm:$0xff] %v22555_v62  ;;  %v10136_v62 = vrot.slane %v10128_v39, %v21690_v23  ;;  %v22593_v39 = vcombine.high %v22537_v56, %v28861_v5  ;;  %v28905_v11 = vcombine.high %v22278_v19, %v22401_v53 }
 0x4c1   : > { %28896 = vst [vmem:[#allocation51_spill] sm:$0xff] %v22559_v29  ;;  %28897 = vst [vmem:[#allocation52_spill] sm:$0xff] %v22563_v13  ;;  %v22569_v43 = vrot.slane %v28898_v6, %v21690_v23  ;;  %v22579_v29 = vcombine.high %v22516_v61, %v28861_v5  ;;  %v22583_v13 = vcombine.high %v22519_v1, %v28861_v5  ;;  %v6592_v1 = vpop.trf.xlu0  ;;  %7856 = vxpose.xlu0.b32.start.end [1/1] (short) (narrow) %v22154_v34, 16 }
 0x4c2   : > { %28900 = vst [vmem:[#allocation54_spill] sm:$0xff] %v22573_v9  ;;  %v10159_v6 = vrot.slane %v10145_v40, %v21690_v23  ;;  %v28903_v9 = vcombine.low %v22278_v19, %v22401_v53  ;;  %28904 = vst [vmem:[#allocation57_spill] sm:$0xff] %v22593_v39  ;;  %v10415_v18 = vrot.slane %v10401_v55, %v21690_v23  ;;  %v22602_v40 = vpop.trf.xlu1  ;;  %8208 = vxpose.xlu1.b32.start.end [1/1] (short) (narrow) %v22142_v37, 16 }
 0x4c3   : > { %28899 = vst [vmem:[#allocation53_spill] sm:$0xff] %v22569_v43  ;;  %28901 = vst [vmem:[#allocation55_spill] sm:$0xff] %v22579_v29  ;;  %v10623_v29 = vrot.slane %v28905_v11, %v21679_v0  ;;  %v10625_v61 = vcombine.high %v6528_v57, %v6592_v1  ;;  %v22610_v53 = vrot.slane %v10136_v62, %v21679_v0 }
 0x4c4   : > { %28902 = vst [vmem:[#allocation56_spill] sm:$0xff] %v22583_v13  ;;  %v10616_v59 = vrot.slane %v28903_v9, %v21679_v0  ;;  %v10408_v13 = vrot.slane %v10400_v32, %v21690_v23  ;;  %v10624_v9 = vcombine.low %v6528_v57, %v6592_v1  ;;  %v22613_v32 = vrot.slane %v10143_v54, %v21679_v0 }
 0x4c5   : > { %v10888_v34 = vrot.slane %v10880_v2, %v21679_v0  ;;  %v10895_v55 = vrot.slane %v10881_v12, %v21679_v0  ;;  %v22618_v37 = vrot.slane %v10152_v48, %v21679_v0  ;;  %v22621_v57 = vrot.slane %v10159_v6, %v21679_v0  ;;  %v6593_v12 = vpop.trf.xlu0 }
 0x4c6   : > { %v10632_v1 = vrot.slane %v10624_v9, %v21679_v0  ;;  %v10639_v11 = vrot.slane %v10625_v61, %v21679_v0  ;;  %v10424_v62 = vrot.slane %v10416_v22, %v21690_v23  ;;  %v10431_v19 = vrot.slane %v10417_v52, %v21690_v23  ;;  %v22633_v48 = vpop.trf.xlu1 }
 0x4c7   : > { %v22628_v54 = vrot.slane %v10408_v13, %v21679_v0  ;;  %v22631_v2 = vrot.slane %v10415_v18, %v21679_v0  ;;  %v10896_v9 = vcombine.low %v6529_v35, %v6593_v12  ;;  %v10897_v5 = vcombine.high %v6529_v35, %v6593_v12 }
 0x4c8   : > { %v10672_v39 = vcombine.low %v10616_v59, %v10632_v1  ;;  %v10673_v6 = vcombine.high %v10616_v59, %v10632_v1  ;;  %v10688_v56 = vcombine.low %v10623_v29, %v10639_v11  ;;  %v10689_v43 = vcombine.high %v10623_v29, %v10639_v11 }
 0x4c9   : > { %v11424_v61 = vcombine.low %v22539_v45, %v22633_v48  ;;  %v11425_v22 = vcombine.high %v22539_v45, %v22633_v48  ;;  %v22644_v59 = vrot.slane %v10424_v62, %v21679_v0  ;;  %v22647_v29 = vrot.slane %v10431_v19, %v21679_v0  ;;  %v7040_v11 = vpop.trf.xlu0  ;;  %8176 = vxpose.xlu0.b32.start.end [1/1] (short) (narrow) %v22199_v27, 16 }
 0x4ca   : > { %v10680_v52 = vrot.slane %v10672_v39, %v21690_v23  ;;  %v10687_v13 = vrot.slane %v10673_v6, %v21690_v23  ;;  %v10696_v18 = vrot.slane %v10688_v56, %v21690_v23  ;;  %v10703_v8 = vrot.slane %v10689_v43, %v21690_v23  ;;  %v22652_v45 = vpop.trf.xlu1  ;;  %8656 = vxpose.xlu1.b32.start.end [1/1] (short) (narrow) %v22173_v30, 16 }
 0x4cb   : > { %v10904_v35 = vrot.slane %v10896_v9, %v21679_v0  ;;  %v10911_v1 = vrot.slane %v10897_v5, %v21679_v0 }
 0x4cc   : > { %v22655_v39 = vrot.slane %v10680_v52, %v21679_v0  ;;  %v22658_v43 = vrot.slane %v10687_v13, %v21679_v0  ;;  %v22661_v56 = vrot.slane %v10696_v18, %v21679_v0  ;;  %v22664_v19 = vrot.slane %v10703_v8, %v21679_v0 }
 0x4cd   : > { %v10944_v5 = vcombine.low %v10888_v34, %v10904_v35  ;;  %v10945_v62 = vcombine.high %v10888_v34, %v10904_v35  ;;  %v10960_v12 = vcombine.low %v10895_v55, %v10911_v1  ;;  %v10961_v27 = vcombine.high %v10895_v55, %v10911_v1  ;;  %v7041_v13 = vpop.trf.xlu0 }
 0x4ce   : > { %v14480_v48 = vcombine.low %v22610_v53, %v22655_v39  ;;  %v14512_v6 = vcombine.low %v22613_v32, %v22658_v43  ;;  %v14616_v9 = vcombine.low %v22618_v37, %v22661_v56  ;;  %v14648_v52 = vcombine.low %v22621_v57, %v22664_v19  ;;  %v7521_v18 = vpop.trf.xlu1 }
 0x4cf   : > { %v10952_v8 = vrot.slane %v10944_v5, %v21690_v23  ;;  %v10959_v30 = vrot.slane %v10945_v62, %v21690_v23  ;;  %v10968_v34 = vrot.slane %v10960_v12, %v21690_v23  ;;  %v10975_v55 = vrot.slane %v10961_v27, %v21690_v23 }
 0x4d0   : > { %v22680_v35 = vrot.slane %v14480_v48, %v21690_v23  ;;  %v22683_v1 = vrot.slane %v14512_v6, %v21690_v23  ;;  %v22686_v7 = vrot.slane %v14616_v9, %v21690_v23  ;;  %v22689_v33 = vrot.slane %v14648_v52, %v21690_v23 }
 0x4d1   : > { %v22692_v5 = vrot.slane %v10952_v8, %v21679_v0  ;;  %v22695_v62 = vrot.slane %v10959_v30, %v21679_v0  ;;  %v22698_v12 = vrot.slane %v10968_v34, %v21679_v0  ;;  %v22701_v27 = vrot.slane %v10975_v55, %v21679_v0  ;;  %v7104_v8 = vpop.trf.xlu0  ;;  %8240 = vxpose.xlu0.b32.start.end [1/1] (short) (narrow) %v22203_v4, 16 }
 0x4d2   : > { %28906 = vst [vmem:[#allocation58_spill] sm:$0xff] %v22680_v35  ;;  %28907 = vst [vmem:[#allocation59_spill] sm:$0xff] %v22683_v1  ;;  %v14617_v9 = vcombine.high %v22618_v37, %v22661_v56  ;;  %v14649_v52 = vcombine.high %v22621_v57, %v22664_v19  ;;  %v7584_v30 = vpop.trf.xlu1  ;;  %8720 = vxpose.xlu1.b32.start.end [1/1] (short) (narrow) %v22206_v36, 16  ;;  %v11168_v48 = vcombine.low %v7040_v11, %v7104_v8 }
 0x4d3   : > { %28908 = vst [vmem:[#allocation60_spill] sm:$0xff] %v22686_v7  ;;  %28909 = vst [vmem:[#allocation61_spill] sm:$0xff] %v22689_v33  ;;  %v14752_v34 = vcombine.low %v22628_v54, %v22692_v5  ;;  %v14784_v55 = vcombine.low %v22631_v2, %v22695_v62  ;;  %v14888_v6 = vcombine.low %v22644_v59, %v22698_v12 }
 0x4d4   : > { %v11169_v37 = vcombine.high %v7040_v11, %v7104_v8  ;;  %v11696_v56 = vcombine.low %v22652_v45, %v7584_v30  ;;  %v11697_v57 = vcombine.high %v22652_v45, %v7584_v30  ;;  %v28910_v4 = vcombine.low %v22497_v25, %v22602_v40 }
 0x4d5   : > { %v22726_v19 = vrot.slane %v14752_v34, %v21690_v23  ;;  %v22729_v58 = vrot.slane %v14784_v55, %v21690_v23  ;;  %v14920_v21 = vcombine.low %v22647_v29, %v22701_v27  ;;  %v28913_v11 = vcombine.high %v22497_v25, %v22602_v40  ;;  %v7105_v63 = vpop.trf.xlu0 }
 0x4d6   : > { %v11160_v36 = vrot.slane %v28910_v4, %v21679_v0  ;;  %v11432_v45 = vrot.slane %v11424_v61, %v21679_v0  ;;  %v11176_v30 = vrot.slane %v11168_v48, %v21679_v0  ;;  %v11183_v4 = vrot.slane %v11169_v37, %v21679_v0  ;;  %v7585_v49 = vpop.trf.xlu1 }
 0x4d7   : > { %28911 = vst [vmem:[#allocation62_spill] sm:$0xff] %v22726_v19  ;;  %28912 = vst [vmem:[#allocation63_spill] sm:$0xff] %v22729_v58  ;;  %v11167_v8 = vrot.slane %v28913_v11, %v21679_v0  ;;  %v11439_v34 = vrot.slane %v11425_v22, %v21679_v0  ;;  %v22744_v38 = vrot.slane %v14888_v6, %v21690_v23 }
 0x4d8   : > { %v22747_v44 = vrot.slane %v14920_v21, %v21690_v23  ;;  %v11216_v25 = vcombine.low %v11160_v36, %v11176_v30  ;;  %v11217_v40 = vcombine.high %v11160_v36, %v11176_v30  ;;  %v11440_v48 = vcombine.low %v7041_v13, %v7105_v63 }
 0x4d9   : > { %28914 = vst [vmem:[#allocation64_spill] sm:$0xff] %v22744_v38  ;;  %v11232_v61 = vcombine.low %v11167_v8, %v11183_v4  ;;  %v11233_v11 = vcombine.high %v11167_v8, %v11183_v4  ;;  %v11441_v51 = vcombine.high %v7041_v13, %v7105_v63  ;;  %v11968_v37 = vcombine.low %v7521_v18, %v7585_v49  ;;  %v7552_v13 = vpop.trf.xlu0 }
 0x4da   : > { %28915 = vst [vmem:[#allocation65_spill] sm:$0xff] %v22747_v44  ;;  %v11969_v47 = vcombine.high %v7521_v18, %v7585_v49  ;;  %v11224_v22 = vrot.slane %v11216_v25, %v21690_v23  ;;  %v11231_v50 = vrot.slane %v11217_v40, %v21690_v23  ;;  %v22752_v55 = vrot.slane %v14617_v9, %v21690_v23  ;;  %v22762_v49 = vpop.trf.xlu1 }
 0x4db   : > { %v22755_v6 = vrot.slane %v14649_v52, %v21690_v23  ;;  %v11240_v21 = vrot.slane %v11232_v61, %v21690_v23  ;;  %v11247_v36 = vrot.slane %v11233_v11, %v21690_v23  ;;  %v11448_v8 = vrot.slane %v11440_v48, %v21679_v0  ;;  %8688 = vxpose.xlu0.b32.start.end [1/1] (short) (narrow) %v22234_v14, 16 }
 0x4dc   : > { %28916 = vst [vmem:[#allocation66_spill] sm:$0xff] %v22752_v55  ;;  %v11455_v63 = vrot.slane %v11441_v51, %v21679_v0  ;;  %v22765_v18 = vrot.slane %v11696_v56, %v21679_v0  ;;  %v22768_v9 = vrot.slane %v11697_v57, %v21679_v0  ;;  %v22771_v52 = vrot.slane %v11968_v37, %v21679_v0 }
 0x4dd   : > { %28917 = vst [vmem:[#allocation67_spill] sm:$0xff] %v22755_v6  ;;  %v22774_v30 = vrot.slane %v11969_v47, %v21679_v0  ;;  %6352 = vxpose.xlu1.b32.start.end [1/1] (short) (narrow) %v22160_v46, 16  ;;  %v11488_v51 = vcombine.low %v11432_v45, %v11448_v8  ;;  %v11489_v4 = vcombine.high %v11432_v45, %v11448_v8  ;;  %v7553_v11 = vpop.trf.xlu0 }
 0x4de   : > { %v11504_v25 = vcombine.low %v11439_v34, %v11455_v63  ;;  %v11505_v14 = vcombine.high %v11439_v34, %v11455_v63  ;;  %v14481_v57 = vcombine.high %v22610_v53, %v22655_v39  ;;  %v14513_v61 = vcombine.high %v22613_v32, %v22658_v43  ;;  %v22797_v48 = vpop.trf.xlu1 }
 0x4df   : > { %v22786_v47 = vrot.slane %v11224_v22, %v21679_v0  ;;  %v22789_v46 = vrot.slane %v11231_v50, %v21679_v0  ;;  %v22792_v45 = vrot.slane %v11240_v21, %v21679_v0  ;;  %v22795_v34 = vrot.slane %v11247_v36, %v21679_v0 }
 0x4e0   : > { %v22800_v53 = vrot.slane %v14481_v57, %v21690_v23  ;;  %v22803_v32 = vrot.slane %v14513_v61, %v21690_v23  ;;  %v14889_v39 = vcombine.high %v22644_v59, %v22698_v12  ;;  %v14921_v50 = vcombine.high %v22647_v29, %v22701_v27 }
 0x4e1   : > { %v11496_v43 = vrot.slane %v11488_v51, %v21690_v23  ;;  %v11503_v37 = vrot.slane %v11489_v4, %v21690_v23  ;;  %v11512_v22 = vrot.slane %v11504_v25, %v21690_v23  ;;  %v11519_v21 = vrot.slane %v11505_v14, %v21690_v23  ;;  %v7616_v29 = vpop.trf.xlu0  ;;  %8752 = vxpose.xlu0.b32.start.end [1/1] (short) (narrow) %v22256_v41, 16 }
 0x4e2   : > { %28918 = vst [vmem:[#allocation68_spill] sm:$0xff] %v22800_v53  ;;  %28919 = vst [vmem:[#allocation69_spill] sm:$0xff] %v22803_v32  ;;  %v22816_v8 = vrot.slane %v14889_v39, %v21690_v23  ;;  %v22819_v63 = vrot.slane %v14921_v50, %v21690_v23  ;;  %v14753_v59 = vcombine.high %v22628_v54, %v22692_v5  ;;  %v22824_v12 = vpop.trf.xlu1  ;;  %6416 = vxpose.xlu1.b32.start.end [1/1] (short) (narrow) %v22222_v16, 16  ;;  %v28929_v54 = vld [vmem:[#allocation13_spill] sm:$0xff] }
 0x4e3   : > { %v14785_v27 = vcombine.high %v22631_v2, %v22695_v62  ;;  %v11712_v25 = vcombine.low %v7552_v13, %v7616_v29  ;;  %v11713_v14 = vcombine.high %v7552_v13, %v7616_v29  ;;  %v22848_v13 = vrot.slane %v11496_v43, %v21679_v0 }
 0x4e4   : > { %28920 = vst [vmem:[#allocation70_spill] sm:$0xff] %v22816_v8  ;;  %28921 = vst [vmem:[#allocation71_spill] sm:$0xff] %v22819_v63  ;;  %v22840_v5 = vrot.slane %v14753_v59, %v21690_v23  ;;  %v22851_v57 = vrot.slane %v11503_v37, %v21679_v0 }
 0x4e5   : > { %v22843_v2 = vrot.slane %v14785_v27, %v21690_v23  ;;  %v11720_v61 = vrot.slane %v11712_v25, %v21679_v0  ;;  %v11727_v39 = vrot.slane %v11713_v14, %v21679_v0  ;;  %v7617_v50 = vpop.trf.xlu0 }
 0x4e6   : > { %28922 = vst [vmem:[#allocation72_spill] sm:$0xff] %v22840_v5  ;;  %v22855_v29 = vpop.trf.xlu1  ;;  %v11984_v51 = vcombine.low %v7553_v11, %v7617_v50  ;;  %v11985_v16 = vcombine.high %v7553_v11, %v7617_v50 }
 0x4e7   : > { %28923 = vst [vmem:[#allocation73_spill] sm:$0xff] %v22843_v2  ;;  %v11760_v62 = vcombine.low %v22765_v18, %v11720_v61  ;;  %v11761_v25 = vcombine.high %v22765_v18, %v11720_v61  ;;  %v11776_v14 = vcombine.low %v22768_v9, %v11727_v39  ;;  %v11777_v4 = vcombine.high %v22768_v9, %v11727_v39 }
 0x4e8   : > { %v10368_v59 = vcombine.low %v22797_v48, %v22855_v29  ;;  %v10369_v27 = vcombine.high %v22797_v48, %v22855_v29  ;;  %v22878_v61 = vrot.slane %v11512_v22, %v21679_v0  ;;  %v22881_v9 = vrot.slane %v11519_v21, %v21679_v0 }
 0x4e9   : > { %v11768_v43 = vrot.slane %v11760_v62, %v21690_v23  ;;  %v11775_v37 = vrot.slane %v11761_v25, %v21690_v23  ;;  %v11784_v36 = vrot.slane %v11776_v14, %v21690_v23  ;;  %v11791_v18 = vrot.slane %v11777_v4, %v21690_v23  ;;  %v6144_v50 = vpop.trf.xlu0  ;;  %6384 = vxpose.xlu0.b32.start.end [1/1] (short) (narrow) %v22238_v10, 16 }
 0x4ea   : > { %v11992_v11 = vrot.slane %v11984_v51, %v21679_v0  ;;  %v11999_v39 = vrot.slane %v11985_v16, %v21679_v0  ;;  %v22886_v48 = vpop.trf.xlu1  ;;  %6864 = vxpose.xlu1.b32.start.end [1/1] (short) (narrow) %v22262_v3, 16 }
 0x4eb   : > { %v22889_v62 = vrot.slane %v11768_v43, %v21679_v0  ;;  %v22892_v4 = vrot.slane %v11775_v37, %v21679_v0  ;;  %v22895_v22 = vrot.slane %v11784_v36, %v21679_v0  ;;  %v22898_v21 = vrot.slane %v11791_v18, %v21679_v0 }
 0x4ec   : > { %v12032_v51 = vcombine.low %v22771_v52, %v11992_v11  ;;  %v12033_v10 = vcombine.high %v22771_v52, %v11992_v11  ;;  %v12048_v16 = vcombine.low %v22774_v30, %v11999_v39  ;;  %v12049_v29 = vcombine.high %v22774_v30, %v11999_v39 }
 0x4ed   : > { %v15568_v43 = vcombine.low %v22786_v47, %v22889_v62  ;;  %v15600_v36 = vcombine.low %v22789_v46, %v22892_v4  ;;  %v15704_v37 = vcombine.low %v22792_v45, %v22895_v22  ;;  %v15736_v3 = vcombine.low %v22795_v34, %v22898_v21  ;;  %v6145_v18 = vpop.trf.xlu0 }
 0x4ee   : > { %v12040_v25 = vrot.slane %v12032_v51, %v21690_v23  ;;  %v12047_v52 = vrot.slane %v12033_v10, %v21690_v23  ;;  %v12056_v14 = vrot.slane %v12048_v16, %v21690_v23  ;;  %v12063_v30 = vrot.slane %v12049_v29, %v21690_v23  ;;  %v6625_v11 = vpop.trf.xlu1 }
 0x4ef   : > { %v22918_v39 = vrot.slane %v15568_v43, %v21690_v23  ;;  %v22921_v56 = vrot.slane %v15600_v36, %v21690_v23  ;;  %v22924_v40 = vrot.slane %v15704_v37, %v21690_v23  ;;  %v22927_v41 = vrot.slane %v15736_v3, %v21690_v23 }
 0x4f0   : > { %v22930_v51 = vrot.slane %v12040_v25, %v21679_v0  ;;  %v22933_v10 = vrot.slane %v12047_v52, %v21679_v0  ;;  %v22936_v16 = vrot.slane %v12056_v14, %v21679_v0  ;;  %v22939_v29 = vrot.slane %v12063_v30, %v21679_v0  ;;  %v28928_v52 = vld [vmem:[#allocation12_spill] sm:$0xff] }
 0x4f1   : > { %28924 = vst [vmem:[#allocation74_spill] sm:$0xff] %v22918_v39  ;;  %28925 = vst [vmem:[#allocation75_spill] sm:$0xff] %v22921_v56  ;;  %v15705_v37 = vcombine.high %v22792_v45, %v22895_v22  ;;  %v15737_v3 = vcombine.high %v22795_v34, %v22898_v21  ;;  %v6208_v25 = vpop.trf.xlu0  ;;  %6448 = vxpose.xlu0.b32.start.end [1/1] (short) (narrow) %v28928_v52, 16  ;;  %v28930_v21 = vcombine.low %v22762_v49, %v22824_v12 }
 0x4f2   : > { %28926 = vst [vmem:[#allocation76_spill] sm:$0xff] %v22924_v40  ;;  %28927 = vst [vmem:[#allocation77_spill] sm:$0xff] %v22927_v41  ;;  %v6688_v14 = vpop.trf.xlu1  ;;  %6928 = vxpose.xlu1.b32.start.end [1/1] (short) (narrow) %v28929_v54, 16  ;;  %v15976_v30 = vcombine.low %v22878_v61, %v22936_v16  ;;  %v16008_v43 = vcombine.low %v22881_v9, %v22939_v29  ;;  %v15840_v36 = vcombine.low %v22848_v13, %v22930_v51 }
 0x4f3   : > { %v10112_v32 = vcombine.low %v6144_v50, %v6208_v25  ;;  %v10113_v45 = vcombine.high %v6144_v50, %v6208_v25  ;;  %v10640_v22 = vcombine.low %v22886_v48, %v6688_v14  ;;  %v10641_v34 = vcombine.high %v22886_v48, %v6688_v14 }
 0x4f4   : > { %v10104_v54 = vrot.slane %v28930_v21, %v21679_v0  ;;  %v22964_v52 = vrot.slane %v15976_v30, %v21690_v23  ;;  %v22967_v53 = vrot.slane %v16008_v43, %v21690_v23  ;;  %v15872_v6 = vcombine.low %v22851_v57, %v22933_v10 }
 0x4f5   : > { %v28933_v50 = vcombine.high %v22762_v49, %v22824_v12  ;;  %v10376_v48 = vrot.slane %v10368_v59, %v21679_v0  ;;  %v10120_v14 = vrot.slane %v10112_v32, %v21679_v0  ;;  %v10127_v21 = vrot.slane %v10113_v45, %v21679_v0  ;;  %v6209_v55 = vpop.trf.xlu0 }
 0x4f6   : > { %28931 = vst [vmem:[#allocation12_spill] sm:$0xff] %v22964_v52  ;;  %28932 = vst [vmem:[#allocation13_spill] sm:$0xff] %v22967_v53  ;;  %v10383_v30 = vrot.slane %v10369_v27, %v21679_v0  ;;  %v6689_v33 = vpop.trf.xlu1  ;;  %v22982_v7 = vrot.slane %v15840_v36, %v21690_v23  ;;  %v22985_v44 = vrot.slane %v15872_v6, %v21690_v23 }
 0x4f7   : > { %v10111_v25 = vrot.slane %v28933_v50, %v21679_v0  ;;  %v10160_v49 = vcombine.low %v10104_v54, %v10120_v14  ;;  %v10161_v12 = vcombine.high %v10104_v54, %v10120_v14  ;;  %v10384_v32 = vcombine.low %v6145_v18, %v6209_v55 }
 0x4f8   : > { %28934 = vst [vmem:[#allocation78_spill] sm:$0xff] %v22982_v7  ;;  %28935 = vst [vmem:[#allocation79_spill] sm:$0xff] %v22985_v44  ;;  %v10385_v38 = vcombine.high %v6145_v18, %v6209_v55  ;;  %v10912_v45 = vcombine.low %v6625_v11, %v6689_v33  ;;  %v10913_v58 = vcombine.high %v6625_v11, %v6689_v33  ;;  %v28938_v33 = vld [vmem:[#allocation16_spill] sm:$0xff] }
 0x4f9   : > { %v10176_v59 = vcombine.low %v10111_v25, %v10127_v21  ;;  %v10177_v50 = vcombine.high %v10111_v25, %v10127_v21  ;;  %v10168_v27 = vrot.slane %v10160_v49, %v21690_v23  ;;  %v10175_v19 = vrot.slane %v10161_v12, %v21690_v23  ;;  %v6656_v18 = vpop.trf.xlu0  ;;  %6896 = vxpose.xlu0.b32.start.end [1/1] (short) (narrow) %v28938_v33, 16 }
 0x4fa   : > { %v22990_v43 = vrot.slane %v15705_v37, %v21690_v23  ;;  %v22993_v36 = vrot.slane %v15737_v3, %v21690_v23  ;;  %v10392_v25 = vrot.slane %v10384_v32, %v21679_v0  ;;  %v10399_v55 = vrot.slane %v10385_v38, %v21679_v0  ;;  %v23000_v11 = vpop.trf.xlu1  ;;  %7376 = vxpose.xlu1.b32.start.end [1/1] (short) (narrow) %v22284_v60, 16 }
 0x4fb   : > { %v10184_v6 = vrot.slane %v10176_v59, %v21690_v23  ;;  %v10191_v54 = vrot.slane %v10177_v50, %v21690_v23  ;;  %v23003_v14 = vrot.slane %v10640_v22, %v21679_v0  ;;  %v23006_v37 = vrot.slane %v10641_v34, %v21679_v0 }
 0x4fc   : > { %28936 = vst [vmem:[#allocation80_spill] sm:$0xff] %v22990_v43  ;;  %28937 = vst [vmem:[#allocation81_spill] sm:$0xff] %v22993_v36  ;;  %v23009_v3 = vrot.slane %v10912_v45, %v21679_v0  ;;  %v23012_v21 = vrot.slane %v10913_v58, %v21679_v0  ;;  %v10432_v38 = vcombine.low %v10376_v48, %v10392_v25 }
 0x4fd   : > { %v10433_v49 = vcombine.high %v10376_v48, %v10392_v25  ;;  %v10448_v12 = vcombine.low %v10383_v30, %v10399_v55  ;;  %v10449_v59 = vcombine.high %v10383_v30, %v10399_v55  ;;  %v15569_v34 = vcombine.high %v22786_v47, %v22889_v62  ;;  %v6657_v45 = vpop.trf.xlu0 }
 0x4fe   : > { %v15601_v32 = vcombine.high %v22789_v46, %v22892_v4  ;;  %v23024_v58 = vrot.slane %v10168_v27, %v21679_v0  ;;  %v23027_v60 = vrot.slane %v10175_v19, %v21679_v0  ;;  %v23030_v48 = vrot.slane %v10184_v6, %v21679_v0  ;;  %v23035_v25 = vpop.trf.xlu1 }
 0x4ff   : > { %v23033_v30 = vrot.slane %v10191_v54, %v21679_v0  ;;  %v23038_v47 = vrot.slane %v15569_v34, %v21690_v23  ;;  %v15977_v62 = vcombine.high %v22878_v61, %v22936_v16  ;;  %v16009_v19 = vcombine.high %v22881_v9, %v22939_v29  ;;  %v28943_v16 = vld [vmem:[#allocation17_spill] sm:$0xff] }
 0x500   : > { %v23041_v46 = vrot.slane %v15601_v32, %v21690_v23  ;;  %v10440_v4 = vrot.slane %v10432_v38, %v21690_v23  ;;  %v10447_v27 = vrot.slane %v10433_v49, %v21690_v23  ;;  %v10456_v6 = vrot.slane %v10448_v12, %v21690_v23 }
 0x501   : > { %28939 = vst [vmem:[#allocation16_spill] sm:$0xff] %v23038_v47  ;;  %v10463_v54 = vrot.slane %v10449_v59, %v21690_v23  ;;  %v23054_v33 = vrot.slane %v15977_v62, %v21690_v23  ;;  %v23057_v34 = vrot.slane %v16009_v19, %v21690_v23  ;;  %v15841_v61 = vcombine.high %v22848_v13, %v22930_v51  ;;  %v6720_v9 = vpop.trf.xlu0 }
 0x502   : > { %28940 = vst [vmem:[#allocation82_spill] sm:$0xff] %v23041_v46  ;;  %6960 = vxpose.xlu0.b32.start.end [1/1] (short) (narrow) %v28943_v16, 16  ;;  %v23062_v29 = vpop.trf.xlu1  ;;  %7440 = vxpose.xlu1.b32.start.end [1/1] (short) (narrow) %v22296_v26, 16  ;;  %v15873_v38 = vcombine.high %v22851_v57, %v22933_v10  ;;  %v10656_v59 = vcombine.low %v6656_v18, %v6720_v9 }
 0x503   : > { %28941 = vst [vmem:[#allocation83_spill] sm:$0xff] %v23054_v33  ;;  %28942 = vst [vmem:[#allocation84_spill] sm:$0xff] %v23057_v34  ;;  %v10657_v32 = vcombine.high %v6656_v18, %v6720_v9  ;;  %v23078_v62 = vrot.slane %v15841_v61, %v21690_v23  ;;  %v23086_v18 = vrot.slane %v10440_v4, %v21679_v0 }
 0x504   : > { %v23081_v57 = vrot.slane %v15873_v38, %v21690_v23  ;;  %v23089_v19 = vrot.slane %v10447_v27, %v21679_v0  ;;  %v10664_v9 = vrot.slane %v10656_v59, %v21679_v0 }
 0x505   : > { %28944 = vst [vmem:[#allocation17_spill] sm:$0xff] %v23078_v62  ;;  %v10671_v16 = vrot.slane %v10657_v32, %v21679_v0  ;;  %v6721_v12 = vpop.trf.xlu0  ;;  %v28951_v62 = vld [vmem:[#allocation18_spill] sm:$0xff] }
 0x506   : > { %28945 = vst [vmem:[#allocation85_spill] sm:$0xff] %v23081_v57  ;;  %v23093_v49 = vpop.trf.xlu1  ;;  %v10704_v10 = vcombine.low %v23003_v14, %v10664_v9  ;;  %v10705_v59 = vcombine.high %v23003_v14, %v10664_v9  ;;  %v10928_v55 = vcombine.low %v6657_v45, %v6721_v12  ;;  %v10929_v22 = vcombine.high %v6657_v45, %v6721_v12  ;;  %v28950_v57 = vld [vmem:[#allocation21_spill] sm:$0xff] }
 0x507   : > { %v10720_v32 = vcombine.low %v23006_v37, %v10671_v16  ;;  %v10721_v26 = vcombine.high %v23006_v37, %v10671_v16  ;;  %v23116_v9 = vrot.slane %v10456_v6, %v21679_v0  ;;  %v23119_v37 = vrot.slane %v10463_v54, %v21679_v0 }
 0x508   : > { %v10712_v4 = vrot.slane %v10704_v10, %v21690_v23  ;;  %v10719_v27 = vrot.slane %v10705_v59, %v21690_v23  ;;  %v10936_v45 = vrot.slane %v10928_v55, %v21679_v0  ;;  %v10943_v12 = vrot.slane %v10929_v22, %v21679_v0 }
 0x509   : > { %v10728_v50 = vrot.slane %v10720_v32, %v21690_v23  ;;  %v10735_v14 = vrot.slane %v10721_v26, %v21690_v23  ;;  %v7168_v16 = vpop.trf.xlu0  ;;  %7408 = vxpose.xlu0.b32.start.end [1/1] (short) (narrow) %v22344_v28, 16 }
 0x50a   : > { %v23124_v10 = vpop.trf.xlu1  ;;  %v23127_v59 = vrot.slane %v10712_v4, %v21679_v0  ;;  %v23130_v26 = vrot.slane %v10719_v27, %v21679_v0  ;;  %7888 = vxpose.xlu1.b32.start.end [1/1] (short) (narrow) %v22302_v15, 16  ;;  %v10976_v22 = vcombine.low %v23009_v3, %v10936_v45  ;;  %v10977_v28 = vcombine.high %v23009_v3, %v10936_v45 }
 0x50b   : > { %v23133_v6 = vrot.slane %v10728_v50, %v21679_v0  ;;  %v23136_v54 = vrot.slane %v10735_v14, %v21679_v0  ;;  %v10992_v55 = vcombine.low %v23012_v21, %v10943_v12  ;;  %v10993_v4 = vcombine.high %v23012_v21, %v10943_v12 }
 0x50c   : > { %v10984_v14 = vrot.slane %v10976_v22, %v21690_v23  ;;  %v10991_v3 = vrot.slane %v10977_v28, %v21690_v23  ;;  %v14496_v32 = vcombine.low %v23024_v58, %v23127_v59  ;;  %v14528_v22 = vcombine.low %v23027_v60, %v23130_v26 }
 0x50d   : > { %v11000_v45 = vrot.slane %v10992_v55, %v21690_v23  ;;  %v11007_v21 = vrot.slane %v10993_v4, %v21690_v23  ;;  %v7169_v12 = vpop.trf.xlu0  ;;  %v14632_v27 = vcombine.low %v23030_v48, %v23133_v6  ;;  %v14664_v50 = vcombine.low %v23033_v30, %v23136_v54 }
 0x50e   : > { %v7649_v38 = vpop.trf.xlu1  ;;  %v23164_v28 = vrot.slane %v10984_v14, %v21679_v0  ;;  %v23167_v55 = vrot.slane %v10991_v3, %v21679_v0  ;;  %v23182_v13 = vrot.slane %v14496_v32, %v21690_v23  ;;  %v23185_v14 = vrot.slane %v14528_v22, %v21690_v23 }
 0x50f   : > { %v23170_v4 = vrot.slane %v11000_v45, %v21679_v0  ;;  %v23173_v15 = vrot.slane %v11007_v21, %v21679_v0  ;;  %v23176_v61 = vrot.slane %v14632_v27, %v21690_v23  ;;  %v23179_v51 = vrot.slane %v14664_v50, %v21690_v23 }
 0x510   : > { %28948 = vst [vmem:[#allocation88_spill] sm:$0xff] %v23182_v13  ;;  %28949 = vst [vmem:[#allocation89_spill] sm:$0xff] %v23185_v14  ;;  %v14768_v50 = vcombine.low %v23086_v18, %v23164_v28 }
 0x511   : > { %28946 = vst [vmem:[#allocation86_spill] sm:$0xff] %v23176_v61  ;;  %28947 = vst [vmem:[#allocation87_spill] sm:$0xff] %v23179_v51  ;;  %v7232_v3 = vpop.trf.xlu0  ;;  %7472 = vxpose.xlu0.b32.start.end [1/1] (short) (narrow) %v28950_v57, 16  ;;  %v14904_v21 = vcombine.low %v23116_v9, %v23170_v4  ;;  %v14936_v27 = vcombine.low %v23119_v37, %v23173_v15 }
 0x512   : > { %v7712_v45 = vpop.trf.xlu1  ;;  %7952 = vxpose.xlu1.b32.start.end [1/1] (short) (narrow) %v28951_v62, 16  ;;  %v11200_v32 = vcombine.low %v7168_v16, %v7232_v3  ;;  %v11201_v34 = vcombine.high %v7168_v16, %v7232_v3  ;;  %v28954_v16 = vcombine.low %v23000_v11, %v23062_v29 }
 0x513   : > { %v11728_v22 = vcombine.low %v23124_v10, %v7712_v45  ;;  %v11729_v33 = vcombine.high %v23124_v10, %v7712_v45  ;;  %v23202_v46 = vrot.slane %v14904_v21, %v21690_v23  ;;  %v23205_v47 = vrot.slane %v14936_v27, %v21690_v23 }
 0x514   : > { %v11192_v3 = vrot.slane %v28954_v16, %v21679_v0  ;;  %v28955_v10 = vcombine.high %v23000_v11, %v23062_v29  ;;  %v11208_v57 = vrot.slane %v11200_v32, %v21679_v0  ;;  %v11215_v62 = vrot.slane %v11201_v34, %v21679_v0 }
 0x515   : > { %28952 = vst [vmem:[#allocation21_spill] sm:$0xff] %v23202_v46  ;;  %28953 = vst [vmem:[#allocation18_spill] sm:$0xff] %v23205_v47  ;;  %v28956_v21 = vcombine.low %v23035_v25, %v23093_v49  ;;  %v7233_v36 = vpop.trf.xlu0  ;;  %v14800_v16 = vcombine.low %v23089_v19, %v23167_v55  ;;  %v23234_v52 = vrot.slane %v11728_v22, %v21679_v0  ;;  %v28977_v46 = vld [vmem:[#allocation11_spill] sm:$0xff] }
 0x516   : > { %v11199_v45 = vrot.slane %v28955_v10, %v21679_v0  ;;  %v7713_v43 = vpop.trf.xlu1  ;;  %v11248_v29 = vcombine.low %v11192_v3, %v11208_v57  ;;  %v11249_v32 = vcombine.high %v11192_v3, %v11208_v57  ;;  %v11472_v5 = vcombine.low %v7169_v12, %v7233_v36 }
 0x517   : > { %v11464_v27 = vrot.slane %v28956_v21, %v21679_v0  ;;  %v11473_v63 = vcombine.high %v7169_v12, %v7233_v36  ;;  %v12000_v8 = vcombine.low %v7649_v38, %v7713_v43  ;;  %v12001_v44 = vcombine.high %v7649_v38, %v7713_v43  ;;  %v28958_v12 = vld [vmem:[#allocation22_spill] sm:$0xff] }
 0x518   : > { %v11264_v10 = vcombine.low %v11199_v45, %v11215_v62  ;;  %v11265_v34 = vcombine.high %v11199_v45, %v11215_v62  ;;  %v28957_v21 = vcombine.high %v23035_v25, %v23093_v49  ;;  %v11256_v2 = vrot.slane %v11248_v29, %v21690_v23  ;;  %v28959_v45 = vld [vmem:[#allocation8_spill] sm:$0xff] }
 0x519   : > { %v11263_v53 = vrot.slane %v11249_v32, %v21690_v23  ;;  %v11480_v36 = vrot.slane %v11472_v5, %v21679_v0  ;;  %v11487_v43 = vrot.slane %v11473_v63, %v21679_v0  ;;  %v7680_v38 = vpop.trf.xlu0  ;;  %7920 = vxpose.xlu0.b32.start.end [1/1] (short) (narrow) %v28958_v12, 16  ;;  %v23244_v49 = vrot.slane %v11729_v33, %v21679_v0 }
 0x51a   : > { %v11471_v7 = vrot.slane %v28957_v21, %v21679_v0  ;;  %v11272_v57 = vrot.slane %v11264_v10, %v21690_v23  ;;  %v11279_v62 = vrot.slane %v11265_v34, %v21690_v23  ;;  %v23241_v25 = vpop.trf.xlu1  ;;  %v23247_v3 = vrot.slane %v12000_v8, %v21679_v0  ;;  %8272 = vxpose.xlu1.b32.start.end [1/1] (short) (narrow) %v28959_v45, 16 }
 0x51b   : > { %v23250_v22 = vrot.slane %v12001_v44, %v21679_v0  ;;  %v23254_v5 = vrot.slane %v14768_v50, %v21690_v23  ;;  %v11520_v63 = vcombine.low %v11464_v27, %v11480_v36  ;;  %v11521_v29 = vcombine.high %v11464_v27, %v11480_v36 }
 0x51c   : > { %v11536_v32 = vcombine.low %v11471_v7, %v11487_v43  ;;  %v11537_v10 = vcombine.high %v11471_v7, %v11487_v43  ;;  %v23257_v34 = vrot.slane %v14800_v16, %v21690_v23  ;;  %v14497_v44 = vcombine.high %v23024_v58, %v23127_v59 }
 0x51d   : > { %28960 = vst [vmem:[#allocation22_spill] sm:$0xff] %v23254_v5  ;;  %v23266_v21 = vrot.slane %v11256_v2, %v21679_v0  ;;  %v23269_v50 = vrot.slane %v11263_v53, %v21679_v0  ;;  %v23272_v7 = vrot.slane %v11272_v57, %v21679_v0  ;;  %v23275_v27 = vrot.slane %v11279_v62, %v21679_v0  ;;  %v7681_v16 = vpop.trf.xlu0 }
 0x51e   : > { %28961 = vst [vmem:[#allocation8_spill] sm:$0xff] %v23257_v34  ;;  %v23277_v36 = vpop.trf.xlu1  ;;  %v11528_v43 = vrot.slane %v11520_v63, %v21690_v23  ;;  %v14529_v53 = vcombine.high %v23027_v60, %v23130_v26  ;;  %v11535_v59 = vrot.slane %v11521_v29, %v21690_v23  ;;  %v11544_v57 = vrot.slane %v11536_v32, %v21690_v23  ;;  %v28964_v29 = vld [vmem:[#allocation28_spill] sm:$0xff] }
 0x51f   : > { %v11551_v62 = vrot.slane %v11537_v10, %v21690_v23  ;;  %v23290_v12 = vrot.slane %v14497_v44, %v21690_v23  ;;  %v14633_v63 = vcombine.high %v23030_v48, %v23133_v6  ;;  %v14665_v2 = vcombine.high %v23033_v30, %v23136_v54  ;;  %v28965_v10 = vld [vmem:[#allocation9_spill] sm:$0xff] }
 0x520   : > { %v23293_v45 = vrot.slane %v14529_v53, %v21690_v23  ;;  %v14769_v60 = vcombine.high %v23086_v18, %v23164_v28  ;;  %v14801_v44 = vcombine.high %v23089_v19, %v23167_v55  ;;  %v23312_v28 = vrot.slane %v11528_v43, %v21679_v0 }
 0x521   : > { %28962 = vst [vmem:[#allocation90_spill] sm:$0xff] %v23290_v12  ;;  %v7744_v26 = vpop.trf.xlu0  ;;  %7984 = vxpose.xlu0.b32.start.end [1/1] (short) (narrow) %v28964_v29, 16  ;;  %v23317_v19 = vrot.slane %v14633_v63, %v21690_v23  ;;  %v23320_v55 = vrot.slane %v14665_v2, %v21690_v23 }
 0x522   : > { %28963 = vst [vmem:[#allocation91_spill] sm:$0xff] %v23293_v45  ;;  %v8096_v32 = vpop.trf.xlu1  ;;  %8336 = vxpose.xlu1.b32.start.end [1/1] (short) (narrow) %v28965_v10, 16  ;;  %v11744_v6 = vcombine.low %v7680_v38, %v7744_v26  ;;  %v11745_v30 = vcombine.high %v7680_v38, %v7744_v26  ;;  %v23323_v10 = vrot.slane %v11535_v59, %v21679_v0 }
 0x523   : > { %v12240_v54 = vcombine.low %v23241_v25, %v8096_v32  ;;  %v12241_v18 = vcombine.high %v23241_v25, %v8096_v32  ;;  %28966 = vst [vmem:[#allocation28_spill] sm:$0xff] %v23317_v19  ;;  %28967 = vst [vmem:[#allocation9_spill] sm:$0xff] %v23320_v55  ;;  %v23326_v38 = vrot.slane %v11544_v57, %v21679_v0 }
 0x524   : > { %v11752_v25 = vrot.slane %v11744_v6, %v21679_v0  ;;  %v11759_v43 = vrot.slane %v11745_v30, %v21679_v0  ;;  %v23331_v26 = vrot.slane %v11551_v62, %v21679_v0  ;;  %v23341_v59 = vrot.slane %v14769_v60, %v21690_v23 }
 0x525   : > { %v23334_v32 = vrot.slane %v12240_v54, %v21679_v0  ;;  %v7745_v63 = vpop.trf.xlu0 }
 0x526   : > { %v23336_v29 = vpop.trf.xlu1  ;;  %28968 = vst [vmem:[#allocation92_spill] sm:$0xff] %v23341_v59  ;;  %v11792_v57 = vcombine.low %v23234_v52, %v11752_v25  ;;  %v11793_v6 = vcombine.high %v23234_v52, %v11752_v25  ;;  %v11808_v30 = vcombine.low %v23244_v49, %v11759_v43  ;;  %v11809_v62 = vcombine.high %v23244_v49, %v11759_v43 }
 0x527   : > { %v12016_v8 = vcombine.low %v7681_v16, %v7745_v63  ;;  %v12017_v54 = vcombine.high %v7681_v16, %v7745_v63  ;;  %v12512_v33 = vcombine.low %v23277_v36, %v23336_v29  ;;  %v12513_v11 = vcombine.high %v23277_v36, %v23336_v29  ;;  %v28969_v63 = vld [vmem:[#allocation23_spill] sm:$0xff] }
 0x528   : > { %v11800_v2 = vrot.slane %v11792_v57, %v21690_v23  ;;  %v11807_v60 = vrot.slane %v11793_v6, %v21690_v23  ;;  %v11816_v58 = vrot.slane %v11808_v30, %v21690_v23  ;;  %v11823_v52 = vrot.slane %v11809_v62, %v21690_v23  ;;  %v28971_v6 = vld [vmem:[#allocation10_spill] sm:$0xff] }
 0x529   : > { %v23356_v25 = vrot.slane %v12241_v18, %v21679_v0  ;;  %v12024_v49 = vrot.slane %v12016_v8, %v21679_v0  ;;  %v12031_v16 = vrot.slane %v12017_v54, %v21679_v0  ;;  %v8064_v43 = vpop.trf.xlu0  ;;  %8304 = vxpose.xlu0.b32.start.end [1/1] (short) (narrow) %v28969_v63, 16  ;;  %v23364_v36 = vrot.slane %v14801_v44, %v21690_v23 }
 0x52a   : > { %v23361_v48 = vpop.trf.xlu1  ;;  %v23367_v29 = vrot.slane %v11800_v2, %v21679_v0  ;;  %v23370_v57 = vrot.slane %v11807_v60, %v21679_v0  ;;  %v23373_v18 = vrot.slane %v11816_v58, %v21679_v0  ;;  %v23376_v8 = vrot.slane %v11823_v52, %v21679_v0  ;;  %8784 = vxpose.xlu1.b32.start.end [1/1] (short) (narrow) %v28971_v6, 16 }
 0x52b   : > { %28970 = vst [vmem:[#allocation23_spill] sm:$0xff] %v23364_v36  ;;  %v12064_v30 = vcombine.low %v23247_v3, %v12024_v49  ;;  %v12065_v62 = vcombine.high %v23247_v3, %v12024_v49  ;;  %v12080_v44 = vcombine.low %v23250_v22, %v12031_v16  ;;  %v12081_v2 = vcombine.high %v23250_v22, %v12031_v16 }
 0x52c   : > { %v15720_v54 = vcombine.low %v23272_v7, %v23373_v18  ;;  %v15752_v58 = vcombine.low %v23275_v27, %v23376_v8  ;;  %v15584_v60 = vcombine.low %v23266_v21, %v23367_v29  ;;  %v15616_v52 = vcombine.low %v23269_v50, %v23370_v57 }
 0x52d   : > { %v12072_v63 = vrot.slane %v12064_v30, %v21690_v23  ;;  %v12079_v3 = vrot.slane %v12065_v62, %v21690_v23  ;;  %v12088_v49 = vrot.slane %v12080_v44, %v21690_v23  ;;  %v12095_v22 = vrot.slane %v12081_v2, %v21690_v23  ;;  %v8065_v16 = vpop.trf.xlu0 }
 0x52e   : > { %v8545_v6 = vpop.trf.xlu1  ;;  %v23396_v53 = vrot.slane %v15720_v54, %v21690_v23  ;;  %v23399_v34 = vrot.slane %v15752_v58, %v21690_v23  ;;  %v23402_v5 = vrot.slane %v15584_v60, %v21690_v23  ;;  %v23405_v47 = vrot.slane %v15616_v52, %v21690_v23 }
 0x52f   : > { %v23408_v30 = vrot.slane %v12072_v63, %v21679_v0  ;;  %v23411_v62 = vrot.slane %v12079_v3, %v21679_v0  ;;  %v23414_v44 = vrot.slane %v12088_v49, %v21679_v0  ;;  %v23417_v2 = vrot.slane %v12095_v22, %v21679_v0  ;;  %v28976_v3 = vld [vmem:[#allocation24_spill] sm:$0xff] }
 0x530   : > { %28972 = vst [vmem:[#allocation10_spill] sm:$0xff] %v23396_v53  ;;  %28973 = vst [vmem:[#allocation93_spill] sm:$0xff] %v23399_v34 }
 0x531   : > { %28974 = vst [vmem:[#allocation94_spill] sm:$0xff] %v23402_v5  ;;  %28975 = vst [vmem:[#allocation95_spill] sm:$0xff] %v23405_v47  ;;  %v8128_v63 = vpop.trf.xlu0  ;;  %8368 = vxpose.xlu0.b32.start.end [1/1] (short) (narrow) %v28976_v3, 16  ;;  %v15992_v22 = vcombine.low %v23326_v38, %v23414_v44  ;;  %v16024_v54 = vcombine.low %v23331_v26, %v23417_v2  ;;  %v15856_v58 = vcombine.low %v23312_v28, %v23408_v30 }
 0x532   : > { %v8608_v49 = vpop.trf.xlu1  ;;  %8848 = vxpose.xlu1.b32.start.end [1/1] (short) (narrow) %v28977_v46, 16  ;;  %v12256_v14 = vcombine.low %v8064_v43, %v8128_v63  ;;  %v12257_v60 = vcombine.high %v8064_v43, %v8128_v63  ;;  %v15888_v47 = vcombine.low %v23323_v10, %v23411_v62  ;;  %v28980_v5 = vcombine.high %v23116_v9, %v23170_v4 }
 0x533   : > { %v12784_v34 = vcombine.low %v23361_v48, %v8608_v49  ;;  %v12785_v52 = vcombine.high %v23361_v48, %v8608_v49  ;;  %v23438_v3 = vrot.slane %v15992_v22, %v21690_v23  ;;  %v23441_v46 = vrot.slane %v16024_v54, %v21690_v23 }
 0x534   : > { %v23449_v53 = vrot.slane %v28980_v5, %v21690_v23  ;;  %v12520_v43 = vrot.slane %v12512_v33, %v21679_v0  ;;  %v12264_v63 = vrot.slane %v12256_v14, %v21679_v0  ;;  %v12271_v48 = vrot.slane %v12257_v60, %v21679_v0 }
 0x535   : > { %28978 = vst [vmem:[#allocation24_spill] sm:$0xff] %v23438_v3  ;;  %28979 = vst [vmem:[#allocation11_spill] sm:$0xff] %v23441_v46  ;;  %v28982_v54 = vcombine.high %v23119_v37, %v23173_v15  ;;  %v12527_v22 = vrot.slane %v12513_v11, %v21679_v0  ;;  %v8129_v13 = vpop.trf.xlu0  ;;  %v23474_v4 = vrot.slane %v15856_v58, %v21690_v23 }
 0x536   : > { %28981 = vst [vmem:[#allocation96_spill] sm:$0xff] %v23449_v53  ;;  %v8609_v51 = vpop.trf.xlu1  ;;  %v12304_v5 = vcombine.low %v23334_v32, %v12264_v63  ;;  %v12305_v33 = vcombine.high %v23334_v32, %v12264_v63  ;;  %v12320_v37 = vcombine.low %v23356_v25, %v12271_v48  ;;  %v12321_v15 = vcombine.high %v23356_v25, %v12271_v48 }
 0x537   : > { %v23458_v49 = vrot.slane %v28982_v54, %v21690_v23  ;;  %v12528_v11 = vcombine.low %v8065_v16, %v8129_v13  ;;  %v12529_v60 = vcombine.high %v8065_v16, %v8129_v13  ;;  %v13056_v54 = vcombine.low %v8545_v6, %v8609_v51  ;;  %28984 = vst [vmem:[#allocation98_spill] sm:$0xff] %v23474_v4 }
 0x538   : > { %v13057_v61 = vcombine.high %v8545_v6, %v8609_v51  ;;  %v12312_v9 = vrot.slane %v12304_v5, %v21690_v23  ;;  %v12319_v41 = vrot.slane %v12305_v33, %v21690_v23  ;;  %v23477_v14 = vrot.slane %v15888_v47, %v21690_v23  ;;  %v28986_v51 = vld [vmem:[#allocation29_spill] sm:$0xff] }
 0x539   : > { %28983 = vst [vmem:[#allocation97_spill] sm:$0xff] %v23458_v49  ;;  %v12328_v32 = vrot.slane %v12320_v37, %v21690_v23  ;;  %v12335_v63 = vrot.slane %v12321_v15, %v21690_v23  ;;  %v12536_v25 = vrot.slane %v12528_v11, %v21679_v0  ;;  %v12543_v13 = vrot.slane %v12529_v60, %v21679_v0  ;;  %v8576_v16 = vpop.trf.xlu0  ;;  %v28987_v33 = vld [vmem:[#allocation25_spill] sm:$0xff] }
 0x53a   : > { %28985 = vst [vmem:[#allocation99_spill] sm:$0xff] %v23477_v14  ;;  %8816 = vxpose.xlu0.b32.start.end [1/1] (short) (narrow) %v28986_v51, 16  ;;  %v23484_v6 = vpop.trf.xlu1  ;;  %v23487_v48 = vrot.slane %v12784_v34, %v21679_v0  ;;  %v23490_v58 = vrot.slane %v12785_v52, %v21679_v0  ;;  %v23493_v47 = vrot.slane %v13056_v54, %v21679_v0 }
 0x53b   : > { %v23496_v5 = vrot.slane %v13057_v61, %v21679_v0  ;;  %8400 = vxpose.xlu1.b32.start.end [1/1] (short) (narrow) %v28987_v33, 16  ;;  %v12576_v37 = vcombine.low %v12520_v43, %v12536_v25  ;;  %v12577_v15 = vcombine.high %v12520_v43, %v12536_v25  ;;  %v12592_v11 = vcombine.low %v12527_v22, %v12543_v13 }
 0x53c   : > { %v12593_v60 = vcombine.high %v12527_v22, %v12543_v13  ;;  %v15585_v54 = vcombine.high %v23266_v21, %v23367_v29  ;;  %v23508_v61 = vrot.slane %v12312_v9, %v21679_v0  ;;  %v23511_v33 = vrot.slane %v12319_v41, %v21679_v0 }
 0x53d   : > { %v23514_v43 = vrot.slane %v12328_v32, %v21679_v0  ;;  %v23517_v22 = vrot.slane %v12335_v63, %v21679_v0  ;;  %v8577_v25 = vpop.trf.xlu0  ;;  %v12584_v52 = vrot.slane %v12576_v37, %v21690_v23  ;;  %v15617_v21 = vcombine.high %v23269_v50, %v23370_v57 }
 0x53e   : > { %v23519_v13 = vpop.trf.xlu1  ;;  %v15721_v29 = vcombine.high %v23272_v7, %v23373_v18  ;;  %v15753_v41 = vcombine.high %v23275_v27, %v23376_v8  ;;  %v12591_v9 = vrot.slane %v12577_v15, %v21690_v23  ;;  %v12600_v32 = vrot.slane %v12592_v11, %v21690_v23  ;;  %v28992_v18 = vld [vmem:[#allocation30_spill] sm:$0xff] }
 0x53f   : > { %v12607_v63 = vrot.slane %v12593_v60, %v21690_v23  ;;  %v23532_v34 = vrot.slane %v15585_v54, %v21690_v23  ;;  %v23535_v37 = vrot.slane %v15617_v21, %v21690_v23  ;;  %v15857_v27 = vcombine.high %v23312_v28, %v23408_v30  ;;  %v28993_v15 = vld [vmem:[#allocation26_spill] sm:$0xff] }
 0x540   : > { %v23538_v50 = vrot.slane %v15721_v29, %v21690_v23  ;;  %v23541_v7 = vrot.slane %v15753_v41, %v21690_v23  ;;  %v15889_v11 = vcombine.high %v23323_v10, %v23411_v62  ;;  %v29004_v40 = vcombine.high %v23326_v38, %v23414_v44 }
 0x541   : > { %28988 = vst [vmem:[#allocation29_spill] sm:$0xff] %v23532_v34  ;;  %28989 = vst [vmem:[#allocation25_spill] sm:$0xff] %v23535_v37  ;;  %v8640_v57 = vpop.trf.xlu0  ;;  %8880 = vxpose.xlu0.b32.start.end [1/1] (short) (narrow) %v28992_v18, 16  ;;  %v23560_v10 = vrot.slane %v15857_v27, %v21690_v23  ;;  %v23577_v30 = vrot.slane %v12607_v63, %v21679_v0  ;;  %v29023_v37 = vld [vmem:[#allocation36_spill] sm:$0xff] }
 0x542   : > { %28990 = vst [vmem:[#allocation100_spill] sm:$0xff] %v23538_v50  ;;  %28991 = vst [vmem:[#allocation101_spill] sm:$0xff] %v23541_v7  ;;  %v6304_v8 = vpop.trf.xlu1  ;;  %8464 = vxpose.xlu1.b32.start.end [1/1] (short) (narrow) %v28993_v15, 16  ;;  %v12800_v21 = vcombine.low %v8576_v16, %v8640_v57  ;;  %v12801_v29 = vcombine.high %v8576_v16, %v8640_v57  ;;  %v23563_v62 = vrot.slane %v15889_v11, %v21690_v23 }
 0x543   : > { %v10200_v41 = vcombine.low %v23484_v6, %v6304_v8  ;;  %v10201_v28 = vcombine.high %v23484_v6, %v6304_v8  ;;  %28994 = vst [vmem:[#allocation30_spill] sm:$0xff] %v23560_v10  ;;  %v23566_v15 = vrot.slane %v12584_v52, %v21679_v0  ;;  %v23569_v16 = vrot.slane %v12591_v9, %v21679_v0 }
 0x544   : > { %28995 = vst [vmem:[#allocation26_spill] sm:$0xff] %v23563_v62  ;;  %v12808_v6 = vrot.slane %v12800_v21, %v21679_v0  ;;  %v12815_v57 = vrot.slane %v12801_v29, %v21679_v0  ;;  %v23574_v8 = vrot.slane %v12600_v32, %v21679_v0  ;;  %v23691_v56 = vrot.slane %v29004_v40, %v21690_v23 }
 0x545   : > { %v8641_v27 = vpop.trf.xlu0 }
 0x546   : > { %v23579_v18 = vpop.trf.xlu1  ;;  %v12848_v11 = vcombine.low %v23487_v48, %v12808_v6  ;;  %v12849_v21 = vcombine.high %v23487_v48, %v12808_v6  ;;  %v12864_v29 = vcombine.low %v23490_v58, %v12815_v57  ;;  %v12865_v32 = vcombine.high %v23490_v58, %v12815_v57  ;;  %29005 = vst [vmem:[#allocation106_spill] sm:$0xff] %v23691_v56 }
 0x547   : > { %v13072_v51 = vcombine.low %v8577_v25, %v8641_v27  ;;  %v13073_v63 = vcombine.high %v8577_v25, %v8641_v27  ;;  %v10472_v54 = vcombine.low %v23519_v13, %v23579_v18  ;;  %v10473_v60 = vcombine.high %v23519_v13, %v23579_v18  ;;  %v28996_v13 = vld [vmem:[#allocation32_spill] sm:$0xff] }
 0x548   : > { %v12856_v52 = vrot.slane %v12848_v11, %v21690_v23  ;;  %v12863_v9 = vrot.slane %v12849_v21, %v21690_v23  ;;  %v12872_v45 = vrot.slane %v12864_v29, %v21690_v23  ;;  %v12879_v48 = vrot.slane %v12865_v32, %v21690_v23 }
 0x549   : > { %v23598_v6 = vrot.slane %v10200_v41, %v21679_v0  ;;  %v23601_v58 = vrot.slane %v10201_v28, %v21679_v0  ;;  %v13080_v25 = vrot.slane %v13072_v51, %v21679_v0  ;;  %v13087_v57 = vrot.slane %v13073_v63, %v21679_v0  ;;  %v6272_v27 = vpop.trf.xlu0  ;;  %8432 = vxpose.xlu0.b32.start.end [1/1] (short) (narrow) %v28996_v13, 16 }
 0x54a   : > { %v23606_v18 = vpop.trf.xlu1  ;;  %v23609_v11 = vrot.slane %v12856_v52, %v21679_v0  ;;  %v23612_v21 = vrot.slane %v12863_v9, %v21679_v0  ;;  %v23615_v41 = vrot.slane %v12872_v45, %v21679_v0  ;;  %v23618_v28 = vrot.slane %v12879_v48, %v21679_v0  ;;  %8912 = vxpose.xlu1.b32.start.end [1/1] (short) (narrow) %v22416_v17, 16 }
 0x54b   : > { %v13120_v51 = vcombine.low %v23493_v47, %v13080_v25  ;;  %v13121_v29 = vcombine.high %v23493_v47, %v13080_v25  ;;  %v13136_v32 = vcombine.low %v23496_v5, %v13087_v57  ;;  %v13137_v52 = vcombine.high %v23496_v5, %v13087_v57 }
 0x54c   : > { %v16792_v9 = vcombine.low %v23514_v43, %v23615_v41  ;;  %v16824_v45 = vcombine.low %v23517_v22, %v23618_v28  ;;  %v16656_v63 = vcombine.low %v23508_v61, %v23609_v11  ;;  %v16688_v17 = vcombine.low %v23511_v33, %v23612_v21 }
 0x54d   : > { %v13128_v48 = vrot.slane %v13120_v51, %v21690_v23  ;;  %v13135_v47 = vrot.slane %v13121_v29, %v21690_v23  ;;  %v13144_v25 = vrot.slane %v13136_v32, %v21690_v23  ;;  %v13151_v5 = vrot.slane %v13137_v52, %v21690_v23  ;;  %v6273_v57 = vpop.trf.xlu0 }
 0x54e   : > { %v6753_v13 = vpop.trf.xlu1  ;;  %v23638_v12 = vrot.slane %v16792_v9, %v21690_v23  ;;  %v23641_v14 = vrot.slane %v16824_v45, %v21690_v23  ;;  %v23644_v4 = vrot.slane %v16656_v63, %v21690_v23  ;;  %v23647_v46 = vrot.slane %v16688_v17, %v21690_v23 }
 0x54f   : > { %v23650_v51 = vrot.slane %v13128_v48, %v21679_v0  ;;  %v23653_v29 = vrot.slane %v13135_v47, %v21679_v0  ;;  %v23656_v32 = vrot.slane %v13144_v25, %v21679_v0  ;;  %v23659_v52 = vrot.slane %v13151_v5, %v21679_v0  ;;  %v29001_v47 = vld [vmem:[#allocation33_spill] sm:$0xff] }
 0x550   : > { %28997 = vst [vmem:[#allocation32_spill] sm:$0xff] %v23638_v12  ;;  %28998 = vst [vmem:[#allocation102_spill] sm:$0xff] %v23641_v14  ;;  %v16793_v63 = vcombine.high %v23514_v43, %v23615_v41  ;;  %v16825_v17 = vcombine.high %v23517_v22, %v23618_v28 }
 0x551   : > { %28999 = vst [vmem:[#allocation103_spill] sm:$0xff] %v23644_v4  ;;  %29000 = vst [vmem:[#allocation104_spill] sm:$0xff] %v23647_v46  ;;  %v6336_v48 = vpop.trf.xlu0  ;;  %8496 = vxpose.xlu0.b32.start.end [1/1] (short) (narrow) %v29001_v47, 16  ;;  %v17064_v5 = vcombine.low %v23574_v8, %v23656_v32  ;;  %v17096_v9 = vcombine.low %v23577_v30, %v23659_v52  ;;  %v16928_v45 = vcombine.low %v23566_v15, %v23650_v51 }
 0x552   : > { %v6816_v25 = vpop.trf.xlu1  ;;  %8976 = vxpose.xlu1.b32.start.end [1/1] (short) (narrow) %v22426_v42, 16  ;;  %v10216_v3 = vcombine.low %v6272_v27, %v6336_v48  ;;  %v10217_v43 = vcombine.high %v6272_v27, %v6336_v48  ;;  %v16960_v47 = vcombine.low %v23569_v16, %v23653_v29  ;;  %v10480_v27 = vrot.slane %v10472_v54, %v21679_v0 }
 0x553   : > { %v10744_v41 = vcombine.low %v23606_v18, %v6816_v25  ;;  %v10745_v22 = vcombine.high %v23606_v18, %v6816_v25  ;;  %v23680_v28 = vrot.slane %v17064_v5, %v21690_v23  ;;  %v23683_v42 = vrot.slane %v17096_v9, %v21690_v23 }
 0x554   : > { %v10224_v48 = vrot.slane %v10216_v3, %v21679_v0  ;;  %v10231_v18 = vrot.slane %v10217_v43, %v21679_v0  ;;  %v29006_v9 = vcombine.high %v23331_v26, %v23417_v2  ;;  %v10487_v5 = vrot.slane %v10473_v60, %v21679_v0 }
 0x555   : > { %29002 = vst [vmem:[#allocation33_spill] sm:$0xff] %v23680_v28  ;;  %29003 = vst [vmem:[#allocation105_spill] sm:$0xff] %v23683_v42  ;;  %v6337_v39 = vpop.trf.xlu0  ;;  %v23706_v38 = vrot.slane %v16928_v45, %v21690_v23  ;;  %v23709_v44 = vrot.slane %v16960_v47, %v21690_v23  ;;  %v23718_v10 = vrot.slane %v16793_v63, %v21690_v23 }
 0x556   : > { %v23700_v25 = vrot.slane %v29006_v9, %v21690_v23  ;;  %v6817_v1 = vpop.trf.xlu1  ;;  %v10264_v3 = vcombine.low %v23598_v6, %v10224_v48  ;;  %v10265_v54 = vcombine.high %v23598_v6, %v10224_v48  ;;  %v10280_v26 = vcombine.low %v23601_v58, %v10231_v18 }
 0x557   : > { %29008 = vst [vmem:[#allocation108_spill] sm:$0xff] %v23706_v38  ;;  %29009 = vst [vmem:[#allocation109_spill] sm:$0xff] %v23709_v44  ;;  %v10281_v2 = vcombine.high %v23601_v58, %v10231_v18  ;;  %v10488_v60 = vcombine.low %v6273_v57, %v6337_v39  ;;  %v10489_v43 = vcombine.high %v6273_v57, %v6337_v39  ;;  %v29058_v44 = vld [vmem:[#allocation53_spill] sm:$0xff] }
 0x558   : > { %29007 = vst [vmem:[#allocation107_spill] sm:$0xff] %v23700_v25  ;;  %v11016_v9 = vcombine.low %v6753_v13, %v6817_v1  ;;  %v11017_v35 = vcombine.high %v6753_v13, %v6817_v1  ;;  %v10272_v40 = vrot.slane %v10264_v3, %v21690_v23  ;;  %v10279_v45 = vrot.slane %v10265_v54, %v21690_v23 }
 0x559   : > { %29010 = vst [vmem:[#allocation110_spill] sm:$0xff] %v23718_v10  ;;  %v23721_v47 = vrot.slane %v16825_v17, %v21690_v23  ;;  %v10288_v6 = vrot.slane %v10280_v26, %v21690_v23  ;;  %v10295_v48 = vrot.slane %v10281_v2, %v21690_v23  ;;  %v10496_v58 = vrot.slane %v10488_v60, %v21679_v0  ;;  %v6784_v57 = vpop.trf.xlu0  ;;  %v29022_v2 = vld [vmem:[#allocation44_spill] sm:$0xff] }
 0x55a   : > { %v10503_v39 = vrot.slane %v10489_v43, %v21679_v0  ;;  %8944 = vxpose.xlu0.b32.start.end [1/1] (short) (narrow) %v22470_v24, 16  ;;  %v23728_v1 = vpop.trf.xlu1  ;;  %v23731_v13 = vrot.slane %v10744_v41, %v21679_v0  ;;  %v23734_v63 = vrot.slane %v10745_v22, %v21679_v0  ;;  %v23737_v17 = vrot.slane %v11016_v9, %v21679_v0 }
 0x55b   : > { %29011 = vst [vmem:[#allocation111_spill] sm:$0xff] %v23721_v47  ;;  %v23740_v18 = vrot.slane %v11017_v35, %v21679_v0  ;;  %9040 = vxpose.xlu1.b32.start.end [1/1] (short) (narrow) %v22444_v31, 16  ;;  %v10536_v3 = vcombine.low %v10480_v27, %v10496_v58  ;;  %v10537_v54 = vcombine.high %v10480_v27, %v10496_v58  ;;  %v29057_v10 = vmov 0.0  }
 0x55c   : > { %v10552_v26 = vcombine.low %v10487_v5, %v10503_v39  ;;  %v10553_v24 = vcombine.high %v10487_v5, %v10503_v39  ;;  %v16657_v22 = vcombine.high %v23508_v61, %v23609_v11  ;;  %v16689_v60 = vcombine.high %v23511_v33, %v23612_v21 }
 0x55d   : > { %v23752_v35 = vrot.slane %v10272_v40, %v21679_v0  ;;  %v23755_v31 = vrot.slane %v10279_v45, %v21679_v0  ;;  %v23758_v27 = vrot.slane %v10288_v6, %v21679_v0  ;;  %v23761_v5 = vrot.slane %v10295_v48, %v21679_v0  ;;  %v6785_v43 = vpop.trf.xlu0 }
 0x55e   : > { %v23763_v9 = vpop.trf.xlu1  ;;  %v23766_v61 = vrot.slane %v16657_v22, %v21690_v23  ;;  %v23769_v33 = vrot.slane %v16689_v60, %v21690_v23  ;;  %v17065_v11 = vcombine.high %v23574_v8, %v23656_v32  ;;  %v17097_v21 = vcombine.high %v23577_v30, %v23659_v52  ;;  %v29016_v52 = vld [vmem:[#allocation34_spill] sm:$0xff] }
 0x55f   : > { %v10544_v40 = vrot.slane %v10536_v3, %v21690_v23  ;;  %v10551_v45 = vrot.slane %v10537_v54, %v21690_v23  ;;  %v10560_v6 = vrot.slane %v10552_v26, %v21690_v23  ;;  %v10567_v48 = vrot.slane %v10553_v24, %v21690_v23 }
 0x560   : > { %29012 = vst [vmem:[#allocation112_spill] sm:$0xff] %v23766_v61  ;;  %29013 = vst [vmem:[#allocation113_spill] sm:$0xff] %v23769_v33  ;;  %v23782_v39 = vrot.slane %v17065_v11, %v21690_v23  ;;  %v23785_v22 = vrot.slane %v17097_v21, %v21690_v23  ;;  %v16929_v30 = vcombine.high %v23566_v15, %v23650_v51 }
 0x561   : > { %v6848_v8 = vpop.trf.xlu0  ;;  %9008 = vxpose.xlu0.b32.start.end [1/1] (short) (narrow) %v22474_v20, 16  ;;  %v16961_v3 = vcombine.high %v23569_v16, %v23653_v29  ;;  %v23810_v21 = vrot.slane %v10544_v40, %v21679_v0  ;;  %v23836_v40 = vrot.slane %v10560_v6, %v21679_v0  ;;  %v24193_v38 = vcombine.high %v29058_v44, %v29057_v10 }
 0x562   : > { %29014 = vst [vmem:[#allocation114_spill] sm:$0xff] %v23782_v39  ;;  %29015 = vst [vmem:[#allocation115_spill] sm:$0xff] %v23785_v22  ;;  %v7328_v32 = vpop.trf.xlu1  ;;  %9104 = vxpose.xlu1.b32.start.end [1/1] (short) (narrow) %v29016_v52, 16  ;;  %v10760_v24 = vcombine.low %v6784_v57, %v6848_v8  ;;  %v10761_v60 = vcombine.high %v6784_v57, %v6848_v8  ;;  %v23802_v51 = vrot.slane %v16929_v30, %v21690_v23  ;;  %v29047_v22 = vld [vmem:[#allocation39_spill] sm:$0xff] }
 0x563   : > { %v11288_v11 = vcombine.low %v23728_v1, %v7328_v32  ;;  %v11289_v15 = vcombine.high %v23728_v1, %v7328_v32  ;;  %v23805_v16 = vrot.slane %v16961_v3, %v21690_v23  ;;  %v23813_v57 = vrot.slane %v10551_v45, %v21679_v0 }
 0x564   : > { %29017 = vst [vmem:[#allocation34_spill] sm:$0xff] %v23802_v51  ;;  %v10768_v1 = vrot.slane %v10760_v24, %v21679_v0  ;;  %v10775_v8 = vrot.slane %v10761_v60, %v21679_v0  ;;  %v23839_v45 = vrot.slane %v10567_v48, %v21679_v0  ;;  %v29046_v51 = vld [vmem:[#allocation48_spill] sm:$0xff] }
 0x565   : > { %29018 = vst [vmem:[#allocation116_spill] sm:$0xff] %v23805_v16  ;;  %v6849_v32 = vpop.trf.xlu0 }
 0x566   : > { %v23817_v52 = vpop.trf.xlu1  ;;  %v10808_v29 = vcombine.low %v23731_v13, %v10768_v1  ;;  %v10809_v24 = vcombine.high %v23731_v13, %v10768_v1  ;;  %v10824_v60 = vcombine.low %v23734_v63, %v10775_v8  ;;  %v10825_v26 = vcombine.high %v23734_v63, %v10775_v8 }
 0x567   : > { %v11032_v54 = vcombine.low %v6785_v43, %v6849_v32  ;;  %v11033_v20 = vcombine.high %v6785_v43, %v6849_v32  ;;  %v11560_v30 = vcombine.low %v23763_v9, %v23817_v52  ;;  %v11561_v3 = vcombine.high %v23763_v9, %v23817_v52  ;;  %v29019_v9 = vld [vmem:[#allocation43_spill] sm:$0xff] }
 0x568   : > { %v10816_v13 = vrot.slane %v10808_v29, %v21690_v23  ;;  %v10823_v1 = vrot.slane %v10809_v24, %v21690_v23  ;;  %v10832_v63 = vrot.slane %v10824_v60, %v21690_v23  ;;  %v10839_v43 = vrot.slane %v10825_v26, %v21690_v23 }
 0x569   : > { %v11040_v8 = vrot.slane %v11032_v54, %v21679_v0  ;;  %v11047_v32 = vrot.slane %v11033_v20, %v21679_v0  ;;  %v7296_v58 = vpop.trf.xlu0  ;;  %9072 = vxpose.xlu0.b32.start.end [1/1] (short) (narrow) %v29019_v9, 16  ;;  %v23857_v52 = vrot.slane %v11288_v11, %v21679_v0  ;;  %v23860_v26 = vrot.slane %v11289_v15, %v21679_v0  ;;  %v29020_v54 = vld [vmem:[#allocation35_spill] sm:$0xff] }
 0x56a   : > { %v23848_v6 = vpop.trf.xlu1  ;;  %v23851_v48 = vrot.slane %v10816_v13, %v21679_v0  ;;  %v23854_v29 = vrot.slane %v10823_v1, %v21679_v0  ;;  %9168 = vxpose.xlu1.b32.start.end [1/1] (short) (narrow) %v29020_v54, 16  ;;  %v23876_v54 = vrot.slane %v10832_v63, %v21679_v0  ;;  %v23899_v41 = vrot.slane %v11560_v30, %v21679_v0 }
 0x56b   : > { %v11080_v20 = vcombine.low %v23737_v17, %v11040_v8  ;;  %v11081_v24 = vcombine.high %v23737_v17, %v11040_v8  ;;  %v11096_v60 = vcombine.low %v23740_v18, %v11047_v32  ;;  %v11097_v13 = vcombine.high %v23740_v18, %v11047_v32 }
 0x56c   : > { %v23879_v17 = vrot.slane %v10839_v43, %v21679_v0  ;;  %v15024_v63 = vcombine.low %v23752_v35, %v23851_v48  ;;  %v15160_v30 = vcombine.low %v23758_v27, %v23876_v54 }
 0x56d   : > { %v11088_v18 = vrot.slane %v11080_v20, %v21690_v23  ;;  %v11095_v8 = vrot.slane %v11081_v24, %v21690_v23  ;;  %v7297_v32 = vpop.trf.xlu0  ;;  %v11104_v43 = vrot.slane %v11096_v60, %v21690_v23  ;;  %v15056_v60 = vcombine.low %v23755_v31, %v23854_v29 }
 0x56e   : > { %v7777_v1 = vpop.trf.xlu1  ;;  %v15192_v15 = vcombine.low %v23761_v5, %v23879_v17  ;;  %v23926_v34 = vrot.slane %v15160_v30, %v21690_v23  ;;  %v11111_v50 = vrot.slane %v11097_v13, %v21690_v23 }
 0x56f   : > { %v23893_v20 = vrot.slane %v11088_v18, %v21679_v0  ;;  %v23896_v24 = vrot.slane %v11095_v8, %v21679_v0 }
 0x570   : > { %29026 = vst [vmem:[#allocation44_spill] sm:$0xff] %v23926_v34  ;;  %v23929_v7 = vrot.slane %v15192_v15, %v21690_v23  ;;  %v23949_v30 = vrot.slane %v11111_v50, %v21679_v0 }
 0x571   : > { %v7360_v18 = vpop.trf.xlu0  ;;  %9136 = vxpose.xlu0.b32.start.end [1/1] (short) (narrow) %v29022_v2, 16  ;;  %v15296_v9 = vcombine.low %v23810_v21, %v23893_v20  ;;  %v23920_v2 = vrot.slane %v15024_v63, %v21690_v23  ;;  %v23936_v63 = vrot.slane %v11104_v43, %v21679_v0  ;;  %v15328_v13 = vcombine.low %v23813_v57, %v23896_v24 }
 0x572   : > { %v7840_v8 = vpop.trf.xlu1  ;;  %9232 = vxpose.xlu1.b32.start.end [1/1] (short) (narrow) %v29023_v37, 16  ;;  %v11304_v62 = vcombine.low %v7296_v58, %v7360_v18  ;;  %v11305_v11 = vcombine.high %v7296_v58, %v7360_v18  ;;  %v23923_v37 = vrot.slane %v15056_v60, %v21690_v23  ;;  %29027 = vst [vmem:[#allocation36_spill] sm:$0xff] %v23929_v7 }
 0x573   : > { %v11832_v25 = vcombine.low %v23848_v6, %v7840_v8  ;;  %v11833_v56 = vcombine.high %v23848_v6, %v7840_v8  ;;  %29024 = vst [vmem:[#allocation43_spill] sm:$0xff] %v23920_v2  ;;  %v11575_v58 = vrot.slane %v11561_v3, %v21679_v0 }
 0x574   : > { %29025 = vst [vmem:[#allocation35_spill] sm:$0xff] %v23923_v37  ;;  %v11312_v18 = vrot.slane %v11304_v62, %v21679_v0  ;;  %v11319_v6 = vrot.slane %v11305_v11, %v21679_v0 }
 0x575   : > { %v7361_v8 = vpop.trf.xlu0  ;;  %v23954_v19 = vrot.slane %v11832_v25, %v21679_v0 }
 0x576   : > { %v7841_v60 = vpop.trf.xlu1  ;;  %v11352_v3 = vcombine.low %v23857_v52, %v11312_v18  ;;  %v11353_v62 = vcombine.high %v23857_v52, %v11312_v18  ;;  %v11368_v11 = vcombine.low %v23860_v26, %v11319_v6  ;;  %v11369_v43 = vcombine.high %v23860_v26, %v11319_v6 }
 0x577   : > { %v11576_v36 = vcombine.low %v7297_v32, %v7361_v8  ;;  %v11577_v59 = vcombine.high %v7297_v32, %v7361_v8  ;;  %v12104_v49 = vcombine.low %v7777_v1, %v7841_v60  ;;  %v12105_v53 = vcombine.high %v7777_v1, %v7841_v60  ;;  %v29028_v1 = vld [vmem:[#allocation45_spill] sm:$0xff] }
 0x578   : > { %v11360_v15 = vrot.slane %v11352_v3, %v21690_v23  ;;  %v11367_v55 = vrot.slane %v11353_v62, %v21690_v23  ;;  %v11376_v52 = vrot.slane %v11368_v11, %v21690_v23  ;;  %v11383_v18 = vrot.slane %v11369_v43, %v21690_v23  ;;  %v29029_v3 = vld [vmem:[#allocation14_spill] sm:$0xff] }
 0x579   : > { %v11584_v26 = vrot.slane %v11576_v36, %v21679_v0  ;;  %v11591_v32 = vrot.slane %v11577_v59, %v21679_v0  ;;  %v7808_v6 = vpop.trf.xlu0  ;;  %9200 = vxpose.xlu0.b32.start.end [1/1] (short) (narrow) %v29028_v1, 16  ;;  %v23964_v8 = vrot.slane %v11833_v56, %v21679_v0  ;;  %v23967_v60 = vrot.slane %v12104_v49, %v21679_v0 }
 0x57a   : > { %v23961_v50 = vpop.trf.xlu1  ;;  %v23970_v25 = vrot.slane %v12105_v53, %v21679_v0  ;;  %9296 = vxpose.xlu1.b32.start.end [1/1] (short) (narrow) %v29029_v3, 16  ;;  %v23974_v36 = vrot.slane %v15296_v9, %v21690_v23  ;;  %v23979_v56 = vrot.slane %v15328_v13, %v21690_v23  ;;  %v15432_v49 = vcombine.low %v23836_v40, %v23936_v63 }
 0x57b   : > { %v11624_v59 = vcombine.low %v23899_v41, %v11584_v26  ;;  %v11625_v62 = vcombine.high %v23899_v41, %v11584_v26  ;;  %v11640_v11 = vcombine.low %v11575_v58, %v11591_v32  ;;  %v11641_v43 = vcombine.high %v11575_v58, %v11591_v32 }
 0x57c   : > { %29030 = vst [vmem:[#allocation45_spill] sm:$0xff] %v23974_v36  ;;  %29031 = vst [vmem:[#allocation14_spill] sm:$0xff] %v23979_v56  ;;  %v15464_v53 = vcombine.low %v23839_v45, %v23949_v30  ;;  %v23988_v9 = vrot.slane %v11360_v15, %v21679_v0  ;;  %v23991_v3 = vrot.slane %v11367_v55, %v21679_v0 }
 0x57d   : > { %v23994_v41 = vrot.slane %v11376_v52, %v21679_v0  ;;  %v23997_v58 = vrot.slane %v11383_v18, %v21679_v0  ;;  %v7809_v13 = vpop.trf.xlu0  ;;  %v24004_v1 = vrot.slane %v15432_v49, %v21690_v23  ;;  %v11632_v52 = vrot.slane %v11624_v59, %v21690_v23  ;;  %v29034_v59 = vld [vmem:[#allocation47_spill] sm:$0xff] }
 0x57e   : > { %v23999_v26 = vpop.trf.xlu1  ;;  %v24007_v15 = vrot.slane %v15464_v53, %v21690_v23  ;;  %v11639_v18 = vrot.slane %v11625_v62, %v21690_v23  ;;  %v11648_v37 = vrot.slane %v11640_v11, %v21690_v23  ;;  %v11655_v2 = vrot.slane %v11641_v43, %v21690_v23  ;;  %v29035_v11 = vld [vmem:[#allocation15_spill] sm:$0xff] }
 0x57f   : > { %29032 = vst [vmem:[#allocation117_spill] sm:$0xff] %v24004_v1  ;;  %v15025_v55 = vcombine.high %v23752_v35, %v23851_v48  ;;  %v15057_v43 = vcombine.high %v23755_v31, %v23854_v29  ;;  %v15161_v32 = vcombine.high %v23758_v27, %v23876_v54  ;;  %v15193_v49 = vcombine.high %v23761_v5, %v23879_v17 }
 0x580   : > { %29033 = vst [vmem:[#allocation118_spill] sm:$0xff] %v24007_v15  ;;  %v24053_v5 = vrot.slane %v11639_v18, %v21679_v0 }
 0x581   : > { %v7872_v7 = vpop.trf.xlu0  ;;  %9264 = vxpose.xlu0.b32.start.end [1/1] (short) (narrow) %v29034_v59, 16  ;;  %v24038_v59 = vrot.slane %v15025_v55, %v21690_v23  ;;  %v24044_v31 = vrot.slane %v15161_v32, %v21690_v23  ;;  %v24047_v27 = vrot.slane %v15193_v49, %v21690_v23  ;;  %v29040_v55 = vld [vmem:[#allocation37_spill] sm:$0xff] }
 0x582   : > { %v24024_v62 = vpop.trf.xlu1  ;;  %9360 = vxpose.xlu1.b32.start.end [1/1] (short) (narrow) %v29035_v11, 16  ;;  %v11848_v53 = vcombine.low %v7808_v6, %v7872_v7  ;;  %v11849_v56 = vcombine.high %v7808_v6, %v7872_v7  ;;  %v24041_v11 = vrot.slane %v15057_v43, %v21690_v23  ;;  %v24050_v7 = vrot.slane %v11632_v52, %v21679_v0 }
 0x583   : > { %29036 = vst [vmem:[#allocation47_spill] sm:$0xff] %v24038_v59  ;;  %29038 = vst [vmem:[#allocation119_spill] sm:$0xff] %v24044_v31 }
 0x584   : > { %29037 = vst [vmem:[#allocation15_spill] sm:$0xff] %v24041_v11  ;;  %29039 = vst [vmem:[#allocation120_spill] sm:$0xff] %v24047_v27  ;;  %v11856_v29 = vrot.slane %v11848_v53, %v21679_v0  ;;  %v11863_v54 = vrot.slane %v11849_v56, %v21679_v0 }
 0x585   : > { %v7873_v17 = vpop.trf.xlu0 }
 0x586   : > { %v24057_v6 = vpop.trf.xlu1  ;;  %v11896_v49 = vcombine.low %v23954_v19, %v11856_v29  ;;  %v11897_v53 = vcombine.high %v23954_v19, %v11856_v29  ;;  %v11912_v56 = vcombine.low %v23964_v8, %v11863_v54  ;;  %v11913_v43 = vcombine.high %v23964_v8, %v11863_v54 }
 0x587   : > { %v12120_v48 = vcombine.low %v7809_v13, %v7873_v17  ;;  %v12121_v35 = vcombine.high %v7809_v13, %v7873_v17  ;;  %v24080_v29 = vrot.slane %v11648_v37, %v21679_v0  ;;  %v24083_v8 = vrot.slane %v11655_v2, %v21679_v0 }
 0x588   : > { %v11904_v52 = vrot.slane %v11896_v49, %v21690_v23  ;;  %v11911_v18 = vrot.slane %v11897_v53, %v21690_v23  ;;  %v11920_v36 = vrot.slane %v11912_v56, %v21690_v23  ;;  %v11927_v19 = vrot.slane %v11913_v43, %v21690_v23 }
 0x589   : > { %v12128_v13 = vrot.slane %v12120_v48, %v21679_v0  ;;  %v12135_v54 = vrot.slane %v12121_v35, %v21679_v0  ;;  %v8192_v17 = vpop.trf.xlu0  ;;  %9328 = vxpose.xlu0.b32.start.end [1/1] (short) (narrow) %v29040_v55, 16  ;;  %v29041_v48 = vld [vmem:[#allocation38_spill] sm:$0xff]  ;;  %v29060_v28 = vcombine.high %v23999_v26, %v24057_v6 }
 0x58a   : > { %v24088_v49 = vpop.trf.xlu1  ;;  %v24091_v53 = vrot.slane %v11904_v52, %v21679_v0  ;;  %v24094_v56 = vrot.slane %v11911_v18, %v21679_v0  ;;  %v24097_v37 = vrot.slane %v11920_v36, %v21679_v0  ;;  %v24100_v2 = vrot.slane %v11927_v19, %v21679_v0  ;;  %9424 = vxpose.xlu1.b32.start.end [1/1] (short) (narrow) %v29041_v48, 16 }
 0x58b   : > { %v12168_v35 = vcombine.low %v23967_v60, %v12128_v13  ;;  %v12169_v55 = vcombine.high %v23967_v60, %v12128_v13  ;;  %v12184_v43 = vcombine.low %v23970_v25, %v12135_v54  ;;  %v12185_v52 = vcombine.high %v23970_v25, %v12135_v54 }
 0x58c   : > { %v16112_v18 = vcombine.low %v23988_v9, %v24091_v53  ;;  %v16144_v36 = vcombine.low %v23991_v3, %v24094_v56  ;;  %v16248_v19 = vcombine.low %v23994_v41, %v24097_v37  ;;  %v16280_v48 = vcombine.low %v23997_v58, %v24100_v2 }
 0x58d   : > { %v12176_v32 = vrot.slane %v12168_v35, %v21690_v23  ;;  %v12183_v60 = vrot.slane %v12169_v55, %v21690_v23  ;;  %v12192_v13 = vrot.slane %v12184_v43, %v21690_v23  ;;  %v12199_v25 = vrot.slane %v12185_v52, %v21690_v23  ;;  %v8193_v54 = vpop.trf.xlu0 }
 0x58e   : > { %v24119_v15 = vpop.trf.xlu1  ;;  %v24122_v1 = vrot.slane %v16112_v18, %v21690_v23  ;;  %v24125_v34 = vrot.slane %v16144_v36, %v21690_v23  ;;  %v24128_v16 = vrot.slane %v16248_v19, %v21690_v23  ;;  %v24131_v35 = vrot.slane %v16280_v48, %v21690_v23 }
 0x58f   : > { %v24134_v55 = vrot.slane %v12176_v32, %v21679_v0  ;;  %v24137_v43 = vrot.slane %v12183_v60, %v21679_v0  ;;  %v24140_v52 = vrot.slane %v12192_v13, %v21679_v0  ;;  %v24143_v18 = vrot.slane %v12199_v25, %v21679_v0 }
 0x590   : > { %29042 = vst [vmem:[#allocation37_spill] sm:$0xff] %v24122_v1  ;;  %29043 = vst [vmem:[#allocation38_spill] sm:$0xff] %v24125_v34  ;;  %v29049_v1 = vld [vmem:[#allocation20_spill] sm:$0xff]  ;;  %v12559_v14 = vrot.slane %v29060_v28, %v21679_v0 }
 0x591   : > { %29044 = vst [vmem:[#allocation121_spill] sm:$0xff] %v24128_v16  ;;  %29045 = vst [vmem:[#allocation122_spill] sm:$0xff] %v24131_v35  ;;  %v8256_v60 = vpop.trf.xlu0  ;;  %9392 = vxpose.xlu0.b32.start.end [1/1] (short) (narrow) %v29046_v51, 16  ;;  %v16384_v25 = vcombine.low %v24050_v7, %v24134_v55  ;;  %v16416_v36 = vcombine.low %v24053_v5, %v24137_v43  ;;  %v16520_v19 = vcombine.low %v24080_v29, %v24140_v52  ;;  %v29048_v51 = vld [vmem:[#allocation19_spill] sm:$0xff] }
 0x592   : > { %v8736_v13 = vpop.trf.xlu1  ;;  %9488 = vxpose.xlu1.b32.start.end [1/1] (short) (narrow) %v29047_v22, 16  ;;  %v12288_v39 = vcombine.low %v8192_v17, %v8256_v60  ;;  %v12289_v48 = vcombine.high %v8192_v17, %v8256_v60  ;;  %v29050_v35 = vcombine.high %v29048_v51, %v29049_v1  ;;  %v16552_v61 = vcombine.low %v24083_v8, %v24143_v18 }
 0x593   : > { %v12816_v34 = vcombine.low %v24088_v49, %v8736_v13  ;;  %v12817_v32 = vcombine.high %v24088_v49, %v8736_v13  ;;  %v24170_v16 = vrot.slane %v16384_v25, %v21690_v23  ;;  %v24173_v33 = vrot.slane %v16416_v36, %v21690_v23  ;;  %29059 = vst [vmem:[#allocation20_spill] sm:$0xff] %v24193_v38 }
 0x594   : > { %v24167_v22 = vrot.slane %v29050_v35, %v21690_v23  ;;  %v29054_v17 = vcombine.low %v23961_v50, %v24024_v62  ;;  %v29055_v1 = vcombine.high %v23961_v50, %v24024_v62  ;;  %v12296_v60 = vrot.slane %v12288_v39, %v21679_v0 }
 0x595   : > { %29052 = vst [vmem:[#allocation39_spill] sm:$0xff] %v24170_v16  ;;  %29053 = vst [vmem:[#allocation19_spill] sm:$0xff] %v24173_v33  ;;  %v12303_v13 = vrot.slane %v12289_v48, %v21679_v0  ;;  %v29056_v36 = vcombine.low %v23999_v26, %v24057_v6  ;;  %v8257_v51 = vpop.trf.xlu0  ;;  %v24209_v50 = vrot.slane %v16520_v19, %v21690_v23  ;;  %v29063_v26 = vld [vmem:[#allocation49_spill] sm:$0xff]  ;;  %v29064_v19 = vld [vmem:[#allocation40_spill] sm:$0xff] }
 0x596   : > { %29051 = vst [vmem:[#allocation48_spill] sm:$0xff] %v24167_v22  ;;  %v12280_v49 = vrot.slane %v29054_v17, %v21679_v0  ;;  %v12287_v35 = vrot.slane %v29055_v1, %v21679_v0  ;;  %v8737_v47 = vpop.trf.xlu1  ;;  %v12560_v46 = vcombine.low %v8193_v54, %v8257_v51  ;;  %v12561_v4 = vcombine.high %v8193_v54, %v8257_v51 }
 0x597   : > { %v12552_v25 = vrot.slane %v29056_v36, %v21679_v0  ;;  %v13088_v36 = vcombine.low %v24119_v15, %v8737_v47  ;;  %v13089_v42 = vcombine.high %v24119_v15, %v8737_v47  ;;  %v24206_v17 = vrot.slane %v12816_v34, %v21679_v0  ;;  %29061 = vst [vmem:[#allocation53_spill] sm:$0xff] %v24209_v50  ;;  %v29084_v50 = vld [vmem:[#allocation46_spill] sm:$0xff] }
 0x598   : > { %v12336_v39 = vcombine.low %v12280_v49, %v12296_v60  ;;  %v12337_v62 = vcombine.high %v12280_v49, %v12296_v60  ;;  %v12352_v48 = vcombine.low %v12287_v35, %v12303_v13  ;;  %v12353_v1 = vcombine.high %v12287_v35, %v12303_v13 }
 0x599   : > { %v24212_v49 = vrot.slane %v16552_v61, %v21690_v23  ;;  %v12568_v47 = vrot.slane %v12560_v46, %v21679_v0  ;;  %v12575_v15 = vrot.slane %v12561_v4, %v21679_v0  ;;  %v8704_v60 = vpop.trf.xlu0  ;;  %9456 = vxpose.xlu0.b32.start.end [1/1] (short) (narrow) %v29063_v26, 16  ;;  %v24224_v61 = vrot.slane %v12817_v32, %v21679_v0 }
 0x59a   : > { %v12344_v54 = vrot.slane %v12336_v39, %v21690_v23  ;;  %v12351_v35 = vrot.slane %v12337_v62, %v21690_v23  ;;  %v24219_v28 = vpop.trf.xlu1  ;;  %v12360_v34 = vrot.slane %v12352_v48, %v21690_v23  ;;  %v12367_v6 = vrot.slane %v12353_v1, %v21690_v23  ;;  %9552 = vxpose.xlu1.b32.start.end [1/1] (short) (narrow) %v29064_v19, 16 }
 0x59b   : > { %29062 = vst [vmem:[#allocation123_spill] sm:$0xff] %v24212_v49  ;;  %v29065_v46 = vcombine.high %v23810_v21, %v23893_v20  ;;  %v12608_v4 = vcombine.low %v12552_v25, %v12568_v47  ;;  %v12609_v51 = vcombine.high %v12552_v25, %v12568_v47  ;;  %v12624_v39 = vcombine.low %v12559_v14, %v12575_v15  ;;  %v29083_v49 = vld [vmem:[#allocation55_spill] sm:$0xff] }
 0x59c   : > { %v12625_v62 = vcombine.high %v12559_v14, %v12575_v15  ;;  %v29067_v32 = vcombine.high %v23813_v57, %v23896_v24  ;;  %v15433_v21 = vcombine.high %v23836_v40, %v23936_v63  ;;  %v24246_v20 = vrot.slane %v12344_v54, %v21679_v0 }
 0x59d   : > { %v24231_v13 = vrot.slane %v29065_v46, %v21690_v23  ;;  %v24249_v14 = vrot.slane %v12351_v35, %v21679_v0  ;;  %v24252_v25 = vrot.slane %v13088_v36, %v21679_v0  ;;  %v24255_v47 = vrot.slane %v13089_v42, %v21679_v0  ;;  %v8705_v15 = vpop.trf.xlu0 }
 0x59e   : > { %v24241_v26 = vrot.slane %v29067_v32, %v21690_v23  ;;  %v24257_v19 = vpop.trf.xlu1  ;;  %v24260_v57 = vrot.slane %v12360_v34, %v21679_v0  ;;  %v15465_v24 = vcombine.high %v23839_v45, %v23949_v30  ;;  %v16113_v63 = vcombine.high %v23988_v9, %v24091_v53  ;;  %v29072_v53 = vld [vmem:[#allocation51_spill] sm:$0xff] }
 0x59f   : > { %29066 = vst [vmem:[#allocation49_spill] sm:$0xff] %v24231_v13  ;;  %v24269_v36 = vrot.slane %v12367_v6, %v21679_v0  ;;  %v12616_v42 = vrot.slane %v12608_v4, %v21690_v23  ;;  %v12623_v54 = vrot.slane %v12609_v51, %v21690_v23  ;;  %v24274_v35 = vrot.slane %v15433_v21, %v21690_v23  ;;  %v29073_v4 = vld [vmem:[#allocation41_spill] sm:$0xff]  ;;  %v29077_v21 = vld [vmem:[#allocation52_spill] sm:$0xff] }
 0x5a0   : > { %29068 = vst [vmem:[#allocation40_spill] sm:$0xff] %v24241_v26  ;;  %v24277_v34 = vrot.slane %v15465_v24, %v21690_v23  ;;  %v24280_v46 = vrot.slane %v16113_v63, %v21690_v23  ;;  %v16145_v45 = vcombine.high %v23991_v3, %v24094_v56  ;;  %v16249_v30 = vcombine.high %v23994_v41, %v24097_v37 }
 0x5a1   : > { %29069 = vst [vmem:[#allocation124_spill] sm:$0xff] %v24274_v35  ;;  %v8768_v9 = vpop.trf.xlu0  ;;  %9520 = vxpose.xlu0.b32.start.end [1/1] (short) (narrow) %v29072_v53, 16  ;;  %v16281_v51 = vcombine.high %v23997_v58, %v24100_v2  ;;  %v24316_v40 = vrot.slane %v12616_v42, %v21679_v0 }
 0x5a2   : > { %29070 = vst [vmem:[#allocation125_spill] sm:$0xff] %v24277_v34  ;;  %29071 = vst [vmem:[#allocation126_spill] sm:$0xff] %v24280_v46  ;;  %v24287_v6 = vpop.trf.xlu1  ;;  %9616 = vxpose.xlu1.b32.start.end [1/1] (short) (narrow) %v29073_v4, 16  ;;  %v12832_v3 = vcombine.low %v8704_v60, %v8768_v9  ;;  %v12833_v56 = vcombine.high %v8704_v60, %v8768_v9  ;;  %v24303_v63 = vrot.slane %v16145_v45, %v21690_v23 }
 0x5a3   : > { %v24306_v58 = vrot.slane %v16249_v30, %v21690_v23  ;;  %v24309_v2 = vrot.slane %v16281_v51, %v21690_v23  ;;  %v12632_v60 = vrot.slane %v12624_v39, %v21690_v23  ;;  %v12639_v9 = vrot.slane %v12625_v62, %v21690_v23 }
 0x5a4   : > { %29074 = vst [vmem:[#allocation51_spill] sm:$0xff] %v24303_v63  ;;  %v12840_v53 = vrot.slane %v12832_v3, %v21679_v0  ;;  %v12847_v4 = vrot.slane %v12833_v56, %v21679_v0  ;;  %v24319_v45 = vrot.slane %v12623_v54, %v21679_v0 }
 0x5a5   : > { %29075 = vst [vmem:[#allocation41_spill] sm:$0xff] %v24306_v58  ;;  %29076 = vst [vmem:[#allocation127_spill] sm:$0xff] %v24309_v2  ;;  %v8769_v24 = vpop.trf.xlu0 }
 0x5a6   : > { %v24321_v30 = vpop.trf.xlu1  ;;  %v12880_v62 = vcombine.low %v24206_v17, %v12840_v53  ;;  %v12881_v3 = vcombine.high %v24206_v17, %v12840_v53  ;;  %v12896_v56 = vcombine.low %v24224_v61, %v12847_v4  ;;  %v12897_v42 = vcombine.high %v24224_v61, %v12847_v4 }
 0x5a7   : > { %v13104_v1 = vcombine.low %v8705_v15, %v8769_v24  ;;  %v13105_v54 = vcombine.high %v8705_v15, %v8769_v24  ;;  %v24340_v53 = vrot.slane %v12632_v60, %v21679_v0  ;;  %v24343_v61 = vrot.slane %v12639_v9, %v21679_v0 }
 0x5a8   : > { %v12888_v51 = vrot.slane %v12880_v62, %v21690_v23  ;;  %v12895_v39 = vrot.slane %v12881_v3, %v21690_v23  ;;  %v12904_v32 = vrot.slane %v12896_v56, %v21690_v23  ;;  %v12911_v17 = vrot.slane %v12897_v42, %v21690_v23 }
 0x5a9   : > { %v13112_v15 = vrot.slane %v13104_v1, %v21679_v0  ;;  %v13119_v24 = vrot.slane %v13105_v54, %v21679_v0  ;;  %v6400_v4 = vpop.trf.xlu0  ;;  %9584 = vxpose.xlu0.b32.start.end [1/1] (short) (narrow) %v29077_v21, 16  ;;  %v29078_v1 = vld [vmem:[#allocation42_spill] sm:$0xff] }
 0x5aa   : > { %v24348_v62 = vpop.trf.xlu1  ;;  %v24351_v3 = vrot.slane %v12888_v51, %v21679_v0  ;;  %v24354_v56 = vrot.slane %v12895_v39, %v21679_v0  ;;  %v24357_v60 = vrot.slane %v12904_v32, %v21679_v0  ;;  %v24360_v9 = vrot.slane %v12911_v17, %v21679_v0  ;;  %9680 = vxpose.xlu1.b32.start.end [1/1] (short) (narrow) %v29078_v1, 16 }
 0x5ab   : > { %v13152_v42 = vcombine.low %v24252_v25, %v13112_v15  ;;  %v13153_v21 = vcombine.high %v24252_v25, %v13112_v15  ;;  %v13168_v54 = vcombine.low %v24255_v47, %v13119_v24  ;;  %v13169_v51 = vcombine.high %v24255_v47, %v13119_v24 }
 0x5ac   : > { %v16808_v39 = vcombine.low %v24260_v57, %v24357_v60  ;;  %v16840_v32 = vcombine.low %v24269_v36, %v24360_v9  ;;  %v16672_v17 = vcombine.low %v24246_v20, %v24351_v3  ;;  %v16704_v1 = vcombine.low %v24249_v14, %v24354_v56 }
 0x5ad   : > { %v13160_v48 = vrot.slane %v13152_v42, %v21690_v23  ;;  %v13167_v25 = vrot.slane %v13153_v21, %v21690_v23  ;;  %v13176_v15 = vrot.slane %v13168_v54, %v21690_v23  ;;  %v13183_v47 = vrot.slane %v13169_v51, %v21690_v23  ;;  %v6401_v24 = vpop.trf.xlu0 }
 0x5ae   : > { %v24379_v37 = vpop.trf.xlu1  ;;  %v24382_v41 = vrot.slane %v16808_v39, %v21690_v23  ;;  %v24385_v33 = vrot.slane %v16840_v32, %v21690_v23  ;;  %v24388_v16 = vrot.slane %v16672_v17, %v21690_v23  ;;  %v24391_v42 = vrot.slane %v16704_v1, %v21690_v23 }
 0x5af   : > { %v24394_v21 = vrot.slane %v13160_v48, %v21679_v0  ;;  %v24397_v54 = vrot.slane %v13167_v25, %v21679_v0  ;;  %v24400_v51 = vrot.slane %v13176_v15, %v21679_v0  ;;  %v24403_v39 = vrot.slane %v13183_v47, %v21679_v0 }
 0x5b0   : > { %29079 = vst [vmem:[#allocation52_spill] sm:$0xff] %v24382_v41  ;;  %29080 = vst [vmem:[#allocation42_spill] sm:$0xff] %v24385_v33 }
 0x5b1   : > { %29081 = vst [vmem:[#allocation128_spill] sm:$0xff] %v24388_v16  ;;  %29082 = vst [vmem:[#allocation129_spill] sm:$0xff] %v24391_v42  ;;  %v6464_v25 = vpop.trf.xlu0  ;;  %9648 = vxpose.xlu0.b32.start.end [1/1] (short) (narrow) %v29083_v49, 16  ;;  %v17080_v47 = vcombine.low %v24340_v53, %v24400_v51  ;;  %v17112_v32 = vcombine.low %v24343_v61, %v24403_v39  ;;  %v16944_v17 = vcombine.low %v24316_v40, %v24394_v21 }
 0x5b2   : > { %v6944_v15 = vpop.trf.xlu1  ;;  %9744 = vxpose.xlu1.b32.start.end [1/1] (short) (narrow) %v29084_v50, 16  ;;  %v10248_v12 = vcombine.low %v6400_v4, %v6464_v25  ;;  %v10249_v1 = vcombine.high %v6400_v4, %v6464_v25  ;;  %v24425_v49 = vcombine.high %v24167_v22, %v29057_v10  ;;  %v16976_v16 = vcombine.low %v24319_v45, %v24397_v54 }
 0x5b3   : > { %v10776_v33 = vcombine.low %v24348_v62, %v6944_v15  ;;  %v10777_v48 = vcombine.high %v24348_v62, %v6944_v15  ;;  %v24428_v50 = vrot.slane %v17080_v47, %v21690_v23  ;;  %v24431_v42 = vrot.slane %v17112_v32, %v21690_v23 }
 0x5b4   : > { %29085 = vst [vmem:[#allocation55_spill] sm:$0xff] %v24425_v49  ;;  %v29088_v4 = vcombine.low %v24219_v28, %v24287_v6  ;;  %v29089_v62 = vcombine.high %v24219_v28, %v24287_v6  ;;  %v10256_v15 = vrot.slane %v10248_v12, %v21679_v0  ;;  %v10263_v47 = vrot.slane %v10249_v1, %v21679_v0 }
 0x5b5   : > { %29086 = vst [vmem:[#allocation46_spill] sm:$0xff] %v24428_v50  ;;  %29087 = vst [vmem:[#allocation130_spill] sm:$0xff] %v24431_v42  ;;  %v6465_v41 = vpop.trf.xlu0  ;;  %v29090_v28 = vcombine.high %v24050_v7, %v24134_v55  ;;  %v24464_v38 = vrot.slane %v16944_v17, %v21690_v23  ;;  %v24467_v7 = vrot.slane %v16976_v16, %v21690_v23  ;;  %v29098_v16 = vld [vmem:[#allocation56_spill] sm:$0xff] }
 0x5b6   : > { %v10240_v25 = vrot.slane %v29088_v4, %v21679_v0  ;;  %v10247_v10 = vrot.slane %v29089_v62, %v21679_v0  ;;  %v6945_v32 = vpop.trf.xlu1  ;;  %v16673_v4 = vcombine.high %v24246_v20, %v24351_v3  ;;  %v10520_v2 = vcombine.low %v6401_v24, %v6465_v41 }
 0x5b7   : > { %v24455_v6 = vrot.slane %v29090_v28, %v21690_v23  ;;  %v10521_v22 = vcombine.high %v6401_v24, %v6465_v41  ;;  %v11048_v49 = vcombine.low %v24379_v37, %v6945_v32  ;;  %v11049_v46 = vcombine.high %v24379_v37, %v6945_v32  ;;  %29093 = vst [vmem:[#allocation132_spill] sm:$0xff] %v24464_v38  ;;  %v29142_v38 = vld [vmem:[#allocation63_spill] sm:$0xff] }
 0x5b8   : > { %v10296_v12 = vcombine.low %v10240_v25, %v10256_v15  ;;  %v10297_v62 = vcombine.high %v10240_v25, %v10256_v15  ;;  %v10312_v1 = vcombine.low %v10247_v10, %v10263_v47  ;;  %v10313_v58 = vcombine.high %v10247_v10, %v10263_v47  ;;  %29094 = vst [vmem:[#allocation133_spill] sm:$0xff] %v24467_v7  ;;  %v29141_v7 = vld [vmem:[#allocation62_spill] sm:$0xff] }
 0x5b9   : > { %29091 = vst [vmem:[#allocation131_spill] sm:$0xff] %v24455_v6  ;;  %v29092_v20 = vcombine.low %v24257_v19, %v24321_v30  ;;  %v29095_v55 = vcombine.high %v24053_v5, %v24137_v43  ;;  %v29097_v37 = vcombine.high %v24257_v19, %v24321_v30  ;;  %v10528_v10 = vrot.slane %v10520_v2, %v21679_v0  ;;  %v6912_v15 = vpop.trf.xlu0  ;;  %v29099_v30 = vld [vmem:[#allocation27_spill] sm:$0xff] }
 0x5ba   : > { %v10304_v25 = vrot.slane %v10296_v12, %v21690_v23  ;;  %v10535_v17 = vrot.slane %v10521_v22, %v21679_v0  ;;  %9712 = vxpose.xlu0.b32.start.end [1/1] (short) (narrow) %v29098_v16, 16  ;;  %v24483_v47 = vpop.trf.xlu1  ;;  %v10311_v5 = vrot.slane %v10297_v62, %v21690_v23  ;;  %v10320_v43 = vrot.slane %v10312_v1, %v21690_v23  ;;  %v29115_v16 = vld [vmem:[#allocation48_spill] sm:$0xff] }
 0x5bb   : > { %v10512_v3 = vrot.slane %v29092_v20, %v21679_v0  ;;  %v24473_v41 = vrot.slane %v29095_v55, %v21690_v23  ;;  %v10519_v24 = vrot.slane %v29097_v37, %v21679_v0  ;;  %v24488_v32 = vrot.slane %v10776_v33, %v21679_v0  ;;  %9808 = vxpose.xlu1.b32.start.end [1/1] (short) (narrow) %v29099_v30, 16  ;;  %v29127_v27 = vld [vmem:[#allocation55_spill] sm:$0xff] }
 0x5bc   : > { %v24491_v19 = vrot.slane %v10777_v48, %v21679_v0  ;;  %v24499_v1 = vrot.slane %v16673_v4, %v21690_v23  ;;  %v16705_v33 = vcombine.high %v24249_v14, %v24354_v56  ;;  %v10327_v48 = vrot.slane %v10313_v58, %v21690_v23 }
 0x5bd   : > { %29096 = vst [vmem:[#allocation134_spill] sm:$0xff] %v24473_v41  ;;  %v10568_v2 = vcombine.low %v10512_v3, %v10528_v10  ;;  %v10569_v28 = vcombine.high %v10512_v3, %v10528_v10  ;;  %v10584_v22 = vcombine.low %v10519_v24, %v10535_v17  ;;  %v10585_v12 = vcombine.high %v10519_v24, %v10535_v17  ;;  %v6913_v24 = vpop.trf.xlu0 }
 0x5be   : > { %29100 = vst [vmem:[#allocation56_spill] sm:$0xff] %v24499_v1  ;;  %v24505_v55 = vrot.slane %v10304_v25, %v21679_v0  ;;  %v24508_v3 = vrot.slane %v11048_v49, %v21679_v0  ;;  %v24511_v37 = vrot.slane %v11049_v46, %v21679_v0  ;;  %v24513_v10 = vpop.trf.xlu1  ;;  %v24516_v4 = vrot.slane %v16705_v33, %v21690_v23 }
 0x5bf   : > { %v16809_v14 = vcombine.high %v24260_v57, %v24357_v60  ;;  %v16841_v58 = vcombine.high %v24269_v36, %v24360_v9  ;;  %v16945_v56 = vcombine.high %v24316_v40, %v24394_v21  ;;  %v24525_v49 = vrot.slane %v10311_v5, %v21679_v0  ;;  %v29105_v9 = vld [vmem:[#allocation57_spill] sm:$0xff]  ;;  %v29106_v5 = vld [vmem:[#allocation31_spill] sm:$0xff] }
 0x5c0   : > { %29101 = vst [vmem:[#allocation27_spill] sm:$0xff] %v24516_v4  ;;  %v24528_v46 = vrot.slane %v10320_v43, %v21679_v0  ;;  %v10576_v25 = vrot.slane %v10568_v2, %v21690_v23  ;;  %v10583_v17 = vrot.slane %v10569_v28, %v21690_v23  ;;  %v16977_v43 = vcombine.high %v24319_v45, %v24397_v54 }
 0x5c1   : > { %v24535_v57 = vrot.slane %v16809_v14, %v21690_v23  ;;  %v24538_v36 = vrot.slane %v16841_v58, %v21690_v23  ;;  %v24541_v40 = vrot.slane %v16945_v56, %v21690_v23  ;;  %v6976_v60 = vpop.trf.xlu0  ;;  %9776 = vxpose.xlu0.b32.start.end [1/1] (short) (narrow) %v29105_v9, 16  ;;  %v17081_v30 = vcombine.high %v24340_v53, %v24400_v51 }
 0x5c2   : > { %v7456_v21 = vpop.trf.xlu1  ;;  %9872 = vxpose.xlu1.b32.start.end [1/1] (short) (narrow) %v29106_v5, 16  ;;  %v17113_v2 = vcombine.high %v24343_v61, %v24403_v39  ;;  %v10792_v28 = vcombine.low %v6912_v15, %v6976_v60  ;;  %v10793_v33 = vcombine.high %v6912_v15, %v6976_v60  ;;  %v24556_v9 = vrot.slane %v16977_v43, %v21690_v23 }
 0x5c3   : > { %29102 = vst [vmem:[#allocation135_spill] sm:$0xff] %v24535_v57  ;;  %29103 = vst [vmem:[#allocation136_spill] sm:$0xff] %v24538_v36  ;;  %v11320_v14 = vcombine.low %v24483_v47, %v7456_v21  ;;  %v11321_v58 = vcombine.high %v24483_v47, %v7456_v21  ;;  %v24559_v45 = vrot.slane %v17081_v30, %v21690_v23  ;;  %v29153_v36 = vld [vmem:[#allocation65_spill] sm:$0xff] }
 0x5c4   : > { %29104 = vst [vmem:[#allocation137_spill] sm:$0xff] %v24541_v40  ;;  %29107 = vst [vmem:[#allocation57_spill] sm:$0xff] %v24556_v9  ;;  %v24562_v53 = vrot.slane %v17113_v2, %v21690_v23  ;;  %v10592_v61 = vrot.slane %v10584_v22, %v21690_v23  ;;  %v10599_v54 = vrot.slane %v10585_v12, %v21690_v23 }
 0x5c5   : > { %29108 = vst [vmem:[#allocation31_spill] sm:$0xff] %v24559_v45  ;;  %v10800_v51 = vrot.slane %v10792_v28, %v21679_v0  ;;  %v10807_v39 = vrot.slane %v10793_v33, %v21679_v0  ;;  %v6977_v15 = vpop.trf.xlu0  ;;  %v24587_v5 = vrot.slane %v10327_v48, %v21679_v0  ;;  %v24590_v22 = vrot.slane %v10576_v25, %v21679_v0 }
 0x5c6   : > { %29109 = vst [vmem:[#allocation138_spill] sm:$0xff] %v24562_v53  ;;  %v24568_v47 = vpop.trf.xlu1  ;;  %v11064_v28 = vcombine.low %v6913_v24, %v6977_v15  ;;  %v11065_v33 = vcombine.high %v6913_v24, %v6977_v15  ;;  %v29110_v15 = vld [vmem:[#allocation50_spill] sm:$0xff]  ;;  %v29143_v42 = vcombine.high %v29141_v7, %v29142_v38 }
 0x5c7   : > { %v10840_v12 = vcombine.low %v24488_v32, %v10800_v51  ;;  %v10841_v43 = vcombine.high %v24488_v32, %v10800_v51  ;;  %v10856_v30 = vcombine.low %v24491_v19, %v10807_v39  ;;  %v10857_v2 = vcombine.high %v24491_v19, %v10807_v39 }
 0x5c8   : > { %v11592_v60 = vcombine.low %v24513_v10, %v24568_v47  ;;  %v11593_v21 = vcombine.high %v24513_v10, %v24568_v47  ;;  %v24593_v32 = vrot.slane %v10583_v17, %v21679_v0  ;;  %v24596_v51 = vrot.slane %v10592_v61, %v21679_v0 }
 0x5c9   : > { %v24599_v19 = vrot.slane %v10599_v54, %v21679_v0  ;;  %v10848_v24 = vrot.slane %v10840_v12, %v21690_v23  ;;  %v11072_v39 = vrot.slane %v11064_v28, %v21679_v0  ;;  %v11079_v10 = vrot.slane %v11065_v33, %v21679_v0  ;;  %v7424_v48 = vpop.trf.xlu0  ;;  %9840 = vxpose.xlu0.b32.start.end [1/1] (short) (narrow) %v29110_v15, 16 }
 0x5ca   : > { %v24605_v25 = vpop.trf.xlu1  ;;  %v10855_v17 = vrot.slane %v10841_v43, %v21690_v23  ;;  %v10864_v47 = vrot.slane %v10856_v30, %v21690_v23  ;;  %v10871_v61 = vrot.slane %v10857_v2, %v21690_v23  ;;  %v24611_v54 = vrot.slane %v11320_v14, %v21679_v0  ;;  %9936 = vxpose.xlu1.b32.start.end [1/1] (short) (narrow) %v29058_v44, 16  ;;  %v29114_v14 = vld [vmem:[#allocation54_spill] sm:$0xff] }
 0x5cb   : > { %v11112_v12 = vcombine.low %v24508_v3, %v11072_v39  ;;  %v11113_v28 = vcombine.high %v24508_v3, %v11072_v39  ;;  %v11128_v33 = vcombine.low %v24511_v37, %v11079_v10  ;;  %v11129_v15 = vcombine.high %v24511_v37, %v11079_v10 }
 0x5cc   : > { %v16521_v44 = vcombine.high %v24080_v29, %v24140_v52  ;;  %v24627_v2 = vrot.slane %v10848_v24, %v21679_v0  ;;  %v24630_v3 = vrot.slane %v11321_v58, %v21679_v0  ;;  %v24634_v39 = vrot.slane %v11592_v60, %v21679_v0 }
 0x5cd   : > { %v11120_v37 = vrot.slane %v11112_v12, %v21690_v23  ;;  %v7425_v10 = vpop.trf.xlu0  ;;  %v24639_v30 = vrot.slane %v10855_v17, %v21679_v0  ;;  %v16553_v29 = vcombine.high %v24083_v8, %v24143_v18  ;;  %v24648_v24 = vrot.slane %v10864_v47, %v21679_v0 }
 0x5ce   : > { %v24636_v43 = vpop.trf.xlu1  ;;  %v24651_v60 = vrot.slane %v10871_v61, %v21679_v0  ;;  %v24657_v17 = vrot.slane %v16521_v44, %v21690_v23  ;;  %v15040_v18 = vcombine.low %v24505_v55, %v24627_v2  ;;  %v11127_v41 = vrot.slane %v11113_v28, %v21690_v23 }
 0x5cf   : > { %v24654_v12 = vrot.slane %v11120_v37, %v21679_v0  ;;  %v24660_v8 = vrot.slane %v16553_v29, %v21690_v23  ;;  %v15072_v29 = vcombine.low %v24525_v49, %v24639_v30 }
 0x5d0   : > { %29111 = vst [vmem:[#allocation50_spill] sm:$0xff] %v24657_v17  ;;  %v15208_v62 = vcombine.low %v24587_v5, %v24651_v60  ;;  %v24705_v44 = vrot.slane %v11127_v41, %v21679_v0  ;;  %v24711_v13 = vrot.slane %v15040_v18, %v21690_v23  ;;  %v29120_v41 = vld [vmem:[#allocation20_spill] sm:$0xff] }
 0x5d1   : > { %29112 = vst [vmem:[#allocation139_spill] sm:$0xff] %v24660_v8  ;;  %v7488_v61 = vpop.trf.xlu0  ;;  %9904 = vxpose.xlu0.b32.start.end [1/1] (short) (narrow) %v29114_v14, 16  ;;  %v24679_v14 = vrot.slane %v11593_v21, %v21679_v0  ;;  %v11143_v21 = vrot.slane %v11129_v15, %v21690_v23  ;;  %v15312_v8 = vcombine.low %v24590_v22, %v24654_v12 }
 0x5d2   : > { %v7968_v37 = vpop.trf.xlu1  ;;  %10000 = vxpose.xlu1.b32.start.end [1/1] (short) (narrow) %v29115_v16, 16  ;;  %v11336_v20 = vcombine.low %v7424_v48, %v7488_v61  ;;  %v11337_v52 = vcombine.high %v7424_v48, %v7488_v61  ;;  %v11136_v48 = vrot.slane %v11128_v33, %v21690_v23  ;;  %v15176_v16 = vcombine.low %v24528_v46, %v24648_v24 }
 0x5d3   : > { %v11864_v26 = vcombine.low %v24605_v25, %v7968_v37  ;;  %v11865_v58 = vcombine.high %v24605_v25, %v7968_v37  ;;  %29118 = vst [vmem:[#allocation54_spill] sm:$0xff] %v24711_v13  ;;  %v24774_v34 = vrot.slane %v15312_v8, %v21690_v23 }
 0x5d4   : > { %v11344_v61 = vrot.slane %v11336_v20, %v21679_v0  ;;  %v11351_v25 = vrot.slane %v11337_v52, %v21679_v0  ;;  %v24708_v56 = vrot.slane %v11136_v48, %v21679_v0  ;;  %v24724_v48 = vrot.slane %v11143_v21, %v21679_v0 }
 0x5d5   : > { %v7489_v37 = vpop.trf.xlu0  ;;  %29123 = vst [vmem:[#allocation141_spill] sm:$0xff] %v24774_v34 }
 0x5d6   : > { %v7969_v6 = vpop.trf.xlu1  ;;  %v11384_v28 = vcombine.low %v24611_v54, %v11344_v61  ;;  %v11385_v33 = vcombine.high %v24611_v54, %v11344_v61  ;;  %v11400_v20 = vcombine.low %v24630_v3, %v11351_v25  ;;  %v11401_v52 = vcombine.high %v24630_v3, %v11351_v25 }
 0x5d7   : > { %v11608_v15 = vcombine.low %v7425_v10, %v7489_v37  ;;  %v11609_v17 = vcombine.high %v7425_v10, %v7489_v37  ;;  %v12136_v63 = vcombine.low %v24636_v43, %v7969_v6  ;;  %v12137_v47 = vcombine.high %v24636_v43, %v7969_v6 }
 0x5d8   : > { %v24714_v54 = vrot.slane %v15072_v29, %v21690_v23  ;;  %v11392_v3 = vrot.slane %v11384_v28, %v21690_v23  ;;  %v11399_v10 = vrot.slane %v11385_v33, %v21690_v23  ;;  %v11408_v18 = vrot.slane %v11400_v20, %v21690_v23 }
 0x5d9   : > { %v11616_v61 = vrot.slane %v11608_v15, %v21679_v0  ;;  %v11623_v6 = vrot.slane %v11609_v17, %v21679_v0  ;;  %v7936_v43 = vpop.trf.xlu0  ;;  %9968 = vxpose.xlu0.b32.start.end [1/1] (short) (narrow) %v29120_v41, 16  ;;  %v24728_v29 = vrot.slane %v11864_v26, %v21679_v0  ;;  %v24731_v37 = vrot.slane %v11865_v58, %v21679_v0 }
 0x5da   : > { %29119 = vst [vmem:[#allocation48_spill] sm:$0xff] %v24714_v54  ;;  %v24721_v25 = vpop.trf.xlu1  ;;  %v11415_v41 = vrot.slane %v11401_v52, %v21690_v23  ;;  %v24741_v20 = vrot.slane %v15176_v16, %v21690_v23  ;;  %v24744_v26 = vrot.slane %v15208_v62, %v21690_v23  ;;  %v24747_v58 = vrot.slane %v11392_v3, %v21679_v0 }
 0x5db   : > { %v11656_v28 = vcombine.low %v24634_v39, %v11616_v61  ;;  %v11657_v17 = vcombine.high %v24634_v39, %v11616_v61  ;;  %v11672_v33 = vcombine.low %v24679_v14, %v11623_v6  ;;  %v11673_v15 = vcombine.high %v24679_v14, %v11623_v6 }
 0x5dc   : > { %29121 = vst [vmem:[#allocation20_spill] sm:$0xff] %v24741_v20  ;;  %29122 = vst [vmem:[#allocation140_spill] sm:$0xff] %v24744_v26  ;;  %v24750_v39 = vrot.slane %v11399_v10, %v21679_v0  ;;  %v24753_v61 = vrot.slane %v12136_v63, %v21679_v0  ;;  %v24756_v14 = vrot.slane %v12137_v47, %v21679_v0 }
 0x5dd   : > { %v7937_v52 = vpop.trf.xlu0  ;;  %v15344_v62 = vcombine.low %v24593_v32, %v24705_v44  ;;  %v15448_v3 = vcombine.low %v24596_v51, %v24708_v56  ;;  %v15480_v10 = vcombine.low %v24599_v19, %v24724_v48  ;;  %v24769_v63 = vrot.slane %v11408_v18, %v21679_v0 }
 0x5de   : > { %v24758_v6 = vpop.trf.xlu1  ;;  %v11664_v47 = vrot.slane %v11656_v28, %v21690_v23  ;;  %v11671_v21 = vrot.slane %v11657_v17, %v21690_v23  ;;  %v11687_v8 = vrot.slane %v11673_v15, %v21690_v23 }
 0x5df   : > { %v24777_v16 = vrot.slane %v15344_v62, %v21690_v23  ;;  %v24780_v35 = vrot.slane %v15448_v3, %v21690_v23  ;;  %v24783_v11 = vrot.slane %v15480_v10, %v21690_v23 }
 0x5e0   : > { %v24818_v54 = vrot.slane %v11664_v47, %v21679_v0  ;;  %v24821_v17 = vrot.slane %v11671_v21, %v21679_v0 }
 0x5e1   : > { %29124 = vst [vmem:[#allocation142_spill] sm:$0xff] %v24777_v16  ;;  %29125 = vst [vmem:[#allocation143_spill] sm:$0xff] %v24780_v35  ;;  %v8000_v59 = vpop.trf.xlu0  ;;  %10032 = vxpose.xlu0.b32.start.end [1/1] (short) (narrow) %v29127_v27, 16 }
 0x5e2   : > { %29126 = vst [vmem:[#allocation144_spill] sm:$0xff] %v24783_v11  ;;  %v24788_v28 = vpop.trf.xlu1  ;;  %v11880_v10 = vcombine.low %v7936_v43, %v8000_v59  ;;  %v11881_v31 = vcombine.high %v7936_v43, %v8000_v59  ;;  %v24811_v59 = vrot.slane %v11415_v41, %v21679_v0  ;;  %v11680_v43 = vrot.slane %v11672_v33, %v21690_v23 }
 0x5e4   : > { %v11888_v18 = vrot.slane %v11880_v10, %v21679_v0  ;;  %v11895_v27 = vrot.slane %v11881_v31, %v21679_v0 }
 0x5e5   : > { %v8001_v62 = vpop.trf.xlu0 }
 0x5e6   : > { %v24823_v16 = vpop.trf.xlu1  ;;  %v11928_v33 = vcombine.low %v24728_v29, %v11888_v18  ;;  %v11929_v10 = vcombine.high %v24728_v29, %v11888_v18  ;;  %v11944_v31 = vcombine.low %v24731_v37, %v11895_v27  ;;  %v11945_v15 = vcombine.high %v24731_v37, %v11895_v27 }
 0x5e7   : > { %v12152_v3 = vcombine.low %v7937_v52, %v8001_v62  ;;  %v12153_v47 = vcombine.high %v7937_v52, %v8001_v62  ;;  %v24840_v18 = vrot.slane %v11680_v43, %v21679_v0  ;;  %v24843_v37 = vrot.slane %v11687_v8, %v21679_v0 }
 0x5e8   : > { %v11936_v11 = vrot.slane %v11928_v33, %v21690_v23  ;;  %v11943_v41 = vrot.slane %v11929_v10, %v21690_v23  ;;  %v11952_v35 = vrot.slane %v11944_v31, %v21690_v23  ;;  %v11959_v29 = vrot.slane %v11945_v15, %v21690_v23 }
 0x5e9   : > { %v12160_v52 = vrot.slane %v12152_v3, %v21679_v0  ;;  %v12167_v62 = vrot.slane %v12153_v47, %v21679_v0  ;;  %v8320_v27 = vpop.trf.xlu0 }
 0x5ea   : > { %v24847_v34 = vpop.trf.xlu1  ;;  %v24850_v33 = vrot.slane %v11936_v11, %v21679_v0  ;;  %v24853_v10 = vrot.slane %v11943_v41, %v21679_v0  ;;  %v24856_v31 = vrot.slane %v11952_v35, %v21679_v0  ;;  %v24859_v43 = vrot.slane %v11959_v29, %v21679_v0 }
 0x5eb   : > { %v12200_v8 = vcombine.low %v24753_v61, %v12160_v52  ;;  %v12201_v3 = vcombine.high %v24753_v61, %v12160_v52  ;;  %v12216_v15 = vcombine.low %v24756_v14, %v12167_v62  ;;  %v12217_v47 = vcombine.high %v24756_v14, %v12167_v62 }
 0x5ec   : > { %v16128_v11 = vcombine.low %v24747_v58, %v24850_v33  ;;  %v16160_v41 = vcombine.low %v24750_v39, %v24853_v10  ;;  %v16264_v35 = vcombine.low %v24769_v63, %v24856_v31  ;;  %v16296_v29 = vcombine.low %v24811_v59, %v24859_v43 }
 0x5ed   : > { %v12208_v21 = vrot.slane %v12200_v8, %v21690_v23  ;;  %v12215_v61 = vrot.slane %v12201_v3, %v21690_v23  ;;  %v12224_v52 = vrot.slane %v12216_v15, %v21690_v23  ;;  %v12231_v14 = vrot.slane %v12217_v47, %v21690_v23  ;;  %v8321_v62 = vpop.trf.xlu0 }
 0x5ee   : > { %v24877_v13 = vpop.trf.xlu1  ;;  %v24880_v26 = vrot.slane %v16128_v11, %v21690_v23  ;;  %v24883_v20 = vrot.slane %v16160_v41, %v21690_v23  ;;  %v24886_v9 = vrot.slane %v16264_v35, %v21690_v23  ;;  %v24889_v8 = vrot.slane %v16296_v29, %v21690_v23 }
 0x5ef   : > { %v24892_v3 = vrot.slane %v12208_v21, %v21679_v0  ;;  %v24895_v15 = vrot.slane %v12215_v61, %v21679_v0  ;;  %v24898_v47 = vrot.slane %v12224_v52, %v21679_v0  ;;  %v24901_v11 = vrot.slane %v12231_v14, %v21679_v0 }
 0x5f0   : > { %29128 = vst [vmem:[#allocation55_spill] sm:$0xff] %v24880_v26  ;;  %29129 = vst [vmem:[#allocation145_spill] sm:$0xff] %v24883_v20  ;;  %v29132_v20 = vld [vmem:[#allocation58_spill] sm:$0xff]  ;;  %v29133_v26 = vld [vmem:[#allocation59_spill] sm:$0xff] }
 0x5f1   : > { %29130 = vst [vmem:[#allocation146_spill] sm:$0xff] %v24886_v9  ;;  %29131 = vst [vmem:[#allocation147_spill] sm:$0xff] %v24889_v8  ;;  %v8384_v61 = vpop.trf.xlu0  ;;  %v16400_v52 = vcombine.low %v24818_v54, %v24892_v3  ;;  %v16432_v14 = vcombine.low %v24821_v17, %v24895_v15  ;;  %v16536_v41 = vcombine.low %v24840_v18, %v24898_v47 }
 0x5f2   : > { %v8864_v40 = vpop.trf.xlu1  ;;  %v16568_v35 = vcombine.low %v24843_v37, %v24901_v11  ;;  %v12392_v53 = vcombine.low %v8320_v27, %v8384_v61  ;;  %v12393_v45 = vcombine.high %v8320_v27, %v8384_v61  ;;  %v29134_v8 = vcombine.high %v29132_v20, %v29133_v26 }
 0x5f3   : > { %v12920_v29 = vcombine.low %v24847_v34, %v8864_v40  ;;  %v12921_v21 = vcombine.high %v24847_v34, %v8864_v40  ;;  %v24926_v9 = vrot.slane %v16400_v52, %v21690_v23  ;;  %v24929_v4 = vrot.slane %v16432_v14, %v21690_v23 }
 0x5f4   : > { %18784 = vrot.lane.b32.xlu1 %v29134_v8, %s20610_s19  ;;  %v24932_v1 = vrot.slane %v16536_v41, %v21690_v23  ;;  %v24935_v27 = vrot.slane %v16568_v35, %v21690_v23  ;;  %v29139_v34 = vcombine.low %v24721_v25, %v24788_v28  ;;  %v29140_v8 = vcombine.high %v24721_v25, %v24788_v28 }
 0x5f5   : > { %29135 = vst [vmem:[#allocation148_spill] sm:$0xff] %v24926_v9  ;;  %29136 = vst [vmem:[#allocation149_spill] sm:$0xff] %v24929_v4  ;;  %v12400_v52 = vrot.slane %v12392_v53, %v21679_v0  ;;  %v12407_v14 = vrot.slane %v12393_v45, %v21679_v0  ;;  %v8385_v26 = vpop.trf.xlu0  ;;  %v29144_v35 = vcombine.high %v24505_v55, %v24627_v2 }
 0x5f6   : > { %29137 = vst [vmem:[#allocation150_spill] sm:$0xff] %v24932_v1  ;;  %29138 = vst [vmem:[#allocation151_spill] sm:$0xff] %v24935_v27  ;;  %v12384_v40 = vrot.slane %v29139_v34, %v21679_v0  ;;  %v12391_v61 = vrot.slane %v29140_v8, %v21679_v0  ;;  %v8865_v41 = vpop.trf.xlu1  ;;  %v12664_v57 = vcombine.low %v8321_v62, %v8385_v26 }
 0x5f7   : > { %v12665_v45 = vcombine.high %v8321_v62, %v8385_v26  ;;  %v24963_v20 = vrot.slane %v29144_v35, %v21690_v23  ;;  %v29146_v34 = vcombine.high %v24525_v49, %v24639_v30  ;;  %v29148_v26 = vcombine.low %v24758_v6, %v24823_v16 }
 0x5f8   : > { %v12440_v25 = vcombine.low %v12384_v40, %v12400_v52  ;;  %v12441_v28 = vcombine.high %v12384_v40, %v12400_v52  ;;  %v12456_v8 = vcombine.low %v12391_v61, %v12407_v14  ;;  %v12457_v53 = vcombine.high %v12391_v61, %v12407_v14  ;;  %18788 = vrot.lane.b32.xlu1 %v29143_v42, %s20610_s19 }
 0x5f9   : > { %29145 = vst [vmem:[#allocation152_spill] sm:$0xff] %v24963_v20  ;;  %v24969_v40 = vrot.slane %v29146_v34, %v21690_v23  ;;  %v12656_v62 = vrot.slane %v29148_v26, %v21679_v0  ;;  %v29149_v42 = vcombine.high %v24758_v6, %v24823_v16  ;;  %v12672_v55 = vrot.slane %v12664_v57, %v21679_v0  ;;  %v8832_v52 = vpop.trf.xlu0 }
 0x5fa   : > { %v12679_v2 = vrot.slane %v12665_v45, %v21679_v0  ;;  %v24981_v14 = vpop.trf.xlu1  ;;  %v12448_v49 = vrot.slane %v12440_v25, %v21690_v23  ;;  %v13192_v30 = vcombine.low %v24877_v13, %v8865_v41  ;;  %v13193_v35 = vcombine.high %v24877_v13, %v8865_v41  ;;  %v29152_v45 = vld [vmem:[#allocation64_spill] sm:$0xff] }
 0x5fb   : > { %29147 = vst [vmem:[#allocation153_spill] sm:$0xff] %v24969_v40  ;;  %v12663_v61 = vrot.slane %v29149_v42, %v21679_v0  ;;  %v29150_v34 = vcombine.high %v24528_v46, %v24648_v24  ;;  %v12712_v6 = vcombine.low %v12656_v62, %v12672_v55  ;;  %v12713_v16 = vcombine.high %v12656_v62, %v12672_v55 }
 0x5fc   : > { %v29154_v38 = vcombine.high %v29152_v45, %v29153_v36  ;;  %v29155_v13 = vcombine.high %v24587_v5, %v24651_v60  ;;  %v15313_v46 = vcombine.high %v24590_v22, %v24654_v12  ;;  %v15345_v24 = vcombine.high %v24593_v32, %v24705_v44 }
 0x5fd   : > { %v24990_v26 = vrot.slane %v29150_v34, %v21690_v23  ;;  %v12728_v57 = vcombine.low %v12663_v61, %v12679_v2  ;;  %v12729_v42 = vcombine.high %v12663_v61, %v12679_v2  ;;  %v12455_v62 = vrot.slane %v12441_v28, %v21690_v23  ;;  %v8833_v2 = vpop.trf.xlu0  ;;  %v29159_v28 = vld [vmem:[#allocation74_spill] sm:$0xff] }
 0x5fe   : > { %18790 = vrot.lane.b32.xlu1 %v29154_v38, %s20610_s19  ;;  %v25002_v41 = vrot.slane %v29155_v13, %v21690_v23  ;;  %v12464_v61 = vrot.slane %v12456_v8, %v21690_v23  ;;  %v12928_v38 = vrot.slane %v12920_v29, %v21679_v0  ;;  %v12935_v55 = vrot.slane %v12921_v21, %v21679_v0  ;;  %v25012_v34 = vpop.trf.xlu1  ;;  %v29160_v8 = vld [vmem:[#allocation75_spill] sm:$0xff] }
 0x5ff   : > { %29151 = vst [vmem:[#allocation154_spill] sm:$0xff] %v24990_v26  ;;  %v25017_v60 = vrot.slane %v15313_v46, %v21690_v23  ;;  %v25020_v22 = vrot.slane %v15345_v24, %v21690_v23  ;;  %v15449_v32 = vcombine.high %v24596_v51, %v24708_v56  ;;  %v12471_v12 = vrot.slane %v12457_v53, %v21690_v23 }
 0x600   : > { %29156 = vst [vmem:[#allocation155_spill] sm:$0xff] %v25002_v41  ;;  %v25026_v44 = vrot.slane %v12448_v49, %v21679_v0  ;;  %v25029_v29 = vrot.slane %v13192_v30, %v21679_v0  ;;  %v25032_v21 = vrot.slane %v13193_v35, %v21679_v0  ;;  %v29161_v13 = vcombine.high %v29159_v28, %v29160_v8  ;;  %v29169_v8 = vld [vmem:[#allocation12_spill] sm:$0xff]  ;;  %v29170_v28 = vld [vmem:[#allocation13_spill] sm:$0xff] }
 0x601   : > { %29157 = vst [vmem:[#allocation156_spill] sm:$0xff] %v25017_v60  ;;  %29158 = vst [vmem:[#allocation157_spill] sm:$0xff] %v25020_v22  ;;  %v25041_v56 = vrot.slane %v15449_v32, %v21690_v23  ;;  %v15481_v51 = vcombine.high %v24599_v19, %v24724_v48  ;;  %v16129_v53 = vcombine.high %v24747_v58, %v24850_v33  ;;  %v8896_v49 = vpop.trf.xlu0 }
 0x602   : > { %18792 = vrot.lane.b32.xlu1 %v29161_v13, %s20610_s19  ;;  %v25047_v30 = vpop.trf.xlu1  ;;  %v16161_v35 = vcombine.high %v24750_v39, %v24853_v10  ;;  %v25058_v19 = vrot.slane %v12455_v62, %v21679_v0  ;;  %v12720_v48 = vrot.slane %v12712_v6, %v21690_v23  ;;  %v12936_v58 = vcombine.low %v8832_v52, %v8896_v49  ;;  %v29163_v39 = vld [vmem:[#allocation76_spill] sm:$0xff]  ;;  %v29164_v10 = vld [vmem:[#allocation77_spill] sm:$0xff] }
 0x603   : > { %29162 = vst [vmem:[#allocation158_spill] sm:$0xff] %v25041_v56  ;;  %v12937_v33 = vcombine.high %v8832_v52, %v8896_v49  ;;  %v12727_v46 = vrot.slane %v12713_v16, %v21690_v23  ;;  %v29165_v25 = vcombine.high %v29163_v39, %v29164_v10  ;;  %v25067_v5 = vrot.slane %v15481_v51, %v21690_v23 }
 0x604   : > { %v25070_v13 = vrot.slane %v16129_v53, %v21690_v23  ;;  %v25073_v62 = vrot.slane %v16161_v35, %v21690_v23  ;;  %v25076_v6 = vrot.slane %v12464_v61, %v21679_v0  ;;  %v25079_v52 = vrot.slane %v12471_v12, %v21679_v0 }
 0x605   : > { %29166 = vst [vmem:[#allocation159_spill] sm:$0xff] %v25067_v5  ;;  %v12944_v16 = vrot.slane %v12936_v58, %v21679_v0  ;;  %v12951_v49 = vrot.slane %v12937_v33, %v21679_v0  ;;  %v12743_v51 = vrot.slane %v12729_v42, %v21690_v23  ;;  %v8897_v32 = vpop.trf.xlu0  ;;  %v25092_v58 = vrot.slane %v12720_v48, %v21679_v0 }
 0x606   : > { %18794 = vrot.lane.b32.xlu1 %v29165_v25, %s20610_s19  ;;  %29167 = vst [vmem:[#allocation160_spill] sm:$0xff] %v25070_v13  ;;  %29168 = vst [vmem:[#allocation161_spill] sm:$0xff] %v25073_v62  ;;  %v12736_v25 = vrot.slane %v12728_v57, %v21690_v23  ;;  %v25085_v53 = vpop.trf.xlu1  ;;  %v25095_v57 = vrot.slane %v12727_v46, %v21679_v0  ;;  %v13208_v42 = vcombine.low %v8833_v2, %v8897_v32  ;;  %v29195_v62 = vld [vmem:[#allocation108_spill] sm:$0xff] }
 0x607   : > { %v12984_v24 = vcombine.low %v12928_v38, %v12944_v16  ;;  %v12985_v12 = vcombine.high %v12928_v38, %v12944_v16  ;;  %v13000_v10 = vcombine.low %v12935_v55, %v12951_v49  ;;  %v13001_v39 = vcombine.high %v12935_v55, %v12951_v49 }
 0x608   : > { %v13209_v33 = vcombine.high %v8833_v2, %v8897_v32  ;;  %v29171_v36 = vcombine.high %v29169_v8, %v29170_v28  ;;  %v25106_v48 = vrot.slane %v12736_v25, %v21679_v0  ;;  %v25109_v46 = vrot.slane %v12743_v51, %v21679_v0  ;;  %v29173_v28 = vld [vmem:[#allocation102_spill] sm:$0xff] }
 0x609   : > { %v12992_v35 = vrot.slane %v12984_v24, %v21690_v23  ;;  %v12999_v61 = vrot.slane %v12985_v12, %v21690_v23  ;;  %v13008_v38 = vrot.slane %v13000_v10, %v21690_v23  ;;  %v13015_v55 = vrot.slane %v13001_v39, %v21690_v23  ;;  %v25113_v16 = vpop.trf.xlu0 }
 0x60a   : > { %18798 = vrot.lane.b32.xlu1 %v29171_v36, %s20610_s19  ;;  %v13216_v2 = vrot.slane %v13208_v42, %v21679_v0  ;;  %v13223_v32 = vrot.slane %v13209_v33, %v21679_v0  ;;  %v25115_v36 = vpop.trf.xlu1  ;;  %v29172_v33 = vld [vmem:[#allocation32_spill] sm:$0xff] }
 0x60b   : > { %v17160_v24 = vrot.slane %v12992_v35, %v21679_v0  ;;  %v17192_v10 = vrot.slane %v12999_v61, %v21679_v0  ;;  %v17296_v39 = vrot.slane %v13008_v38, %v21679_v0  ;;  %v17328_v49 = vrot.slane %v13015_v55, %v21679_v0 }
 0x60c   : > { %v13256_v25 = vcombine.low %v25029_v29, %v13216_v2  ;;  %v13257_v51 = vcombine.high %v25029_v29, %v13216_v2  ;;  %v13272_v12 = vcombine.low %v25032_v21, %v13223_v32  ;;  %v13273_v42 = vcombine.high %v25032_v21, %v13223_v32 }
 0x60d   : > { %v29174_v8 = vcombine.high %v29172_v33, %v29173_v28  ;;  %v17200_v35 = vcombine.low %v25026_v44, %v17160_v24  ;;  %v17232_v61 = vcombine.low %v25058_v19, %v17192_v10  ;;  %v17336_v38 = vcombine.low %v25076_v6, %v17296_v39  ;;  %v25137_v32 = vpop.trf.xlu0  ;;  %v29176_v33 = vld [vmem:[#allocation61_spill] sm:$0xff] }
 0x60e   : > { %v17368_v55 = vcombine.low %v25079_v52, %v17328_v49  ;;  %v13264_v45 = vrot.slane %v13256_v25, %v21690_v23  ;;  %v13271_v29 = vrot.slane %v13257_v51, %v21690_v23  ;;  %v13280_v2 = vrot.slane %v13272_v12, %v21690_v23  ;;  %v25139_v28 = vpop.trf.xlu1 }
 0x60f   : > { %18802 = vrot.lane.b32.xlu1 %v29174_v8, %s20610_s19  ;;  %v13287_v21 = vrot.slane %v13273_v42, %v21690_v23  ;;  %v29175_v8 = vld [vmem:[#allocation60_spill] sm:$0xff]  ;;  %v25146_v4 = vrot.slane %v17200_v35, %v21690_v23  ;;  %v25149_v25 = vrot.slane %v17232_v61, %v21690_v23  ;;  %v25152_v51 = vrot.slane %v17336_v38, %v21690_v23  ;;  %v29182_v35 = vld [vmem:[#allocation33_spill] sm:$0xff]  ;;  %v29185_v38 = vld [vmem:[#allocation78_spill] sm:$0xff] }
 0x610   : > { %v29177_v7 = vcombine.high %v29175_v8, %v29176_v33  ;;  %v25155_v12 = vrot.slane %v17368_v55, %v21690_v23  ;;  %v17432_v42 = vrot.slane %v13264_v45, %v21679_v0  ;;  %v17464_v9 = vrot.slane %v13271_v29, %v21679_v0  ;;  %v29183_v33 = vld [vmem:[#allocation105_spill] sm:$0xff] }
 0x611   : > { %29178 = vst [vmem:[#allocation162_spill] sm:$0xff] %v25146_v4  ;;  %29179 = vst [vmem:[#allocation163_spill] sm:$0xff] %v25149_v25  ;;  %v17568_v27 = vrot.slane %v13280_v2, %v21679_v0  ;;  %v29184_v8 = vcombine.high %v29182_v35, %v29183_v33  ;;  %v25173_v29 = vpop.trf.xlu0  ;;  %v29186_v35 = vld [vmem:[#allocation79_spill] sm:$0xff] }
 0x612   : > { %18786 = vrot.lane.b32.xlu0 %v29177_v7, %s20610_s19  ;;  %29180 = vst [vmem:[#allocation164_spill] sm:$0xff] %v25152_v51  ;;  %29181 = vst [vmem:[#allocation165_spill] sm:$0xff] %v25155_v12  ;;  %v17600_v7 = vrot.slane %v13287_v21, %v21679_v0  ;;  %v25175_v2 = vpop.trf.xlu1  ;;  %v17472_v21 = vcombine.low %v25092_v58, %v17432_v42  ;;  %v29187_v1 = vcombine.high %v29185_v38, %v29186_v35  ;;  %v29196_v35 = vld [vmem:[#allocation109_spill] sm:$0xff] }
 0x613   : > { %18806 = vrot.lane.b32.xlu1 %v29184_v8, %s20610_s19  ;;  %v17504_v8 = vcombine.low %v25095_v57, %v17464_v9  ;;  %v17608_v33 = vcombine.low %v25106_v48, %v17568_v27  ;;  %v29197_v56 = vcombine.high %v29195_v62, %v29196_v35 }
 0x614   : > { %v17640_v61 = vcombine.low %v25109_v46, %v17600_v7  ;;  %v25186_v45 = vrot.slane %v17472_v21, %v21690_v23  ;;  %v17233_v21 = vcombine.high %v25058_v19, %v17192_v10 }
 0x615   : > { %v25189_v55 = vrot.slane %v17504_v8, %v21690_v23  ;;  %v25192_v25 = vrot.slane %v17608_v33, %v21690_v23  ;;  %v25197_v12 = vpop.trf.xlu0  ;;  %v29192_v8 = vld [vmem:[#allocation103_spill] sm:$0xff]  ;;  %v17369_v33 = vcombine.high %v25079_v52, %v17328_v49  ;;  %v17473_v52 = vcombine.high %v25092_v58, %v17432_v42 }
 0x616   : > { %18796 = vrot.lane.b32.xlu0 %v29187_v1, %s20610_s19  ;;  %29188 = vst [vmem:[#allocation166_spill] sm:$0xff] %v25186_v45  ;;  %v25195_v4 = vrot.slane %v17640_v61, %v21690_v23  ;;  %v25199_v51 = vpop.trf.xlu1  ;;  %v29193_v61 = vld [vmem:[#allocation104_spill] sm:$0xff]  ;;  %v17201_v1 = vcombine.high %v25026_v44, %v17160_v24  ;;  %v17609_v49 = vcombine.high %v25106_v48, %v17568_v27 }
 0x617   : > { %29189 = vst [vmem:[#allocation167_spill] sm:$0xff] %v25189_v55  ;;  %29190 = vst [vmem:[#allocation168_spill] sm:$0xff] %v25192_v25  ;;  %v29194_v38 = vcombine.high %v29192_v8, %v29193_v61  ;;  %v17337_v55 = vcombine.high %v25076_v6, %v17296_v39  ;;  %v25231_v8 = vrot.slane %v17233_v21, %v21690_v23 }
 0x618   : > { %29191 = vst [vmem:[#allocation169_spill] sm:$0xff] %v25195_v4  ;;  %v25237_v44 = vrot.slane %v17369_v33, %v21690_v23  ;;  %v17505_v39 = vcombine.high %v25095_v57, %v17464_v9  ;;  %v25252_v21 = vrot.slane %v17473_v52, %v21690_v23  ;;  %v25258_v58 = vrot.slane %v17609_v49, %v21690_v23 }
 0x619   : > { %v8960_v50 = vpop.trf.xlu0  ;;  %29199 = vst [vmem:[#allocation171_spill] sm:$0xff] %v25231_v8  ;;  %v12424_v49 = vcombine.low %v25113_v16, %v25173_v29  ;;  %v12425_v57 = vcombine.high %v25113_v16, %v25173_v29  ;;  %v29206_v48 = vcombine.high %v24769_v63, %v24856_v31  ;;  %v29208_v6 = vcombine.high %v24811_v59, %v24859_v43 }
 0x61a   : > { %18800 = vrot.lane.b32.xlu0 %v29194_v38, %s20610_s19  ;;  %v25213_v13 = vpop.trf.xlu1  ;;  %v25228_v38 = vrot.slane %v17201_v1, %v21690_v23  ;;  %29201 = vst [vmem:[#allocation173_spill] sm:$0xff] %v25237_v44  ;;  %29202 = vst [vmem:[#allocation174_spill] sm:$0xff] %v25252_v21  ;;  %v25255_v33 = vrot.slane %v17505_v39, %v21690_v23  ;;  %v12408_v1 = vcombine.low %v24981_v14, %v25047_v30 }
 0x61b   : > { %29204 = vst [vmem:[#allocation176_spill] sm:$0xff] %v25258_v58  ;;  %v25293_v19 = vrot.slane %v29206_v48, %v21690_v23  ;;  %v25299_v35 = vrot.slane %v29208_v6, %v21690_v23  ;;  %v12409_v16 = vcombine.high %v24981_v14, %v25047_v30  ;;  %v12432_v63 = vrot.slane %v12424_v49, %v21679_v0 }
 0x61c   : > { %29198 = vst [vmem:[#allocation170_spill] sm:$0xff] %v25228_v38  ;;  %29203 = vst [vmem:[#allocation175_spill] sm:$0xff] %v25255_v33  ;;  %v12696_v31 = vcombine.low %v25137_v32, %v25197_v12  ;;  %v12439_v43 = vrot.slane %v12425_v57, %v21679_v0  ;;  %v12953_v14 = vcombine.high %v25115_v36, %v25175_v2 }
 0x61d   : > { %v25223_v45 = vpop.trf.xlu0  ;;  %29207 = vst [vmem:[#allocation178_spill] sm:$0xff] %v25293_v19  ;;  %29209 = vst [vmem:[#allocation179_spill] sm:$0xff] %v25299_v35  ;;  %v12416_v30 = vrot.slane %v12408_v1, %v21679_v0  ;;  %v12680_v6 = vcombine.low %v25012_v34, %v25085_v53  ;;  %v12423_v49 = vrot.slane %v12409_v16, %v21679_v0 }
 0x61e   : > { %18804 = vrot.lane.b32.xlu0 %v29197_v56, %s20610_s19  ;;  %v25225_v61 = vpop.trf.xlu1  ;;  %v25234_v56 = vrot.slane %v17337_v55, %v21690_v23  ;;  %v17641_v55 = vcombine.high %v25109_v46, %v17600_v7  ;;  %v12952_v46 = vcombine.low %v25115_v36, %v25175_v2  ;;  %v29210_v1 = vcombine.high %v24818_v54, %v24892_v3 }
 0x61f   : > { %v12472_v48 = vcombine.low %v12416_v30, %v12432_v63  ;;  %v12704_v16 = vrot.slane %v12696_v31, %v21679_v0  ;;  %v12488_v58 = vcombine.low %v12423_v49, %v12439_v43  ;;  %v12688_v38 = vrot.slane %v12680_v6, %v21679_v0 }
 0x620   : > { %29200 = vst [vmem:[#allocation172_spill] sm:$0xff] %v25234_v56  ;;  %v25261_v42 = vrot.slane %v17641_v55, %v21690_v23  ;;  %v25335_v21 = vrot.slane %v29210_v1, %v21690_v23  ;;  %v12489_v44 = vcombine.high %v12423_v49, %v12439_v43  ;;  %v12697_v54 = vcombine.high %v25137_v32, %v25197_v12 }
 0x621   : > { %v9024_v24 = vpop.trf.xlu0  ;;  %v12496_v32 = vrot.slane %v12488_v58, %v21690_v23  ;;  %v12745_v12 = vcombine.high %v12688_v38, %v12704_v16 }
 0x622   : > { %v25244_v10 = vpop.trf.xlu1  ;;  %29205 = vst [vmem:[#allocation177_spill] sm:$0xff] %v25261_v42  ;;  %v12968_v55 = vcombine.low %v8960_v50, %v9024_v24  ;;  %v12969_v29 = vcombine.high %v8960_v50, %v9024_v24  ;;  %v13224_v50 = vcombine.low %v25139_v28, %v25199_v51  ;;  %v12960_v24 = vrot.slane %v12952_v46, %v21679_v0 }
 0x623   : > { %29211 = vst [vmem:[#allocation180_spill] sm:$0xff] %v25335_v21  ;;  %v12681_v46 = vcombine.high %v25012_v34, %v25085_v53  ;;  %v12503_v6 = vrot.slane %v12489_v44, %v21690_v23 }
 0x624   : > { %v12976_v59 = vrot.slane %v12968_v55, %v21679_v0  ;;  %v12983_v57 = vrot.slane %v12969_v29, %v21679_v0  ;;  %v12473_v29 = vcombine.high %v12416_v30, %v12432_v63  ;;  %v13232_v8 = vrot.slane %v13224_v50, %v21679_v0 }
 0x625   : > { %v25263_v9 = vpop.trf.xlu0  ;;  %v12480_v63 = vrot.slane %v12472_v48, %v21690_v23  ;;  %v13225_v50 = vcombine.high %v25139_v28, %v25199_v51 }
 0x626   : > { %v25265_v27 = vpop.trf.xlu1  ;;  %v13240_v62 = vcombine.low %v25223_v45, %v25263_v9  ;;  %v13016_v42 = vcombine.low %v12960_v24, %v12976_v59  ;;  %v13017_v3 = vcombine.high %v12960_v24, %v12976_v59  ;;  %v12487_v30 = vrot.slane %v12473_v29, %v21690_v23 }
 0x627   : > { %v12695_v59 = vrot.slane %v12681_v46, %v21679_v0  ;;  %v12711_v24 = vrot.slane %v12697_v54, %v21679_v0  ;;  %v12759_v46 = vrot.slane %v12745_v12, %v21690_v23  ;;  %v25386_v29 = vrot.slane %v12503_v6, %v21679_v0 }
 0x628   : > { %v13248_v55 = vrot.slane %v13240_v62, %v21679_v0  ;;  %v12967_v62 = vrot.slane %v12953_v14, %v21679_v0  ;;  %v12744_v14 = vcombine.low %v12688_v38, %v12704_v16  ;;  %v13024_v43 = vrot.slane %v13016_v42, %v21690_v23 }
 0x629   : > { %v25275_v52 = vpop.trf.xlu0  ;;  %v13031_v48 = vrot.slane %v13017_v3, %v21690_v23  ;;  %29216 = vst [vmem:[#allocation185_spill] sm:$0xff] %v25386_v29  ;;  %v16433_v54 = vcombine.high %v24821_v17, %v24895_v15  ;;  %v16537_v3 = vcombine.high %v24840_v18, %v24898_v47  ;;  %v16569_v15 = vcombine.high %v24843_v37, %v24901_v11 }
 0x62a   : > { %v25277_v39 = vpop.trf.xlu1  ;;  %v13032_v1 = vcombine.low %v12967_v62, %v12983_v57  ;;  %v13033_v56 = vcombine.high %v12967_v62, %v12983_v57  ;;  %v13288_v34 = vcombine.low %v13232_v8, %v13248_v55  ;;  %v13289_v53 = vcombine.high %v13232_v8, %v13248_v55 }
 0x62b   : > { %v13241_v8 = vcombine.high %v25223_v45, %v25263_v9  ;;  %v25370_v45 = vrot.slane %v12480_v63, %v21679_v0  ;;  %v12752_v44 = vrot.slane %v12744_v14, %v21690_v23  ;;  %v13239_v9 = vrot.slane %v13225_v50, %v21679_v0 }
 0x62c   : > { %v13040_v28 = vrot.slane %v13032_v1, %v21690_v23  ;;  %v13047_v51 = vrot.slane %v13033_v56, %v21690_v23  ;;  %v13296_v42 = vrot.slane %v13288_v34, %v21690_v23  ;;  %v13303_v58 = vrot.slane %v13289_v53, %v21690_v23 }
 0x62d   : > { %v25305_v7 = vpop.trf.xlu0  ;;  %29212 = vst [vmem:[#allocation181_spill] sm:$0xff] %v25370_v45  ;;  %v25375_v57 = vrot.slane %v13024_v43, %v21679_v0  ;;  %v25378_v56 = vrot.slane %v12487_v30, %v21679_v0  ;;  %v25381_v55 = vrot.slane %v12496_v32, %v21679_v0  ;;  %v13255_v16 = vrot.slane %v13241_v8, %v21679_v0 }
 0x62e   : > { %v25307_v33 = vpop.trf.xlu1  ;;  %v25389_v62 = vrot.slane %v13031_v48, %v21679_v0  ;;  %v25396_v1 = vrot.slane %v13040_v28, %v21679_v0  ;;  %v25399_v34 = vrot.slane %v13047_v51, %v21679_v0  ;;  %v25402_v53 = vrot.slane %v13296_v42, %v21679_v0 }
 0x62f   : > { %29213 = vst [vmem:[#allocation182_spill] sm:$0xff] %v25375_v57  ;;  %29214 = vst [vmem:[#allocation183_spill] sm:$0xff] %v25378_v56  ;;  %v25405_v63 = vrot.slane %v13303_v58, %v21679_v0  ;;  %v25412_v17 = vrot.slane %v12752_v44, %v21679_v0  ;;  %v25415_v18 = vrot.slane %v16433_v54, %v21690_v23 }
 0x630   : > { %29215 = vst [vmem:[#allocation184_spill] sm:$0xff] %v25381_v55  ;;  %29217 = vst [vmem:[#allocation186_spill] sm:$0xff] %v25389_v62  ;;  %v17217_v47 = vcombine.high %v25370_v45, %v25375_v57  ;;  %v25422_v43 = vrot.slane %v12759_v46, %v21679_v0  ;;  %v13304_v30 = vcombine.low %v13239_v9, %v13255_v16 }
 0x631   : > { %v25327_v36 = vpop.trf.xlu0  ;;  %29218 = vst [vmem:[#allocation187_spill] sm:$0xff] %v25396_v1  ;;  %29219 = vst [vmem:[#allocation188_spill] sm:$0xff] %v25399_v34  ;;  %v13305_v32 = vcombine.high %v13239_v9, %v13255_v16  ;;  %v25425_v12 = vrot.slane %v16537_v3, %v21690_v23  ;;  %v25430_v6 = vrot.slane %v16569_v15, %v21690_v23 }
 0x632   : > { %v25329_v2 = vpop.trf.xlu1  ;;  %29220 = vst [vmem:[#allocation189_spill] sm:$0xff] %v25402_v53  ;;  %29221 = vst [vmem:[#allocation190_spill] sm:$0xff] %v25405_v63  ;;  %v25433_v48 = vrot.slane %v17217_v47, %v21690_v23  ;;  %v17249_v37 = vcombine.high %v25378_v56, %v25389_v62  ;;  %v17353_v51 = vcombine.high %v25381_v55, %v25396_v1 }
 0x633   : > { %29222 = vst [vmem:[#allocation191_spill] sm:$0xff] %v25412_v17  ;;  %29223 = vst [vmem:[#allocation192_spill] sm:$0xff] %v25415_v18  ;;  %v17385_v42 = vcombine.high %v25386_v29, %v25399_v34  ;;  %v17489_v58 = vcombine.high %v25412_v17, %v25402_v53  ;;  %v17521_v44 = vcombine.high %v25422_v43, %v25405_v63 }
 0x634   : > { %29224 = vst [vmem:[#allocation193_spill] sm:$0xff] %v25422_v43  ;;  %29225 = vst [vmem:[#allocation194_spill] sm:$0xff] %v25425_v12  ;;  %v12760_v9 = vcombine.low %v12695_v59, %v12711_v24  ;;  %v12761_v46 = vcombine.high %v12695_v59, %v12711_v24  ;;  %v25452_v54 = vrot.slane %v17249_v37, %v21690_v23 }
 0x635   : > { %v25345_v4 = vpop.trf.xlu0  ;;  %29226 = vst [vmem:[#allocation195_spill] sm:$0xff] %v25430_v6  ;;  %29227 = vst [vmem:[#allocation196_spill] sm:$0xff] %v25433_v48  ;;  %v25455_v3 = vrot.slane %v17353_v51, %v21690_v23  ;;  %v25458_v15 = vrot.slane %v17385_v42, %v21690_v23  ;;  %v13312_v47 = vrot.slane %v13304_v30, %v21690_v23 }
 0x636   : > { %v25347_v31 = vpop.trf.xlu1  ;;  %29228 = vst [vmem:[#allocation197_spill] sm:$0xff] %v25452_v54  ;;  %v13319_v8 = vrot.slane %v13305_v32, %v21690_v23  ;;  %v12768_v37 = vrot.slane %v12760_v9, %v21690_v23  ;;  %v12775_v51 = vrot.slane %v12761_v46, %v21690_v23  ;;  %v25479_v32 = vrot.slane %v17489_v58, %v21690_v23 }
 0x637   : > { %29229 = vst [vmem:[#allocation198_spill] sm:$0xff] %v25455_v3  ;;  %29230 = vst [vmem:[#allocation199_spill] sm:$0xff] %v25458_v15  ;;  %v25473_v42 = vrot.slane %v13312_v47, %v21679_v0  ;;  %v25482_v16 = vrot.slane %v17521_v44, %v21690_v23  ;;  %v13617_v54 = vcombine.high %v25305_v7, %v25345_v4 }
 0x638   : > { %v25476_v30 = vrot.slane %v13319_v8, %v21679_v0  ;;  %29233 = vst [vmem:[#allocation202_spill] sm:$0xff] %v25479_v32  ;;  %v25489_v9 = vrot.slane %v12768_v37, %v21679_v0  ;;  %v25492_v46 = vrot.slane %v12775_v51, %v21679_v0  ;;  %v13344_v8 = vcombine.low %v25275_v52, %v25327_v36 }
 0x639   : > { %v25365_v38 = vpop.trf.xlu0  ;;  %29231 = vst [vmem:[#allocation200_spill] sm:$0xff] %v25473_v42  ;;  %29234 = vst [vmem:[#allocation203_spill] sm:$0xff] %v25482_v16  ;;  %v13329_v32 = vcombine.high %v25213_v13, %v25244_v10 }
 0x63a   : > { %v25367_v49 = vpop.trf.xlu1  ;;  %29232 = vst [vmem:[#allocation201_spill] sm:$0xff] %v25476_v30  ;;  %29235 = vst [vmem:[#allocation204_spill] sm:$0xff] %v25489_v9  ;;  %v17625_v58 = vcombine.high %v25489_v9, %v25473_v42  ;;  %v17657_v44 = vcombine.high %v25492_v46, %v25476_v30  ;;  %v13345_v42 = vcombine.high %v25275_v52, %v25327_v36 }
 0x63b   : > { %29236 = vst [vmem:[#allocation205_spill] sm:$0xff] %v25492_v46  ;;  %v13328_v46 = vcombine.low %v25213_v13, %v25244_v10  ;;  %v13352_v40 = vrot.slane %v13344_v8, %v21679_v0  ;;  %v13600_v52 = vcombine.low %v25225_v61, %v25265_v27  ;;  %v13601_v8 = vcombine.high %v25225_v61, %v25265_v27 }
 0x63c   : > { %v25507_v37 = vrot.slane %v17625_v58, %v21690_v23  ;;  %v25510_v51 = vrot.slane %v17657_v44, %v21690_v23  ;;  %v13359_v36 = vrot.slane %v13345_v42, %v21679_v0  ;;  %v13343_v10 = vrot.slane %v13329_v32, %v21679_v0 }
 0x63d   : > { %v25407_v14 = vpop.trf.xlu0  ;;  %v13361_v42 = vcombine.high %v25277_v39, %v25329_v2  ;;  %v13631_v61 = vrot.slane %v13617_v54, %v21679_v0  ;;  %v13608_v27 = vrot.slane %v13600_v52, %v21679_v0  ;;  %v13615_v21 = vrot.slane %v13601_v8, %v21679_v0 }
 0x63e   : > { %v25409_v50 = vpop.trf.xlu1  ;;  %29237 = vst [vmem:[#allocation206_spill] sm:$0xff] %v25507_v37  ;;  %29238 = vst [vmem:[#allocation207_spill] sm:$0xff] %v25510_v51  ;;  %v13616_v51 = vcombine.low %v25305_v7, %v25345_v4  ;;  %v13336_v37 = vrot.slane %v13328_v46, %v21679_v0  ;;  %v13360_v7 = vcombine.low %v25277_v39, %v25329_v2 }
 0x63f   : > { %v13409_v32 = vcombine.high %v13343_v10, %v13359_v36  ;;  %v13633_v39 = vcombine.high %v25307_v33, %v25347_v31  ;;  %v13680_v8 = vcombine.low %v13615_v21, %v13631_v61 }
 0x640   : > { %v13392_v48 = vcombine.low %v13336_v37, %v13352_v40  ;;  %v13393_v15 = vcombine.high %v13336_v37, %v13352_v40  ;;  %v13624_v46 = vrot.slane %v13616_v51, %v21679_v0  ;;  %v13408_v37 = vcombine.low %v13343_v10, %v13359_v36 }
 0x641   : > { %v25437_v11 = vpop.trf.xlu0  ;;  %v13632_v51 = vcombine.low %v25307_v33, %v25347_v31  ;;  %v13368_v36 = vrot.slane %v13360_v7, %v21679_v0  ;;  %v13375_v10 = vrot.slane %v13361_v42, %v21679_v0  ;;  %v13423_v35 = vrot.slane %v13409_v32, %v21690_v23 }
 0x642   : > { %v25439_v28 = vpop.trf.xlu1  ;;  %v13376_v4 = vcombine.low %v25365_v38, %v25437_v11  ;;  %v13377_v40 = vcombine.high %v25365_v38, %v25437_v11  ;;  %v13400_v6 = vrot.slane %v13392_v48, %v21690_v23  ;;  %v13407_v12 = vrot.slane %v13393_v15, %v21690_v23 }
 0x643   : > { %v13664_v38 = vcombine.low %v13608_v27, %v13624_v46  ;;  %v13665_v11 = vcombine.high %v13608_v27, %v13624_v46  ;;  %v13416_v15 = vrot.slane %v13408_v37, %v21690_v23  ;;  %v13681_v33 = vcombine.high %v13615_v21, %v13631_v61 }
 0x644   : > { %v13384_v52 = vrot.slane %v13376_v4, %v21679_v0  ;;  %v13391_v48 = vrot.slane %v13377_v40, %v21679_v0  ;;  %v25605_v31 = vrot.slane %v13632_v51, %v21679_v0  ;;  %v25608_v19 = vrot.slane %v13400_v6, %v21679_v0 }
 0x645   : > { %v25462_v17 = vpop.trf.xlu0  ;;  %v25611_v46 = vrot.slane %v13407_v12, %v21679_v0  ;;  %v25614_v4 = vrot.slane %v13633_v39, %v21679_v0  ;;  %v13672_v21 = vrot.slane %v13664_v38, %v21690_v23  ;;  %v13679_v61 = vrot.slane %v13665_v11, %v21690_v23 }
 0x646   : > { %v25464_v43 = vpop.trf.xlu1  ;;  %v13648_v7 = vcombine.low %v25407_v14, %v25462_v17  ;;  %v13424_v27 = vcombine.low %v13368_v36, %v13384_v52  ;;  %v13425_v37 = vcombine.high %v13368_v36, %v13384_v52  ;;  %v13688_v6 = vrot.slane %v13680_v8, %v21690_v23 }
 0x647   : > { %v13440_v32 = vcombine.low %v13375_v10, %v13391_v48  ;;  %v13441_v12 = vcombine.high %v13375_v10, %v13391_v48  ;;  %v13649_v51 = vcombine.high %v25407_v14, %v25462_v17  ;;  %v25626_v39 = vrot.slane %v13416_v15, %v21679_v0 }
 0x648   : > { %v25629_v22 = vrot.slane %v13423_v35, %v21679_v0  ;;  %v13695_v60 = vrot.slane %v13681_v33, %v21690_v23  ;;  %v13464_v38 = vcombine.low %v25367_v49, %v25439_v28  ;;  %v13465_v11 = vcombine.high %v25367_v49, %v25439_v28 }
 0x649   : > { %v25484_v59 = vpop.trf.xlu0  ;;  %v25637_v52 = vrot.slane %v13648_v7, %v21679_v0  ;;  %v13736_v14 = vcombine.low %v25409_v50, %v25464_v43  ;;  %v13737_v17 = vcombine.high %v25409_v50, %v25464_v43  ;;  %v25644_v35 = vrot.slane %v13672_v21, %v21679_v0 }
 0x64a   : > { %v25486_v63 = vpop.trf.xlu1  ;;  %v25647_v10 = vrot.slane %v13679_v61, %v21679_v0  ;;  %v13432_v8 = vrot.slane %v13424_v27, %v21690_v23  ;;  %v13439_v49 = vrot.slane %v13425_v37, %v21690_v23  ;;  %v25652_v28 = vrot.slane %v13688_v6, %v21679_v0 }
 0x64b   : > { %v13448_v48 = vrot.slane %v13440_v32, %v21690_v23  ;;  %v13455_v15 = vrot.slane %v13441_v12, %v21690_v23  ;;  %v25657_v50 = vrot.slane %v13649_v51, %v21679_v0  ;;  %v25662_v33 = vrot.slane %v13695_v60, %v21679_v0 }
 0x64c   : > { %v25665_v7 = vrot.slane %v13464_v38, %v21679_v0  ;;  %v25672_v27 = vrot.slane %v13465_v11, %v21679_v0  ;;  %v13696_v37 = vcombine.low %v25605_v31, %v25637_v52  ;;  %v25677_v6 = vrot.slane %v13736_v14, %v21679_v0 }
 0x64d   : > { %v25502_v24 = vpop.trf.xlu0  ;;  %v25680_v60 = vrot.slane %v13737_v17, %v21679_v0  ;;  %v25683_v12 = vrot.slane %v13432_v8, %v21679_v0  ;;  %v25686_v51 = vrot.slane %v13439_v49, %v21679_v0  ;;  %v25689_v38 = vrot.slane %v13448_v48, %v21679_v0 }
 0x64e   : > { %v25504_v53 = vpop.trf.xlu1  ;;  %v25692_v11 = vrot.slane %v13455_v15, %v21679_v0  ;;  %v25703_v48 = vrot.slane %v13696_v37, %v21690_v23  ;;  %v29250_v1 = vcombine.high %v25605_v31, %v25637_v52  ;;  %v29256_v52 = vcombine.high %v25614_v4, %v25657_v50 }
 0x64f   : > { %29242 = vst [vmem:[#allocation208_spill] sm:$0xff] %v25683_v12  ;;  %29243 = vst [vmem:[#allocation209_spill] sm:$0xff] %v25686_v51 }
 0x650   : > { %29244 = vst [vmem:[#allocation210_spill] sm:$0xff] %v25689_v38  ;;  %29245 = vst [vmem:[#allocation211_spill] sm:$0xff] %v25692_v11  ;;  %v13711_v25 = vrot.slane %v29250_v1, %v21690_v23 }
 0x651   : > { %v25524_v44 = vpop.trf.xlu0 }
 0x652   : > { %v25526_v56 = vpop.trf.xlu1  ;;  %v13480_v37 = vcombine.low %v25484_v59, %v25524_v44 }
 0x655   : > { %v25540_v20 = vpop.trf.xlu0 }
 0x656   : > { %v25542_v30 = vpop.trf.xlu1  ;;  %v13753_v38 = vcombine.high %v25502_v24, %v25540_v20 }
 0x659   : > { %v25546_v9 = vpop.trf.xlu0 }
 0x65a   : > { %v25548_v18 = vpop.trf.xlu1 }
 0x65d   : > { %v25555_v58 = vpop.trf.xlu0 }
 0x65e   : > { %v25557_v16 = vpop.trf.xlu1 }
 0x661   : > { %v25571_v3 = vpop.trf.xlu0 }
 0x662   : > { %v25573_v13 = vpop.trf.xlu1  ;;  %v13512_v51 = vcombine.low %v25546_v9, %v25571_v3 }
 0x663   : > { %v13872_v21 = vcombine.low %v25548_v18, %v25573_v13  ;;  %v13873_v61 = vcombine.high %v25548_v18, %v25573_v13 }
 0x665   : > { %v25594_v2 = vpop.trf.xlu0  ;;  %v13880_v8 = vrot.slane %v13872_v21, %v21679_v0  ;;  %v13887_v5 = vrot.slane %v13873_v61, %v21679_v0 }
 0x666   : > { %v25596_v54 = vpop.trf.xlu1 }
 0x667   : > { %v14145_v17 = vcombine.high %v25557_v16, %v25596_v54 }
 0x669   : > { %v9600_v42 = vpop.trf.xlu0 }
 0x66a   : > { %v25618_v40 = vpop.trf.xlu1 }
 0x66d   : > { %v9601_v36 = vpop.trf.xlu0 }
 0x66e   : > { %v25659_v43 = vpop.trf.xlu1 }
 0x671   : > { %v9664_v32 = vpop.trf.xlu0 }
 0x672   : > { %v13888_v18 = vcombine.low %v9600_v42, %v9664_v32  ;;  %v13889_v13 = vcombine.high %v9600_v42, %v9664_v32  ;;  %v14144_v32 = vcombine.low %v25557_v16, %v25596_v54  ;;  %v25711_v14 = vpop.trf.xlu1 }
 0x674   : > { %v13896_v49 = vrot.slane %v13888_v18, %v21679_v0  ;;  %v13903_v42 = vrot.slane %v13889_v13, %v21679_v0  ;;  %v13481_v13 = vcombine.high %v25484_v59, %v25524_v44 }
 0x675   : > { %v9665_v21 = vpop.trf.xlu0 }
 0x676   : > { %v13936_v61 = vcombine.low %v13880_v8, %v13896_v49  ;;  %v13937_v47 = vcombine.high %v13880_v8, %v13896_v49  ;;  %v13952_v18 = vcombine.low %v13887_v5, %v13903_v42  ;;  %v13953_v41 = vcombine.high %v13887_v5, %v13903_v42 }
 0x677   : > { %v14160_v15 = vcombine.low %v9601_v36, %v9665_v21  ;;  %v14161_v26 = vcombine.high %v9601_v36, %v9665_v21  ;;  %v14152_v8 = vrot.slane %v14144_v32, %v21679_v0  ;;  %v14159_v5 = vrot.slane %v14145_v17, %v21679_v0  ;;  %v25739_v21 = vpop.trf.xlu1 }
 0x678   : > { %v13944_v62 = vrot.slane %v13936_v61, %v21690_v23  ;;  %v13951_v45 = vrot.slane %v13937_v47, %v21690_v23  ;;  %v13960_v16 = vrot.slane %v13952_v18, %v21690_v23  ;;  %v13967_v54 = vrot.slane %v13953_v41, %v21690_v23 }
 0x679   : > { %v14168_v49 = vrot.slane %v14160_v15, %v21679_v0  ;;  %v14175_v42 = vrot.slane %v14161_v26, %v21679_v0  ;;  %v25725_v57 = vpop.trf.xlu0  ;;  %v13495_v11 = vrot.slane %v13481_v13, %v21679_v0  ;;  %v13727_v13 = vrot.slane %v29256_v52, %v21690_v23 }
 0x67a   : > { %v25728_v59 = vrot.slane %v13944_v62, %v21679_v0  ;;  %v25731_v44 = vrot.slane %v13951_v45, %v21679_v0  ;;  %v25734_v47 = vrot.slane %v13960_v16, %v21679_v0  ;;  %v25737_v41 = vrot.slane %v13967_v54, %v21679_v0 }
 0x67b   : > { %v14208_v36 = vcombine.low %v14152_v8, %v14168_v49  ;;  %v14209_v17 = vcombine.high %v14152_v8, %v14168_v49  ;;  %v14224_v32 = vcombine.low %v14159_v5, %v14175_v42  ;;  %v14225_v15 = vcombine.high %v14159_v5, %v14175_v42 }
 0x67c   : > { %v17880_v26 = vcombine.low %v25626_v39, %v25734_v47  ;;  %v17912_v62 = vcombine.low %v25629_v22, %v25737_v41  ;;  %v17744_v45 = vcombine.low %v25608_v19, %v25728_v59  ;;  %v17776_v61 = vcombine.low %v25611_v46, %v25731_v44 }
 0x67d   : > { %v14216_v18 = vrot.slane %v14208_v36, %v21690_v23  ;;  %v14223_v16 = vrot.slane %v14209_v17, %v21690_v23  ;;  %v14232_v54 = vrot.slane %v14224_v32, %v21690_v23  ;;  %v14239_v8 = vrot.slane %v14225_v15, %v21690_v23  ;;  %v25753_v5 = vpop.trf.xlu0 }
 0x67e   : > { %v25756_v49 = vrot.slane %v17880_v26, %v21690_v23  ;;  %v25759_v42 = vrot.slane %v17912_v62, %v21690_v23  ;;  %v25762_v29 = vrot.slane %v17744_v45, %v21690_v23  ;;  %v25765_v34 = vrot.slane %v17776_v61, %v21690_v23 }
 0x67f   : > { %v25768_v36 = vrot.slane %v14216_v18, %v21679_v0  ;;  %v25771_v17 = vrot.slane %v14223_v16, %v21679_v0  ;;  %v25774_v32 = vrot.slane %v14232_v54, %v21679_v0  ;;  %v25777_v15 = vrot.slane %v14239_v8, %v21679_v0  ;;  %v25786_v18 = vpop.trf.xlu1 }
 0x680   : > { %29246 = vst [vmem:[#allocation212_spill] sm:$0xff] %v25756_v49  ;;  %29247 = vst [vmem:[#allocation213_spill] sm:$0xff] %v25759_v42  ;;  %v13488_v26 = vrot.slane %v13480_v37, %v21679_v0  ;;  %v13752_v62 = vcombine.low %v25502_v24, %v25540_v20  ;;  %v17945_v45 = vcombine.high %v25756_v49, %v25759_v42 }
 0x681   : > { %29248 = vst [vmem:[#allocation214_spill] sm:$0xff] %v25762_v29  ;;  %29249 = vst [vmem:[#allocation215_spill] sm:$0xff] %v25765_v34  ;;  %v17809_v61 = vcombine.high %v25762_v29, %v25765_v34  ;;  %v25788_v16 = vpop.trf.xlu0  ;;  %v18152_v54 = vcombine.low %v25652_v28, %v25774_v32  ;;  %v18184_v8 = vcombine.low %v25662_v33, %v25777_v15 }
 0x682   : > { %v18016_v37 = vcombine.low %v25644_v35, %v25768_v36  ;;  %v18048_v55 = vcombine.low %v25647_v10, %v25771_v17  ;;  %18810 = vrot.lane.b32.xlu1 %v17945_v45, %s20610_s19  ;;  %v29255_v20 = vcombine.low %v25614_v4, %v25657_v50  ;;  %v13496_v45 = vcombine.low %v25486_v63, %v25526_v56 }
 0x683   : > { %18808 = vrot.lane.b32.xlu0 %v17809_v61, %s20610_s19  ;;  %v25810_v12 = vrot.slane %v18152_v54, %v21690_v23  ;;  %v25813_v49 = vrot.slane %v18184_v8, %v21690_v23  ;;  %v13760_v61 = vrot.slane %v13752_v62, %v21679_v0  ;;  %v13528_v54 = vcombine.low %v25665_v7, %v13488_v26 }
 0x684   : > { %v25816_v1 = vrot.slane %v18016_v37, %v21690_v23  ;;  %v25819_v31 = vrot.slane %v18048_v55, %v21690_v23  ;;  %v13720_v24 = vrot.slane %v29255_v20, %v21690_v23  ;;  %v13529_v55 = vcombine.high %v25665_v7, %v13488_v26 }
 0x685   : > { %29251 = vst [vmem:[#allocation216_spill] sm:$0xff] %v25810_v12  ;;  %29252 = vst [vmem:[#allocation217_spill] sm:$0xff] %v25813_v49  ;;  %v25834_v8 = vpop.trf.xlu0  ;;  %v18217_v37 = vcombine.high %v25810_v12, %v25813_v49  ;;  %v25842_v4 = vrot.slane %v25703_v48, %v21679_v0  ;;  %v25845_v50 = vrot.slane %v13711_v25, %v21679_v0 }
 0x686   : > { %29253 = vst [vmem:[#allocation218_spill] sm:$0xff] %v25816_v1  ;;  %29254 = vst [vmem:[#allocation219_spill] sm:$0xff] %v25819_v31  ;;  %v18081_v20 = vcombine.high %v25816_v1, %v25819_v31  ;;  %v13767_v62 = vrot.slane %v13753_v38, %v21679_v0  ;;  %v13513_v7 = vcombine.high %v25546_v9, %v25571_v3  ;;  %v25855_v1 = vpop.trf.xlu1 }
 0x687   : > { %29257 = vst [vmem:[#allocation220_spill] sm:$0xff] %v25842_v4  ;;  %29258 = vst [vmem:[#allocation221_spill] sm:$0xff] %v25845_v50  ;;  %v13544_v26 = vcombine.low %v25672_v27, %v13495_v11  ;;  %v13545_v52 = vcombine.high %v25672_v27, %v13495_v11  ;;  %v13497_v12 = vcombine.high %v25486_v63, %v25526_v56  ;;  %18814 = vrot.lane.b32.xlu1 %v18217_v37, %s20610_s19  ;;  %v29272_v4 = vld [vmem:[#allocation71_spill] sm:$0xff] }
 0x688   : > { %v13520_v49 = vrot.slane %v13512_v51, %v21679_v0  ;;  %v25859_v25 = vrot.slane %v13720_v24, %v21679_v0  ;;  %v13800_v38 = vcombine.low %v25677_v6, %v13760_v61  ;;  %v13768_v3 = vcombine.low %v25504_v53, %v25542_v30  ;;  %18812 = vrot.lane.b32.xlu0 %v18081_v20, %s20610_s19  ;;  %s28250_s19 = scalar_lea.hbm %s28317_s6, %s20351_s22 }
 0x689   : > { %v13769_v9 = vcombine.high %v25504_v53, %v25542_v30  ;;  %v13536_v56 = vrot.slane %v13528_v54, %v21690_v23  ;;  %v13543_v63 = vrot.slane %v13529_v55, %v21690_v23  ;;  %v13504_v27 = vrot.slane %v13496_v45, %v21679_v0  ;;  %v25871_v11 = vpop.trf.xlu0 }
 0x68a   : > { %29259 = vst [vmem:[#allocation222_spill] sm:$0xff] %v25859_v25  ;;  %v13801_v51 = vcombine.high %v25677_v6, %v13760_v61  ;;  %v25874_v48 = vrot.slane %v13727_v13, %v21679_v0  ;;  %v13816_v24 = vcombine.low %v25680_v60, %v13767_v62  ;;  %v13817_v37 = vcombine.high %v25680_v60, %v13767_v62  ;;  %v29261_v6 = vld [vmem:[#allocation66_spill] sm:$0xff]  ;;  %v29262_v61 = vld [vmem:[#allocation67_spill] sm:$0xff] }
 0x68b   : > { %v13527_v53 = vrot.slane %v13513_v7, %v21679_v0  ;;  %v13552_v30 = vrot.slane %v13544_v26, %v21690_v23  ;;  %v13559_v54 = vrot.slane %v13545_v52, %v21690_v23  ;;  %v13511_v55 = vrot.slane %v13497_v12, %v21679_v0  ;;  %v29266_v7 = vld [vmem:[#allocation68_spill] sm:$0xff]  ;;  %v29267_v26 = vld [vmem:[#allocation69_spill] sm:$0xff] }
 0x68c   : > { %29260 = vst [vmem:[#allocation223_spill] sm:$0xff] %v25874_v48  ;;  %v13560_v45 = vcombine.low %v13504_v27, %v13520_v49  ;;  %v29263_v20 = vcombine.low %v29261_v6, %v29262_v61  ;;  %v13808_v13 = vrot.slane %v13800_v38, %v21690_v23  ;;  %v25888_v48 = vrot.slane %v13768_v3, %v21679_v0 }
 0x68d   : > { %v25891_v60 = vrot.slane %v13769_v9, %v21679_v0  ;;  %v13561_v62 = vcombine.high %v13504_v27, %v13520_v49  ;;  %v29268_v52 = vcombine.low %v29266_v7, %v29267_v26  ;;  %v25898_v12 = vrot.slane %v13536_v56, %v21679_v0  ;;  %v25906_v9 = vpop.trf.xlu0 }
 0x68e   : > { %18850 = vrot.lane.b32.xlu1 %v29263_v20, %s20593_s17  ;;  %29264 = vst [vmem:[#allocation66_spill] sm:$0xff] %v25888_v48  ;;  %v25901_v25 = vrot.slane %v13543_v63, %v21679_v0  ;;  %v13815_v38 = vrot.slane %v13801_v51, %v21690_v23  ;;  %v13784_v3 = vcombine.low %v25555_v58, %v25594_v2  ;;  %v9888_v20 = vpop.trf.xlu1 }
 0x68f   : > { %29265 = vst [vmem:[#allocation67_spill] sm:$0xff] %v25891_v60  ;;  %18848 = vrot.lane.b32.xlu0 %v29268_v52, %s20593_s17  ;;  %29269 = vst [vmem:[#allocation224_spill] sm:$0xff] %v25898_v12  ;;  %v13824_v49 = vrot.slane %v13816_v24, %v21690_v23  ;;  %v13831_v27 = vrot.slane %v13817_v37, %v21690_v23  ;;  %v13576_v50 = vcombine.low %v13511_v55, %v13527_v53  ;;  %v29271_v12 = vld [vmem:[#allocation70_spill] sm:$0xff] }
 0x690   : > { %29270 = vst [vmem:[#allocation225_spill] sm:$0xff] %v25901_v25  ;;  %v13785_v56 = vcombine.high %v25555_v58, %v25594_v2  ;;  %v13568_v52 = vrot.slane %v13560_v45, %v21690_v23  ;;  %v13577_v63 = vcombine.high %v13511_v55, %v13527_v53  ;;  %v13904_v51 = vcombine.low %v25618_v40, %v25711_v14  ;;  %v29276_v53 = vld [vmem:[#allocation72_spill] sm:$0xff]  ;;  %v29277_v55 = vld [vmem:[#allocation73_spill] sm:$0xff] }
 0x691   : > { %v13920_v25 = vcombine.low %v25725_v57, %v25788_v16  ;;  %v29273_v26 = vcombine.low %v29271_v12, %v29272_v4  ;;  %v25922_v24 = vrot.slane %v13552_v30, %v21679_v0  ;;  %v25925_v37 = vrot.slane %v13559_v54, %v21679_v0 }
 0x692   : > { %v25928_v58 = vrot.slane %v13808_v13, %v21679_v0  ;;  %v13575_v2 = vrot.slane %v13561_v62, %v21690_v23  ;;  %v29278_v45 = vcombine.low %v29276_v53, %v29277_v55  ;;  %v25936_v7 = vrot.slane %v13815_v38, %v21679_v0  ;;  %v25945_v13 = vpop.trf.xlu0 }
 0x693   : > { %18854 = vrot.lane.b32.xlu1 %v29273_v26, %s20593_s17  ;;  %29274 = vst [vmem:[#allocation70_spill] sm:$0xff] %v25925_v37  ;;  %v25939_v26 = vrot.slane %v13784_v3, %v21679_v0  ;;  %v13905_v30 = vcombine.high %v25618_v40, %v25711_v14  ;;  %v13921_v54 = vcombine.high %v25725_v57, %v25788_v16  ;;  %v9889_v16 = vpop.trf.xlu1 }
 0x694   : > { %29275 = vst [vmem:[#allocation71_spill] sm:$0xff] %v25928_v58  ;;  %18852 = vrot.lane.b32.xlu0 %v29278_v45, %s20593_s17  ;;  %29279 = vst [vmem:[#allocation72_spill] sm:$0xff] %v25936_v7  ;;  %v25948_v62 = vrot.slane %v13824_v49, %v21679_v0  ;;  %v25951_v58 = vrot.slane %v13831_v27, %v21679_v0  ;;  %v25954_v38 = vrot.slane %v13576_v50, %v21690_v23  ;;  %v29287_v49 = vld [vmem:[#allocation80_spill] sm:$0xff]  ;;  %v29288_v27 = vld [vmem:[#allocation81_spill] sm:$0xff] }
 0x695   : > { %29280 = vst [vmem:[#allocation73_spill] sm:$0xff] %v25939_v26  ;;  %v25957_v3 = vrot.slane %v13785_v56, %v21679_v0  ;;  %v25960_v45 = vrot.slane %v13577_v63, %v21690_v23  ;;  %v25963_v40 = vrot.slane %v13568_v52, %v21679_v0  ;;  %v13912_v57 = vrot.slane %v13904_v51, %v21679_v0  ;;  %v29292_v51 = vld [vmem:[#allocation82_spill] sm:$0xff]  ;;  %v29295_v26 = vld [vmem:[#allocation84_spill] sm:$0xff] }
 0x696   : > { %29281 = vst [vmem:[#allocation226_spill] sm:$0xff] %v25948_v62  ;;  %29282 = vst [vmem:[#allocation227_spill] sm:$0xff] %v25951_v58  ;;  %v13928_v14 = vrot.slane %v13920_v25, %v21679_v0  ;;  %v29289_v58 = vcombine.low %v29287_v49, %v29288_v27  ;;  %v25972_v50 = vrot.slane %v13575_v2, %v21679_v0  ;;  %v29291_v25 = vld [vmem:[#allocation16_spill] sm:$0xff] }
 0x697   : > { %29283 = vst [vmem:[#allocation228_spill] sm:$0xff] %v25954_v38  ;;  %29284 = vst [vmem:[#allocation229_spill] sm:$0xff] %v25957_v3  ;;  %v14176_v56 = vcombine.low %v25659_v43, %v25739_v21  ;;  %v14177_v52 = vcombine.high %v25659_v43, %v25739_v21  ;;  %v14192_v63 = vcombine.low %v25753_v5, %v25834_v8  ;;  %v25990_v38 = vpop.trf.xlu0  ;;  %v29298_v3 = vld [vmem:[#allocation85_spill] sm:$0xff] }
 0x698   : > { %29285 = vst [vmem:[#allocation230_spill] sm:$0xff] %v25960_v45  ;;  %29286 = vst [vmem:[#allocation231_spill] sm:$0xff] %v25963_v40  ;;  %18858 = vrot.lane.b32.xlu1 %v29289_v58, %s20593_s17  ;;  %v29293_v45 = vcombine.low %v29291_v25, %v29292_v51  ;;  %v13935_v40 = vrot.slane %v13921_v54, %v21679_v0  ;;  %v14008_v21 = vcombine.low %v25786_v18, %v9888_v20  ;;  %v29294_v54 = vld [vmem:[#allocation83_spill] sm:$0xff]  ;;  %v29297_v58 = vld [vmem:[#allocation17_spill] sm:$0xff] }
 0x699   : > { %29290 = vst [vmem:[#allocation80_spill] sm:$0xff] %v25972_v50  ;;  %v13919_v50 = vrot.slane %v13905_v30, %v21679_v0  ;;  %v14009_v62 = vcombine.high %v25786_v18, %v9888_v20  ;;  %v13968_v2 = vcombine.low %v13912_v57, %v13928_v14  ;;  %v14193_v30 = vcombine.high %v25753_v5, %v25834_v8 }
 0x69a   : > { %18856 = vrot.lane.b32.xlu0 %v29293_v45, %s20593_s17  ;;  %v17881_v45 = vcombine.high %v25626_v39, %v25734_v47  ;;  %v29296_v48 = vcombine.low %v29294_v54, %v29295_v26  ;;  %v17913_v43 = vcombine.high %v25629_v22, %v25737_v41  ;;  %v14184_v18 = vrot.slane %v14176_v56, %v21679_v0 }
 0x69b   : > { %v14191_v20 = vrot.slane %v14177_v52, %v21679_v0  ;;  %v13969_v39 = vcombine.high %v13912_v57, %v13928_v14  ;;  %v14200_v47 = vrot.slane %v14192_v63, %v21679_v0  ;;  %v29299_v60 = vcombine.low %v29297_v58, %v29298_v3  ;;  %v26034_v52 = vpop.trf.xlu0 }
 0x69c   : > { %18862 = vrot.lane.b32.xlu1 %v29296_v48, %s20593_s17  ;;  %v13984_v5 = vcombine.low %v13919_v50, %v13935_v40  ;;  %v13985_v8 = vcombine.high %v13919_v50, %v13935_v40  ;;  %v14280_v7 = vcombine.low %v25855_v1, %v9889_v16  ;;  %v26016_v48 = vpop.trf.xlu1  ;;  %v17745_v22 = vcombine.high %v25608_v19, %v25728_v59  ;;  %v29300_v19 = vld [vmem:[#allocation110_spill] sm:$0xff]  ;;  %v29301_v59 = vld [vmem:[#allocation111_spill] sm:$0xff] }
 0x69d   : > { %v26021_v41 = vrot.slane %v14008_v21, %v21679_v0  ;;  %v26024_v57 = vrot.slane %v14009_v62, %v21679_v0  ;;  %v26027_v14 = vrot.slane %v17881_v45, %v21690_v23  ;;  %v13976_v40 = vrot.slane %v13968_v2, %v21690_v23 }
 0x69e   : > { %18860 = vrot.lane.b32.xlu0 %v29299_v60, %s20593_s17  ;;  %v17777_v60 = vcombine.high %v25611_v46, %v25731_v44  ;;  %v14207_v50 = vrot.slane %v14193_v30, %v21679_v0  ;;  %v14281_v56 = vcombine.high %v25855_v1, %v9889_v16  ;;  %v29302_v63 = vcombine.low %v29300_v19, %v29301_v59  ;;  %v29303_v46 = vld [vmem:[#allocation112_spill] sm:$0xff]  ;;  %v29304_v44 = vld [vmem:[#allocation113_spill] sm:$0xff] }
 0x69f   : > { %v26041_v62 = vrot.slane %v17913_v43, %v21690_v23  ;;  %v13983_v21 = vrot.slane %v13969_v39, %v21690_v23  ;;  %v14240_v45 = vcombine.low %v14184_v18, %v14200_v47  ;;  %v29305_v2 = vcombine.low %v29303_v46, %v29304_v44  ;;  %v29307_v44 = vld [vmem:[#allocation115_spill] sm:$0xff] }
 0x6a0   : > { %18866 = vrot.lane.b32.xlu1 %v29302_v63, %s20593_s17  ;;  %v18153_v1 = vcombine.high %v25652_v28, %v25774_v32  ;;  %v18185_v16 = vcombine.high %v25662_v33, %v25777_v15  ;;  %v13992_v30 = vrot.slane %v13984_v5, %v21690_v23  ;;  %v13999_v63 = vrot.slane %v13985_v8, %v21690_v23  ;;  %v26072_v8 = vpop.trf.xlu1 }
 0x6a1   : > { %v26055_v43 = vrot.slane %v14280_v7, %v21679_v0  ;;  %v26058_v39 = vrot.slane %v17745_v22, %v21690_v23  ;;  %v14024_v37 = vcombine.low %v25871_v11, %v25945_v13  ;;  %v18017_v28 = vcombine.high %v25644_v35, %v25768_v36  ;;  %v29306_v22 = vld [vmem:[#allocation114_spill] sm:$0xff]  ;;  %v29310_v36 = vld [vmem:[#allocation116_spill] sm:$0xff] }
 0x6a2   : > { %18864 = vrot.lane.b32.xlu0 %v29305_v2, %s20593_s17  ;;  %v26063_v2 = vrot.slane %v17777_v60, %v21690_v23  ;;  %v18049_v33 = vcombine.high %v25647_v10, %v25771_v17  ;;  %v14241_v32 = vcombine.high %v14184_v18, %v14200_v47  ;;  %v14256_v15 = vcombine.low %v14191_v20, %v14207_v50  ;;  %v29309_v35 = vld [vmem:[#allocation34_spill] sm:$0xff]  ;;  %v26093_v47 = vpop.trf.xlu0 }
 0x6a3   : > { %v14257_v5 = vcombine.high %v14191_v20, %v14207_v50  ;;  %v26070_v7 = vrot.slane %v14281_v56, %v21679_v0  ;;  %v29308_v46 = vcombine.low %v29306_v22, %v29307_v44  ;;  %v14248_v60 = vrot.slane %v14240_v45, %v21690_v23 }
 0x6a4   : > { %v29311_v59 = vcombine.low %v29309_v35, %v29310_v36  ;;  %v17946_v10 = vcombine.low %v26027_v14, %v26041_v62  ;;  %v26086_v17 = vrot.slane %v18153_v1, %v21690_v23  ;;  %v26089_v18 = vrot.slane %v18185_v16, %v21690_v23 }
 0x6a5   : > { %18870 = vrot.lane.b32.xlu1 %v29308_v46, %s20593_s17  ;;  %v14025_v20 = vcombine.high %v25871_v11, %v25945_v13  ;;  %v14032_v1 = vrot.slane %v14024_v37, %v21679_v0  ;;  %v17810_v16 = vcombine.low %v26058_v39, %v26063_v2  ;;  %v26105_v36 = vrot.slane %v18017_v28, %v21690_v23 }
 0x6a6   : > { %18868 = vrot.lane.b32.xlu0 %v29311_v59, %s20593_s17  ;;  %v26108_v11 = vrot.slane %v18049_v33, %v21690_v23  ;;  %v26111_v13 = vrot.slane %v13976_v40, %v21679_v0  ;;  %v26114_v50 = vrot.slane %v13983_v21, %v21679_v0  ;;  %v14296_v46 = vcombine.low %v25906_v9, %v25990_v38 }
 0x6a7   : > { %v26122_v28 = vrot.slane %v13992_v30, %v21679_v0  ;;  %v14255_v33 = vrot.slane %v14241_v32, %v21690_v23  ;;  %v14264_v45 = vrot.slane %v14256_v15, %v21690_v23  ;;  %v14271_v40 = vrot.slane %v14257_v5, %v21690_v23 }
 0x6a8   : > { %29314 = vst [vmem:[#allocation81_spill] sm:$0xff] %v26111_v13  ;;  %29315 = vst [vmem:[#allocation16_spill] sm:$0xff] %v26114_v50  ;;  %v26129_v21 = vrot.slane %v13999_v63, %v21679_v0  ;;  %v14039_v34 = vrot.slane %v14025_v20, %v21679_v0  ;;  %v14297_v31 = vcombine.high %v25906_v9, %v25990_v38  ;;  %v10048_v9 = vpop.trf.xlu0  ;;  %v29318_v38 = vld [vmem:[#allocation208_spill] sm:$0xff] }
 0x6a9   : > { %18874 = vrot.lane.b32.xlu1 %v17946_v10, %s20593_s17  ;;  %v10016_v10 = vpop.trf.xlu1  ;;  %v18218_v30 = vcombine.low %v26086_v17, %v26089_v18  ;;  %v26137_v32 = vrot.slane %v14248_v60, %v21679_v0  ;;  %v14072_v15 = vcombine.low %v26021_v41, %v14032_v1  ;;  %v18082_v63 = vcombine.low %v26105_v36, %v26108_v11 }
 0x6aa   : > { %18872 = vrot.lane.b32.xlu0 %v17810_v16, %s20593_s17  ;;  %v14040_v5 = vcombine.low %v26016_v48, %v10016_v10  ;;  %v14073_v16 = vcombine.high %v26021_v41, %v14032_v1  ;;  %v14041_v20 = vcombine.high %v26016_v48, %v10016_v10  ;;  %v14304_v37 = vrot.slane %v14296_v46, %v21679_v0 }
 0x6ab   : > { %v17761_v60 = vcombine.high %v29318_v38, %v26111_v13  ;;  %v26150_v59 = vrot.slane %v14255_v33, %v21679_v0  ;;  %v26153_v29 = vrot.slane %v14264_v45, %v21679_v0  ;;  %v26156_v42 = vrot.slane %v14271_v40, %v21679_v0  ;;  %v29320_v33 = vld [vmem:[#allocation209_spill] sm:$0xff] }
 0x6ac   : > { %v14088_v41 = vcombine.low %v26024_v57, %v14039_v34  ;;  %v14089_v46 = vcombine.high %v26024_v57, %v14039_v34  ;;  %v14311_v1 = vrot.slane %v14297_v31, %v21679_v0  ;;  %v17793_v10 = vcombine.high %v29320_v33, %v26114_v50  ;;  %v29323_v33 = vld [vmem:[#allocation69_spill] sm:$0xff]  ;;  %v29326_v50 = vld [vmem:[#allocation210_spill] sm:$0xff] }
 0x6ad   : > { %18878 = vrot.lane.b32.xlu1 %v18218_v30, %s20593_s17  ;;  %29319 = vst [vmem:[#allocation82_spill] sm:$0xff] %v26150_v59  ;;  %v14080_v45 = vrot.slane %v14072_v15, %v21690_v23  ;;  %v14056_v30 = vcombine.low %v26034_v52, %v10048_v9  ;;  %v14087_v48 = vrot.slane %v14073_v16, %v21690_v23  ;;  %v10017_v57 = vpop.trf.xlu1  ;;  %v29322_v16 = vld [vmem:[#allocation68_spill] sm:$0xff] }
 0x6ae   : > { %18876 = vrot.lane.b32.xlu0 %v18082_v63, %s20593_s17  ;;  %v26171_v63 = vrot.slane %v17761_v60, %v21690_v23  ;;  %v14048_v56 = vrot.slane %v14040_v5, %v21679_v0  ;;  %v26176_v34 = vrot.slane %v14041_v20, %v21679_v0  ;;  %v14344_v31 = vcombine.low %v26055_v43, %v14304_v37  ;;  %s20611_s17 = smov 6  }
 0x6af   : > { %v29321_v15 = vcombine.high %v29261_v6, %v29262_v61  ;;  %v14312_v40 = vcombine.low %v26072_v8, %v10017_v57  ;;  %v14313_v60 = vcombine.high %v26072_v8, %v10017_v57  ;;  %v29324_v5 = vcombine.high %v29322_v16, %v29323_v33 }
 0x6b0   : > { %v26190_v20 = vrot.slane %v17793_v10, %v21690_v23  ;;  %v17897_v38 = vcombine.high %v29326_v50, %v26122_v28  ;;  %v14096_v13 = vrot.slane %v14088_v41, %v21690_v23  ;;  %v14103_v6 = vrot.slane %v14089_v46, %v21690_v23 }
 0x6b1   : > { %18914 = vrot.lane.b32.xlu1 %v29321_v15, %s20611_s17  ;;  %v14345_v61 = vcombine.high %v26055_v43, %v14304_v37  ;;  %v14360_v15 = vcombine.low %v26070_v7, %v14311_v1  ;;  %v26199_v8 = vrot.slane %v14080_v45, %v21679_v0  ;;  %v14057_v33 = vcombine.high %v26034_v52, %v10048_v9  ;;  %v10049_v52 = vpop.trf.xlu0 }
 0x6b2   : > { %18912 = vrot.lane.b32.xlu0 %v29324_v5, %s20611_s17  ;;  %29325 = vst [vmem:[#allocation83_spill] sm:$0xff] %v26190_v20  ;;  %v14064_v57 = vrot.slane %v14056_v30, %v21679_v0  ;;  %v26206_v16 = vrot.slane %v14087_v48, %v21679_v0  ;;  %v14352_v41 = vrot.slane %v14344_v31, %v21690_v23  ;;  %v29330_v48 = vld [vmem:[#allocation211_spill] sm:$0xff]  ;;  %v29331_v30 = vld [vmem:[#allocation220_spill] sm:$0xff] }
 0x6b3   : > { %v14361_v46 = vcombine.high %v26070_v7, %v14311_v1  ;;  %v29328_v43 = vcombine.high %v29271_v12, %v29272_v4  ;;  %v26215_v37 = vrot.slane %v17897_v38, %v21690_v23  ;;  %v29329_v9 = vcombine.high %v29276_v53, %v29277_v55  ;;  %v29332_v1 = vld [vmem:[#allocation221_spill] sm:$0xff]  ;;  %v29333_v4 = vld [vmem:[#allocation222_spill] sm:$0xff] }
 0x6b4   : > { %29327 = vst [vmem:[#allocation84_spill] sm:$0xff] %v26206_v16  ;;  %v17929_v45 = vcombine.high %v29330_v48, %v26129_v21  ;;  %v18033_v7 = vcombine.high %v29331_v30, %v26137_v32  ;;  %v18065_v31 = vcombine.high %v29332_v1, %v26150_v59  ;;  %v18169_v12 = vcombine.high %v29333_v4, %v26153_v29 }
 0x6b5   : > { %18918 = vrot.lane.b32.xlu1 %v29328_v43, %s20611_s17  ;;  %v14359_v38 = vrot.slane %v14345_v61, %v21690_v23  ;;  %v14368_v5 = vrot.slane %v14360_v15, %v21690_v23  ;;  %v29334_v43 = vld [vmem:[#allocation223_spill] sm:$0xff]  ;;  %v14104_v10 = vcombine.low %v14048_v56, %v14064_v57  ;;  %v14328_v59 = vcombine.low %v26093_v47, %v10049_v52 }
 0x6b6   : > { %18916 = vrot.lane.b32.xlu0 %v29329_v9, %s20611_s17  ;;  %v18201_v53 = vcombine.high %v29334_v43, %v26156_v42  ;;  %v14071_v9 = vrot.slane %v14057_v33, %v21679_v0  ;;  %v26237_v30 = vrot.slane %v17929_v45, %v21690_v23  ;;  %v26240_v1 = vrot.slane %v18033_v7, %v21690_v23 }
 0x6b7   : > { %v29335_v61 = vcombine.high %v29287_v49, %v29288_v27  ;;  %v26248_v15 = vrot.slane %v18065_v31, %v21690_v23  ;;  %v26251_v55 = vrot.slane %v18169_v12, %v21690_v23  ;;  %v14105_v45 = vcombine.high %v14048_v56, %v14064_v57  ;;  %v29347_v31 = vld [vmem:[#allocation112_spill] sm:$0xff]  ;;  %v29348_v12 = vld [vmem:[#allocation113_spill] sm:$0xff]  ;;  %v29350_v49 = vld [vmem:[#allocation70_spill] sm:$0xff] }
 0x6b8   : > { %v26254_v33 = vrot.slane %v18201_v53, %v21690_v23  ;;  %v14329_v7 = vcombine.high %v26093_v47, %v10049_v52  ;;  %v29336_v20 = vcombine.high %v29291_v25, %v29292_v51  ;;  %v26274_v25 = vrot.slane %v14096_v13, %v21679_v0 }
 0x6b9   : > { %18922 = vrot.lane.b32.xlu1 %v29335_v61, %s20611_s17  ;;  %v14375_v51 = vrot.slane %v14361_v46, %v21690_v23  ;;  %v14327_v57 = vrot.slane %v14313_v60, %v21679_v0  ;;  %v14112_v52 = vrot.slane %v14104_v10, %v21690_v23  ;;  %v14120_v53 = vcombine.low %v26176_v34, %v14071_v9  ;;  %v29339_v60 = vld [vmem:[#allocation224_spill] sm:$0xff] }
 0x6ba   : > { %18920 = vrot.lane.b32.xlu0 %v29336_v20, %s20611_s17  ;;  %v14320_v20 = vrot.slane %v14312_v40, %v21679_v0  ;;  %v14121_v61 = vcombine.high %v26176_v34, %v14071_v9  ;;  %v14336_v47 = vrot.slane %v14328_v59, %v21679_v0  ;;  %v29337_v56 = vcombine.high %v29294_v54, %v29295_v26  ;;  %v29340_v34 = vld [vmem:[#allocation225_spill] sm:$0xff] }
 0x6bb   : > { %v14119_v13 = vrot.slane %v14105_v45, %v21690_v23  ;;  %v14343_v46 = vrot.slane %v14329_v7, %v21679_v0  ;;  %v29338_v40 = vcombine.high %v29297_v58, %v29298_v3  ;;  %v18289_v10 = vcombine.high %v29339_v60, %v26199_v8 }
 0x6bc   : > { %v18321_v59 = vcombine.high %v29340_v34, %v26206_v16  ;;  %v26298_v9 = vrot.slane %v14103_v6, %v21679_v0  ;;  %v26301_v26 = vrot.slane %v14352_v41, %v21679_v0  ;;  %v26304_v54 = vrot.slane %v14359_v38, %v21679_v0  ;;  %v29353_v34 = vld [vmem:[#allocation226_spill] sm:$0xff] }
 0x6bd   : > { %18926 = vrot.lane.b32.xlu1 %v29337_v56, %s20611_s17  ;;  %v26307_v45 = vrot.slane %v14368_v5, %v21679_v0  ;;  %v26310_v3 = vrot.slane %v14375_v51, %v21679_v0  ;;  %v26313_v58 = vrot.slane %v18289_v10, %v21690_v23  ;;  %v18425_v6 = vcombine.high %v25922_v24, %v26274_v25  ;;  %v29344_v51 = vld [vmem:[#allocation111_spill] sm:$0xff] }
 0x6be   : > { %18924 = vrot.lane.b32.xlu0 %v29338_v40, %s20611_s17  ;;  %v26316_v7 = vrot.slane %v18321_v59, %v21690_v23  ;;  %v14128_v41 = vrot.slane %v14120_v53, %v21690_v23  ;;  %v14135_v38 = vrot.slane %v14121_v61, %v21690_v23  ;;  %v26323_v56 = vrot.slane %v14112_v52, %v21679_v0 }
 0x6bf   : > { %29341 = vst [vmem:[#allocation17_spill] sm:$0xff] %v26313_v58  ;;  %v14376_v5 = vcombine.low %v14320_v20, %v14336_v47  ;;  %v29345_v40 = vcombine.high %v29300_v19, %v29344_v51  ;;  %v26330_v10 = vrot.slane %v14119_v13, %v21679_v0  ;;  %v14377_v59 = vcombine.high %v14320_v20, %v14336_v47  ;;  %v29351_v51 = vld [vmem:[#allocation71_spill] sm:$0xff]  ;;  %v29352_v47 = vld [vmem:[#allocation72_spill] sm:$0xff] }
 0x6c0   : > { %29342 = vst [vmem:[#allocation85_spill] sm:$0xff] %v26316_v7  ;;  %29343 = vst [vmem:[#allocation110_spill] sm:$0xff] %v26323_v56  ;;  %v14392_v27 = vcombine.low %v14327_v57, %v14343_v46  ;;  %v29349_v53 = vcombine.high %v29347_v31, %v29348_v12  ;;  %v26339_v61 = vrot.slane %v18425_v6, %v21690_v23  ;;  %v29354_v12 = vld [vmem:[#allocation227_spill] sm:$0xff] }
 0x6c1   : > { %18930 = vrot.lane.b32.xlu1 %v29345_v40, %s20611_s17  ;;  %29346 = vst [vmem:[#allocation114_spill] sm:$0xff] %v26330_v10  ;;  %v18457_v19 = vcombine.high %v29350_v49, %v26298_v9  ;;  %v18561_v13 = vcombine.high %v29351_v51, %v26301_v26  ;;  %v18593_v20 = vcombine.high %v29352_v47, %v26304_v54 }
 0x6c2   : > { %18928 = vrot.lane.b32.xlu0 %v29349_v53, %s20611_s17  ;;  %v14393_v40 = vcombine.high %v14327_v57, %v14343_v46  ;;  %v18697_v31 = vcombine.high %v29353_v34, %v26307_v45  ;;  %v18729_v53 = vcombine.high %v29354_v12, %v26310_v3  ;;  %v14384_v52 = vrot.slane %v14376_v5, %v21690_v23  ;;  %v29358_v5 = vld [vmem:[#allocation116_spill] sm:$0xff] }
 0x6c3   : > { %v29355_v16 = vcombine.high %v29306_v22, %v29307_v44  ;;  %v26359_v51 = vrot.slane %v18457_v19, %v21690_v23  ;;  %v26362_v57 = vrot.slane %v18561_v13, %v21690_v23  ;;  %v26365_v46 = vrot.slane %v18593_v20, %v21690_v23  ;;  %v29370_v13 = vld [vmem:[#allocation229_spill] sm:$0xff] }
 0x6c4   : > { %v14391_v47 = vrot.slane %v14377_v59, %v21690_v23  ;;  %v14400_v6 = vrot.slane %v14392_v27, %v21690_v23  ;;  %v29359_v7 = vcombine.high %v29309_v35, %v29358_v5  ;;  %v26374_v44 = vrot.slane %v18697_v31, %v21690_v23  ;;  %v29363_v31 = vld [vmem:[#allocation228_spill] sm:$0xff]  ;;  %v29365_v5 = vld [vmem:[#allocation66_spill] sm:$0xff]  ;;  %v29366_v27 = vld [vmem:[#allocation73_spill] sm:$0xff] }
 0x6c5   : > { %18934 = vrot.lane.b32.xlu1 %v29355_v16, %s20611_s17  ;;  %29356 = vst [vmem:[#allocation115_spill] sm:$0xff] %v26362_v57  ;;  %29357 = vst [vmem:[#allocation34_spill] sm:$0xff] %v26365_v46  ;;  %v26377_v22 = vrot.slane %v18729_v53, %v21690_v23  ;;  %v26388_v35 = vrot.slane %v14128_v41, %v21679_v0  ;;  %v26397_v53 = vrot.slane %v29363_v31, %v21679_v0  ;;  %v29369_v16 = vld [vmem:[#allocation67_spill] sm:$0xff] }
 0x6c6   : > { %18932 = vrot.lane.b32.xlu0 %v29359_v7, %s20611_s17  ;;  %29360 = vst [vmem:[#allocation68_spill] sm:$0xff] %v26374_v44  ;;  %v14407_v7 = vrot.slane %v14393_v40, %v21690_v23  ;;  %v29367_v19 = vcombine.low %v29365_v5, %v29366_v27  ;;  %v29368_v41 = vcombine.high %v29365_v5, %v29366_v27  ;;  %v26586_v44 = vpop.permute.xlu0 %18786 }
 0x6c7   : > { %29361 = vst [vmem:[#allocation69_spill] sm:$0xff] %v26377_v22  ;;  %29362 = vst [vmem:[#allocation210_spill] sm:$0xff] %v26388_v35  ;;  %v29371_v46 = vcombine.low %v29369_v16, %v29370_v13  ;;  %v29372_v31 = vcombine.high %v26027_v14, %v26041_v62  ;;  %v29373_v20 = vcombine.high %v29369_v16, %v29370_v13  ;;  %v29437_v22 = vld [vmem:[#allocation221_spill] sm:$0xff] }
 0x6c8   : > { %29364 = vst [vmem:[#allocation211_spill] sm:$0xff] %v26397_v53  ;;  %v13840_v59 = vrot.slane %v29367_v19, %v21690_v23  ;;  %v13847_v40 = vrot.slane %v29368_v41, %v21690_v23  ;;  %v29374_v27 = vcombine.high %v26058_v39, %v26063_v2  ;;  %v18219_v5 = vcombine.high %v26086_v17, %v26089_v18  ;;  %v29375_v41 = vld [vmem:[#allocation231_spill] sm:$0xff]  ;;  %v26441_v2 = vpop.permute.xlu1 %18784  ;;  %v29383_v18 = vld [vmem:[#allocation80_spill] sm:$0xff] }
 0x6c9   : > { %v13856_v57 = vrot.slane %v29371_v46, %v21690_v23  ;;  %18938 = vrot.lane.b32.xlu1 %v29372_v31, %s20611_s17  ;;  %v13863_v19 = vrot.slane %v29373_v20, %v21690_v23  ;;  %v18083_v46 = vcombine.high %v26105_v36, %v26108_v11  ;;  %v18305_v14 = vcombine.high %v29375_v41, %v26323_v56  ;;  %v29426_v41 = vld [vmem:[#allocation16_spill] sm:$0xff]  ;;  %v29427_v56 = vld [vmem:[#allocation209_spill] sm:$0xff] }
 0x6ca   : > { %18936 = vrot.lane.b32.xlu0 %v29374_v27, %s20611_s17  ;;  %v26430_v62 = vrot.slane %v14135_v38, %v21679_v0  ;;  %v26433_v16 = vrot.slane %v14384_v52, %v21679_v0  ;;  %v26436_v13 = vrot.slane %v14391_v47, %v21679_v0  ;;  %v26439_v39 = vrot.slane %v14400_v6, %v21679_v0  ;;  %v29384_v52 = vld [vmem:[#allocation230_spill] sm:$0xff] }
 0x6cb   : > { %29380 = vst [vmem:[#allocation112_spill] sm:$0xff] %v26441_v2  ;;  %v26444_v17 = vrot.slane %v14407_v7, %v21679_v0  ;;  %v26447_v36 = vrot.slane %v18305_v14, %v21690_v23  ;;  %v18337_v11 = vcombine.high %v29383_v18, %v26330_v10  ;;  %v18441_v38 = vcombine.high %v26397_v53, %v26388_v35  ;;  %v29424_v18 = vld [vmem:[#allocation81_spill] sm:$0xff]  ;;  %v29431_v53 = vld [vmem:[#allocation128_spill] sm:$0xff] }
 0x6cc   : > { %29376 = vst [vmem:[#allocation222_spill] sm:$0xff] %v26430_v62  ;;  %29377 = vst [vmem:[#allocation223_spill] sm:$0xff] %v26433_v16  ;;  %v26455_v47 = vrot.slane %v29384_v52, %v21679_v0  ;;  %v26458_v6 = vrot.slane %v13840_v59, %v21679_v0  ;;  %v26461_v20 = vrot.slane %v13847_v40, %v21679_v0 }
 0x6cd   : > { %29378 = vst [vmem:[#allocation224_spill] sm:$0xff] %v26436_v13  ;;  %29379 = vst [vmem:[#allocation111_spill] sm:$0xff] %v26439_v39  ;;  %v26464_v7 = vrot.slane %v13856_v57, %v21679_v0  ;;  %18942 = vrot.lane.b32.xlu1 %v18219_v5, %s20611_s17  ;;  %v26468_v31 = vrot.slane %v13863_v19, %v21679_v0  ;;  %v26472_v27 = vrot.slane %v18337_v11, %v21690_v23  ;;  %v29392_v11 = vld [vmem:[#allocation86_spill] sm:$0xff] }
 0x6ce   : > { %29381 = vst [vmem:[#allocation113_spill] sm:$0xff] %v26444_v17  ;;  %29382 = vst [vmem:[#allocation70_spill] sm:$0xff] %v26447_v36  ;;  %18940 = vrot.lane.b32.xlu0 %v18083_v46, %s20611_s17  ;;  %v26475_v14 = vrot.slane %v18441_v38, %v21690_v23  ;;  %v18473_v59 = vcombine.high %v26455_v47, %v26430_v62  ;;  %v18577_v57 = vcombine.high %v26458_v6, %v26433_v16  ;;  %v29393_v38 = vld [vmem:[#allocation87_spill] sm:$0xff]  ;;  %v29400_v46 = vld [vmem:[#allocation88_spill] sm:$0xff] }
 0x6cf   : > { %29385 = vst [vmem:[#allocation226_spill] sm:$0xff] %v26455_v47  ;;  %29386 = vst [vmem:[#allocation227_spill] sm:$0xff] %v26458_v6  ;;  %v18609_v40 = vcombine.high %v26461_v20, %v26436_v13  ;;  %v18713_v0 = vcombine.high %v26464_v7, %v26439_v39  ;;  %v18745_v5 = vcombine.high %v26468_v31, %v26444_v17  ;;  %v26507_v6 = vpop.permute.xlu1 %18788  ;;  %v29405_v16 = vld [vmem:[#allocation18_spill] sm:$0xff] }
 0x6d0   : > { %29387 = vst [vmem:[#allocation116_spill] sm:$0xff] %v26461_v20  ;;  %29388 = vst [vmem:[#allocation228_spill] sm:$0xff] %v26464_v7  ;;  %v29394_v52 = vcombine.low %v29392_v11, %v29393_v38  ;;  %v26496_v2 = vrot.slane %v18473_v59, %v21690_v23  ;;  %v26499_v20 = vrot.slane %v18577_v57, %v21690_v23  ;;  %v29407_v59 = vld [vmem:[#allocation22_spill] sm:$0xff]  ;;  %v29408_v57 = vld [vmem:[#allocation8_spill] sm:$0xff] }
 0x6d1   : > { %29389 = vst [vmem:[#allocation66_spill] sm:$0xff] %v26468_v31  ;;  %29390 = vst [vmem:[#allocation73_spill] sm:$0xff] %v26472_v27  ;;  %v26502_v13 = vrot.slane %v18609_v40, %v21690_v23  ;;  %v26505_v19 = vrot.slane %v18713_v0, %v21690_v23  ;;  %v29401_v27 = vld [vmem:[#allocation89_spill] sm:$0xff]  ;;  %v29409_v17 = vcombine.low %v29407_v59, %v29408_v57  ;;  %v29411_v0 = vld [vmem:[#allocation10_spill] sm:$0xff] }
 0x6d2   : > { %29391 = vst [vmem:[#allocation67_spill] sm:$0xff] %v26475_v14  ;;  %18978 = vrot.lane.b32.xlu1 %v29394_v52, %s20594_s18  ;;  %29395 = vst [vmem:[#allocation229_spill] sm:$0xff] %v26496_v2  ;;  %v29402_v36 = vcombine.low %v29400_v46, %v29401_v27  ;;  %v26514_v52 = vrot.slane %v18745_v5, %v21690_v23  ;;  %v29404_v5 = vld [vmem:[#allocation21_spill] sm:$0xff]  ;;  %v17928_v39 = vcombine.low %v29330_v48, %v26129_v21 }
 0x6d3   : > { %29396 = vst [vmem:[#allocation230_spill] sm:$0xff] %v26499_v20  ;;  %29397 = vst [vmem:[#allocation86_spill] sm:$0xff] %v26502_v13  ;;  %v29406_v31 = vcombine.low %v29404_v5, %v29405_v16  ;;  %v26536_v40 = vpop.permute.xlu1 %18790  ;;  %v29412_v13 = vld [vmem:[#allocation93_spill] sm:$0xff]  ;;  %v17792_v47 = vcombine.low %v29427_v56, %v29426_v41  ;;  %v18168_v21 = vcombine.low %v29333_v4, %v26153_v29  ;;  %v29440_v29 = vld [vmem:[#allocation130_spill] sm:$0xff] }
 0x6d4   : > { %29398 = vst [vmem:[#allocation87_spill] sm:$0xff] %v26505_v19  ;;  %29399 = vst [vmem:[#allocation232_spill] sm:$0xff] %v26507_v6  ;;  %18976 = vrot.lane.b32.xlu0 %v29402_v36, %s20594_s18  ;;  %v29413_v20 = vcombine.low %v29411_v0, %v29412_v13  ;;  %v29414_v6 = vld [vmem:[#allocation94_spill] sm:$0xff]  ;;  %v29415_v36 = vld [vmem:[#allocation95_spill] sm:$0xff]  ;;  %v18200_v48 = vcombine.low %v29334_v43, %v26156_v42 }
 0x6d5   : > { %29403 = vst [vmem:[#allocation88_spill] sm:$0xff] %v26514_v52  ;;  %29410 = vst [vmem:[#allocation89_spill] sm:$0xff] %v26536_v40  ;;  %v29416_v52 = vcombine.low %v29414_v6, %v29415_v36  ;;  %v29417_v19 = vld [vmem:[#allocation24_spill] sm:$0xff]  ;;  %v29422_v40 = vld [vmem:[#allocation99_spill] sm:$0xff] }
 0x6d6   : > { %18982 = vrot.lane.b32.xlu1 %v29406_v31, %s20594_s18  ;;  %v29418_v31 = vld [vmem:[#allocation11_spill] sm:$0xff]  ;;  %29438 = vst [vmem:[#allocation22_spill] sm:$0xff] %v26586_v44  ;;  %v29442_v42 = vld [vmem:[#allocation132_spill] sm:$0xff]  ;;  %v29443_v43 = vld [vmem:[#allocation133_spill] sm:$0xff] }
 0x6d7   : > { %v29419_v2 = vcombine.low %v29417_v19, %v29418_v31  ;;  %v26550_v14 = vpop.permute.xlu1 %18792 }
 0x6d8   : > { %18980 = vrot.lane.b32.xlu0 %v29409_v17, %s20594_s18  ;;  %29420 = vst [vmem:[#allocation21_spill] sm:$0xff] %v26550_v14  ;;  %v29421_v17 = vld [vmem:[#allocation98_spill] sm:$0xff] }
 0x6d9   : > { %v29423_v7 = vcombine.low %v29421_v17, %v29422_v40  ;;  %v29429_v14 = vld [vmem:[#allocation42_spill] sm:$0xff] }
 0x6da   : > { %18986 = vrot.lane.b32.xlu1 %v29413_v20, %s20594_s18  ;;  %v17896_v20 = vcombine.low %v29326_v50, %v26122_v28  ;;  %v17936_v28 = vrot.slane %v17928_v39, %v21690_v23  ;;  %v29439_v39 = vld [vmem:[#allocation46_spill] sm:$0xff] }
 0x6db   : > { %v26578_v56 = vpop.permute.xlu1 %18794  ;;  %v29441_v4 = vcombine.low %v29439_v39, %v29440_v29 }
 0x6dc   : > { %18984 = vrot.lane.b32.xlu0 %v29416_v52, %s20594_s18  ;;  %v29425_v52 = vld [vmem:[#allocation208_spill] sm:$0xff]  ;;  %v17904_v50 = vrot.slane %v17896_v20, %v21690_v23  ;;  %29434 = vst [vmem:[#allocation18_spill] sm:$0xff] %v26578_v56  ;;  %v29444_v56 = vcombine.low %v29442_v42, %v29443_v43 }
 0x6dd   : > { %v17760_v10 = vcombine.low %v29425_v52, %v29424_v18  ;;  %v29435_v18 = vld [vmem:[#allocation220_spill] sm:$0xff] }
 0x6de   : > { %18990 = vrot.lane.b32.xlu1 %v29419_v2, %s20594_s18  ;;  %v29428_v2 = vld [vmem:[#allocation52_spill] sm:$0xff]  ;;  %v18032_v52 = vcombine.low %v29435_v18, %v26137_v32  ;;  %v18208_v32 = vrot.slane %v18200_v48, %v21690_v23 }
 0x6df   : > { %v29430_v62 = vcombine.low %v29428_v2, %v29429_v14  ;;  %v17768_v41 = vrot.slane %v17760_v10, %v21690_v23  ;;  %v17948_v10 = vcombine.low %v17904_v50, %v17936_v28  ;;  %v26601_v44 = vpop.permute.xlu1 %18798 }
 0x6e0   : > { %18988 = vrot.lane.b32.xlu0 %v29423_v7, %s20594_s18  ;;  %v29432_v7 = vld [vmem:[#allocation129_spill] sm:$0xff] }
 0x6e1   : > { %v29433_v35 = vcombine.low %v29431_v53, %v29432_v7 }
 0x6e2   : > { %18994 = vrot.lane.b32.xlu1 %v29430_v62, %s20594_s18  ;;  %v17800_v62 = vrot.slane %v17792_v47, %v21690_v23  ;;  %v18176_v47 = vrot.slane %v18168_v21, %v21690_v23 }
 0x6e3   : > { %v26608_v21 = vpop.permute.xlu1 %18802 }
 0x6e4   : > { %18992 = vrot.lane.b32.xlu0 %v29433_v35, %s20594_s18  ;;  %v29436_v35 = vld [vmem:[#allocation82_spill] sm:$0xff]  ;;  %v17812_v18 = vcombine.low %v17768_v41, %v17800_v62  ;;  %v18220_v58 = vcombine.low %v18176_v47, %v18208_v32 }
 0x6e5   : > { %v18064_v20 = vcombine.low %v29437_v22, %v29436_v35  ;;  %v18040_v22 = vrot.slane %v18032_v52, %v21690_v23  ;;  %v29445_v52 = vcombine.high %v29392_v11, %v29393_v38  ;;  %v29449_v11 = vcombine.high %v29411_v0, %v29412_v13 }
 0x6e6   : > { %18998 = vrot.lane.b32.xlu1 %v29441_v4, %s20594_s18  ;;  %v26604_v4 = vpop.permute.xlu0 %18796  ;;  %v29451_v38 = vcombine.high %v29417_v19, %v29418_v31  ;;  %v29454_v0 = vcombine.high %v29431_v53, %v29432_v7  ;;  %v17949_v31 = vcombine.high %v17904_v50, %v17936_v28  ;;  %v17813_v53 = vcombine.high %v17768_v41, %v17800_v62  ;;  %v29465_v28 = vld [vmem:[#allocation28_spill] sm:$0xff]  ;;  %v29466_v41 = vld [vmem:[#allocation9_spill] sm:$0xff] }
 0x6e7   : > { %v18072_v35 = vrot.slane %v18064_v20, %v21690_v23  ;;  %v29446_v20 = vcombine.high %v29400_v46, %v29401_v27  ;;  %v29450_v27 = vcombine.high %v29414_v6, %v29415_v36  ;;  %v29453_v6 = vcombine.high %v29428_v2, %v29429_v14 }
 0x6e8   : > { %18996 = vrot.lane.b32.xlu0 %v29444_v56, %s20594_s18  ;;  %v18221_v7 = vcombine.high %v18176_v47, %v18208_v32  ;;  %v29467_v62 = vcombine.low %v29465_v28, %v29466_v41 }
 0x6e9   : > { %v18084_v56 = vcombine.low %v18040_v22, %v18072_v35 }
 0x6ea   : > { %19002 = vrot.lane.b32.xlu1 %v17948_v10, %s20594_s18  ;;  %v26610_v48 = vpop.permute.xlu0 %18800  ;;  %v26624_v10 = vpop.permute.xlu1 %18806 }
 0x6ec   : > { %19000 = vrot.lane.b32.xlu0 %v17812_v18, %s20594_s18  ;;  %v29448_v18 = vcombine.high %v29407_v59, %v29408_v57  ;;  %v29452_v59 = vcombine.high %v29421_v17, %v29422_v40  ;;  %v29457_v40 = vcombine.high %v29439_v39, %v29440_v29  ;;  %v18085_v29 = vcombine.high %v18040_v22, %v18072_v35  ;;  %v29473_v35 = vld [vmem:[#allocation96_spill] sm:$0xff] }
 0x6ee   : > { %19006 = vrot.lane.b32.xlu1 %v18220_v58, %s20594_s18  ;;  %v29447_v58 = vcombine.high %v29404_v5, %v29405_v16  ;;  %v29458_v5 = vcombine.high %v29442_v42, %v29443_v43  ;;  %v29468_v43 = vld [vmem:[#allocation90_spill] sm:$0xff] }
 0x6f0   : > { %19004 = vrot.lane.b32.xlu0 %v18084_v56, %s20594_s18  ;;  %v26630_v56 = vpop.permute.xlu0 %18804 }
 0x6f2   : > { %19042 = vrot.lane.b32.xlu1 %v29445_v52, %s20612_s15  ;;  %v29469_v52 = vld [vmem:[#allocation91_spill] sm:$0xff] }
 0x6f3   : > { %v29470_v47 = vcombine.low %v29468_v43, %v29469_v52 }
 0x6f4   : > { %19040 = vrot.lane.b32.xlu0 %v29446_v20, %s20612_s15  ;;  %v26640_v16 = vpop.permute.xlu1 %18810  ;;  %v29474_v20 = vld [vmem:[#allocation97_spill] sm:$0xff] }
 0x6f5   : > { %v26642_v46 = vpop.permute.xlu0 %18808 }
 0x6f6   : > { %19046 = vrot.lane.b32.xlu1 %v29447_v58, %s20612_s15  ;;  %v29475_v58 = vcombine.low %v29473_v35, %v29474_v20 }
 0x6f8   : > { %19044 = vrot.lane.b32.xlu0 %v29448_v18, %s20612_s15  ;;  %v29476_v18 = vld [vmem:[#allocation92_spill] sm:$0xff] }
 0x6f9   : > { %v26652_v13 = vpop.permute.xlu1 %18814 }
 0x6fa   : > { %19050 = vrot.lane.b32.xlu1 %v29449_v11, %s20612_s15  ;;  %v26654_v57 = vpop.permute.xlu0 %18812  ;;  %v29477_v11 = vld [vmem:[#allocation23_spill] sm:$0xff] }
 0x6fc   : > { %19048 = vrot.lane.b32.xlu0 %v29450_v27, %s20612_s15  ;;  %v29478_v27 = vcombine.low %v29476_v18, %v29477_v11 }
 0x6fe   : > { %19054 = vrot.lane.b32.xlu1 %v29451_v38, %s20612_s15 }
 0x700   : > { %19052 = vrot.lane.b32.xlu0 %v29452_v59, %s20612_s15  ;;  %v26664_v19 = vpop.permute.xlu1 %18850 }
 0x701   : > { %29455 = vst [vmem:[#allocation8_spill] sm:$0xff] %v26664_v19  ;;  %v26666_v36 = vpop.permute.xlu0 %18848 }
 0x702   : > { %19058 = vrot.lane.b32.xlu1 %v29453_v6, %s20612_s15  ;;  %29456 = vst [vmem:[#allocation10_spill] sm:$0xff] %v26666_v36  ;;  %v29481_v6 = vld [vmem:[#allocation100_spill] sm:$0xff] }
 0x704   : > { %19056 = vrot.lane.b32.xlu0 %v29454_v0, %s20612_s15  ;;  %v29482_v0 = vld [vmem:[#allocation101_spill] sm:$0xff] }
 0x705   : > { %v26676_v14 = vpop.permute.xlu1 %18854 }
 0x706   : > { %19062 = vrot.lane.b32.xlu1 %v29457_v40, %s20612_s15  ;;  %29459 = vst [vmem:[#allocation93_spill] sm:$0xff] %v26676_v14  ;;  %v26678_v17 = vpop.permute.xlu0 %18852  ;;  %v29483_v40 = vcombine.low %v29481_v6, %v29482_v0  ;;  %v29509_v14 = vld [vmem:[#allocation57_spill] sm:$0xff] }
 0x707   : > { %29460 = vst [vmem:[#allocation94_spill] sm:$0xff] %v26678_v17 }
 0x708   : > { %19060 = vrot.lane.b32.xlu0 %v29458_v5, %s20612_s15  ;;  %v29484_v5 = vld [vmem:[#allocation29_spill] sm:$0xff] }
 0x70a   : > { %19066 = vrot.lane.b32.xlu1 %v17949_v31, %s20612_s15  ;;  %v26682_v2 = vpop.permute.xlu1 %18858  ;;  %v29485_v31 = vld [vmem:[#allocation25_spill] sm:$0xff] }
 0x70b   : > { %29461 = vst [vmem:[#allocation95_spill] sm:$0xff] %v26682_v2 }
 0x70c   : > { %19064 = vrot.lane.b32.xlu0 %v17813_v53, %s20612_s15  ;;  %v26684_v39 = vpop.permute.xlu0 %18856  ;;  %v29486_v53 = vcombine.low %v29484_v5, %v29485_v31 }
 0x70d   : > { %29462 = vst [vmem:[#allocation24_spill] sm:$0xff] %v26684_v39  ;;  %v29506_v39 = vld [vmem:[#allocation138_spill] sm:$0xff] }
 0x70e   : > { %19070 = vrot.lane.b32.xlu1 %v18221_v7, %s20612_s15  ;;  %v26688_v42 = vpop.permute.xlu1 %18862 }
 0x70f   : > { %29463 = vst [vmem:[#allocation11_spill] sm:$0xff] %v26688_v42  ;;  %v29501_v42 = vld [vmem:[#allocation27_spill] sm:$0xff] }
 0x710   : > { %19068 = vrot.lane.b32.xlu0 %v18085_v29, %s20612_s15  ;;  %v26690_v50 = vpop.permute.xlu0 %18860 }
 0x711   : > { %29464 = vst [vmem:[#allocation98_spill] sm:$0xff] %v26690_v50 }
 0x712   : > { %19106 = vrot.lane.b32.xlu1 %v29467_v62, %s20595_s5  ;;  %v26700_v32 = vpop.permute.xlu1 %18866  ;;  %v29489_v62 = vld [vmem:[#allocation106_spill] sm:$0xff] }
 0x713   : > { %29471 = vst [vmem:[#allocation99_spill] sm:$0xff] %v26700_v32 }
 0x714   : > { %19104 = vrot.lane.b32.xlu0 %v29470_v47, %s20595_s5  ;;  %v26702_v22 = vpop.permute.xlu0 %18864  ;;  %v29490_v47 = vld [vmem:[#allocation107_spill] sm:$0xff] }
 0x715   : > { %29472 = vst [vmem:[#allocation81_spill] sm:$0xff] %v26702_v22  ;;  %v29498_v22 = vld [vmem:[#allocation136_spill] sm:$0xff] }
 0x716   : > { %19110 = vrot.lane.b32.xlu1 %v29475_v58, %s20595_s5  ;;  %v29491_v58 = vcombine.low %v29489_v62, %v29490_v47 }
 0x717   : > { %v26712_v38 = vpop.permute.xlu1 %18870 }
 0x718   : > { %19108 = vrot.lane.b32.xlu0 %v29478_v27, %s20595_s5  ;;  %29479 = vst [vmem:[#allocation208_spill] sm:$0xff] %v26712_v38  ;;  %v26714_v59 = vpop.permute.xlu0 %18868  ;;  %v29492_v27 = vld [vmem:[#allocation30_spill] sm:$0xff] }
 0x719   : > { %29480 = vst [vmem:[#allocation16_spill] sm:$0xff] %v26714_v59  ;;  %v29493_v59 = vld [vmem:[#allocation26_spill] sm:$0xff] }
 0x71a   : > { %19114 = vrot.lane.b32.xlu1 %v29483_v40, %s20595_s5  ;;  %v29494_v38 = vcombine.low %v29492_v27, %v29493_v59 }
 0x71b   : > { %v26724_v7 = vpop.permute.xlu1 %18874 }
 0x71c   : > { %19112 = vrot.lane.b32.xlu0 %v29486_v53, %s20595_s5  ;;  %29487 = vst [vmem:[#allocation209_spill] sm:$0xff] %v26724_v7  ;;  %v26726_v29 = vpop.permute.xlu0 %18872  ;;  %v29497_v53 = vld [vmem:[#allocation135_spill] sm:$0xff] }
 0x71d   : > { %29488 = vst [vmem:[#allocation52_spill] sm:$0xff] %v26726_v29  ;;  %v29499_v7 = vcombine.low %v29497_v53, %v29498_v22  ;;  %v29500_v29 = vld [vmem:[#allocation56_spill] sm:$0xff] }
 0x71e   : > { %19118 = vrot.lane.b32.xlu1 %v29491_v58, %s20595_s5  ;;  %v29502_v50 = vcombine.low %v29500_v29, %v29501_v42 }
 0x71f   : > { %v26736_v40 = vpop.permute.xlu1 %18878 }
 0x720   : > { %19116 = vrot.lane.b32.xlu0 %v29494_v38, %s20595_s5  ;;  %29495 = vst [vmem:[#allocation42_spill] sm:$0xff] %v26736_v40  ;;  %v26738_v32 = vpop.permute.xlu0 %18876  ;;  %v29505_v38 = vld [vmem:[#allocation31_spill] sm:$0xff] }
 0x721   : > { %29496 = vst [vmem:[#allocation128_spill] sm:$0xff] %v26738_v32  ;;  %v29507_v40 = vcombine.low %v29505_v38, %v29506_v39  ;;  %v29508_v32 = vld [vmem:[#allocation137_spill] sm:$0xff] }
 0x722   : > { %19122 = vrot.lane.b32.xlu1 %v29499_v7, %s20595_s5  ;;  %v29510_v17 = vcombine.low %v29508_v32, %v29509_v14 }
 0x723   : > { %v26748_v58 = vpop.permute.xlu1 %18914 }
 0x724   : > { %19120 = vrot.lane.b32.xlu0 %v29502_v50, %s20595_s5  ;;  %29503 = vst [vmem:[#allocation129_spill] sm:$0xff] %v26748_v58  ;;  %v26750_v2 = vpop.permute.xlu0 %18912  ;;  %v29513_v50 = vcombine.low %v26215_v37, %v26237_v30  ;;  %v29514_v58 = vld [vmem:[#allocation83_spill] sm:$0xff] }
 0x725   : > { %29504 = vst [vmem:[#allocation220_spill] sm:$0xff] %v26750_v2  ;;  %v29515_v2 = vcombine.low %v26171_v63, %v29514_v58 }
 0x726   : > { %19126 = vrot.lane.b32.xlu1 %v29507_v40, %s20595_s5 }
 0x727   : > { %v26760_v7 = vpop.permute.xlu1 %18918 }
 0x728   : > { %19124 = vrot.lane.b32.xlu0 %v29510_v17, %s20595_s5  ;;  %29511 = vst [vmem:[#allocation82_spill] sm:$0xff] %v26760_v7  ;;  %v26762_v19 = vpop.permute.xlu0 %18916  ;;  %v29518_v17 = vcombine.low %v26251_v55, %v26254_v33 }
 0x729   : > { %29512 = vst [vmem:[#allocation221_spill] sm:$0xff] %v26762_v19  ;;  %v29519_v19 = vcombine.low %v26240_v1, %v26248_v15 }
 0x72a   : > { %19130 = vrot.lane.b32.xlu1 %v29513_v50, %s20595_s5 }
 0x72b   : > { %v26772_v40 = vpop.permute.xlu1 %18922 }
 0x72c   : > { %19128 = vrot.lane.b32.xlu0 %v29515_v2, %s20595_s5  ;;  %29516 = vst [vmem:[#allocation46_spill] sm:$0xff] %v26772_v40  ;;  %v26774_v36 = vpop.permute.xlu0 %18920  ;;  %v29522_v2 = vcombine.high %v29465_v28, %v29466_v41  ;;  %v29530_v41 = vcombine.high %v29481_v6, %v29482_v0  ;;  %v29536_v6 = vcombine.high %v29497_v53, %v29498_v22 }
 0x72d   : > { %29517 = vst [vmem:[#allocation130_spill] sm:$0xff] %v26774_v36  ;;  %v29523_v36 = vcombine.high %v29468_v43, %v29469_v52  ;;  %v29537_v0 = vcombine.high %v29500_v29, %v29501_v42  ;;  %v29542_v42 = vcombine.high %v26215_v37, %v26237_v30  ;;  %v29543_v29 = vcombine.high %v26171_v63, %v29514_v58  ;;  %v29550_v30 = vld [vmem:[#allocation44_spill] sm:$0xff] }
 0x72e   : > { %19134 = vrot.lane.b32.xlu1 %v29518_v17, %s20595_s5  ;;  %v29551_v63 = vld [vmem:[#allocation36_spill] sm:$0xff] }
 0x72f   : > { %v26784_v50 = vpop.permute.xlu1 %18926  ;;  %v29552_v58 = vcombine.low %v29550_v30, %v29551_v63 }
 0x730   : > { %19132 = vrot.lane.b32.xlu0 %v29519_v19, %s20595_s5  ;;  %29520 = vst [vmem:[#allocation132_spill] sm:$0xff] %v26784_v50  ;;  %v26786_v7 = vpop.permute.xlu0 %18924  ;;  %v29526_v19 = vcombine.high %v29473_v35, %v29474_v20  ;;  %v29534_v35 = vcombine.high %v29489_v62, %v29490_v47  ;;  %v29535_v20 = vcombine.high %v29492_v27, %v29493_v59  ;;  %s20614_s5 = smov 18  }
 0x731   : > { %29521 = vst [vmem:[#allocation133_spill] sm:$0xff] %v26786_v7  ;;  %v29527_v7 = vcombine.high %v29476_v18, %v29477_v11  ;;  %v29538_v59 = vcombine.high %v29505_v38, %v29506_v39  ;;  %v29539_v62 = vcombine.high %v29508_v32, %v29509_v14  ;;  %v29546_v14 = vcombine.high %v26251_v55, %v26254_v33  ;;  %v29553_v38 = vld [vmem:[#allocation43_spill] sm:$0xff] }
 0x732   : > { %19170 = vrot.lane.b32.xlu1 %v29522_v2, %s20613_s16  ;;  %v29547_v32 = vcombine.high %v26240_v1, %v26248_v15  ;;  %v29558_v1 = vld [vmem:[#allocation117_spill] sm:$0xff]  ;;  %v29559_v15 = vld [vmem:[#allocation118_spill] sm:$0xff] }
 0x733   : > { %v26794_v40 = vpop.permute.xlu1 %18930 }
 0x734   : > { %19168 = vrot.lane.b32.xlu0 %v29523_v36, %s20613_s16  ;;  %29524 = vst [vmem:[#allocation28_spill] sm:$0xff] %v26794_v40  ;;  %v26796_v17 = vpop.permute.xlu0 %18928  ;;  %v29531_v36 = vcombine.high %v29484_v5, %v29485_v31  ;;  %v29586_v40 = vld [vmem:[#allocation163_spill] sm:$0xff] }
 0x735   : > { %29525 = vst [vmem:[#allocation9_spill] sm:$0xff] %v26796_v17  ;;  %v29585_v17 = vld [vmem:[#allocation162_spill] sm:$0xff] }
 0x736   : > { %19174 = vrot.lane.b32.xlu1 %v29526_v19, %s20613_s16  ;;  %v29560_v19 = vcombine.low %v29558_v1, %v29559_v15 }
 0x737   : > { %v26804_v50 = vpop.permute.xlu1 %18934 }
 0x738   : > { %19172 = vrot.lane.b32.xlu0 %v29527_v7, %s20613_s16  ;;  %29528 = vst [vmem:[#allocation90_spill] sm:$0xff] %v26804_v50  ;;  %v26806_v28 = vpop.permute.xlu0 %18932  ;;  %v29554_v7 = vld [vmem:[#allocation35_spill] sm:$0xff] }
 0x739   : > { %29529 = vst [vmem:[#allocation91_spill] sm:$0xff] %v26806_v28  ;;  %v29555_v2 = vcombine.low %v29553_v38, %v29554_v7  ;;  %v29580_v28 = vld [vmem:[#allocation84_spill] sm:$0xff] }
 0x73a   : > { %19178 = vrot.lane.b32.xlu1 %v29530_v41, %s20613_s16  ;;  %v29561_v41 = vld [vmem:[#allocation45_spill] sm:$0xff] }
 0x73b   : > { %v26814_v43 = vpop.permute.xlu1 %18938 }
 0x73c   : > { %19176 = vrot.lane.b32.xlu0 %v29531_v36, %s20613_s16  ;;  %29532 = vst [vmem:[#allocation96_spill] sm:$0xff] %v26814_v43  ;;  %v26816_v52 = vpop.permute.xlu0 %18936  ;;  %v29562_v36 = vld [vmem:[#allocation14_spill] sm:$0xff]  ;;  %v29578_v43 = vld [vmem:[#allocation19_spill] sm:$0xff] }
 0x73d   : > { %29533 = vst [vmem:[#allocation97_spill] sm:$0xff] %v26816_v52  ;;  %v29577_v52 = vld [vmem:[#allocation39_spill] sm:$0xff] }
 0x73e   : > { %19182 = vrot.lane.b32.xlu1 %v29534_v35, %s20613_s16  ;;  %v29563_v35 = vcombine.low %v29561_v41, %v29562_v36 }
 0x73f   : > { %v26824_v18 = vpop.permute.xlu1 %18942 }
 0x740   : > { %19180 = vrot.lane.b32.xlu0 %v29535_v20, %s20613_s16  ;;  %v26826_v11 = vpop.permute.xlu0 %18940 }
 0x742   : > { %19186 = vrot.lane.b32.xlu1 %v29536_v6, %s20613_s16 }
 0x744   : > { %19184 = vrot.lane.b32.xlu0 %v29537_v0, %s20613_s16  ;;  %v26834_v5 = vpop.permute.xlu1 %18978  ;;  %v29566_v0 = vld [vmem:[#allocation121_spill] sm:$0xff] }
 0x746   : > { %v26836_v31 = vpop.permute.xlu0 %18976  ;;  %19190 = vrot.lane.b32.xlu1 %v29538_v59, %s20613_s16  ;;  %v29567_v59 = vld [vmem:[#allocation122_spill] sm:$0xff] }
 0x748   : > { %19188 = vrot.lane.b32.xlu0 %v29539_v62, %s20613_s16  ;;  %v26844_v47 = vpop.permute.xlu1 %18982  ;;  %v29568_v62 = vcombine.low %v29566_v0, %v29567_v59 }
 0x749   : > { %29540 = vst [vmem:[#allocation92_spill] sm:$0xff] %v26844_v47 }
 0x74a   : > { %v26846_v22 = vpop.permute.xlu0 %18980  ;;  %19194 = vrot.lane.b32.xlu1 %v29542_v42, %s20613_s16  ;;  %v29569_v42 = vld [vmem:[#allocation37_spill] sm:$0xff] }
 0x74b   : > { %29541 = vst [vmem:[#allocation23_spill] sm:$0xff] %v26846_v22 }
 0x74c   : > { %19192 = vrot.lane.b32.xlu0 %v29543_v29, %s20613_s16  ;;  %v26854_v27 = vpop.permute.xlu1 %18986  ;;  %v29570_v29 = vld [vmem:[#allocation38_spill] sm:$0xff] }
 0x74d   : > { %29544 = vst [vmem:[#allocation100_spill] sm:$0xff] %v26854_v27 }
 0x74e   : > { %v26856_v39 = vpop.permute.xlu0 %18984  ;;  %19198 = vrot.lane.b32.xlu1 %v29546_v14, %s20613_s16  ;;  %v29571_v14 = vcombine.low %v29569_v42, %v29570_v29 }
 0x74f   : > { %29545 = vst [vmem:[#allocation101_spill] sm:$0xff] %v26856_v39  ;;  %v29593_v39 = vld [vmem:[#allocation169_spill] sm:$0xff] }
 0x750   : > { %19196 = vrot.lane.b32.xlu0 %v29547_v32, %s20613_s16  ;;  %v26864_v53 = vpop.permute.xlu1 %18990  ;;  %s20618_s16 = smov [#allocation5]  }
 0x751   : > { %29548 = vst [vmem:[#allocation29_spill] sm:$0xff] %v26864_v53  ;;  %v29591_v53 = vld [vmem:[#allocation72_spill] sm:$0xff] }
 0x752   : > { %v26866_v37 = vpop.permute.xlu0 %18988  ;;  %19234 = vrot.lane.b32.xlu1 %v29552_v58, %s20596_s29 }
 0x753   : > { %29549 = vst [vmem:[#allocation25_spill] sm:$0xff] %v26866_v37 }
 0x754   : > { %19232 = vrot.lane.b32.xlu0 %v29555_v2, %s20596_s29  ;;  %v26876_v55 = vpop.permute.xlu1 %18994  ;;  %v29574_v2 = vld [vmem:[#allocation53_spill] sm:$0xff] }
 0x755   : > { %29556 = vst [vmem:[#allocation106_spill] sm:$0xff] %v26876_v55  ;;  %v29583_v55 = vld [vmem:[#allocation165_spill] sm:$0xff] }
 0x756   : > { %v26878_v33 = vpop.permute.xlu0 %18992  ;;  %19238 = vrot.lane.b32.xlu1 %v29560_v19, %s20596_s29  ;;  %v29575_v19 = vld [vmem:[#allocation123_spill] sm:$0xff] }
 0x757   : > { %29557 = vst [vmem:[#allocation107_spill] sm:$0xff] %v26878_v33  ;;  %v29582_v33 = vld [vmem:[#allocation164_spill] sm:$0xff] }
 0x758   : > { %19236 = vrot.lane.b32.xlu0 %v29563_v35, %s20596_s29  ;;  %v26888_v20 = vpop.permute.xlu1 %18998  ;;  %v29576_v35 = vcombine.low %v29574_v2, %v29575_v19 }
 0x759   : > { %29564 = vst [vmem:[#allocation30_spill] sm:$0xff] %v26888_v20  ;;  %v18424_v20 = vcombine.low %v25922_v24, %v26274_v25  ;;  %v29587_v24 = vcombine.low %v29585_v17, %v29586_v40 }
 0x75a   : > { %v26890_v6 = vpop.permute.xlu0 %18996  ;;  %19242 = vrot.lane.b32.xlu1 %v29568_v62, %s20596_s29 }
 0x75b   : > { %29565 = vst [vmem:[#allocation26_spill] sm:$0xff] %v26890_v6  ;;  %v29579_v6 = vcombine.low %v29577_v52, %v29578_v43 }
 0x75c   : > { %19240 = vrot.lane.b32.xlu0 %v29571_v14, %s20596_s29  ;;  %v26900_v32 = vpop.permute.xlu1 %19002  ;;  %v18456_v14 = vcombine.low %v29350_v49, %v26298_v9  ;;  %v18432_v49 = vrot.slane %v18424_v20, %v21690_v23  ;;  %v18592_v20 = vcombine.low %v29591_v53, %v26304_v54 }
 0x75d   : > { %29572 = vst [vmem:[#allocation135_spill] sm:$0xff] %v26900_v32 }
 0x75e   : > { %v26902_v58 = vpop.permute.xlu0 %19000  ;;  %19246 = vrot.lane.b32.xlu1 %v29576_v35, %s20596_s29  ;;  %v29581_v35 = vld [vmem:[#allocation225_spill] sm:$0xff]  ;;  %v18464_v9 = vrot.slane %v18456_v14, %v21690_v23  ;;  %v29592_v14 = vld [vmem:[#allocation168_spill] sm:$0xff]  ;;  %v18600_v22 = vrot.slane %v18592_v20, %v21690_v23  ;;  %v29605_v20 = vcombine.high %v29553_v38, %v29554_v7  ;;  %v29612_v38 = vcombine.high %v29566_v0, %v29567_v59 }
 0x75f   : > { %29573 = vst [vmem:[#allocation136_spill] sm:$0xff] %v26902_v58  ;;  %v18288_v58 = vcombine.low %v29339_v60, %v26199_v8  ;;  %v18320_v50 = vcombine.low %v29581_v35, %v29580_v28  ;;  %v18696_v8 = vcombine.low %v29353_v34, %v26307_v45  ;;  %v18728_v60 = vcombine.low %v29354_v12, %v26310_v3  ;;  %v29595_v34 = vld [vmem:[#allocation166_spill] sm:$0xff]  ;;  %v29596_v45 = vld [vmem:[#allocation167_spill] sm:$0xff] }
 0x760   : > { %19244 = vrot.lane.b32.xlu0 %v29579_v6, %s20596_s29  ;;  %v26912_v62 = vpop.permute.xlu1 %19006  ;;  %v29584_v6 = vcombine.low %v29582_v33, %v29583_v55  ;;  %v29594_v27 = vcombine.low %v29592_v14, %v29593_v39  ;;  %v29597_v3 = vcombine.low %v29595_v34, %v29596_v45  ;;  %v29613_v7 = vcombine.high %v29569_v42, %v29570_v29 }
 0x761   : > { %v18296_v35 = vrot.slane %v18288_v58, %v21690_v23  ;;  %v18488_v58 = vcombine.low %v18432_v49, %v18464_v9  ;;  %v29618_v42 = vcombine.high %v29582_v33, %v29583_v55  ;;  %v29619_v29 = vcombine.high %v29585_v17, %v29586_v40 }
 0x762   : > { %v26918_v32 = vpop.permute.xlu0 %19004  ;;  %19250 = vrot.lane.b32.xlu1 %v29584_v6, %s20596_s29  ;;  %v18328_v6 = vrot.slane %v18320_v50, %v21690_v23  ;;  %v18704_v50 = vrot.slane %v18696_v8, %v21690_v23  ;;  %v18489_v33 = vcombine.high %v18432_v49, %v18464_v9  ;;  %v29630_v9 = vld [vmem:[#allocation119_spill] sm:$0xff] }
 0x764   : > { %19248 = vrot.lane.b32.xlu0 %v29587_v24, %s20596_s29  ;;  %v26932_v25 = vpop.permute.xlu1 %19042  ;;  %v29590_v24 = vld [vmem:[#allocation71_spill] sm:$0xff]  ;;  %v18352_v54 = vcombine.low %v18296_v35, %v18328_v6  ;;  %v18353_v40 = vcombine.high %v18296_v35, %v18328_v6  ;;  %v29631_v35 = vld [vmem:[#allocation120_spill] sm:$0xff] }
 0x765   : > { %29588 = vst [vmem:[#allocation56_spill] sm:$0xff] %v26932_v25  ;;  %v18560_v37 = vcombine.low %v29590_v24, %v26301_v26  ;;  %v18736_v26 = vrot.slane %v18728_v60, %v21690_v23  ;;  %v29632_v6 = vcombine.low %v29630_v9, %v29631_v35 }
 0x766   : > { %v26940_v28 = vpop.permute.xlu0 %19040  ;;  %19254 = vrot.lane.b32.xlu1 %v29594_v27, %s20596_s29 }
 0x767   : > { %29589 = vst [vmem:[#allocation27_spill] sm:$0xff] %v26940_v28  ;;  %v18568_v53 = vrot.slane %v18560_v37, %v21690_v23  ;;  %v29604_v37 = vcombine.high %v29550_v30, %v29551_v63 }
 0x768   : > { %19252 = vrot.lane.b32.xlu0 %v29597_v3, %s20596_s29  ;;  %v26956_v12 = vpop.permute.xlu1 %19046  ;;  %v18760_v3 = vcombine.low %v18704_v50, %v18736_v26 }
 0x769   : > { %29598 = vst [vmem:[#allocation31_spill] sm:$0xff] %v26956_v12  ;;  %v18624_v47 = vcombine.low %v18568_v53, %v18600_v22 }
 0x76a   : > { %v26960_v24 = vpop.permute.xlu0 %19044  ;;  %19258 = vrot.lane.b32.xlu1 %v18488_v58, %s20596_s29 }
 0x76b   : > { %29599 = vst [vmem:[#allocation138_spill] sm:$0xff] %v26960_v24  ;;  %v29686_v24 = vld [vmem:[#allocation34_spill] sm:$0xff] }
 0x76c   : > { %19256 = vrot.lane.b32.xlu0 %v18352_v54, %s20596_s29  ;;  %v26966_v27 = vpop.permute.xlu1 %19050 }
 0x76d   : > { %29600 = vst [vmem:[#allocation137_spill] sm:$0xff] %v26966_v27 }
 0x76e   : > { %v26968_v12 = vpop.permute.xlu0 %19048  ;;  %19262 = vrot.lane.b32.xlu1 %v18760_v3, %s20596_s29  ;;  %v29609_v3 = vcombine.high %v29561_v41, %v29562_v36  ;;  %v29616_v41 = vcombine.high %v29574_v2, %v29575_v19  ;;  %v29617_v36 = vcombine.high %v29577_v52, %v29578_v43  ;;  %v29622_v43 = vcombine.high %v29592_v14, %v29593_v39 }
 0x76f   : > { %29601 = vst [vmem:[#allocation57_spill] sm:$0xff] %v26968_v12  ;;  %v29623_v52 = vcombine.high %v29595_v34, %v29596_v45  ;;  %v18625_v14 = vcombine.high %v18568_v53, %v18600_v22  ;;  %v29633_v45 = vld [vmem:[#allocation47_spill] sm:$0xff]  ;;  %v29638_v53 = vld [vmem:[#allocation124_spill] sm:$0xff]  ;;  %v29678_v12 = vld [vmem:[#allocation85_spill] sm:$0xff] }
 0x770   : > { %19260 = vrot.lane.b32.xlu0 %v18624_v47, %s20596_s29  ;;  %v26972_v8 = vpop.permute.xlu1 %19054  ;;  %v29608_v47 = vcombine.high %v29558_v1, %v29559_v15  ;;  %s20615_s29 = smov 22  }
 0x771   : > { %29602 = vst [vmem:[#allocation83_spill] sm:$0xff] %v26972_v8 }
 0x772   : > { %v26974_v60 = vpop.permute.xlu0 %19052  ;;  %19298 = vrot.lane.b32.xlu1 %v29604_v37, %s20614_s5 }
 0x773   : > { %29603 = vst [vmem:[#allocation44_spill] sm:$0xff] %v26974_v60  ;;  %v29672_v60 = vld [vmem:[#allocation175_spill] sm:$0xff] }
 0x774   : > { %19296 = vrot.lane.b32.xlu0 %v29605_v20, %s20614_s5  ;;  %v26984_v58 = vpop.permute.xlu1 %19058  ;;  %v18761_v20 = vcombine.high %v18704_v50, %v18736_v26 }
 0x775   : > { %29606 = vst [vmem:[#allocation36_spill] sm:$0xff] %v26984_v58  ;;  %v29669_v58 = vld [vmem:[#allocation177_spill] sm:$0xff] }
 0x776   : > { %v26986_v54 = vpop.permute.xlu0 %19056  ;;  %19302 = vrot.lane.b32.xlu1 %v29608_v47, %s20614_s5  ;;  %v29634_v47 = vld [vmem:[#allocation15_spill] sm:$0xff] }
 0x777   : > { %29607 = vst [vmem:[#allocation43_spill] sm:$0xff] %v26986_v54  ;;  %v29635_v50 = vcombine.low %v29633_v45, %v29634_v47 }
 0x778   : > { %19300 = vrot.lane.b32.xlu0 %v29609_v3, %s20614_s5  ;;  %v26996_v30 = vpop.permute.xlu1 %19062  ;;  %v29639_v3 = vld [vmem:[#allocation125_spill] sm:$0xff] }
 0x779   : > { %29610 = vst [vmem:[#allocation35_spill] sm:$0xff] %v26996_v30  ;;  %v29661_v30 = vld [vmem:[#allocation173_spill] sm:$0xff] }
 0x77a   : > { %v26998_v63 = vpop.permute.xlu0 %19060  ;;  %19306 = vrot.lane.b32.xlu1 %v29612_v38, %s20614_s5  ;;  %v29640_v38 = vcombine.low %v29638_v53, %v29639_v3 }
 0x77b   : > { %29611 = vst [vmem:[#allocation117_spill] sm:$0xff] %v26998_v63 }
 0x77c   : > { %19304 = vrot.lane.b32.xlu0 %v29613_v7, %s20614_s5  ;;  %v27008_v1 = vpop.permute.xlu1 %19066  ;;  %v29641_v7 = vld [vmem:[#allocation49_spill] sm:$0xff] }
 0x77d   : > { %29614 = vst [vmem:[#allocation118_spill] sm:$0xff] %v27008_v1  ;;  %v29657_v1 = vld [vmem:[#allocation131_spill] sm:$0xff] }
 0x77e   : > { %v27010_v15 = vpop.permute.xlu0 %19064  ;;  %19310 = vrot.lane.b32.xlu1 %v29616_v41, %s20614_s5  ;;  %v29642_v41 = vld [vmem:[#allocation40_spill] sm:$0xff] }
 0x77f   : > { %29615 = vst [vmem:[#allocation45_spill] sm:$0xff] %v27010_v15 }
 0x780   : > { %19308 = vrot.lane.b32.xlu0 %v29617_v36, %s20614_s5  ;;  %v27020_v0 = vpop.permute.xlu1 %19070  ;;  %v29643_v36 = vcombine.low %v29641_v7, %v29642_v41 }
 0x782   : > { %v27022_v59 = vpop.permute.xlu0 %19068  ;;  %19314 = vrot.lane.b32.xlu1 %v29618_v42, %s20614_s5 }
 0x784   : > { %19312 = vrot.lane.b32.xlu0 %v29619_v29, %s20614_s5  ;;  %v27032_v2 = vpop.permute.xlu1 %19106 }
 0x785   : > { %29620 = vst [vmem:[#allocation14_spill] sm:$0xff] %v27032_v2  ;;  %v29782_v2 = vld [vmem:[#allocation80_spill] sm:$0xff] }
 0x786   : > { %v27034_v19 = vpop.permute.xlu0 %19104  ;;  %19318 = vrot.lane.b32.xlu1 %v29622_v43, %s20614_s5  ;;  %v29646_v43 = vld [vmem:[#allocation41_spill] sm:$0xff] }
 0x787   : > { %29621 = vst [vmem:[#allocation121_spill] sm:$0xff] %v27034_v19  ;;  %v29781_v19 = vld [vmem:[#allocation114_spill] sm:$0xff] }
 0x788   : > { %19316 = vrot.lane.b32.xlu0 %v29623_v52, %s20614_s5  ;;  %v27044_v55 = vpop.permute.xlu1 %19110  ;;  %v29647_v52 = vld [vmem:[#allocation127_spill] sm:$0xff]  ;;  %v18336_v28 = vcombine.low %v29782_v2, %v29781_v19  ;;  %v29785_v2 = vld [vmem:[#allocation228_spill] sm:$0xff] }
 0x789   : > { %29624 = vst [vmem:[#allocation122_spill] sm:$0xff] %v27044_v55  ;;  %v29683_v55 = vld [vmem:[#allocation69_spill] sm:$0xff] }
 0x78a   : > { %v27046_v37 = vpop.permute.xlu0 %19108  ;;  %19322 = vrot.lane.b32.xlu1 %v18489_v33, %s20614_s5  ;;  %v29648_v33 = vcombine.low %v29646_v43, %v29647_v52  ;;  %v27360_v25 = vrot.slane %v18336_v28, %v21690_v23 }
 0x78b   : > { %29625 = vst [vmem:[#allocation37_spill] sm:$0xff] %v27046_v37 }
 0x78c   : > { %19320 = vrot.lane.b32.xlu0 %v18353_v40, %s20614_s5  ;;  %v27050_v17 = vpop.permute.xlu1 %19114  ;;  %v29649_v40 = vld [vmem:[#allocation126_spill] sm:$0xff] }
 0x78d   : > { %29626 = vst [vmem:[#allocation38_spill] sm:$0xff] %v27050_v17  ;;  %v29677_v17 = vld [vmem:[#allocation17_spill] sm:$0xff] }
 0x78e   : > { %v27052_v39 = vpop.permute.xlu0 %19112  ;;  %19326 = vrot.lane.b32.xlu1 %v18761_v20, %s20614_s5  ;;  %v29650_v20 = vld [vmem:[#allocation51_spill] sm:$0xff]  ;;  %v29679_v27 = vcombine.low %v29677_v17, %v29678_v12 }
 0x78f   : > { %29627 = vst [vmem:[#allocation53_spill] sm:$0xff] %v27052_v39 }
 0x790   : > { %19324 = vrot.lane.b32.xlu0 %v18625_v14, %s20614_s5  ;;  %v27056_v34 = vpop.permute.xlu1 %19118  ;;  %v29651_v14 = vcombine.low %v29649_v40, %v29650_v20  ;;  %s20517_s5 = sshll.u32 %s20618_s16, 4  ;;  %s20518_s5 = int_to_ptr.vmem [resolvable:$false] %s20517_s5 }
 0x791   : > { %29628 = vst [vmem:[#allocation123_spill] sm:$0xff] %v27056_v34  ;;  %v29671_v34 = vld [vmem:[#allocation174_spill] sm:$0xff] }
 0x792   : > { %v27058_v49 = vpop.permute.xlu0 %19116  ;;  %19362 = vrot.lane.b32.xlu1 %v29632_v6, %s20597_s7  ;;  %v29673_v8 = vcombine.low %v29671_v34, %v29672_v60 }
 0x793   : > { %29629 = vst [vmem:[#allocation39_spill] sm:$0xff] %v27058_v49 }
 0x794   : > { %19360 = vrot.lane.b32.xlu0 %v29635_v50, %s20597_s7  ;;  %v27068_v26 = vpop.permute.xlu1 %19122 }
 0x795   : > { %29636 = vst [vmem:[#allocation19_spill] sm:$0xff] %v27068_v26 }
 0x796   : > { %v27070_v22 = vpop.permute.xlu0 %19120  ;;  %19366 = vrot.lane.b32.xlu1 %v29640_v38, %s20597_s7  ;;  %v29654_v38 = vld [vmem:[#allocation50_spill] sm:$0xff] }
 0x797   : > { %29637 = vst [vmem:[#allocation84_spill] sm:$0xff] %v27070_v22  ;;  %v29664_v22 = vld [vmem:[#allocation171_spill] sm:$0xff] }
 0x798   : > { %19364 = vrot.lane.b32.xlu0 %v29643_v36, %s20597_s7  ;;  %v27080_v42 = vpop.permute.xlu1 %19126  ;;  %v29655_v36 = vld [vmem:[#allocation139_spill] sm:$0xff] }
 0x799   : > { %29644 = vst [vmem:[#allocation225_spill] sm:$0xff] %v27080_v42  ;;  %v29656_v15 = vcombine.low %v29654_v38, %v29655_v36 }
 0x79a   : > { %v27082_v29 = vpop.permute.xlu0 %19124  ;;  %19370 = vrot.lane.b32.xlu1 %v29648_v33, %s20597_s7 }
 0x79b   : > { %29645 = vst [vmem:[#allocation164_spill] sm:$0xff] %v27082_v29  ;;  %v29658_v29 = vld [vmem:[#allocation134_spill] sm:$0xff] }
 0x79c   : > { %19368 = vrot.lane.b32.xlu0 %v29651_v14, %s20597_s7  ;;  %v27092_v6 = vpop.permute.xlu1 %19130  ;;  %v29659_v42 = vcombine.low %v29657_v1, %v29658_v29  ;;  %v29660_v14 = vld [vmem:[#allocation172_spill] sm:$0xff] }
 0x79d   : > { %29652 = vst [vmem:[#allocation165_spill] sm:$0xff] %v27092_v6  ;;  %v29662_v6 = vcombine.low %v29660_v14, %v29661_v30 }
 0x79e   : > { %v27094_v50 = vpop.permute.xlu0 %19128  ;;  %19374 = vrot.lane.b32.xlu1 %v29656_v15, %s20597_s7 }
 0x79f   : > { %29653 = vst [vmem:[#allocation162_spill] sm:$0xff] %v27094_v50  ;;  %v29663_v50 = vld [vmem:[#allocation170_spill] sm:$0xff] }
 0x7a0   : > { %19372 = vrot.lane.b32.xlu0 %v29659_v42, %s20597_s7  ;;  %v27104_v33 = vpop.permute.xlu1 %19134  ;;  %v29665_v26 = vcombine.low %v29663_v50, %v29664_v22  ;;  %v29668_v42 = vld [vmem:[#allocation176_spill] sm:$0xff] }
 0x7a1   : > { %v29670_v49 = vcombine.low %v29668_v42, %v29669_v58 }
 0x7a2   : > { %v27106_v63 = vpop.permute.xlu0 %19132  ;;  %19378 = vrot.lane.b32.xlu1 %v29662_v6, %s20597_s7 }
 0x7a4   : > { %19376 = vrot.lane.b32.xlu0 %v29665_v26, %s20597_s7  ;;  %v27116_v15 = vpop.permute.xlu1 %19170  ;;  %v29676_v26 = vcombine.low %v26339_v61, %v26359_v51 }
 0x7a5   : > { %29666 = vst [vmem:[#allocation163_spill] sm:$0xff] %v27116_v15 }
 0x7a6   : > { %v27118_v54 = vpop.permute.xlu0 %19168  ;;  %19382 = vrot.lane.b32.xlu1 %v29670_v49, %s20597_s7 }
 0x7a7   : > { %29667 = vst [vmem:[#allocation71_spill] sm:$0xff] %v27118_v54 }
 0x7a8   : > { %19380 = vrot.lane.b32.xlu0 %v29673_v8, %s20597_s7  ;;  %v27128_v6 = vpop.permute.xlu1 %19174  ;;  %v29682_v8 = vld [vmem:[#allocation68_spill] sm:$0xff] }
 0x7a9   : > { %29674 = vst [vmem:[#allocation72_spill] sm:$0xff] %v27128_v6  ;;  %v29684_v6 = vcombine.low %v29682_v8, %v29683_v55 }
 0x7aa   : > { %v27130_v39 = vpop.permute.xlu0 %19172  ;;  %19386 = vrot.lane.b32.xlu1 %v29676_v26, %s20597_s7 }
 0x7ab   : > { %29675 = vst [vmem:[#allocation168_spill] sm:$0xff] %v27130_v39  ;;  %v29685_v39 = vld [vmem:[#allocation115_spill] sm:$0xff] }
 0x7ac   : > { %19384 = vrot.lane.b32.xlu0 %v29679_v27, %s20597_s7  ;;  %v27140_v49 = vpop.permute.xlu1 %19178  ;;  %v29687_v54 = vcombine.low %v29685_v39, %v29686_v24  ;;  %v29690_v27 = vcombine.high %v29630_v9, %v29631_v35  ;;  %v29698_v35 = vcombine.high %v29646_v43, %v29647_v52  ;;  %v29706_v43 = vcombine.high %v29660_v14, %v29661_v30 }
 0x7ad   : > { %29680 = vst [vmem:[#allocation169_spill] sm:$0xff] %v27140_v49  ;;  %v29707_v52 = vcombine.high %v29663_v50, %v29664_v22  ;;  %v29714_v22 = vcombine.high %v26339_v61, %v26359_v51  ;;  %v29715_v50 = vcombine.high %v29677_v17, %v29678_v12  ;;  %v29722_v51 = vld [vmem:[#allocation20_spill] sm:$0xff] }
 0x7ae   : > { %v27142_v37 = vpop.permute.xlu0 %19176  ;;  %19390 = vrot.lane.b32.xlu1 %v29684_v6, %s20597_s7  ;;  %v29723_v12 = vld [vmem:[#allocation140_spill] sm:$0xff] }
 0x7af   : > { %29681 = vst [vmem:[#allocation166_spill] sm:$0xff] %v27142_v37  ;;  %v29691_v37 = vcombine.high %v29633_v45, %v29634_v47  ;;  %v29724_v17 = vcombine.low %v29722_v51, %v29723_v12 }
 0x7b0   : > { %19388 = vrot.lane.b32.xlu0 %v29687_v54, %s20597_s7  ;;  %v27152_v26 = vpop.permute.xlu1 %19182  ;;  %v29694_v54 = vcombine.high %v29638_v53, %v29639_v3  ;;  %v29702_v53 = vcombine.high %v29654_v38, %v29655_v36  ;;  %v29703_v3 = vcombine.high %v29657_v1, %v29658_v29  ;;  %v29710_v1 = vcombine.high %v29668_v42, %v29669_v58  ;;  %v29726_v42 = vld [vmem:[#allocation48_spill] sm:$0xff]  ;;  %s20616_s7 = smov 26  }
 0x7b1   : > { %29688 = vst [vmem:[#allocation167_spill] sm:$0xff] %v27152_v26  ;;  %v29711_v29 = vcombine.high %v29671_v34, %v29672_v60  ;;  %v29718_v60 = vcombine.high %v29682_v8, %v29683_v55  ;;  %v29719_v34 = vcombine.high %v29685_v39, %v29686_v24  ;;  %v29730_v24 = vld [vmem:[#allocation143_spill] sm:$0xff]  ;;  %v29731_v39 = vld [vmem:[#allocation144_spill] sm:$0xff] }
 0x7b2   : > { %v27154_v15 = vpop.permute.xlu0 %19180  ;;  %19426 = vrot.lane.b32.xlu1 %v29690_v27, %s20615_s29 }
 0x7b3   : > { %29689 = vst [vmem:[#allocation119_spill] sm:$0xff] %v27154_v15  ;;  %v29695_v15 = vcombine.high %v29641_v7, %v29642_v41 }
 0x7b4   : > { %19424 = vrot.lane.b32.xlu0 %v29691_v37, %s20615_s29  ;;  %v27162_v49 = vpop.permute.xlu1 %19186  ;;  %v29699_v37 = vcombine.high %v29649_v40, %v29650_v20 }
 0x7b5   : > { %29692 = vst [vmem:[#allocation120_spill] sm:$0xff] %v27162_v49 }
 0x7b6   : > { %v27164_v6 = vpop.permute.xlu0 %19184  ;;  %19430 = vrot.lane.b32.xlu1 %v29694_v54, %s20615_s29  ;;  %v29732_v54 = vcombine.low %v29730_v24, %v29731_v39 }
 0x7b7   : > { %29693 = vst [vmem:[#allocation47_spill] sm:$0xff] %v27164_v6 }
 0x7b8   : > { %19428 = vrot.lane.b32.xlu0 %v29695_v15, %s20615_s29  ;;  %v27172_v26 = vpop.permute.xlu1 %19190  ;;  %v29725_v15 = vld [vmem:[#allocation54_spill] sm:$0xff] }
 0x7b9   : > { %29696 = vst [vmem:[#allocation15_spill] sm:$0xff] %v27172_v26  ;;  %v29727_v27 = vcombine.low %v29725_v15, %v29726_v42  ;;  %v29747_v26 = vld [vmem:[#allocation147_spill] sm:$0xff] }
 0x7ba   : > { %v27174_v9 = vpop.permute.xlu0 %19188  ;;  %19434 = vrot.lane.b32.xlu1 %v29698_v35, %s20615_s29  ;;  %v29733_v35 = vld [vmem:[#allocation141_spill] sm:$0xff] }
 0x7bb   : > { %29697 = vst [vmem:[#allocation124_spill] sm:$0xff] %v27174_v9  ;;  %v29746_v9 = vld [vmem:[#allocation146_spill] sm:$0xff] }
 0x7bc   : > { %19432 = vrot.lane.b32.xlu0 %v29699_v37, %s20615_s29  ;;  %v27182_v45 = vpop.permute.xlu1 %19194  ;;  %v29734_v37 = vld [vmem:[#allocation142_spill] sm:$0xff] }
 0x7bd   : > { %29700 = vst [vmem:[#allocation125_spill] sm:$0xff] %v27182_v45 }
 0x7be   : > { %v27184_v47 = vpop.permute.xlu0 %19192  ;;  %19438 = vrot.lane.b32.xlu1 %v29702_v53, %s20615_s29  ;;  %v29735_v53 = vcombine.low %v29733_v35, %v29734_v37 }
 0x7bf   : > { %29701 = vst [vmem:[#allocation49_spill] sm:$0xff] %v27184_v47  ;;  %v29744_v47 = vld [vmem:[#allocation186_spill] sm:$0xff] }
 0x7c0   : > { %19436 = vrot.lane.b32.xlu0 %v29703_v3, %s20615_s29  ;;  %v27192_v7 = vpop.permute.xlu1 %19198 }
 0x7c1   : > { %29704 = vst [vmem:[#allocation40_spill] sm:$0xff] %v27192_v7 }
 0x7c2   : > { %v27194_v41 = vpop.permute.xlu0 %19196  ;;  %19442 = vrot.lane.b32.xlu1 %v29706_v43, %s20615_s29  ;;  %v29737_v43 = vld [vmem:[#allocation187_spill] sm:$0xff] }
 0x7c3   : > { %29705 = vst [vmem:[#allocation41_spill] sm:$0xff] %v27194_v41 }
 0x7c4   : > { %19440 = vrot.lane.b32.xlu0 %v29707_v52, %s20615_s29  ;;  %v27202_v40 = vpop.permute.xlu1 %19234  ;;  %v29738_v52 = vld [vmem:[#allocation184_spill] sm:$0xff] }
 0x7c5   : > { %29708 = vst [vmem:[#allocation127_spill] sm:$0xff] %v27202_v40  ;;  %v29780_v40 = vld [vmem:[#allocation231_spill] sm:$0xff] }
 0x7c6   : > { %v27204_v20 = vpop.permute.xlu0 %19232  ;;  %19446 = vrot.lane.b32.xlu1 %v29710_v1, %s20615_s29  ;;  %v17352_v1 = vcombine.low %v29738_v52, %v29737_v43  ;;  %v29752_v52 = vld [vmem:[#allocation189_spill] sm:$0xff] }
 0x7c7   : > { %29709 = vst [vmem:[#allocation126_spill] sm:$0xff] %v27204_v20 }
 0x7c8   : > { %19444 = vrot.lane.b32.xlu0 %v29711_v29, %s20615_s29  ;;  %v27212_v38 = vpop.permute.xlu1 %19238  ;;  %v29739_v29 = vld [vmem:[#allocation188_spill] sm:$0xff] }
 0x7c9   : > { %29712 = vst [vmem:[#allocation51_spill] sm:$0xff] %v27212_v38 }
 0x7ca   : > { %v27214_v30 = vpop.permute.xlu0 %19236  ;;  %19450 = vrot.lane.b32.xlu1 %v29714_v22, %s20615_s29  ;;  %v29740_v22 = vld [vmem:[#allocation185_spill] sm:$0xff] }
 0x7cb   : > { %29713 = vst [vmem:[#allocation50_spill] sm:$0xff] %v27214_v30  ;;  %v29776_v30 = vld [vmem:[#allocation222_spill] sm:$0xff] }
 0x7cc   : > { %19448 = vrot.lane.b32.xlu0 %v29715_v50, %s20615_s29  ;;  %v27222_v36 = vpop.permute.xlu1 %19242  ;;  %v17384_v50 = vcombine.low %v29740_v22, %v29739_v29  ;;  %v29753_v29 = vld [vmem:[#allocation191_spill] sm:$0xff] }
 0x7cd   : > { %29716 = vst [vmem:[#allocation139_spill] sm:$0xff] %v27222_v36  ;;  %v17488_v22 = vcombine.low %v29753_v29, %v29752_v52  ;;  %v29765_v29 = vld [vmem:[#allocation151_spill] sm:$0xff] }
 0x7ce   : > { %v27224_v58 = vpop.permute.xlu0 %19240  ;;  %19454 = vrot.lane.b32.xlu1 %v29718_v60, %s20615_s29  ;;  %v29775_v36 = vld [vmem:[#allocation211_spill] sm:$0xff] }
 0x7cf   : > { %29717 = vst [vmem:[#allocation131_spill] sm:$0xff] %v27224_v58  ;;  %v27290_v58 = vrot.slane %v17384_v50, %v21690_v23  ;;  %v27309_v50 = vrot.slane %v17488_v22, %v21690_v23  ;;  %v29777_v22 = vld [vmem:[#allocation226_spill] sm:$0xff] }
 0x7d0   : > { %19452 = vrot.lane.b32.xlu0 %v29719_v34, %s20615_s29  ;;  %v27232_v14 = vpop.permute.xlu1 %19246  ;;  %v29742_v34 = vld [vmem:[#allocation182_spill] sm:$0xff]  ;;  %v18472_v38 = vcombine.low %v29777_v22, %v29776_v30  ;;  %s20519_s29 = scalar_lea.vmem %s20518_s5, 4096 }
 0x7d1   : > { %29720 = vst [vmem:[#allocation134_spill] sm:$0xff] %v27232_v14  ;;  %29770 = vst [vmem:[#allocation85_spill] sm:$0xff] %v27309_v50 }
 0x7d2   : > { %v27234_v61 = vpop.permute.xlu0 %19244  ;;  %19490 = vrot.lane.b32.xlu1 %v29724_v17, %s20598_s12  ;;  %v29743_v17 = vld [vmem:[#allocation181_spill] sm:$0xff] }
 0x7d3   : > { %29721 = vst [vmem:[#allocation172_spill] sm:$0xff] %v27234_v61 }
 0x7d4   : > { %19488 = vrot.lane.b32.xlu0 %v29727_v27, %s20598_s12  ;;  %v27244_v55 = vpop.permute.xlu1 %19250  ;;  %v17216_v27 = vcombine.low %v29743_v17, %v29742_v34  ;;  %v29756_v34 = vld [vmem:[#allocation200_spill] sm:$0xff] }
 0x7d5   : > { %29728 = vst [vmem:[#allocation173_spill] sm:$0xff] %v27244_v55  ;;  %v29755_v55 = vld [vmem:[#allocation193_spill] sm:$0xff]  ;;  %v29757_v17 = vld [vmem:[#allocation204_spill] sm:$0xff] }
 0x7d6   : > { %v27246_v8 = vpop.permute.xlu0 %19248  ;;  %19494 = vrot.lane.b32.xlu1 %v29732_v54, %s20598_s12  ;;  %v29745_v54 = vld [vmem:[#allocation183_spill] sm:$0xff]  ;;  %v17624_v49 = vcombine.low %v29757_v17, %v29756_v34  ;;  %v27295_v52 = vrot.slane %v17216_v27, %v21690_v23  ;;  %v29767_v17 = vld [vmem:[#allocation148_spill] sm:$0xff] }
 0x7d7   : > { %29729 = vst [vmem:[#allocation170_spill] sm:$0xff] %v27246_v8  ;;  %v17248_v45 = vcombine.low %v29745_v54, %v29744_v47  ;;  %v29750_v8 = vld [vmem:[#allocation145_spill] sm:$0xff] }
 0x7d8   : > { %19492 = vrot.lane.b32.xlu0 %v29735_v53, %s20598_s12  ;;  %v27256_v3 = vpop.permute.xlu1 %19254  ;;  %v29748_v53 = vcombine.low %v29746_v9, %v29747_v26  ;;  %v29758_v47 = vld [vmem:[#allocation201_spill] sm:$0xff]  ;;  %29762 = vst [vmem:[#allocation175_spill] sm:$0xff] %v27295_v52  ;;  %v27315_v27 = vrot.slane %v17624_v49, %v21690_v23 }
 0x7d9   : > { %29736 = vst [vmem:[#allocation171_spill] sm:$0xff] %v27256_v3  ;;  %v29749_v3 = vld [vmem:[#allocation55_spill] sm:$0xff]  ;;  %v29759_v54 = vld [vmem:[#allocation205_spill] sm:$0xff] }
 0x7da   : > { %v27262_v60 = vpop.permute.xlu0 %19252  ;;  %19498 = vrot.lane.b32.xlu1 %v29748_v53, %s20598_s12  ;;  %v29751_v43 = vcombine.low %v29749_v3, %v29750_v8  ;;  %v17656_v61 = vcombine.low %v29759_v54, %v29758_v47  ;;  %v27287_v53 = vrot.slane %v17352_v1, %v21690_v23  ;;  %v29768_v1 = vld [vmem:[#allocation149_spill] sm:$0xff] }
 0x7db   : > { %29741 = vst [vmem:[#allocation176_spill] sm:$0xff] %v27262_v60  ;;  %v29754_v60 = vld [vmem:[#allocation190_spill] sm:$0xff]  ;;  %v29769_v47 = vcombine.low %v29767_v17, %v29768_v1  ;;  %v29791_v17 = vld [vmem:[#allocation224_spill] sm:$0xff] }
 0x7dc   : > { %19496 = vrot.lane.b32.xlu0 %v29751_v43, %s20598_s12  ;;  %v17520_v6 = vcombine.low %v29755_v55, %v29754_v60  ;;  %v27284_v14 = vpop.permute.xlu1 %19258  ;;  %v27298_v55 = vrot.slane %v17248_v45, %v21690_v23  ;;  %v29764_v60 = vld [vmem:[#allocation150_spill] sm:$0xff]  ;;  %v27318_v45 = vrot.slane %v17656_v61, %v21690_v23 }
 0x7dd   : > { %29760 = vst [vmem:[#allocation177_spill] sm:$0xff] %v27284_v14  ;;  %v29766_v34 = vcombine.low %v29764_v60, %v29765_v29  ;;  %v29774_v14 = vld [vmem:[#allocation210_spill] sm:$0xff] }
 0x7de   : > { %v27292_v43 = vpop.permute.xlu0 %19256  ;;  %29763 = vst [vmem:[#allocation17_spill] sm:$0xff] %v27298_v55  ;;  %v27312_v54 = vrot.slane %v17520_v6, %v21690_v23  ;;  %29772 = vst [vmem:[#allocation69_spill] sm:$0xff] %v27318_v45  ;;  %v17268_v49 = vcombine.low %v27295_v52, %v27298_v55  ;;  %v29779_v6 = vld [vmem:[#allocation110_spill] sm:$0xff]  ;;  %v17676_v30 = vcombine.low %v27315_v27, %v27318_v45  ;;  %v29809_v55 = vld [vmem:[#allocation65_spill] sm:$0xff] }
 0x7df   : > { %29761 = vst [vmem:[#allocation174_spill] sm:$0xff] %v27292_v43  ;;  %19502 = vrot.lane.b32.xlu1 %v29766_v34, %s20598_s12  ;;  %v17404_v34 = vcombine.low %v27287_v53, %v27290_v58  ;;  %v18304_v61 = vcombine.low %v29780_v40, %v29779_v6  ;;  %v27348_v40 = vrot.slane %v18472_v38, %v21690_v23  ;;  %v29784_v6 = vld [vmem:[#allocation111_spill] sm:$0xff]  ;;  %v29792_v38 = vld [vmem:[#allocation116_spill] sm:$0xff] }
 0x7e0   : > { %19500 = vrot.lane.b32.xlu0 %v29769_v47, %s20598_s12  ;;  %29771 = vst [vmem:[#allocation68_spill] sm:$0xff] %v27312_v54  ;;  %v27320_v43 = vpop.permute.xlu1 %19262  ;;  %v18440_v47 = vcombine.low %v29775_v36, %v29774_v14  ;;  %v17540_v36 = vcombine.low %v27309_v50, %v27312_v54  ;;  %v18712_v19 = vcombine.low %v29785_v2, %v29784_v6 }
 0x7e1   : > { %29773 = vst [vmem:[#allocation115_spill] sm:$0xff] %v27320_v43  ;;  %v27357_v41 = vrot.slane %v18304_v61, %v21690_v23  ;;  %v18608_v7 = vcombine.low %v29792_v38, %v29791_v17 }
 0x7e2   : > { %v27328_v20 = vpop.permute.xlu0 %19260  ;;  %v27345_v22 = vrot.slane %v18440_v47, %v21690_v23  ;;  %v29790_v47 = vld [vmem:[#allocation227_spill] sm:$0xff]  ;;  %v27373_v61 = vrot.slane %v18712_v19, %v21690_v23 }
 0x7e3   : > { %29778 = vst [vmem:[#allocation34_spill] sm:$0xff] %v27328_v20  ;;  %19506 = vrot.lane.b32.xlu1 %v17404_v34, %s20598_s12  ;;  %v29786_v34 = vld [vmem:[#allocation113_spill] sm:$0xff]  ;;  %v29787_v20 = vld [vmem:[#allocation66_spill] sm:$0xff]  ;;  %v18356_v17 = vcombine.low %v27357_v41, %v27360_v25 }
 0x7e4   : > { %19504 = vrot.lane.b32.xlu0 %v17268_v49, %s20598_s12  ;;  %v27342_v14 = vpop.permute.xlu1 %19298  ;;  %v18744_v49 = vcombine.low %v29787_v20, %v29786_v34  ;;  %v18492_v20 = vcombine.low %v27345_v22, %v27348_v40 }
 0x7e5   : > { %29783 = vst [vmem:[#allocation20_spill] sm:$0xff] %v27342_v14  ;;  %v29789_v14 = vld [vmem:[#allocation223_spill] sm:$0xff] }
 0x7e6   : > { %v27354_v43 = vpop.permute.xlu0 %19296  ;;  %v18576_v1 = vcombine.low %v29790_v47, %v29789_v14  ;;  %v27376_v28 = vrot.slane %v18744_v49, %v21690_v23  ;;  %v29808_v47 = vld [vmem:[#allocation64_spill] sm:$0xff] }
 0x7e7   : > { %29788 = vst [vmem:[#allocation140_spill] sm:$0xff] %v27354_v43  ;;  %19510 = vrot.lane.b32.xlu1 %v17676_v30, %s20598_s12  ;;  %v29807_v43 = vld [vmem:[#allocation89_spill] sm:$0xff]  ;;  %v29810_v52 = vcombine.low %v29808_v47, %v29809_v55 }
 0x7e8   : > { %19508 = vrot.lane.b32.xlu0 %v17540_v36, %s20598_s12  ;;  %v27368_v6 = vpop.permute.xlu1 %19302  ;;  %v27383_v30 = vrot.slane %v18576_v1, %v21690_v23  ;;  %v27386_v36 = vrot.slane %v18608_v7, %v21690_v23  ;;  %v18764_v19 = vcombine.low %v27373_v61, %v27376_v28  ;;  %v29822_v47 = vld [vmem:[#allocation77_spill] sm:$0xff] }
 0x7e9   : > { %29793 = vst [vmem:[#allocation54_spill] sm:$0xff] %v27368_v6  ;;  %v19732_v38 = vsel %vm19728_vm6, %v29810_v52, %v29807_v43  ;;  %v29820_v43 = vld [vmem:[#allocation18_spill] sm:$0xff]  ;;  %v29821_v52 = vld [vmem:[#allocation76_spill] sm:$0xff] }
 0x7ea   : > { %v27378_v2 = vpop.permute.xlu0 %19300  ;;  %v18628_v49 = vcombine.low %v27383_v30, %v27386_v36  ;;  %v29823_v50 = vcombine.low %v29821_v52, %v29822_v47  ;;  %v29834_v52 = vld [vmem:[#allocation32_spill] sm:$0xff] }
 0x7eb   : > { %29794 = vst [vmem:[#allocation48_spill] sm:$0xff] %v27378_v2  ;;  %19514 = vrot.lane.b32.xlu1 %v18492_v20, %s20598_s12  ;;  %v29805_v2 = vld [vmem:[#allocation63_spill] sm:$0xff] }
 0x7ec   : > { %19512 = vrot.lane.b32.xlu0 %v18356_v17, %s20598_s12  ;;  %v27390_v14 = vpop.permute.xlu1 %19306  ;;  %v29799_v17 = vld [vmem:[#allocation112_spill] sm:$0xff]  ;;  %v19734_v45 = vsel %vm19728_vm6, %v29823_v50, %v29820_v43 }
 0x7ed   : > { %29795 = vst [vmem:[#allocation143_spill] sm:$0xff] %v27390_v14  ;;  %v29803_v14 = vld [vmem:[#allocation232_spill] sm:$0xff] }
 0x7ee   : > { %v27394_v34 = vpop.permute.xlu0 %19304  ;;  %v29832_v50 = vld [vmem:[#allocation104_spill] sm:$0xff] }
 0x7ef   : > { %29796 = vst [vmem:[#allocation144_spill] sm:$0xff] %v27394_v34  ;;  %19518 = vrot.lane.b32.xlu1 %v18764_v19, %s20598_s12  ;;  %v29800_v19 = vld [vmem:[#allocation58_spill] sm:$0xff]  ;;  %v29801_v34 = vld [vmem:[#allocation59_spill] sm:$0xff] }
 0x7f0   : > { %19516 = vrot.lane.b32.xlu0 %v18628_v49, %s20598_s12  ;;  %v27400_v23 = vpop.permute.xlu1 %19310  ;;  %v29802_v49 = vcombine.low %v29800_v19, %v29801_v34  ;;  %v29811_v34 = vcombine.high %v29722_v51, %v29723_v12  ;;  %v29813_v19 = vld [vmem:[#allocation74_spill] sm:$0xff]  ;;  %v29825_v12 = vld [vmem:[#allocation79_spill] sm:$0xff]  ;;  %s20617_s12 = smov 30  }
 0x7f1   : > { %29797 = vst [vmem:[#allocation141_spill] sm:$0xff] %v27400_v23  ;;  %v29824_v51 = vld [vmem:[#allocation78_spill] sm:$0xff] }
 0x7f2   : > { %v27402_v7 = vpop.permute.xlu0 %19308  ;;  %v19729_v23 = vsel %vm19728_vm6, %v29802_v49, %v29799_v17  ;;  %v29812_v17 = vld [vmem:[#allocation21_spill] sm:$0xff]  ;;  %v29814_v49 = vld [vmem:[#allocation75_spill] sm:$0xff] }
 0x7f3   : > { %29798 = vst [vmem:[#allocation142_spill] sm:$0xff] %v27402_v7  ;;  %v29804_v7 = vld [vmem:[#allocation62_spill] sm:$0xff]  ;;  %19554 = vrot.lane.b32.xlu1 %v29811_v34, %s20616_s7  ;;  %v29815_v20 = vcombine.low %v29813_v19, %v29814_v49  ;;  %v29826_v34 = vcombine.low %v29824_v51, %v29825_v12 }
 0x7f4   : > { %v29806_v6 = vcombine.low %v29804_v7, %v29805_v2  ;;  %v29818_v7 = vld [vmem:[#allocation61_spill] sm:$0xff] }
 0x7f5   : > { %v19733_v2 = vsel %vm19728_vm6, %v29815_v20, %v29812_v17  ;;  %v19735_v19 = vsel %vm19728_vm6, %v29826_v34, %v26604_v4  ;;  %v29827_v20 = vcombine.high %v29725_v15, %v29726_v42  ;;  %v29828_v17 = vld [vmem:[#allocation12_spill] sm:$0xff]  ;;  %v29835_v4 = vld [vmem:[#allocation102_spill] sm:$0xff]  ;;  %v29838_v42 = vld [vmem:[#allocation109_spill] sm:$0xff] }
 0x7f6   : > { %v19731_v1 = vsel %vm19728_vm6, %v29806_v6, %v29803_v14  ;;  %v29816_v6 = vld [vmem:[#allocation22_spill] sm:$0xff]  ;;  %v29817_v14 = vld [vmem:[#allocation60_spill] sm:$0xff]  ;;  %v29836_v47 = vcombine.low %v29834_v52, %v29835_v4  ;;  %v18629_v4 = vcombine.high %v27383_v30, %v27386_v36 }
 0x7f7   : > { %v29819_v54 = vcombine.low %v29817_v14, %v29818_v7  ;;  %19552 = vrot.lane.b32.xlu0 %v29827_v20, %s20616_s7  ;;  %v29831_v14 = vld [vmem:[#allocation103_spill] sm:$0xff]  ;;  %v29837_v15 = vld [vmem:[#allocation108_spill] sm:$0xff]  ;;  %v27475_v20 = vpop.permute.xlu1 %19314 }
 0x7f8   : > { %v29833_v7 = vcombine.low %v29831_v14, %v29832_v50  ;;  %v19738_v51 = vsel %vm19728_vm6, %v29836_v47, %v26608_v21  ;;  %v29839_v12 = vcombine.low %v29837_v15, %v29838_v42  ;;  %v18357_v21 = vcombine.high %v27357_v41, %v27360_v25  ;;  %v29843_v50 = vld [vmem:[#allocation212_spill] sm:$0xff]  ;;  %v29847_v15 = vld [vmem:[#allocation214_spill] sm:$0xff]  ;;  %v29848_v42 = vld [vmem:[#allocation215_spill] sm:$0xff] }
 0x7f9   : > { %v19730_v55 = vsel %vm19728_vm6, %v29819_v54, %v29816_v6  ;;  %v29829_v54 = vld [vmem:[#allocation13_spill] sm:$0xff]  ;;  %v18493_v14 = vcombine.high %v27345_v22, %v27348_v40  ;;  %v18765_v47 = vcombine.high %v27373_v61, %v27376_v28  ;;  %v29938_v41 = vld [vmem:[#allocation144_spill] sm:$0xff]  ;;  %v29946_v61 = vld [vmem:[#allocation107_spill] sm:$0xff] }
 0x7fa   : > { %v29830_v49 = vcombine.low %v29828_v17, %v29829_v54  ;;  %v19737_v43 = vsel %vm19728_vm6, %v29833_v7, %v26610_v48  ;;  %v19739_v34 = vsel %vm19728_vm6, %v29839_v12, %v26630_v56  ;;  %v29841_v17 = vld [vmem:[#allocation105_spill] sm:$0xff]  ;;  %v29849_v12 = vcombine.low %v29847_v15, %v29848_v42  ;;  %v29857_v15 = vld [vmem:[#allocation10_spill] sm:$0xff]  ;;  %v29858_v42 = vld [vmem:[#allocation8_spill] sm:$0xff] }
 0x7fb   : > { %v29844_v56 = vld [vmem:[#allocation213_spill] sm:$0xff]  ;;  %v29952_v36 = vld [vmem:[#allocation142_spill] sm:$0xff] }
 0x7fc   : > { %v19736_v6 = vsel %vm19728_vm6, %v29830_v49, %v26601_v44  ;;  %v29840_v44 = vld [vmem:[#allocation33_spill] sm:$0xff]  ;;  %v27482_v49 = vpop.permute.xlu0 %19312  ;;  %v29845_v7 = vcombine.low %v29843_v50, %v29844_v56 }
 0x7fd   : > { %v29842_v54 = vcombine.low %v29840_v44, %v29841_v17  ;;  %v19741_v44 = vsel %vm19728_vm6, %v29849_v12, %v26642_v46  ;;  %v29851_v17 = vld [vmem:[#allocation219_spill] sm:$0xff]  ;;  %v19745_v46 = vsel %vm647_vm8, %v19729_v23, %v29857_v15  ;;  %v19746_v12 = vsel %vm647_vm8, %v19730_v55, %v29858_v42  ;;  %v29863_v23 = vld [vmem:[#allocation98_spill] sm:$0xff]  ;;  %v29932_v22 = vld [vmem:[#allocation25_spill] sm:$0xff] }
 0x7fe   : > { %v19742_v52 = vsel %vm19728_vm6, %v29845_v7, %v26640_v16  ;;  %v29850_v16 = vld [vmem:[#allocation218_spill] sm:$0xff]  ;;  %v29864_v55 = vld [vmem:[#allocation11_spill] sm:$0xff] }
 0x7ff   : > { %v19740_v48 = vsel %vm19728_vm6, %v29842_v54, %v26624_v10  ;;  %v29846_v10 = vcombine.high %v29730_v24, %v29731_v39  ;;  %v29852_v54 = vcombine.low %v29850_v16, %v29851_v17  ;;  %v29853_v24 = vld [vmem:[#allocation216_spill] sm:$0xff]  ;;  %v29854_v39 = vld [vmem:[#allocation217_spill] sm:$0xff]  ;;  %v29859_v16 = vld [vmem:[#allocation94_spill] sm:$0xff] }
 0x800   : > { %v29855_v56 = vcombine.low %v29853_v24, %v29854_v39  ;;  %v29860_v17 = vld [vmem:[#allocation93_spill] sm:$0xff]  ;;  %v27528_v24 = vpop.permute.xlu1 %19318 }
 0x801   : > { %19558 = vrot.lane.b32.xlu1 %v29846_v10, %s20616_s7  ;;  %v19743_v50 = vsel %vm19728_vm6, %v29852_v54, %v26654_v57  ;;  %v29856_v10 = vcombine.high %v29733_v35, %v29734_v37  ;;  %v19747_v57 = vsel %vm647_vm8, %v19731_v1, %v29859_v16  ;;  %v19748_v54 = vsel %vm647_vm8, %v19732_v38, %v29860_v17  ;;  %v29862_v35 = vld [vmem:[#allocation95_spill] sm:$0xff]  ;;  %v29865_v38 = vld [vmem:[#allocation81_spill] sm:$0xff] }
 0x802   : > { %v19744_v7 = vsel %vm19728_vm6, %v29855_v56, %v26652_v13  ;;  %v29861_v13 = vld [vmem:[#allocation24_spill] sm:$0xff]  ;;  %v27536_v37 = vsel %vm647_vm8, %v19734_v45, %v29862_v35  ;;  %v27540_v56 = vsel %vm647_vm8, %v19735_v19, %v29863_v23  ;;  %v27544_v1 = vsel %vm647_vm8, %v19736_v6, %v29864_v55  ;;  %v29868_v19 = vld [vmem:[#allocation42_spill] sm:$0xff]  ;;  %v29871_v35 = vld [vmem:[#allocation209_spill] sm:$0xff] }
 0x803   : > { %19556 = vrot.lane.b32.xlu0 %v29856_v10, %s20616_s7  ;;  %v27532_v39 = vsel %vm647_vm8, %v19733_v2, %v29861_v13  ;;  %v27546_v10 = vpop.permute.xlu0 %19316  ;;  %v27550_v15 = vsel %vm647_vm8, %v19737_v43, %v29865_v38  ;;  %v29866_v2 = vld [vmem:[#allocation99_spill] sm:$0xff]  ;;  %v29867_v45 = vld [vmem:[#allocation208_spill] sm:$0xff]  ;;  %v19760_v17 = vsel %vm647_vm8, %v19744_v7, %v29868_v19  ;;  %v29869_v6 = vcombine.high %v29746_v9, %v29747_v26 }
 0x804   : > { %v27554_v42 = vsel %vm647_vm8, %v19738_v51, %v29866_v2  ;;  %v27558_v16 = vsel %vm647_vm8, %v19740_v48, %v29867_v45  ;;  %v29870_v13 = vld [vmem:[#allocation16_spill] sm:$0xff]  ;;  %v27572_v51 = vsel %vm647_vm8, %v19742_v52, %v29871_v35  ;;  %v19777_v55 = vsel %vm19761_vm7, %v19760_v17, %v26824_v18  ;;  %v29876_v2 = vld [vmem:[#allocation129_spill] sm:$0xff] }
 0x805   : > { %19562 = vrot.lane.b32.xlu1 %v29869_v6, %s20616_s7  ;;  %v27568_v43 = vsel %vm647_vm8, %v19739_v34, %v29870_v13  ;;  %v29872_v23 = vld [vmem:[#allocation128_spill] sm:$0xff]  ;;  %v29873_v7 = vcombine.high %v29749_v3, %v29750_v8  ;;  %v19794_v52 = vsel %vm19778_vm9, %v19777_v55, %v26912_v62  ;;  %v19763_v8 = vsel %vm19761_vm7, %v19746_v12, %v29876_v2  ;;  %v29881_v6 = vld [vmem:[#allocation149_spill] sm:$0xff] }
 0x806   : > { %v19759_v48 = vsel %vm647_vm8, %v19743_v50, %v29872_v23  ;;  %v29874_v26 = vld [vmem:[#allocation52_spill] sm:$0xff]  ;;  %v27590_v50 = vpop.permute.xlu1 %19322  ;;  %v29878_v12 = vcombine.high %v29764_v60, %v29765_v29  ;;  %v29884_v29 = vld [vmem:[#allocation41_spill] sm:$0xff]  ;;  %v29885_v23 = vld [vmem:[#allocation115_spill] sm:$0xff] }
 0x807   : > { %19560 = vrot.lane.b32.xlu0 %v29873_v7, %s20616_s7  ;;  %v27584_v9 = vsel %vm647_vm8, %v19741_v44, %v29874_v26  ;;  %v19776_v34 = vsel %vm19761_vm7, %v19759_v48, %v26826_v11  ;;  %v29875_v38 = vld [vmem:[#allocation220_spill] sm:$0xff]  ;;  %v19811_v44 = vsel %vm19795_vm10, %v19794_v52, %v27020_v0  ;;  %v27600_v45 = vpop.permute.xlu0 %19320  ;;  %v29877_v11 = vld [vmem:[#allocation82_spill] sm:$0xff]  ;;  %vm19846_vm8 = vcmask 130048   ;;  %v29889_v2 = vld [vmem:[#allocation121_spill] sm:$0xff] }
 0x808   : > { %v19762_v18 = vsel %vm19761_vm7, %v19745_v46, %v29875_v38  ;;  %v19793_v3 = vsel %vm19778_vm9, %v19776_v34, %v26918_v32  ;;  %v19765_v62 = vsel %vm19761_vm7, %v19748_v54, %v29877_v11  ;;  %v19828_v46 = vsel %vm19812_vm11, %v19811_v44, %v27104_v33  ;;  %v29879_v17 = vld [vmem:[#allocation40_spill] sm:$0xff]  ;;  %v29887_v7 = vld [vmem:[#allocation14_spill] sm:$0xff] }
 0x809   : > { %v19810_v19 = vsel %vm19795_vm10, %v19793_v3, %v27022_v59  ;;  %19566 = vrot.lane.b32.xlu1 %v29878_v12, %s20616_s7  ;;  %v19779_v32 = vsel %vm19778_vm9, %v19762_v18, %v26836_v31  ;;  %v19780_v0 = vsel %vm19778_vm9, %v19763_v8, %v26834_v5  ;;  %v19845_v59 = vsel %vm19829_vm12, %v19828_v46, %v29879_v17  ;;  %v29880_v33 = vld [vmem:[#allocation148_spill] sm:$0xff]  ;;  %v29888_v34 = vld [vmem:[#allocation34_spill] sm:$0xff]  ;;  %v29890_v3 = vld [vmem:[#allocation163_spill] sm:$0xff] }
 0x80a   : > { %v19827_v54 = vsel %vm19812_vm11, %v19810_v19, %v27106_v63  ;;  %v29882_v13 = vcombine.high %v29880_v33, %v29881_v6  ;;  %v29883_v35 = vld [vmem:[#allocation56_spill] sm:$0xff]  ;;  %v19862_v5 = vsel %vm19846_vm8, %v19845_v59, %v29885_v23  ;;  %v19327_v48 = vpop.permute.xlu1 %19326  ;;  %v29886_v63 = vld [vmem:[#allocation27_spill] sm:$0xff]  ;;  %v29891_v19 = vcombine.high %v27287_v53, %v27290_v58  ;;  %v29892_v46 = vld [vmem:[#allocation221_spill] sm:$0xff] }
 0x80b   : > { %v19797_v60 = vsel %vm19795_vm10, %v19780_v0, %v29883_v35  ;;  %v19844_v31 = vsel %vm19829_vm12, %v19827_v54, %v29884_v29  ;;  %v19796_v55 = vsel %vm19795_vm10, %v19779_v32, %v29886_v63  ;;  %v19325_v38 = vpop.permute.xlu0 %19324  ;;  %v27637_v18 = vsel %vm19863_vm13, %v19862_v5, %v19327_v48  ;;  %v29893_v32 = vld [vmem:[#allocation92_spill] sm:$0xff]  ;;  %v29894_v54 = vld [vmem:[#allocation71_spill] sm:$0xff]  ;;  %v29901_v29 = vld [vmem:[#allocation126_spill] sm:$0xff] }
 0x80c   : > { %19564 = vrot.lane.b32.xlu0 %v29882_v13, %s20616_s7  ;;  %v19814_v26 = vsel %vm19812_vm11, %v19797_v60, %v29887_v7  ;;  %v19861_v52 = vsel %vm19846_vm8, %v19844_v31, %v29888_v34  ;;  %v19813_v8 = vsel %vm19812_vm11, %v19796_v55, %v29889_v2  ;;  %v19764_v12 = vsel %vm19761_vm7, %v19747_v57, %v29892_v46  ;;  %v29895_v59 = vld [vmem:[#allocation127_spill] sm:$0xff]  ;;  %v29897_v13 = vld [vmem:[#allocation17_spill] sm:$0xff]  ;;  %v29902_v31 = vld [vmem:[#allocation20_spill] sm:$0xff] }
 0x80d   : > { %v19831_v44 = vsel %vm19829_vm12, %v19814_v26, %v29890_v3  ;;  %v27644_v11 = vsel %vm19863_vm13, %v19861_v52, %v19325_v38  ;;  %19570 = vrot.lane.b32.xlu1 %v29891_v19, %s20616_s7  ;;  %v19782_v0 = vsel %vm19778_vm9, %v19765_v62, %v29893_v32  ;;  %v19830_v17 = vsel %vm19829_vm12, %v19813_v8, %v29894_v54  ;;  %v29896_v6 = vld [vmem:[#allocation175_spill] sm:$0xff]  ;;  %v29903_v48 = vld [vmem:[#allocation138_spill] sm:$0xff]  ;;  %v29905_v26 = vld [vmem:[#allocation140_spill] sm:$0xff] }
 0x80e   : > { %v19848_v33 = vsel %vm19846_vm8, %v19831_v44, %v29895_v59  ;;  %v29898_v35 = vcombine.high %v29896_v6, %v29897_v13  ;;  %v29899_v58 = vld [vmem:[#allocation23_spill] sm:$0xff]  ;;  %v19847_v62 = vsel %vm19846_vm8, %v19830_v17, %v29901_v29  ;;  %v19363_v5 = vpop.permute.xlu1 %19362  ;;  %v29904_v55 = vld [vmem:[#allocation122_spill] sm:$0xff]  ;;  %v29907_v3 = vld [vmem:[#allocation37_spill] sm:$0xff] }
 0x80f   : > { %v19781_v53 = vsel %vm19778_vm9, %v19764_v12, %v29899_v58  ;;  %v29900_v60 = vld [vmem:[#allocation31_spill] sm:$0xff]  ;;  %v19865_v23 = vsel %vm19863_vm13, %v19848_v33, %v29902_v31  ;;  %v19864_v34 = vsel %vm19863_vm13, %v19847_v62, %v29905_v26  ;;  %v19361_v52 = vpop.permute.xlu0 %19360  ;;  %v29906_v2 = vld [vmem:[#allocation46_spill] sm:$0xff]  ;;  %v29908_v19 = vld [vmem:[#allocation72_spill] sm:$0xff] }
 0x810   : > { %19568 = vrot.lane.b32.xlu0 %v29898_v35, %s20616_s7  ;;  %v19799_v57 = vsel %vm19795_vm10, %v19782_v0, %v29900_v60  ;;  %v19798_v63 = vsel %vm19795_vm10, %v19781_v53, %v29903_v48  ;;  %v27677_v38 = vsel %vm19880_vm14, %v19865_v23, %v19363_v5  ;;  %v19767_v8 = vsel %vm19761_vm7, %v27536_v37, %v29906_v2  ;;  %v29909_v32 = vld [vmem:[#allocation69_spill] sm:$0xff]  ;;  %v29911_v54 = vld [vmem:[#allocation130_spill] sm:$0xff]  ;;  %v29912_v59 = vld [vmem:[#allocation100_spill] sm:$0xff] }
 0x811   : > { %v19816_v7 = vsel %vm19812_vm11, %v19799_v57, %v29904_v55  ;;  %v19815_v44 = vsel %vm19812_vm11, %v19798_v63, %v29907_v3  ;;  %v27687_v12 = vsel %vm19880_vm14, %v19864_v34, %v19361_v52  ;;  %v29910_v0 = vcombine.high %v27315_v27, %v29909_v32  ;;  %v29913_v33 = vld [vmem:[#allocation168_spill] sm:$0xff]  ;;  %v29914_v13 = vld [vmem:[#allocation51_spill] sm:$0xff]  ;;  %v29915_v58 = vld [vmem:[#allocation85_spill] sm:$0xff] }
 0x812   : > { %v19833_v46 = vsel %vm19829_vm12, %v19816_v7, %v29908_v19  ;;  %v19766_v17 = vsel %vm19761_vm7, %v27532_v39, %v29911_v54  ;;  %v19784_v37 = vsel %vm19778_vm9, %v19767_v8, %v29912_v59  ;;  %v19832_v6 = vsel %vm19829_vm12, %v19815_v44, %v29913_v33  ;;  %v29916_v53 = vld [vmem:[#allocation68_spill] sm:$0xff]  ;;  %v29918_v27 = vld [vmem:[#allocation101_spill] sm:$0xff]  ;;  %v29920_v62 = vld [vmem:[#allocation50_spill] sm:$0xff]  ;;  %v19367_v48 = vpop.permute.xlu1 %19366 }
 0x813   : > { %19574 = vrot.lane.b32.xlu1 %v29910_v0, %s20616_s7  ;;  %v19850_v35 = vsel %vm19846_vm8, %v19833_v46, %v29914_v13  ;;  %v29917_v60 = vcombine.high %v29915_v58, %v29916_v53  ;;  %v19783_v57 = vsel %vm19778_vm9, %v19766_v17, %v29918_v27  ;;  %v29919_v29 = vld [vmem:[#allocation137_spill] sm:$0xff]  ;;  %v19849_v31 = vsel %vm19846_vm8, %v19832_v6, %v29920_v62  ;;  %v29921_v23 = vld [vmem:[#allocation54_spill] sm:$0xff]  ;;  %v29924_v34 = vld [vmem:[#allocation48_spill] sm:$0xff]  ;;  %v19365_v2 = vpop.permute.xlu0 %19364 }
 0x814   : > { %v19801_v39 = vsel %vm19795_vm10, %v19784_v37, %v29919_v29  ;;  %v19867_v5 = vsel %vm19863_vm13, %v19850_v35, %v29921_v23  ;;  %v29922_v63 = vld [vmem:[#allocation57_spill] sm:$0xff]  ;;  %v29923_v7 = vld [vmem:[#allocation38_spill] sm:$0xff]  ;;  %v19866_v52 = vsel %vm19863_vm13, %v19849_v31, %v29924_v34  ;;  %v29925_v3 = vld [vmem:[#allocation132_spill] sm:$0xff] }
 0x815   : > { %19572 = vrot.lane.b32.xlu0 %v29917_v60, %s20616_s7  ;;  %v19800_v55 = vsel %vm19795_vm10, %v19783_v57, %v29922_v63  ;;  %v19818_v26 = vsel %vm19812_vm11, %v19801_v39, %v29923_v7  ;;  %v27721_v8 = vsel %vm19880_vm14, %v19867_v5, %v19367_v48  ;;  %v19769_v44 = vsel %vm19761_vm7, %v27544_v1, %v29925_v3  ;;  %v29926_v19 = vld [vmem:[#allocation53_spill] sm:$0xff]  ;;  %v29930_v33 = vld [vmem:[#allocation166_spill] sm:$0xff]  ;;  %v29931_v13 = vld [vmem:[#allocation139_spill] sm:$0xff] }
 0x816   : > { %v19817_v46 = vsel %vm19812_vm11, %v19800_v55, %v29926_v19  ;;  %v29927_v32 = vld [vmem:[#allocation169_spill] sm:$0xff]  ;;  %v27731_v54 = vsel %vm19880_vm14, %v19866_v52, %v19365_v2  ;;  %v29934_v58 = vld [vmem:[#allocation131_spill] sm:$0xff]  ;;  %v19371_v57 = vpop.permute.xlu1 %19370  ;;  %v29936_v29 = vld [vmem:[#allocation44_spill] sm:$0xff] }
 0x817   : > { %v19835_v0 = vsel %vm19829_vm12, %v19818_v26, %v29927_v32  ;;  %19578 = vrot.lane.b32.xlu1 %v18493_v14, %s20616_s7  ;;  %v29928_v17 = vld [vmem:[#allocation133_spill] sm:$0xff]  ;;  %v19834_v6 = vsel %vm19829_vm12, %v19817_v46, %v29930_v33  ;;  %v29933_v14 = vld [vmem:[#allocation83_spill] sm:$0xff]  ;;  %v19369_v31 = vpop.permute.xlu0 %19368  ;;  %v29939_v5 = vld [vmem:[#allocation28_spill] sm:$0xff] }
 0x818   : > { %v19768_v59 = vsel %vm19761_vm7, %v27540_v56, %v29928_v17  ;;  %v29929_v37 = vld [vmem:[#allocation29_spill] sm:$0xff]  ;;  %v19852_v35 = vsel %vm19846_vm8, %v19835_v0, %v29931_v13  ;;  %v19851_v53 = vsel %vm19846_vm8, %v19834_v6, %v29934_v58  ;;  %v29935_v60 = vld [vmem:[#allocation143_spill] sm:$0xff]  ;;  %v19771_v48 = vsel %vm19761_vm7, %v27554_v42, %v29939_v5  ;;  %v29943_v3 = vld [vmem:[#allocation106_spill] sm:$0xff] }
 0x819   : > { %v19786_v1 = vsel %vm19778_vm9, %v19769_v44, %v29929_v37  ;;  %19576 = vrot.lane.b32.xlu0 %v18357_v21, %s20616_s7  ;;  %v19785_v40 = vsel %vm19778_vm9, %v19768_v59, %v29932_v22  ;;  %v19869_v27 = vsel %vm19863_vm13, %v19852_v35, %v29935_v60  ;;  %v29937_v62 = vld [vmem:[#allocation123_spill] sm:$0xff]  ;;  %v19868_v21 = vsel %vm19863_vm13, %v19851_v53, %v29938_v41  ;;  %v29942_v52 = vld [vmem:[#allocation9_spill] sm:$0xff]  ;;  %v29945_v46 = vld [vmem:[#allocation134_spill] sm:$0xff] }
 0x81a   : > { %v19803_v56 = vsel %vm19795_vm10, %v19786_v1, %v29933_v14  ;;  %v19802_v39 = vsel %vm19795_vm10, %v19785_v40, %v29936_v29  ;;  %v27765_v23 = vsel %vm19880_vm14, %v19869_v27, %v19371_v57  ;;  %v29940_v63 = vld [vmem:[#allocation39_spill] sm:$0xff]  ;;  %v27775_v34 = vsel %vm19880_vm14, %v19868_v21, %v19369_v31  ;;  %v29948_v0 = vld [vmem:[#allocation172_spill] sm:$0xff]  ;;  %v29949_v59 = vld [vmem:[#allocation141_spill] sm:$0xff]  ;;  %v19375_v1 = vpop.permute.xlu1 %19374 }
 0x81b   : > { %v19820_v25 = vsel %vm19812_vm11, %v19803_v56, %v29937_v62  ;;  %v19819_v55 = vsel %vm19812_vm11, %v19802_v39, %v29940_v63  ;;  %v29941_v7 = vld [vmem:[#allocation167_spill] sm:$0xff]  ;;  %19582 = vrot.lane.b32.xlu1 %v18765_v47, %s20616_s7  ;;  %v19770_v2 = vsel %vm19761_vm7, %v27550_v15, %v29942_v52  ;;  %v19788_v42 = vsel %vm19778_vm9, %v19771_v48, %v29943_v3  ;;  %v29947_v47 = vld [vmem:[#allocation36_spill] sm:$0xff]  ;;  %v19373_v35 = vpop.permute.xlu0 %19372  ;;  %v29953_v40 = vld [vmem:[#allocation90_spill] sm:$0xff] }
 0x81c   : > { %v19837_v26 = vsel %vm19829_vm12, %v19820_v25, %v29941_v7  ;;  %v29944_v44 = vld [vmem:[#allocation119_spill] sm:$0xff]  ;;  %v19787_v28 = vsel %vm19778_vm9, %v19770_v2, %v29946_v61  ;;  %v19805_v15 = vsel %vm19795_vm10, %v19788_v42, %v29947_v47  ;;  %v19773_v14 = vsel %vm19761_vm7, %v27558_v16, %v29953_v40  ;;  %v29954_v56 = vld [vmem:[#allocation84_spill] sm:$0xff]  ;;  %v29956_v57 = vld [vmem:[#allocation154_spill] sm:$0xff] }
 0x81d   : > { %v19836_v19 = vsel %vm19829_vm12, %v19819_v55, %v29944_v44  ;;  %v19854_v32 = vsel %vm19846_vm8, %v19837_v26, %v29945_v46  ;;  %19580 = vrot.lane.b32.xlu0 %v18629_v4, %s20616_s7  ;;  %v29950_v33 = vld [vmem:[#allocation43_spill] sm:$0xff]  ;;  %v29955_v53 = vld [vmem:[#allocation120_spill] sm:$0xff]  ;;  %v29960_v41 = vld [vmem:[#allocation30_spill] sm:$0xff] }
 0x81e   : > { %v19853_v17 = vsel %vm19846_vm8, %v19836_v19, %v29948_v0  ;;  %v19871_v37 = vsel %vm19863_vm13, %v19854_v32, %v29949_v59  ;;  %v19804_v6 = vsel %vm19795_vm10, %v19787_v28, %v29950_v33  ;;  %v29951_v13 = vld [vmem:[#allocation19_spill] sm:$0xff]  ;;  %v19790_v16 = vsel %vm19778_vm9, %v19773_v14, %v29960_v41  ;;  %v29962_v5 = vld [vmem:[#allocation173_spill] sm:$0xff]  ;;  %v29963_v63 = vld [vmem:[#allocation152_spill] sm:$0xff]  ;;  %v19379_v19 = vpop.permute.xlu1 %19378 }
 0x81f   : > { %v19822_v30 = vsel %vm19812_vm11, %v19805_v15, %v29951_v13  ;;  %v19870_v4 = vsel %vm19863_vm13, %v19853_v17, %v29952_v36  ;;  %v27809_v22 = vsel %vm19880_vm14, %v19871_v37, %v19375_v1  ;;  %v19821_v58 = vsel %vm19812_vm11, %v19804_v6, %v29954_v56  ;;  %v29957_v29 = vld [vmem:[#allocation155_spill] sm:$0xff]  ;;  %v29964_v55 = vld [vmem:[#allocation153_spill] sm:$0xff]  ;;  %v29966_v26 = vld [vmem:[#allocation26_spill] sm:$0xff]  ;;  %v19377_v15 = vpop.permute.xlu0 %19376 }
 0x820   : > { %v19839_v60 = vsel %vm19829_vm12, %v19822_v30, %v29955_v53  ;;  %v27819_v27 = vsel %vm19880_vm14, %v19870_v4, %v19373_v35  ;;  %v29958_v39 = vcombine.low %v29956_v57, %v29957_v29  ;;  %v29959_v62 = vld [vmem:[#allocation91_spill] sm:$0xff]  ;;  %v29965_v7 = vcombine.low %v29963_v63, %v29964_v55  ;;  %v29968_v3 = vld [vmem:[#allocation170_spill] sm:$0xff]  ;;  %v29969_v46 = vld [vmem:[#allocation117_spill] sm:$0xff] }
 0x821   : > { %v19772_v25 = vsel %vm19761_vm7, %v27568_v43, %v29959_v62  ;;  %v29961_v21 = vld [vmem:[#allocation47_spill] sm:$0xff]  ;;  %v19856_v48 = vsel %vm19846_vm8, %v19839_v60, %v29962_v5  ;;  %v29970_v61 = vld [vmem:[#allocation225_spill] sm:$0xff]  ;;  %v29971_v17 = vld [vmem:[#allocation96_spill] sm:$0xff] }
 0x822   : > { %19618 = vrot.lane.b32.xlu1 %v29958_v39, %s20599_s13  ;;  %v19838_v31 = vsel %vm19829_vm12, %v19821_v58, %v29961_v21  ;;  %19616 = vrot.lane.b32.xlu0 %v29965_v7, %s20599_s13  ;;  %v19789_v52 = vsel %vm19778_vm9, %v19772_v25, %v29966_v26  ;;  %v29967_v2 = vld [vmem:[#allocation35_spill] sm:$0xff]  ;;  %v19873_v44 = vsel %vm19863_vm13, %v19856_v48, %v27475_v20  ;;  %v29972_v37 = vld [vmem:[#allocation164_spill] sm:$0xff]  ;;  %v29974_v13 = vld [vmem:[#allocation158_spill] sm:$0xff]  ;;  %v19383_v5 = vpop.permute.xlu1 %19382 }
 0x823   : > { %v19807_v43 = vsel %vm19795_vm10, %v19790_v16, %v29967_v2  ;;  %v19855_v42 = vsel %vm19846_vm8, %v19838_v31, %v29968_v3  ;;  %v19806_v32 = vsel %vm19795_vm10, %v19789_v52, %v29969_v46  ;;  %v27853_v0 = vsel %vm19880_vm14, %v19873_v44, %v19379_v19  ;;  %v29973_v1 = vld [vmem:[#allocation15_spill] sm:$0xff]  ;;  %v29977_v36 = vld [vmem:[#allocation97_spill] sm:$0xff]  ;;  %v29979_v40 = vld [vmem:[#allocation124_spill] sm:$0xff] }
 0x824   : > { %v19824_v28 = vsel %vm19812_vm11, %v19807_v43, %v29970_v61  ;;  %v19872_v47 = vsel %vm19863_vm13, %v19855_v42, %v27482_v49  ;;  %v19775_v59 = vsel %vm19761_vm7, %v27572_v51, %v29971_v17  ;;  %v19823_v20 = vsel %vm19812_vm11, %v19806_v32, %v29972_v37  ;;  %v29975_v49 = vld [vmem:[#allocation159_spill] sm:$0xff]  ;;  %v29981_v53 = vld [vmem:[#allocation156_spill] sm:$0xff]  ;;  %v29982_v60 = vld [vmem:[#allocation157_spill] sm:$0xff]  ;;  %v19381_v43 = vpop.permute.xlu0 %19380 }
 0x825   : > { %v19841_v33 = vsel %vm19829_vm12, %v19824_v28, %v29973_v1  ;;  %v27863_v6 = vsel %vm19880_vm14, %v19872_v47, %v19377_v15  ;;  %v29976_v30 = vcombine.low %v29974_v13, %v29975_v49  ;;  %v19774_v4 = vsel %vm19761_vm7, %v27584_v9, %v29977_v36  ;;  %v29978_v35 = vld [vmem:[#allocation135_spill] sm:$0xff]  ;;  %v29984_v62 = vld [vmem:[#allocation136_spill] sm:$0xff]  ;;  %v29985_v41 = vld [vmem:[#allocation118_spill] sm:$0xff] }
 0x826   : > { %v19792_v51 = vsel %vm19778_vm9, %v19775_v59, %v29978_v35  ;;  %v19840_v14 = vsel %vm19829_vm12, %v19823_v20, %v29979_v40  ;;  %v29980_v56 = vld [vmem:[#allocation171_spill] sm:$0xff]  ;;  %v29983_v39 = vcombine.low %v29981_v53, %v29982_v60  ;;  %v19791_v25 = vsel %vm19778_vm9, %v19774_v4, %v29984_v62  ;;  %v29986_v16 = vld [vmem:[#allocation176_spill] sm:$0xff]  ;;  %v29987_v48 = vld [vmem:[#allocation45_spill] sm:$0xff]  ;;  %v19387_v36 = vpop.permute.xlu1 %19386 }
 0x827   : > { %19622 = vrot.lane.b32.xlu1 %v29976_v30, %s20599_s13  ;;  %v19858_v58 = vsel %vm19846_vm8, %v19841_v33, %v29980_v56  ;;  %v19809_v9 = vsel %vm19795_vm10, %v19792_v51, %v29985_v41  ;;  %v19857_v21 = vsel %vm19846_vm8, %v19840_v14, %v29986_v16  ;;  %v19808_v7 = vsel %vm19795_vm10, %v19791_v25, %v29987_v48  ;;  %v29988_v26 = vld [vmem:[#allocation165_spill] sm:$0xff]  ;;  %v29989_v42 = vld [vmem:[#allocation162_spill] sm:$0xff]  ;;  %v29992_v61 = vld [vmem:[#allocation179_spill] sm:$0xff] }
 0x828   : > { %19620 = vrot.lane.b32.xlu0 %v29983_v39, %s20599_s13  ;;  %v19875_v31 = vsel %vm19863_vm13, %v19858_v58, %v27528_v24  ;;  %v19826_v52 = vsel %vm19812_vm11, %v19809_v9, %v29988_v26  ;;  %v19874_v2 = vsel %vm19863_vm13, %v19857_v21, %v27546_v10  ;;  %v19825_v44 = vsel %vm19812_vm11, %v19808_v7, %v29989_v42  ;;  %v29990_v19 = vld [vmem:[#allocation125_spill] sm:$0xff]  ;;  %v29991_v32 = vld [vmem:[#allocation178_spill] sm:$0xff]  ;;  %v29996_v59 = vld [vmem:[#allocation160_spill] sm:$0xff]  ;;  %v19385_v35 = vpop.permute.xlu0 %19384 }
 0x829   : > { %v19892_v3 = vsel %vm19880_vm14, %v19875_v31, %v19383_v5  ;;  %v19843_v46 = vsel %vm19829_vm12, %v19826_v52, %v29990_v19  ;;  %v19891_v24 = vsel %vm19880_vm14, %v19874_v2, %v19381_v43  ;;  %v29993_v28 = vcombine.low %v29991_v32, %v29992_v61  ;;  %v29994_v47 = vld [vmem:[#allocation49_spill] sm:$0xff]  ;;  %v29999_v1 = vld [vmem:[#allocation174_spill] sm:$0xff]  ;;  %v30001_v56 = vld [vmem:[#allocation195_spill] sm:$0xff] }
 0x82a   : > { %v19842_v15 = vsel %vm19829_vm12, %v19825_v44, %v29994_v47  ;;  %v29995_v10 = vld [vmem:[#allocation177_spill] sm:$0xff]  ;;  %v30000_v14 = vld [vmem:[#allocation194_spill] sm:$0xff]  ;;  %v30003_v39 = vld [vmem:[#allocation180_spill] sm:$0xff] }
 0x82b   : > { %19626 = vrot.lane.b32.xlu1 %v29993_v28, %s20599_s13  ;;  %v19860_v17 = vsel %vm19846_vm8, %v19843_v46, %v29995_v10  ;;  %v29997_v37 = vld [vmem:[#allocation161_spill] sm:$0xff]  ;;  %v19859_v33 = vsel %vm19846_vm8, %v19842_v15, %v29999_v1  ;;  %v30002_v58 = vcombine.low %v30000_v14, %v30001_v56  ;;  %v30004_v62 = vld [vmem:[#allocation192_spill] sm:$0xff]  ;;  %v30006_v16 = vld [vmem:[#allocation198_spill] sm:$0xff] }
 0x82c   : > { %v29998_v20 = vcombine.low %v29996_v59, %v29997_v37  ;;  %v19877_v30 = vsel %vm19863_vm13, %v19860_v17, %v27590_v50  ;;  %v19876_v4 = vsel %vm19863_vm13, %v19859_v33, %v27600_v45  ;;  %v30005_v25 = vcombine.low %v30003_v39, %v30004_v62  ;;  %v19391_v50 = vpop.permute.xlu1 %19390  ;;  %v19389_v41 = vpop.permute.xlu0 %19388  ;;  %v30007_v21 = vld [vmem:[#allocation199_spill] sm:$0xff]  ;;  %v30009_v5 = vld [vmem:[#allocation196_spill] sm:$0xff]  ;;  %v30010_v48 = vld [vmem:[#allocation197_spill] sm:$0xff] }
 0x82d   : > { %v19894_v51 = vsel %vm19880_vm14, %v19877_v30, %v19387_v36  ;;  %v19893_v40 = vsel %vm19880_vm14, %v19876_v4, %v19385_v35  ;;  %v19896_v45 = vsel %vm19880_vm14, %v27637_v18, %v19391_v50  ;;  %v19895_v9 = vsel %vm19880_vm14, %v27644_v11, %v19389_v41  ;;  %v30012_v11 = vld [vmem:[#allocation206_spill] sm:$0xff]  ;;  %v30013_v43 = vld [vmem:[#allocation207_spill] sm:$0xff]  ;;  %v30019_v10 = vld [vmem:[#allocation229_spill] sm:$0xff] }
 0x82e   : > { %19624 = vrot.lane.b32.xlu0 %v29998_v20, %s20599_s13  ;;  %v30008_v31 = vcombine.low %v30006_v16, %v30007_v21  ;;  %v30011_v7 = vcombine.low %v30009_v5, %v30010_v48  ;;  %v30014_v42 = vcombine.low %v30012_v11, %v30013_v43  ;;  %v30015_v44 = vld [vmem:[#allocation202_spill] sm:$0xff]  ;;  %v30016_v19 = vld [vmem:[#allocation203_spill] sm:$0xff]  ;;  %v30022_v1 = vld [vmem:[#allocation73_spill] sm:$0xff] }
 0x82f   : > { %19630 = vrot.lane.b32.xlu1 %v30002_v58, %s20599_s13  ;;  %v30017_v46 = vcombine.low %v30015_v44, %v30016_v19  ;;  %v30021_v20 = vld [vmem:[#allocation70_spill] sm:$0xff]  ;;  %v30025_v35 = vld [vmem:[#allocation88_spill] sm:$0xff] }
 0x830   : > { %v19427_v26 = vpop.permute.xlu1 %19426  ;;  %v19425_v52 = vpop.permute.xlu0 %19424  ;;  %v30023_v33 = vcombine.low %v30021_v20, %v30022_v1  ;;  %v30028_v50 = vld [vmem:[#allocation86_spill] sm:$0xff] }
 0x831   : > { %v19899_v2 = vsel %vm19897_vm15, %v27677_v38, %v19427_v26  ;;  %v19898_v18 = vsel %vm19897_vm15, %v27687_v12, %v19425_v52  ;;  %v30018_v12 = vld [vmem:[#allocation67_spill] sm:$0xff]  ;;  %v30031_v52 = vcombine.high %v29963_v63, %v29964_v55 }
 0x832   : > { %19628 = vrot.lane.b32.xlu0 %v30005_v25, %s20599_s13  ;;  %v30020_v17 = vcombine.low %v30018_v12, %v30019_v10  ;;  %v30027_v25 = vld [vmem:[#allocation230_spill] sm:$0xff] }
 0x833   : > { %19634 = vrot.lane.b32.xlu1 %v30008_v31, %s20599_s13  ;;  %v30029_v41 = vcombine.low %v30027_v25, %v30028_v50 }
 0x834   : > { %v19431_v28 = vpop.permute.xlu1 %19430  ;;  %v19429_v47 = vpop.permute.xlu0 %19428 }
 0x835   : > { %v19901_v15 = vsel %vm19897_vm15, %v27721_v8, %v19431_v28  ;;  %v19900_v38 = vsel %vm19897_vm15, %v27731_v54, %v19429_v47  ;;  %v30024_v54 = vld [vmem:[#allocation87_spill] sm:$0xff] }
 0x836   : > { %19632 = vrot.lane.b32.xlu0 %v30011_v7, %s20599_s13  ;;  %v30026_v58 = vcombine.low %v30024_v54, %v30025_v35 }
 0x837   : > { %19638 = vrot.lane.b32.xlu1 %v30014_v42, %s20599_s13 }
 0x838   : > { %v19435_v30 = vpop.permute.xlu1 %19434  ;;  %v19433_v36 = vpop.permute.xlu0 %19432 }
 0x839   : > { %v19903_v4 = vsel %vm19897_vm15, %v27765_v23, %v19435_v30  ;;  %v19902_v8 = vsel %vm19897_vm15, %v27775_v34, %v19433_v36  ;;  %v30030_v34 = vcombine.high %v29956_v57, %v29957_v29  ;;  %v30033_v57 = vcombine.high %v29981_v53, %v29982_v60 }
 0x83a   : > { %19636 = vrot.lane.b32.xlu0 %v30017_v46, %s20599_s13 }
 0x83b   : > { %19642 = vrot.lane.b32.xlu1 %v30020_v17, %s20599_s13 }
 0x83c   : > { %v19439_v31 = vpop.permute.xlu1 %19438  ;;  %v19437_v7 = vpop.permute.xlu0 %19436 }
 0x83d   : > { %v19905_v26 = vsel %vm19897_vm15, %v27809_v22, %v19439_v31  ;;  %v19904_v23 = vsel %vm19897_vm15, %v27819_v27, %v19437_v7  ;;  %v30032_v27 = vcombine.high %v29974_v13, %v29975_v49 }
 0x83e   : > { %19640 = vrot.lane.b32.xlu0 %v30023_v33, %s20599_s13 }
 0x83f   : > { %19646 = vrot.lane.b32.xlu1 %v30026_v58, %s20599_s13 }
 0x840   : > { %v19443_v42 = vpop.permute.xlu1 %19442  ;;  %v19441_v46 = vpop.permute.xlu0 %19440 }
 0x841   : > { %v19907_v28 = vsel %vm19897_vm15, %v27853_v0, %v19443_v42  ;;  %v19906_v22 = vsel %vm19897_vm15, %v27863_v6, %v19441_v46  ;;  %v30034_v0 = vcombine.high %v29991_v32, %v29992_v61  ;;  %v30035_v6 = vcombine.high %v29996_v59, %v29997_v37 }
 0x842   : > { %19644 = vrot.lane.b32.xlu0 %v30029_v41, %s20599_s13  ;;  %s355_s13 = sand.u32 1, %s20575_s24  }
 0x843   : > { %19682 = vrot.lane.b32.xlu1 %v30030_v34, %s20617_s12  ;;  %s20144_s20 = sshll.u32 %s355_s13, 7  ;;  %s28264_s17 = scalar_lea.sflag [#allocation6], %s355_s13 }
 0x844   : > { %v19447_v29 = vpop.permute.xlu1 %19446  ;;  %v19445_v63 = vpop.permute.xlu0 %19444  ;;  %s28147_s21 = scalar_lea.vmem [#allocation5], %s20144_s20 }
 0x845   : > { %v19909_v55 = vsel %vm19897_vm15, %v19892_v3, %v19447_v29  ;;  %v19908_v47 = vsel %vm19897_vm15, %v19891_v24, %v19445_v63  ;;  %v30036_v3 = vcombine.high %v30000_v14, %v30001_v56  ;;  %v30037_v24 = vcombine.high %v30003_v39, %v30004_v62  ;;  %s20015_s9 = sshll.u32 %s28147_s21, 4  ;;  %s28255_s9 = int_to_ptr.vmem [resolvable:$true] %s20015_s9 }
 0x846   : > { %19680 = vrot.lane.b32.xlu0 %v30031_v52, %s20617_s12  ;;  %s20513_s15 = scalar_lea.vmem %s28255_s9, 2048  ;;  %p20520_p1 = scmp.lt.s32.totalorder %s28255_s9, %s20518_s5 }
 0x847   : > { %19686 = vrot.lane.b32.xlu1 %v30032_v27, %s20617_s12  ;;  %p20514_p12 = scmp.ne.s32.totalorder %s28255_s9, %s20513_s15  ;;  %p20521_p2 = scmp.lt.s32.totalorder %s20519_s29, %s20513_s15 }
 0x848   : > { %v19451_v13 = vpop.permute.xlu1 %19450  ;;  %v19449_v49 = vpop.permute.xlu0 %19448 }
 0x849   : > { %v19911_v53 = vsel %vm19897_vm15, %v19894_v51, %v19451_v13  ;;  %v19910_v60 = vsel %vm19897_vm15, %v19893_v40, %v19449_v49  ;;  %v30038_v51 = vcombine.high %v30006_v16, %v30007_v21  ;;  %v30039_v40 = vcombine.high %v30009_v5, %v30010_v48  ;;  %p20515_p13 = pnand %p20514_p12, %p20698_p4  ;;  %p20522_p3 = por %p20521_p2, %p20520_p1 }
 0x84a   : > { %19684 = vrot.lane.b32.xlu0 %v30033_v57, %s20617_s12 }
 0x84b   : > { %19690 = vrot.lane.b32.xlu1 %v30034_v0, %s20617_s12  ;;  %p20516_p0 = pneg %p20515_p13 }
 0x84c   : > { %v19455_v32 = vpop.permute.xlu1 %19454  ;;  %v19453_v61 = vpop.permute.xlu0 %19452 }
 0x84d   : > { %v19913_v59 = vsel %vm19897_vm15, %v19896_v45, %v19455_v32  ;;  %v19912_v37 = vsel %vm19897_vm15, %v19895_v9, %v19453_v61  ;;  %v30040_v45 = vcombine.high %v30012_v11, %v30013_v43  ;;  %v30041_v9 = vcombine.high %v30015_v44, %v30016_v19  ;;  %p20523_p5 = pnand %p20522_p3, %p20516_p0 }
 0x84e   : > { %19688 = vrot.lane.b32.xlu0 %v30035_v6, %s20617_s12 }
 0x84f   : > { %19694 = vrot.lane.b32.xlu1 %v30036_v3, %s20617_s12 }
 0x850   : > { %v19491_v14 = vpop.permute.xlu1 %19490  ;;  %v19489_v56 = vpop.permute.xlu0 %19488 }
 0x851   : > { %v28033_v39 = vsel %vm19914_vm0, %v19899_v2, %v19491_v14  ;;  %v28036_v62 = vsel %vm19914_vm0, %v19898_v18, %v19489_v56  ;;  %v30042_v2 = vcombine.high %v30018_v12, %v30019_v10  ;;  %v30043_v18 = vcombine.high %v30021_v20, %v30022_v1 }
 0x852   : > { %19692 = vrot.lane.b32.xlu0 %v30037_v24, %s20617_s12 }
 0x853   : > { %19698 = vrot.lane.b32.xlu1 %v30038_v51, %s20617_s12 }
 0x854   : > { %v19495_v16 = vpop.permute.xlu1 %19494  ;;  %v19493_v21 = vpop.permute.xlu0 %19492 }
 0x855   : > { %v28047_v5 = vsel %vm19914_vm0, %v19901_v15, %v19495_v16  ;;  %v28050_v48 = vsel %vm19914_vm0, %v19900_v38, %v19493_v21  ;;  %v30044_v15 = vcombine.high %v30024_v54, %v30025_v35  ;;  %v30045_v38 = vcombine.high %v30027_v25, %v30028_v50 }
 0x856   : > { %19696 = vrot.lane.b32.xlu0 %v30039_v40, %s20617_s12 }
 0x857   : > { %19702 = vrot.lane.b32.xlu1 %v30040_v45, %s20617_s12 }
 0x858   : > { %v19499_v11 = vpop.permute.xlu1 %19498  ;;  %v19497_v43 = vpop.permute.xlu0 %19496 }
 0x859   : > { %v28061_v44 = vsel %vm19914_vm0, %v19903_v4, %v19499_v11  ;;  %v28064_v19 = vsel %vm19914_vm0, %v19902_v8, %v19497_v43 }
 0x85a   : > { %19700 = vrot.lane.b32.xlu0 %v30041_v9, %s20617_s12 }
 0x85b   : > { %19706 = vrot.lane.b32.xlu1 %v30042_v2, %s20617_s12 }
 0x85c   : > { %v19503_v12 = vpop.permute.xlu1 %19502  ;;  %v19501_v10 = vpop.permute.xlu0 %19500 }
 0x85d   : > { %v28075_v17 = vsel %vm19914_vm0, %v19905_v26, %v19503_v12  ;;  %v28078_v20 = vsel %vm19914_vm0, %v19904_v23, %v19501_v10 }
 0x85e   : > { %19704 = vrot.lane.b32.xlu0 %v30043_v18, %s20617_s12 }
 0x85f   : > { %19710 = vrot.lane.b32.xlu1 %v30044_v15, %s20617_s12 }
 0x860   : > { %v19507_v1 = vpop.permute.xlu1 %19506  ;;  %v19505_v33 = vpop.permute.xlu0 %19504 }
 0x861   : > { %v28081_v30 = vsel %vm19914_vm0, %v19907_v28, %v19507_v1  ;;  %v28084_v36 = vsel %vm19914_vm0, %v19906_v22, %v19505_v33 }
 0x862   : > { %19708 = vrot.lane.b32.xlu0 %v30045_v38, %s20617_s12 }
 0x864   : > { %v19511_v4 = vpop.permute.xlu1 %19510  ;;  %v19509_v8 = vpop.permute.xlu0 %19508 }
 0x865   : > { %v28087_v54 = vsel %vm19914_vm0, %v19909_v55, %v19511_v4  ;;  %v28090_v35 = vsel %vm19914_vm0, %v19908_v47, %v19509_v8 }
 0x868   : > { %v19515_v58 = vpop.permute.xlu1 %19514  ;;  %v19513_v25 = vpop.permute.xlu0 %19512 }
 0x869   : > { %v28093_v50 = vsel %vm19914_vm0, %v19911_v53, %v19515_v58  ;;  %v28096_v41 = vsel %vm19914_vm0, %v19910_v60, %v19513_v25 }
 0x86c   : > { %v19519_v31 = vpop.permute.xlu1 %19518  ;;  %v19517_v7 = vpop.permute.xlu0 %19516 }
 0x86d   : > { %v28099_v26 = vsel %vm19914_vm0, %v19913_v59, %v19519_v31  ;;  %v28102_v23 = vsel %vm19914_vm0, %v19912_v37, %v19517_v7 }
 0x870   : > { %v19555_v34 = vpop.permute.xlu1 %19554  ;;  %v19553_v52 = vpop.permute.xlu0 %19552 }
 0x871   : > { %v19933_v2 = vsel %vm19931_vm1, %v28033_v39, %v19555_v34  ;;  %v19932_v18 = vsel %vm19931_vm1, %v28036_v62, %v19553_v52 }
 0x874   : > { %v19559_v42 = vpop.permute.xlu1 %19558 }
 0x875   : > { %v19557_v46 = vpop.permute.xlu0 %19556  ;;  %v19935_v39 = vsel %vm19931_vm1, %v28047_v5, %v19559_v42 }
 0x876   : > { %v19934_v62 = vsel %vm19931_vm1, %v28050_v48, %v19557_v46 }
 0x878   : > { %v19563_v28 = vpop.permute.xlu1 %19562 }
 0x879   : > { %v19561_v22 = vpop.permute.xlu0 %19560  ;;  %v19937_v5 = vsel %vm19931_vm1, %v28061_v44, %v19563_v28 }
 0x87a   : > { %v19936_v48 = vsel %vm19931_vm1, %v28064_v19, %v19561_v22 }
 0x87c   : > { %v28104_v27 = vpop.permute.xlu1 %19566 }
 0x87d   : > { %v19939_v44 = vsel %vm19931_vm1, %v28075_v17, %v28104_v27 }
 0x87e   : > { %v28106_v57 = vpop.permute.xlu0 %19564 }
 0x87f   : > { %v19938_v19 = vsel %vm19931_vm1, %v28078_v20, %v28106_v57 }
 0x880   : > { %v28108_v29 = vpop.permute.xlu1 %19570 }
 0x881   : > { %v19941_v17 = vsel %vm19931_vm1, %v28081_v30, %v28108_v29 }
 0x882   : > { %v28110_v63 = vpop.permute.xlu0 %19568 }
 0x883   : > { %v19940_v20 = vsel %vm19931_vm1, %v28084_v36, %v28110_v63 }
 0x885   : > { %v28112_v55 = vpop.permute.xlu1 %19574 }
 0x886   : > { %v19943_v30 = vsel %vm19931_vm1, %v28087_v54, %v28112_v55 }
 0x887   : > { %v28114_v47 = vpop.permute.xlu0 %19572 }
 0x888   : > { %v19942_v36 = vsel %vm19931_vm1, %v28090_v35, %v28114_v47 }
 0x889   : > { %v28116_v0 = vpop.permute.xlu1 %19578 }
 0x88a   : > { %v19945_v35 = vsel %vm19931_vm1, %v28093_v50, %v28116_v0 }
 0x88b   : > { %v28118_v6 = vpop.permute.xlu0 %19576 }
 0x88c   : > { %v19944_v55 = vsel %vm19931_vm1, %v28096_v41, %v28118_v6 }
 0x88d   : > { %v28120_v13 = vpop.permute.xlu1 %19582 }
 0x88e   : > { %v19947_v41 = vsel %vm19931_vm1, %v28099_v26, %v28120_v13 }
 0x88f   : > { %v28122_v49 = vpop.permute.xlu0 %19580 }
 0x890   : > { %v19946_v0 = vsel %vm19931_vm1, %v28102_v23, %v28122_v49 }
 0x894   : > { %v19619_v53 = vpop.permute.xlu1 %19618  ;;  %v19617_v60 = vpop.permute.xlu0 %19616 }
 0x895   : > { %v19950_v11 = vsel %vm19948_vm2, %v19933_v2, %v19619_v53  ;;  %v19949_v15 = vsel %vm19948_vm2, %v19932_v18, %v19617_v60 }
 0x899   : > { %v19623_v3 = vpop.permute.xlu1 %19622 }
 0x89a   : > { %v19621_v24 = vpop.permute.xlu0 %19620  ;;  %v19952_v1 = vsel %vm19948_vm2, %v19935_v39, %v19623_v3 }
 0x89b   : > { %v19951_v4 = vsel %vm19948_vm2, %v19934_v62, %v19621_v24 }
 0x89d   : > { %v19627_v32 = vpop.permute.xlu1 %19626 }
 0x89e   : > { %v19954_v31 = vsel %vm19948_vm2, %v19937_v5, %v19627_v32 }
 0x8a0   : > { %v19625_v61 = vpop.permute.xlu0 %19624 }
 0x8a1   : > { %v19631_v59 = vpop.permute.xlu1 %19630  ;;  %v19953_v34 = vsel %vm19948_vm2, %v19936_v48, %v19625_v61 }
 0x8a2   : > { %v19956_v28 = vsel %vm19948_vm2, %v19939_v44, %v19631_v59 }
 0x8a4   : > { %v19629_v37 = vpop.permute.xlu0 %19628 }
 0x8a5   : > { %v19635_v51 = vpop.permute.xlu1 %19634  ;;  %v19955_v53 = vsel %vm19948_vm2, %v19938_v19, %v19629_v37 }
 0x8a6   : > { %v19958_v27 = vsel %vm19948_vm2, %v19941_v17, %v19635_v51 }
 0x8a8   : > { %v19633_v40 = vpop.permute.xlu0 %19632 }
 0x8a9   : > { %v28124_v14 = vpop.permute.xlu1 %19638  ;;  %v19957_v32 = vsel %vm19948_vm2, %v19940_v20, %v19633_v40 }
 0x8aa   : > { %v19960_v29 = vsel %vm19948_vm2, %v19943_v30, %v28124_v14 }
 0x8ac   : > { %v28126_v56 = vpop.permute.xlu0 %19636 }
 0x8ad   : > { %v28128_v45 = vpop.permute.xlu1 %19642  ;;  %v19959_v51 = vsel %vm19948_vm2, %v19942_v36, %v28126_v56 }
 0x8ae   : > { %v19962_v47 = vsel %vm19948_vm2, %v19945_v35, %v28128_v45 }
 0x8b0   : > { %v28130_v9 = vpop.permute.xlu0 %19640 }
 0x8b1   : > { %v28133_v16 = vpop.permute.xlu1 %19646  ;;  %v19961_v56 = vsel %vm19948_vm2, %v19944_v55, %v28130_v9 }
 0x8b2   : > { %v19964_v6 = vsel %vm19948_vm2, %v19947_v41, %v28133_v16 }
 0x8b4   : > { %v28137_v21 = vpop.permute.xlu0 %19644 }
 0x8b5   : > { %v19683_v43 = vpop.permute.xlu1 %19682  ;;  %v19963_v9 = vsel %vm19948_vm2, %v19946_v0, %v28137_v21 }
 0x8b6   : > { %v19967_v12 = vsel %vm19965_vm3, %v19950_v11, %v19683_v43 }
 0x8b7   : > { %19984 = vst.msk [vmem:[%s28147_s21 + $0x8] sm:$0xff] %vm19982_vm4, %v19967_v12 }
 0x8b8   : > { %v19681_v38 = vpop.permute.xlu0 %19680 }
 0x8b9   : > { %v19966_v10 = vsel %vm19965_vm3, %v19949_v15, %v19681_v38  ;;  %v19687_v33 = vpop.permute.xlu1 %19686 }
 0x8ba   : > { %19983 = vst.msk [vmem:[%s28147_s21] sm:$0xff] %vm19982_vm4, %v19966_v10  ;;  %v19969_v58 = vsel %vm19965_vm3, %v19952_v1, %v19687_v33 }
 0x8bb   : > { %19986 = vst.msk [vmem:[%s28147_s21 + $0x18] sm:$0xff] %vm19982_vm4, %v19969_v58 }
 0x8bc   : > { %v19685_v8 = vpop.permute.xlu0 %19684 }
 0x8bd   : > { %v19968_v25 = vsel %vm19965_vm3, %v19951_v4, %v19685_v8  ;;  %v19691_v7 = vpop.permute.xlu1 %19690 }
 0x8be   : > { %19985 = vst.msk [vmem:[%s28147_s21 + $0x10] sm:$0xff] %vm19982_vm4, %v19968_v25  ;;  %v19971_v42 = vsel %vm19965_vm3, %v19954_v31, %v19691_v7 }
 0x8bf   : > { %19988 = vst.msk [vmem:[%s28147_s21 + $0x28] sm:$0xff] %vm19982_vm4, %v19971_v42 }
 0x8c0   : > { %v19689_v52 = vpop.permute.xlu0 %19688 }
 0x8c1   : > { %v19970_v46 = vsel %vm19965_vm3, %v19953_v34, %v19689_v52  ;;  %v19695_v22 = vpop.permute.xlu1 %19694 }
 0x8c2   : > { %19987 = vst.msk [vmem:[%s28147_s21 + $0x20] sm:$0xff] %vm19982_vm4, %v19970_v46  ;;  %v19973_v3 = vsel %vm19965_vm3, %v19956_v28, %v19695_v22 }
 0x8c3   : > { %19990 = vst.msk [vmem:[%s28147_s21 + $0x38] sm:$0xff] %vm19982_vm4, %v19973_v3 }
 0x8c4   : > { %v19693_v60 = vpop.permute.xlu0 %19692 }
 0x8c5   : > { %v19972_v24 = vsel %vm19965_vm3, %v19955_v53, %v19693_v60  ;;  %v19699_v57 = vpop.permute.xlu1 %19698 }
 0x8c6   : > { %19989 = vst.msk [vmem:[%s28147_s21 + $0x30] sm:$0xff] %vm19982_vm4, %v19972_v24  ;;  %v19975_v59 = vsel %vm19965_vm3, %v19958_v27, %v19699_v57 }
 0x8c7   : > { %19992 = vst.msk [vmem:[%s28147_s21 + $0x48] sm:$0xff] %vm19982_vm4, %v19975_v59 }
 0x8c8   : > { %v19697_v61 = vpop.permute.xlu0 %19696 }
 0x8c9   : > { %v19974_v37 = vsel %vm19965_vm3, %v19957_v32, %v19697_v61  ;;  %v19703_v63 = vpop.permute.xlu1 %19702 }
 0x8ca   : > { %19991 = vst.msk [vmem:[%s28147_s21 + $0x40] sm:$0xff] %vm19982_vm4, %v19974_v37  ;;  %v19977_v2 = vsel %vm19965_vm3, %v19960_v29, %v19703_v63 }
 0x8cb   : > { %19994 = vst.msk [vmem:[%s28147_s21 + $0x58] sm:$0xff] %vm19982_vm4, %v19977_v2 }
 0x8cc   : > { %v19701_v40 = vpop.permute.xlu0 %19700 }
 0x8cd   : > { %v19976_v54 = vsel %vm19965_vm3, %v19959_v51, %v19701_v40  ;;  %v19707_v14 = vpop.permute.xlu1 %19706 }
 0x8ce   : > { %19993 = vst.msk [vmem:[%s28147_s21 + $0x50] sm:$0xff] %vm19982_vm4, %v19976_v54  ;;  %v19979_v11 = vsel %vm19965_vm3, %v19962_v47, %v19707_v14 }
 0x8cf   : > { %19996 = vst.msk [vmem:[%s28147_s21 + $0x68] sm:$0xff] %vm19982_vm4, %v19979_v11 }
 0x8d0   : > { %v19705_v18 = vpop.permute.xlu0 %19704 }
 0x8d1   : > { %v19978_v50 = vsel %vm19965_vm3, %v19961_v56, %v19705_v18  ;;  %v19711_v45 = vpop.permute.xlu1 %19710 }
 0x8d2   : > { %19995 = vst.msk [vmem:[%s28147_s21 + $0x60] sm:$0xff] %vm19982_vm4, %v19978_v50  ;;  %v19981_v13 = vsel %vm19965_vm3, %v19964_v6, %v19711_v45 }
 0x8d3   : > { %19998 = vst.msk [vmem:[%s28147_s21 + $0x78] sm:$0xff] %vm19982_vm4, %v19981_v13 }
 0x8d4   : > { %v19709_v26 = vpop.permute.xlu0 %19708 }
 0x8d5   : > { %v19980_v23 = vsel %vm19965_vm3, %v19963_v9, %v19709_v26 }
 0x8d6   : > { %19997 = vst.msk [vmem:[%s28147_s21 + $0x70] sm:$0xff] %vm19982_vm4, %v19980_v23 }
 0x8d7   : > { %20526 = shalt.err (!%p20523_p5)
}
 0x8d8   : > { %s20527_s7 = scalar_lea.hbm %s28250_s19, 2048  ;;  %s20531_s20 = scalar_lea.hbm %s28317_s6, 4096 }
 0x8d9   : > { %p20528_p6 = scmp.ne.s32.totalorder %s28250_s19, %s20527_s7  ;;  %p20532_p10 = scmp.lt.u32.totalorder %s28250_s19, %s28317_s6 }
 0x8da   : > { %p20533_p11 = scmp.lt.u32.totalorder %s20531_s20, %s20527_s7  ;;  %p20535_p13 = scmp.lt.u32.totalorder %s20527_s7, %s28250_s19 }
 0x8db   : > { %p20529_p7 = pnand %p20528_p6, %p20698_p4 }
 0x8dc   : > { %p20534_p12 = por %p20533_p11, %p20532_p10 }
 0x8dd   : > { %p20530_p9 = pneg %p20529_p7 }
 0x8de   : > { %p20536_p0 = por %p20535_p13, %p20534_p12 }
 0x8e0   : > { %p20537_p1 = pnand %p20536_p0, %p20530_p9 }
 0x8e2   : > { %20540 = shalt.err (!%p20537_p1)
}
 0x8e3   : > { %s20619_s26 = smov 128  }
 0x8e4   : > { %20380 = dma.vmem_to_hbm [thread:$0]  (%p20698_p4), %s28255_s9, 2048, %s28250_s19, %s28264_s17, %s20619_s26, %s20619_s26, %s20594_s18  }
 0x8e5 PF: > { %p20387_p2 = scmp.ge.s32.totalorder %s20591_s28, 2  ;;  %s20030_s14 = sand.u32 1, %s20571_s23  }
 0x8e6   : > { %s20031_s15 = scalar_lea.sflag [#allocation6], %s20030_s14 }
 0x8e7   : > { %p20383_p3 = pnand %p20387_p2, %p20705_p8 }
 0x8e9   : > { %20566 = dma.done.wait (!%p20383_p3), %s20031_s15, 2048  }
 0x8ea   : > { %20568 = vsyncadd (!%p20383_p3), %s20031_s15, 4294965248  ;;  %s20_s28 = sadd.s32 1, %s20591_s28   ;;  %s30046_s23 = smov %s20575_s24 }
 0x8eb   : > { %p17_p5 = scmp.ge.s32.totalorder %s20_s28, 4   ;;  %s30047_s24 = smov %s20579_s25 }
 0x8ec   : > { %s30048_s25 = smov %s20711_s11  ;;  %s30049_s26 = smov %s20587_s27 }
 0x8ed   : > { %s30050_s27 = smov %s30052_s30  ;;  %19 = sbr.rel (!%p17_p5) target bundleno = 6 (0x6), region = 89 }
 0x8f4   :  { %20036 = vsyncpa [#allocation6], 1 }
 0x8f5   :  { %20038 = vsyncpa [#allocation6 + $0x1], 1 }

</bundles_post_ra>
